<compile_context>
chip_gen: v6e
topology: v6e:2x2x1
jax: 0.10.0
libtpu: 0.0.40
codegen_flags: <defaults>
</compile_context>

<pallas_src>
import functools

import jax
import jax.numpy as jnp
from jax.experimental import pallas as pl
from jax.experimental.pallas import tpu as pltpu


def _similarity_kernel(qT_ref, vT_ref, wT_ref, o_ref, *, tb: int):
    """Processes `tb` batch rows per grid step.

    qT_ref: (tb, V, 1) == query_vector[b].T   (feature dim V on sublanes)
    vT_ref: (tb, V, N) == vectors[b].T
    wT_ref: (V, V)     == W.T (same block index every step -> stays resident)
    o_ref : (tb, N)    output softmax weights
    """
    wT = wT_ref[...].astype(jnp.float32)                           # (V, V)

    # Small static unroll over the batch rows of this tile; every op below is a
    # plain 2-D MXU matmul or a lane/sublane reduction (no in-kernel relayouts).
    for b in range(tb):
        qT = qT_ref[b].astype(jnp.float32)                         # (V, 1)
        vT = vT_ref[b].astype(jnp.float32)                         # (V, N)

        # (query @ W).T and (vectors @ W).T via native-orientation matmuls on W.T.
        qwT = jnp.dot(wT, qT, preferred_element_type=jnp.float32)  # (V, 1)
        vwT = jnp.dot(wT, vT, preferred_element_type=jnp.float32)  # (V, N)

        # p = softmax(query @ W, dim=1). dim=1 of (B, 1, V) is the singleton
        # query axis == axis 1 here (identically 1.0, computed faithfully).
        p_exp = jnp.exp(qwT - jnp.max(qwT, axis=1, keepdims=True))
        pT = p_exp * pl.reciprocal(
            jnp.sum(p_exp, axis=1, keepdims=True), approx=False)   # (V, 1)

        # q = softmax(vectors @ W, dim=1). dim=1 of (B, N, V) is the
        # num_vectors axis == the lane axis here.
        q_max = jnp.max(vwT, axis=1, keepdims=True)                # (V, 1)
        q_sh = vwT - q_max
        q_exp = jnp.exp(q_sh)                                      # (V, N)
        q_den = jnp.sum(q_exp, axis=1, keepdims=True)              # (V, 1)
        q_sm = q_exp * pl.reciprocal(q_den, approx=False)          # (V, N)
        log_q = q_sh - jnp.log(q_den)                              # (V, N)

        # F.kl_div(p, q, reduction='none') = q * (log(q) - p); .sum(dim=2) is a
        # sum over V == the sublane axis in this layout.
        kl = q_sm * (log_q - pT)                                   # (V, N)
        kl_sum = jnp.sum(kl, axis=0, keepdims=True)                # (1, N)

        # weights = softmax(-kl_sum, dim=1) over the N candidates (lane axis).
        s = -kl_sum
        e = jnp.exp(s - jnp.max(s, axis=1, keepdims=True))
        w_row = e * pl.reciprocal(
            jnp.sum(e, axis=1, keepdims=True), approx=False)       # (1, N)

        o_ref[pl.ds(b, 1), :] = w_row.astype(o_ref.dtype)


def similarity_model_forward(query_vector, vectors, weights, *, tb=None):
    """Pallas TPU implementation of SimilarityModel.forward.

    query_vector: (B, 1, V), vectors: (B, N, V), weights: (V, V) -> (B, N) f32.
    """
    B, one, V = query_vector.shape
    _, N, _ = vectors.shape
    assert one == 1
    assert vectors.shape == (B, N, V)
    assert weights.shape == (V, V)

    # Batch tile: multiple of 8 (sublanes) so the (tb, N) output block is
    # unmasked; for real shapes size tb against VMEM (halve on v7x's 64 MiB).
    if tb is None:
        tb = min(B, 8)
    assert B % tb == 0, "batch must be divisible by the batch tile"

    # Layout plumbing in plain XLA (cheap): put the feature axis V on sublanes
    # so every in-kernel reduction is a native lane/sublane reduction and the
    # output is written lane-dense in N.
    qT = jnp.swapaxes(query_vector, 1, 2)   # (B, V, 1)
    vT = jnp.swapaxes(vectors, 1, 2)        # (B, V, N)
    wT = jnp.transpose(weights)             # (V, V)

    kernel = functools.partial(_similarity_kernel, tb=tb)
    flops = 2 * B * V * V * (N + 1) + 10 * B * V * N
    transcendentals = B * V * (N + 2) + 2 * B * N
    bytes_accessed = 4 * (B * V * N + B * V + V * V + B * N)

    out = pl.pallas_call(
        kernel,
        out_shape=jax.ShapeDtypeStruct((B, N), jnp.float32),
        grid_spec=pltpu.PrefetchScalarGridSpec(
            num_scalar_prefetch=0,
            grid=(B // tb,),                                   # batch-tiled, pipelined
            in_specs=[
                pl.BlockSpec((tb, V, 1), lambda i: (i, 0, 0)),
                pl.BlockSpec((tb, V, N), lambda i: (i, 0, 0)),
                pl.BlockSpec((V, V), lambda i: (0, 0)),        # W.T stays resident
            ],
            out_specs=pl.BlockSpec((tb, N), lambda i: (i, 0)),
        ),
        compiler_params=pltpu.CompilerParams(
            # Independent batch tiles -> shard across TensorCores on v7x.
            dimension_semantics=("parallel",),
            # Explicit, generation-safe cap (< 64 MiB physical on v7x).
            vmem_limit_bytes=48 * 1024 * 1024,
        ),
        cost_estimate=pl.CostEstimate(
            flops=flops,
            transcendentals=transcendentals,
            bytes_accessed=bytes_accessed,
        ),
    )(qT, vT, wT)
    return out


def _reference(query_vector, vectors, weights):
    # Direct transcription of the PyTorch forward in plain JAX.
    p = jax.nn.softmax(query_vector @ weights, axis=1)        # (B, 1, V)
    q = jax.nn.softmax(vectors @ weights, axis=1)             # (B, N, V)
    kl = q * (jnp.log(q) - p)                                 # F.kl_div(p, q, 'none')
    kl_sum = jnp.sum(kl, axis=2)                              # (B, N)
    return jax.nn.softmax(-kl_sum, axis=1)                    # (B, N)


if __name__ == "__main__":
    # Small shapes implied by the forward: batch=16, num_vectors=8,
    # vector_size=128 (lane-aligned).
    B, N, V = 16, 8, 128

    key = jax.random.PRNGKey(0)
    kq, kv, kw = jax.random.split(key, 3)
    query_vector = jax.random.normal(kq, (B, 1, V), dtype=jnp.float32)
    vectors = jax.random.normal(kv, (B, N, V), dtype=jnp.float32)
    weights = jax.random.normal(kw, (V, V), dtype=jnp.float32)

    out = similarity_model_forward(query_vector, vectors, weights)
    jax.block_until_ready(out)

    ref = _reference(query_vector, vectors, weights)
    assert out.shape == (B, N), out.shape
    assert bool(jnp.allclose(out, ref, rtol=1e-3, atol=1e-5)), (out, ref)
    assert bool(jnp.allclose(jnp.sum(out, axis=1), 1.0, atol=1e-5))

    print("KERNEL_OK")
</pallas_src>

<mosaic_0001>
module attributes {stable_mosaic.version = 11 : i64} {
  func.func @_similarity_kernel(%arg0: i32, %arg1: memref<8x128x1xf32, #tpu.memory_space<vmem>>, %arg2: memref<8x128x8xf32, #tpu.memory_space<vmem>>, %arg3: memref<128x128xf32, #tpu.memory_space<vmem>>, %arg4: memref<8x8xf32, #tpu.memory_space<vmem>>) attributes {dimension_semantics = [#tpu.dimension_semantics<parallel>], iteration_bounds = array<i64: 2>, scalar_prefetch = 0 : i64, scratch_operands = 0 : i64, tpu.core_type = #tpu.core_type<tc>, window_params = [{transform_indices = @transform_0, window_bounds = array<i64: 8, 128, 1>}, {transform_indices = @transform_1, window_bounds = array<i64: 8, 128, 8>}, {pipeline_mode = #tpu.pipeline_mode<synchronous>, transform_indices = @transform_2, window_bounds = array<i64: 128, 128>}, {transform_indices = @transform_3, window_bounds = array<i64: 8, 8>}]} {
    %c0 = arith.constant 0 : index
    %c0_0 = arith.constant 0 : index
    %0 = vector.load %arg3[%c0, %c0_0] : memref<128x128xf32, #tpu.memory_space<vmem>>, vector<128x128xf32>
    %c0_1 = arith.constant 0 : index
    %c0_2 = arith.constant 0 : index
    %c0_3 = arith.constant 0 : index
    %1 = vector.load %arg1[%c0_1, %c0_2, %c0_3] : memref<8x128x1xf32, #tpu.memory_space<vmem>>, vector<1x128x1xf32>
    %2 = vector.shape_cast %1 : vector<1x128x1xf32> to vector<128x1xf32>
    %c0_4 = arith.constant 0 : index
    %c0_5 = arith.constant 0 : index
    %c0_6 = arith.constant 0 : index
    %3 = vector.load %arg2[%c0_4, %c0_5, %c0_6] : memref<8x128x8xf32, #tpu.memory_space<vmem>>, vector<1x128x8xf32>
    %4 = vector.shape_cast %3 : vector<1x128x8xf32> to vector<128x8xf32>
    %cst = arith.constant dense<0.000000e+00> : vector<128x1xf32>
    %5 = tpu.matmul %0, %2, %cst {dimension_numbers = #tpu.dot_dimension_numbers<[1], [0], [0], [1], [0, 0, 1, 1], [], []>} : vector<128x128xf32>, vector<128x1xf32>, vector<128x1xf32> -> vector<128x1xf32>
    %cst_7 = arith.constant dense<0.000000e+00> : vector<128x8xf32>
    %6 = tpu.matmul %0, %4, %cst_7 {dimension_numbers = #tpu.dot_dimension_numbers<[1], [0], [0], [1], [0, 0, 1, 1], [], []>} : vector<128x128xf32>, vector<128x8xf32>, vector<128x8xf32> -> vector<128x8xf32>
    %cst_8 = arith.constant dense<0xFF800000> : vector<128xf32>
    %7 = vector.multi_reduction <maximumf>, %5, %cst_8 [1] : vector<128x1xf32> to vector<128xf32>
    %8 = vector.shape_cast %7 : vector<128xf32> to vector<128x1xf32>
    %9 = arith.subf %5, %8 : vector<128x1xf32>
    %10 = math.exp %9 : vector<128x1xf32>
    %cst_9 = arith.constant dense<0.000000e+00> : vector<128xf32>
    %11 = vector.multi_reduction <add>, %10, %cst_9 [1] : vector<128x1xf32> to vector<128xf32>
    %12 = vector.shape_cast %11 : vector<128xf32> to vector<128x1xf32>
    %13 = tpu.reciprocal %12 : vector<128x1xf32> -> vector<128x1xf32>
    %14 = arith.mulf %10, %13 : vector<128x1xf32>
    %cst_10 = arith.constant dense<0xFF800000> : vector<128xf32>
    %15 = vector.multi_reduction <maximumf>, %6, %cst_10 [1] : vector<128x8xf32> to vector<128xf32>
    %16 = vector.shape_cast %15 : vector<128xf32> to vector<128x1xf32>
    %17 = vector.broadcast %16 : vector<128x1xf32> to vector<128x8xf32>
    %18 = arith.subf %6, %17 : vector<128x8xf32>
    %19 = math.exp %18 : vector<128x8xf32>
    %cst_11 = arith.constant dense<0.000000e+00> : vector<128xf32>
    %20 = vector.multi_reduction <add>, %19, %cst_11 [1] : vector<128x8xf32> to vector<128xf32>
    %21 = vector.shape_cast %20 : vector<128xf32> to vector<128x1xf32>
    %22 = tpu.reciprocal %21 : vector<128x1xf32> -> vector<128x1xf32>
    %23 = vector.broadcast %22 : vector<128x1xf32> to vector<128x8xf32>
    %24 = arith.mulf %19, %23 : vector<128x8xf32>
    %25 = math.log %21 : vector<128x1xf32>
    %26 = vector.broadcast %25 : vector<128x1xf32> to vector<128x8xf32>
    %27 = arith.subf %18, %26 : vector<128x8xf32>
    %28 = vector.broadcast %14 : vector<128x1xf32> to vector<128x8xf32>
    %29 = arith.subf %27, %28 : vector<128x8xf32>
    %30 = arith.mulf %24, %29 : vector<128x8xf32>
    %cst_12 = arith.constant dense<0.000000e+00> : vector<8xf32>
    %31 = vector.multi_reduction <add>, %30, %cst_12 [0] : vector<128x8xf32> to vector<8xf32>
    %32 = vector.shape_cast %31 : vector<8xf32> to vector<1x8xf32>
    %cst_13 = arith.constant 0.000000e+00 : f32
    %33 = vector.broadcast %cst_13 : f32 to vector<1x8xf32>
    %34 = arith.subf %33, %32 : vector<1x8xf32>
    %cst_14 = arith.constant dense<0xFF800000> : vector<1xf32>
    %35 = vector.multi_reduction <maximumf>, %34, %cst_14 [1] : vector<1x8xf32> to vector<1xf32>
    %36 = vector.shape_cast %35 : vector<1xf32> to vector<1x1xf32>
    %37 = vector.broadcast %36 : vector<1x1xf32> to vector<1x8xf32>
    %38 = arith.subf %34, %37 : vector<1x8xf32>
    %39 = math.exp %38 : vector<1x8xf32>
    %cst_15 = arith.constant dense<0.000000e+00> : vector<1xf32>
    %40 = vector.multi_reduction <add>, %39, %cst_15 [1] : vector<1x8xf32> to vector<1xf32>
    %41 = vector.shape_cast %40 : vector<1xf32> to vector<1x1xf32>
    %42 = tpu.reciprocal %41 : vector<1x1xf32> -> vector<1x1xf32>
    %43 = vector.broadcast %42 : vector<1x1xf32> to vector<1x8xf32>
    %44 = arith.mulf %39, %43 : vector<1x8xf32>
    %c0_16 = arith.constant 0 : index
    %c0_17 = arith.constant 0 : index
    %45 = vector.load %arg4[%c0_16, %c0_17] : memref<8x8xf32, #tpu.memory_space<vmem>>, vector<1x8xf32>
    tpu.vector_store %arg4[%c0_16, %c0_17], %44 {strides = array<i32>} : memref<8x8xf32, #tpu.memory_space<vmem>>, vector<1x8xf32>,
    %c1 = arith.constant 1 : index
    %c0_18 = arith.constant 0 : index
    %c0_19 = arith.constant 0 : index
    %46 = vector.load %arg1[%c1, %c0_18, %c0_19] : memref<8x128x1xf32, #tpu.memory_space<vmem>>, vector<1x128x1xf32>
    %47 = vector.shape_cast %46 : vector<1x128x1xf32> to vector<128x1xf32>
    %c1_20 = arith.constant 1 : index
    %c0_21 = arith.constant 0 : index
    %c0_22 = arith.constant 0 : index
    %48 = vector.load %arg2[%c1_20, %c0_21, %c0_22] : memref<8x128x8xf32, #tpu.memory_space<vmem>>, vector<1x128x8xf32>
    %49 = vector.shape_cast %48 : vector<1x128x8xf32> to vector<128x8xf32>
    %cst_23 = arith.constant dense<0.000000e+00> : vector<128x1xf32>
    %50 = tpu.matmul %0, %47, %cst_23 {dimension_numbers = #tpu.dot_dimension_numbers<[1], [0], [0], [1], [0, 0, 1, 1], [], []>} : vector<128x128xf32>, vector<128x1xf32>, vector<128x1xf32> -> vector<128x1xf32>
    %cst_24 = arith.constant dense<0.000000e+00> : vector<128x8xf32>
    %51 = tpu.matmul %0, %49, %cst_24 {dimension_numbers = #tpu.dot_dimension_numbers<[1], [0], [0], [1], [0, 0, 1, 1], [], []>} : vector<128x128xf32>, vector<128x8xf32>, vector<128x8xf32> -> vector<128x8xf32>
    %cst_25 = arith.constant dense<0xFF800000> : vector<128xf32>
    %52 = vector.multi_reduction <maximumf>, %50, %cst_25 [1] : vector<128x1xf32> to vector<128xf32>
    %53 = vector.shape_cast %52 : vector<128xf32> to vector<128x1xf32>
    %54 = arith.subf %50, %53 : vector<128x1xf32>
    %55 = math.exp %54 : vector<128x1xf32>
    %cst_26 = arith.constant dense<0.000000e+00> : vector<128xf32>
    %56 = vector.multi_reduction <add>, %55, %cst_26 [1] : vector<128x1xf32> to vector<128xf32>
    %57 = vector.shape_cast %56 : vector<128xf32> to vector<128x1xf32>
    %58 = tpu.reciprocal %57 : vector<128x1xf32> -> vector<128x1xf32>
    %59 = arith.mulf %55, %58 : vector<128x1xf32>
    %cst_27 = arith.constant dense<0xFF800000> : vector<128xf32>
    %60 = vector.multi_reduction <maximumf>, %51, %cst_27 [1] : vector<128x8xf32> to vector<128xf32>
    %61 = vector.shape_cast %60 : vector<128xf32> to vector<128x1xf32>
    %62 = vector.broadcast %61 : vector<128x1xf32> to vector<128x8xf32>
    %63 = arith.subf %51, %62 : vector<128x8xf32>
    %64 = math.exp %63 : vector<128x8xf32>
    %cst_28 = arith.constant dense<0.000000e+00> : vector<128xf32>
    %65 = vector.multi_reduction <add>, %64, %cst_28 [1] : vector<128x8xf32> to vector<128xf32>
    %66 = vector.shape_cast %65 : vector<128xf32> to vector<128x1xf32>
    %67 = tpu.reciprocal %66 : vector<128x1xf32> -> vector<128x1xf32>
    %68 = vector.broadcast %67 : vector<128x1xf32> to vector<128x8xf32>
    %69 = arith.mulf %64, %68 : vector<128x8xf32>
    %70 = math.log %66 : vector<128x1xf32>
    %71 = vector.broadcast %70 : vector<128x1xf32> to vector<128x8xf32>
    %72 = arith.subf %63, %71 : vector<128x8xf32>
    %73 = vector.broadcast %59 : vector<128x1xf32> to vector<128x8xf32>
    %74 = arith.subf %72, %73 : vector<128x8xf32>
    %75 = arith.mulf %69, %74 : vector<128x8xf32>
    %cst_29 = arith.constant dense<0.000000e+00> : vector<8xf32>
    %76 = vector.multi_reduction <add>, %75, %cst_29 [0] : vector<128x8xf32> to vector<8xf32>
    %77 = vector.shape_cast %76 : vector<8xf32> to vector<1x8xf32>
    %cst_30 = arith.constant 0.000000e+00 : f32
    %78 = vector.broadcast %cst_30 : f32 to vector<1x8xf32>
    %79 = arith.subf %78, %77 : vector<1x8xf32>
    %cst_31 = arith.constant dense<0xFF800000> : vector<1xf32>
    %80 = vector.multi_reduction <maximumf>, %79, %cst_31 [1] : vector<1x8xf32> to vector<1xf32>
    %81 = vector.shape_cast %80 : vector<1xf32> to vector<1x1xf32>
    %82 = vector.broadcast %81 : vector<1x1xf32> to vector<1x8xf32>
    %83 = arith.subf %79, %82 : vector<1x8xf32>
    %84 = math.exp %83 : vector<1x8xf32>
    %cst_32 = arith.constant dense<0.000000e+00> : vector<1xf32>
    %85 = vector.multi_reduction <add>, %84, %cst_32 [1] : vector<1x8xf32> to vector<1xf32>
    %86 = vector.shape_cast %85 : vector<1xf32> to vector<1x1xf32>
    %87 = tpu.reciprocal %86 : vector<1x1xf32> -> vector<1x1xf32>
    %88 = vector.broadcast %87 : vector<1x1xf32> to vector<1x8xf32>
    %89 = arith.mulf %84, %88 : vector<1x8xf32>
    %c1_33 = arith.constant 1 : index
    %c0_34 = arith.constant 0 : index
    %90 = vector.load %arg4[%c1_33, %c0_34] : memref<8x8xf32, #tpu.memory_space<vmem>>, vector<1x8xf32>
    tpu.vector_store %arg4[%c1_33, %c0_34], %89 {strides = array<i32>} : memref<8x8xf32, #tpu.memory_space<vmem>>, vector<1x8xf32>,
    %c2 = arith.constant 2 : index
    %c0_35 = arith.constant 0 : index
    %c0_36 = arith.constant 0 : index
    %91 = vector.load %arg1[%c2, %c0_35, %c0_36] : memref<8x128x1xf32, #tpu.memory_space<vmem>>, vector<1x128x1xf32>
    %92 = vector.shape_cast %91 : vector<1x128x1xf32> to vector<128x1xf32>
    %c2_37 = arith.constant 2 : index
    %c0_38 = arith.constant 0 : index
    %c0_39 = arith.constant 0 : index
    %93 = vector.load %arg2[%c2_37, %c0_38, %c0_39] : memref<8x128x8xf32, #tpu.memory_space<vmem>>, vector<1x128x8xf32>
    %94 = vector.shape_cast %93 : vector<1x128x8xf32> to vector<128x8xf32>
    %cst_40 = arith.constant dense<0.000000e+00> : vector<128x1xf32>
    %95 = tpu.matmul %0, %92, %cst_40 {dimension_numbers = #tpu.dot_dimension_numbers<[1], [0], [0], [1], [0, 0, 1, 1], [], []>} : vector<128x128xf32>, vector<128x1xf32>, vector<128x1xf32> -> vector<128x1xf32>
    %cst_41 = arith.constant dense<0.000000e+00> : vector<128x8xf32>
    %96 = tpu.matmul %0, %94, %cst_41 {dimension_numbers = #tpu.dot_dimension_numbers<[1], [0], [0], [1], [0, 0, 1, 1], [], []>} : vector<128x128xf32>, vector<128x8xf32>, vector<128x8xf32> -> vector<128x8xf32>
    %cst_42 = arith.constant dense<0xFF800000> : vector<128xf32>
    %97 = vector.multi_reduction <maximumf>, %95, %cst_42 [1] : vector<128x1xf32> to vector<128xf32>
    %98 = vector.shape_cast %97 : vector<128xf32> to vector<128x1xf32>
    %99 = arith.subf %95, %98 : vector<128x1xf32>
    %100 = math.exp %99 : vector<128x1xf32>
    %cst_43 = arith.constant dense<0.000000e+00> : vector<128xf32>
    %101 = vector.multi_reduction <add>, %100, %cst_43 [1] : vector<128x1xf32> to vector<128xf32>
    %102 = vector.shape_cast %101 : vector<128xf32> to vector<128x1xf32>
    %103 = tpu.reciprocal %102 : vector<128x1xf32> -> vector<128x1xf32>
    %104 = arith.mulf %100, %103 : vector<128x1xf32>
    %cst_44 = arith.constant dense<0xFF800000> : vector<128xf32>
    %105 = vector.multi_reduction <maximumf>, %96, %cst_44 [1] : vector<128x8xf32> to vector<128xf32>
    %106 = vector.shape_cast %105 : vector<128xf32> to vector<128x1xf32>
    %107 = vector.broadcast %106 : vector<128x1xf32> to vector<128x8xf32>
    %108 = arith.subf %96, %107 : vector<128x8xf32>
    %109 = math.exp %108 : vector<128x8xf32>
    %cst_45 = arith.constant dense<0.000000e+00> : vector<128xf32>
    %110 = vector.multi_reduction <add>, %109, %cst_45 [1] : vector<128x8xf32> to vector<128xf32>
    %111 = vector.shape_cast %110 : vector<128xf32> to vector<128x1xf32>
    %112 = tpu.reciprocal %111 : vector<128x1xf32> -> vector<128x1xf32>
    %113 = vector.broadcast %112 : vector<128x1xf32> to vector<128x8xf32>
    %114 = arith.mulf %109, %113 : vector<128x8xf32>
    %115 = math.log %111 : vector<128x1xf32>
    %116 = vector.broadcast %115 : vector<128x1xf32> to vector<128x8xf32>
    %117 = arith.subf %108, %116 : vector<128x8xf32>
    %118 = vector.broadcast %104 : vector<128x1xf32> to vector<128x8xf32>
    %119 = arith.subf %117, %118 : vector<128x8xf32>
    %120 = arith.mulf %114, %119 : vector<128x8xf32>
    %cst_46 = arith.constant dense<0.000000e+00> : vector<8xf32>
    %121 = vector.multi_reduction <add>, %120, %cst_46 [0] : vector<128x8xf32> to vector<8xf32>
    %122 = vector.shape_cast %121 : vector<8xf32> to vector<1x8xf32>
    %cst_47 = arith.constant 0.000000e+00 : f32
    %123 = vector.broadcast %cst_47 : f32 to vector<1x8xf32>
    %124 = arith.subf %123, %122 : vector<1x8xf32>
    %cst_48 = arith.constant dense<0xFF800000> : vector<1xf32>
    %125 = vector.multi_reduction <maximumf>, %124, %cst_48 [1] : vector<1x8xf32> to vector<1xf32>
    %126 = vector.shape_cast %125 : vector<1xf32> to vector<1x1xf32>
    %127 = vector.broadcast %126 : vector<1x1xf32> to vector<1x8xf32>
    %128 = arith.subf %124, %127 : vector<1x8xf32>
    %129 = math.exp %128 : vector<1x8xf32>
    %cst_49 = arith.constant dense<0.000000e+00> : vector<1xf32>
    %130 = vector.multi_reduction <add>, %129, %cst_49 [1] : vector<1x8xf32> to vector<1xf32>
    %131 = vector.shape_cast %130 : vector<1xf32> to vector<1x1xf32>
    %132 = tpu.reciprocal %131 : vector<1x1xf32> -> vector<1x1xf32>
    %133 = vector.broadcast %132 : vector<1x1xf32> to vector<1x8xf32>
    %134 = arith.mulf %129, %133 : vector<1x8xf32>
    %c2_50 = arith.constant 2 : index
    %c0_51 = arith.constant 0 : index
    %135 = vector.load %arg4[%c2_50, %c0_51] : memref<8x8xf32, #tpu.memory_space<vmem>>, vector<1x8xf32>
    tpu.vector_store %arg4[%c2_50, %c0_51], %134 {strides = array<i32>} : memref<8x8xf32, #tpu.memory_space<vmem>>, vector<1x8xf32>,
    %c3 = arith.constant 3 : index
    %c0_52 = arith.constant 0 : index
    %c0_53 = arith.constant 0 : index
    %136 = vector.load %arg1[%c3, %c0_52, %c0_53] : memref<8x128x1xf32, #tpu.memory_space<vmem>>, vector<1x128x1xf32>
    %137 = vector.shape_cast %136 : vector<1x128x1xf32> to vector<128x1xf32>
    %c3_54 = arith.constant 3 : index
    %c0_55 = arith.constant 0 : index
    %c0_56 = arith.constant 0 : index
    %138 = vector.load %arg2[%c3_54, %c0_55, %c0_56] : memref<8x128x8xf32, #tpu.memory_space<vmem>>, vector<1x128x8xf32>
    %139 = vector.shape_cast %138 : vector<1x128x8xf32> to vector<128x8xf32>
    %cst_57 = arith.constant dense<0.000000e+00> : vector<128x1xf32>
    %140 = tpu.matmul %0, %137, %cst_57 {dimension_numbers = #tpu.dot_dimension_numbers<[1], [0], [0], [1], [0, 0, 1, 1], [], []>} : vector<128x128xf32>, vector<128x1xf32>, vector<128x1xf32> -> vector<128x1xf32>
    %cst_58 = arith.constant dense<0.000000e+00> : vector<128x8xf32>
    %141 = tpu.matmul %0, %139, %cst_58 {dimension_numbers = #tpu.dot_dimension_numbers<[1], [0], [0], [1], [0, 0, 1, 1], [], []>} : vector<128x128xf32>, vector<128x8xf32>, vector<128x8xf32> -> vector<128x8xf32>
    %cst_59 = arith.constant dense<0xFF800000> : vector<128xf32>
    %142 = vector.multi_reduction <maximumf>, %140, %cst_59 [1] : vector<128x1xf32> to vector<128xf32>
    %143 = vector.shape_cast %142 : vector<128xf32> to vector<128x1xf32>
    %144 = arith.subf %140, %143 : vector<128x1xf32>
    %145 = math.exp %144 : vector<128x1xf32>
    %cst_60 = arith.constant dense<0.000000e+00> : vector<128xf32>
    %146 = vector.multi_reduction <add>, %145, %cst_60 [1] : vector<128x1xf32> to vector<128xf32>
    %147 = vector.shape_cast %146 : vector<128xf32> to vector<128x1xf32>
    %148 = tpu.reciprocal %147 : vector<128x1xf32> -> vector<128x1xf32>
    %149 = arith.mulf %145, %148 : vector<128x1xf32>
    %cst_61 = arith.constant dense<0xFF800000> : vector<128xf32>
    %150 = vector.multi_reduction <maximumf>, %141, %cst_61 [1] : vector<128x8xf32> to vector<128xf32>
    %151 = vector.shape_cast %150 : vector<128xf32> to vector<128x1xf32>
    %152 = vector.broadcast %151 : vector<128x1xf32> to vector<128x8xf32>
    %153 = arith.subf %141, %152 : vector<128x8xf32>
    %154 = math.exp %153 : vector<128x8xf32>
    %cst_62 = arith.constant dense<0.000000e+00> : vector<128xf32>
    %155 = vector.multi_reduction <add>, %154, %cst_62 [1] : vector<128x8xf32> to vector<128xf32>
    %156 = vector.shape_cast %155 : vector<128xf32> to vector<128x1xf32>
    %157 = tpu.reciprocal %156 : vector<128x1xf32> -> vector<128x1xf32>
    %158 = vector.broadcast %157 : vector<128x1xf32> to vector<128x8xf32>
    %159 = arith.mulf %154, %158 : vector<128x8xf32>
    %160 = math.log %156 : vector<128x1xf32>
    %161 = vector.broadcast %160 : vector<128x1xf32> to vector<128x8xf32>
    %162 = arith.subf %153, %161 : vector<128x8xf32>
    %163 = vector.broadcast %149 : vector<128x1xf32> to vector<128x8xf32>
    %164 = arith.subf %162, %163 : vector<128x8xf32>
    %165 = arith.mulf %159, %164 : vector<128x8xf32>
    %cst_63 = arith.constant dense<0.000000e+00> : vector<8xf32>
    %166 = vector.multi_reduction <add>, %165, %cst_63 [0] : vector<128x8xf32> to vector<8xf32>
    %167 = vector.shape_cast %166 : vector<8xf32> to vector<1x8xf32>
    %cst_64 = arith.constant 0.000000e+00 : f32
    %168 = vector.broadcast %cst_64 : f32 to vector<1x8xf32>
    %169 = arith.subf %168, %167 : vector<1x8xf32>
    %cst_65 = arith.constant dense<0xFF800000> : vector<1xf32>
    %170 = vector.multi_reduction <maximumf>, %169, %cst_65 [1] : vector<1x8xf32> to vector<1xf32>
    %171 = vector.shape_cast %170 : vector<1xf32> to vector<1x1xf32>
    %172 = vector.broadcast %171 : vector<1x1xf32> to vector<1x8xf32>
    %173 = arith.subf %169, %172 : vector<1x8xf32>
    %174 = math.exp %173 : vector<1x8xf32>
    %cst_66 = arith.constant dense<0.000000e+00> : vector<1xf32>
    %175 = vector.multi_reduction <add>, %174, %cst_66 [1] : vector<1x8xf32> to vector<1xf32>
    %176 = vector.shape_cast %175 : vector<1xf32> to vector<1x1xf32>
    %177 = tpu.reciprocal %176 : vector<1x1xf32> -> vector<1x1xf32>
    %178 = vector.broadcast %177 : vector<1x1xf32> to vector<1x8xf32>
    %179 = arith.mulf %174, %178 : vector<1x8xf32>
    %c3_67 = arith.constant 3 : index
    %c0_68 = arith.constant 0 : index
    %180 = vector.load %arg4[%c3_67, %c0_68] : memref<8x8xf32, #tpu.memory_space<vmem>>, vector<1x8xf32>
    tpu.vector_store %arg4[%c3_67, %c0_68], %179 {strides = array<i32>} : memref<8x8xf32, #tpu.memory_space<vmem>>, vector<1x8xf32>,
    %c4 = arith.constant 4 : index
    %c0_69 = arith.constant 0 : index
    %c0_70 = arith.constant 0 : index
    %181 = vector.load %arg1[%c4, %c0_69, %c0_70] : memref<8x128x1xf32, #tpu.memory_space<vmem>>, vector<1x128x1xf32>
    %182 = vector.shape_cast %181 : vector<1x128x1xf32> to vector<128x1xf32>
    %c4_71 = arith.constant 4 : index
    %c0_72 = arith.constant 0 : index
    %c0_73 = arith.constant 0 : index
    %183 = vector.load %arg2[%c4_71, %c0_72, %c0_73] : memref<8x128x8xf32, #tpu.memory_space<vmem>>, vector<1x128x8xf32>
    %184 = vector.shape_cast %183 : vector<1x128x8xf32> to vector<128x8xf32>
    %cst_74 = arith.constant dense<0.000000e+00> : vector<128x1xf32>
    %185 = tpu.matmul %0, %182, %cst_74 {dimension_numbers = #tpu.dot_dimension_numbers<[1], [0], [0], [1], [0, 0, 1, 1], [], []>} : vector<128x128xf32>, vector<128x1xf32>, vector<128x1xf32> -> vector<128x1xf32>
    %cst_75 = arith.constant dense<0.000000e+00> : vector<128x8xf32>
    %186 = tpu.matmul %0, %184, %cst_75 {dimension_numbers = #tpu.dot_dimension_numbers<[1], [0], [0], [1], [0, 0, 1, 1], [], []>} : vector<128x128xf32>, vector<128x8xf32>, vector<128x8xf32> -> vector<128x8xf32>
    %cst_76 = arith.constant dense<0xFF800000> : vector<128xf32>
    %187 = vector.multi_reduction <maximumf>, %185, %cst_76 [1] : vector<128x1xf32> to vector<128xf32>
    %188 = vector.shape_cast %187 : vector<128xf32> to vector<128x1xf32>
    %189 = arith.subf %185, %188 : vector<128x1xf32>
    %190 = math.exp %189 : vector<128x1xf32>
    %cst_77 = arith.constant dense<0.000000e+00> : vector<128xf32>
    %191 = vector.multi_reduction <add>, %190, %cst_77 [1] : vector<128x1xf32> to vector<128xf32>
    %192 = vector.shape_cast %191 : vector<128xf32> to vector<128x1xf32>
    %193 = tpu.reciprocal %192 : vector<128x1xf32> -> vector<128x1xf32>
    %194 = arith.mulf %190, %193 : vector<128x1xf32>
    %cst_78 = arith.constant dense<0xFF800000> : vector<128xf32>
    %195 = vector.multi_reduction <maximumf>, %186, %cst_78 [1] : vector<128x8xf32> to vector<128xf32>
    %196 = vector.shape_cast %195 : vector<128xf32> to vector<128x1xf32>
    %197 = vector.broadcast %196 : vector<128x1xf32> to vector<128x8xf32>
    %198 = arith.subf %186, %197 : vector<128x8xf32>
    %199 = math.exp %198 : vector<128x8xf32>
    %cst_79 = arith.constant dense<0.000000e+00> : vector<128xf32>
    %200 = vector.multi_reduction <add>, %199, %cst_79 [1] : vector<128x8xf32> to vector<128xf32>
    %201 = vector.shape_cast %200 : vector<128xf32> to vector<128x1xf32>
    %202 = tpu.reciprocal %201 : vector<128x1xf32> -> vector<128x1xf32>
    %203 = vector.broadcast %202 : vector<128x1xf32> to vector<128x8xf32>
    %204 = arith.mulf %199, %203 : vector<128x8xf32>
    %205 = math.log %201 : vector<128x1xf32>
    %206 = vector.broadcast %205 : vector<128x1xf32> to vector<128x8xf32>
    %207 = arith.subf %198, %206 : vector<128x8xf32>
    %208 = vector.broadcast %194 : vector<128x1xf32> to vector<128x8xf32>
    %209 = arith.subf %207, %208 : vector<128x8xf32>
    %210 = arith.mulf %204, %209 : vector<128x8xf32>
    %cst_80 = arith.constant dense<0.000000e+00> : vector<8xf32>
    %211 = vector.multi_reduction <add>, %210, %cst_80 [0] : vector<128x8xf32> to vector<8xf32>
    %212 = vector.shape_cast %211 : vector<8xf32> to vector<1x8xf32>
    %cst_81 = arith.constant 0.000000e+00 : f32
    %213 = vector.broadcast %cst_81 : f32 to vector<1x8xf32>
    %214 = arith.subf %213, %212 : vector<1x8xf32>
    %cst_82 = arith.constant dense<0xFF800000> : vector<1xf32>
    %215 = vector.multi_reduction <maximumf>, %214, %cst_82 [1] : vector<1x8xf32> to vector<1xf32>
    %216 = vector.shape_cast %215 : vector<1xf32> to vector<1x1xf32>
    %217 = vector.broadcast %216 : vector<1x1xf32> to vector<1x8xf32>
    %218 = arith.subf %214, %217 : vector<1x8xf32>
    %219 = math.exp %218 : vector<1x8xf32>
    %cst_83 = arith.constant dense<0.000000e+00> : vector<1xf32>
    %220 = vector.multi_reduction <add>, %219, %cst_83 [1] : vector<1x8xf32> to vector<1xf32>
    %221 = vector.shape_cast %220 : vector<1xf32> to vector<1x1xf32>
    %222 = tpu.reciprocal %221 : vector<1x1xf32> -> vector<1x1xf32>
    %223 = vector.broadcast %222 : vector<1x1xf32> to vector<1x8xf32>
    %224 = arith.mulf %219, %223 : vector<1x8xf32>
    %c4_84 = arith.constant 4 : index
    %c0_85 = arith.constant 0 : index
    %225 = vector.load %arg4[%c4_84, %c0_85] : memref<8x8xf32, #tpu.memory_space<vmem>>, vector<1x8xf32>
    tpu.vector_store %arg4[%c4_84, %c0_85], %224 {strides = array<i32>} : memref<8x8xf32, #tpu.memory_space<vmem>>, vector<1x8xf32>,
    %c5 = arith.constant 5 : index
    %c0_86 = arith.constant 0 : index
    %c0_87 = arith.constant 0 : index
    %226 = vector.load %arg1[%c5, %c0_86, %c0_87] : memref<8x128x1xf32, #tpu.memory_space<vmem>>, vector<1x128x1xf32>
    %227 = vector.shape_cast %226 : vector<1x128x1xf32> to vector<128x1xf32>
    %c5_88 = arith.constant 5 : index
    %c0_89 = arith.constant 0 : index
    %c0_90 = arith.constant 0 : index
    %228 = vector.load %arg2[%c5_88, %c0_89, %c0_90] : memref<8x128x8xf32, #tpu.memory_space<vmem>>, vector<1x128x8xf32>
    %229 = vector.shape_cast %228 : vector<1x128x8xf32> to vector<128x8xf32>
    %cst_91 = arith.constant dense<0.000000e+00> : vector<128x1xf32>
    %230 = tpu.matmul %0, %227, %cst_91 {dimension_numbers = #tpu.dot_dimension_numbers<[1], [0], [0], [1], [0, 0, 1, 1], [], []>} : vector<128x128xf32>, vector<128x1xf32>, vector<128x1xf32> -> vector<128x1xf32>
    %cst_92 = arith.constant dense<0.000000e+00> : vector<128x8xf32>
    %231 = tpu.matmul %0, %229, %cst_92 {dimension_numbers = #tpu.dot_dimension_numbers<[1], [0], [0], [1], [0, 0, 1, 1], [], []>} : vector<128x128xf32>, vector<128x8xf32>, vector<128x8xf32> -> vector<128x8xf32>
    %cst_93 = arith.constant dense<0xFF800000> : vector<128xf32>
    %232 = vector.multi_reduction <maximumf>, %230, %cst_93 [1] : vector<128x1xf32> to vector<128xf32>
    %233 = vector.shape_cast %232 : vector<128xf32> to vector<128x1xf32>
    %234 = arith.subf %230, %233 : vector<128x1xf32>
    %235 = math.exp %234 : vector<128x1xf32>
    %cst_94 = arith.constant dense<0.000000e+00> : vector<128xf32>
    %236 = vector.multi_reduction <add>, %235, %cst_94 [1] : vector<128x1xf32> to vector<128xf32>
    %237 = vector.shape_cast %236 : vector<128xf32> to vector<128x1xf32>
    %238 = tpu.reciprocal %237 : vector<128x1xf32> -> vector<128x1xf32>
    %239 = arith.mulf %235, %238 : vector<128x1xf32>
    %cst_95 = arith.constant dense<0xFF800000> : vector<128xf32>
    %240 = vector.multi_reduction <maximumf>, %231, %cst_95 [1] : vector<128x8xf32> to vector<128xf32>
    %241 = vector.shape_cast %240 : vector<128xf32> to vector<128x1xf32>
    %242 = vector.broadcast %241 : vector<128x1xf32> to vector<128x8xf32>
    %243 = arith.subf %231, %242 : vector<128x8xf32>
    %244 = math.exp %243 : vector<128x8xf32>
    %cst_96 = arith.constant dense<0.000000e+00> : vector<128xf32>
    %245 = vector.multi_reduction <add>, %244, %cst_96 [1] : vector<128x8xf32> to vector<128xf32>
    %246 = vector.shape_cast %245 : vector<128xf32> to vector<128x1xf32>
    %247 = tpu.reciprocal %246 : vector<128x1xf32> -> vector<128x1xf32>
    %248 = vector.broadcast %247 : vector<128x1xf32> to vector<128x8xf32>
    %249 = arith.mulf %244, %248 : vector<128x8xf32>
    %250 = math.log %246 : vector<128x1xf32>
    %251 = vector.broadcast %250 : vector<128x1xf32> to vector<128x8xf32>
    %252 = arith.subf %243, %251 : vector<128x8xf32>
    %253 = vector.broadcast %239 : vector<128x1xf32> to vector<128x8xf32>
    %254 = arith.subf %252, %253 : vector<128x8xf32>
    %255 = arith.mulf %249, %254 : vector<128x8xf32>
    %cst_97 = arith.constant dense<0.000000e+00> : vector<8xf32>
    %256 = vector.multi_reduction <add>, %255, %cst_97 [0] : vector<128x8xf32> to vector<8xf32>
    %257 = vector.shape_cast %256 : vector<8xf32> to vector<1x8xf32>
    %cst_98 = arith.constant 0.000000e+00 : f32
    %258 = vector.broadcast %cst_98 : f32 to vector<1x8xf32>
    %259 = arith.subf %258, %257 : vector<1x8xf32>
    %cst_99 = arith.constant dense<0xFF800000> : vector<1xf32>
    %260 = vector.multi_reduction <maximumf>, %259, %cst_99 [1] : vector<1x8xf32> to vector<1xf32>
    %261 = vector.shape_cast %260 : vector<1xf32> to vector<1x1xf32>
    %262 = vector.broadcast %261 : vector<1x1xf32> to vector<1x8xf32>
    %263 = arith.subf %259, %262 : vector<1x8xf32>
    %264 = math.exp %263 : vector<1x8xf32>
    %cst_100 = arith.constant dense<0.000000e+00> : vector<1xf32>
    %265 = vector.multi_reduction <add>, %264, %cst_100 [1] : vector<1x8xf32> to vector<1xf32>
    %266 = vector.shape_cast %265 : vector<1xf32> to vector<1x1xf32>
    %267 = tpu.reciprocal %266 : vector<1x1xf32> -> vector<1x1xf32>
    %268 = vector.broadcast %267 : vector<1x1xf32> to vector<1x8xf32>
    %269 = arith.mulf %264, %268 : vector<1x8xf32>
    %c5_101 = arith.constant 5 : index
    %c0_102 = arith.constant 0 : index
    %270 = vector.load %arg4[%c5_101, %c0_102] : memref<8x8xf32, #tpu.memory_space<vmem>>, vector<1x8xf32>
    tpu.vector_store %arg4[%c5_101, %c0_102], %269 {strides = array<i32>} : memref<8x8xf32, #tpu.memory_space<vmem>>, vector<1x8xf32>,
    %c6 = arith.constant 6 : index
    %c0_103 = arith.constant 0 : index
    %c0_104 = arith.constant 0 : index
    %271 = vector.load %arg1[%c6, %c0_103, %c0_104] : memref<8x128x1xf32, #tpu.memory_space<vmem>>, vector<1x128x1xf32>
    %272 = vector.shape_cast %271 : vector<1x128x1xf32> to vector<128x1xf32>
    %c6_105 = arith.constant 6 : index
    %c0_106 = arith.constant 0 : index
    %c0_107 = arith.constant 0 : index
    %273 = vector.load %arg2[%c6_105, %c0_106, %c0_107] : memref<8x128x8xf32, #tpu.memory_space<vmem>>, vector<1x128x8xf32>
    %274 = vector.shape_cast %273 : vector<1x128x8xf32> to vector<128x8xf32>
    %cst_108 = arith.constant dense<0.000000e+00> : vector<128x1xf32>
    %275 = tpu.matmul %0, %272, %cst_108 {dimension_numbers = #tpu.dot_dimension_numbers<[1], [0], [0], [1], [0, 0, 1, 1], [], []>} : vector<128x128xf32>, vector<128x1xf32>, vector<128x1xf32> -> vector<128x1xf32>
    %cst_109 = arith.constant dense<0.000000e+00> : vector<128x8xf32>
    %276 = tpu.matmul %0, %274, %cst_109 {dimension_numbers = #tpu.dot_dimension_numbers<[1], [0], [0], [1], [0, 0, 1, 1], [], []>} : vector<128x128xf32>, vector<128x8xf32>, vector<128x8xf32> -> vector<128x8xf32>
    %cst_110 = arith.constant dense<0xFF800000> : vector<128xf32>
    %277 = vector.multi_reduction <maximumf>, %275, %cst_110 [1] : vector<128x1xf32> to vector<128xf32>
    %278 = vector.shape_cast %277 : vector<128xf32> to vector<128x1xf32>
    %279 = arith.subf %275, %278 : vector<128x1xf32>
    %280 = math.exp %279 : vector<128x1xf32>
    %cst_111 = arith.constant dense<0.000000e+00> : vector<128xf32>
    %281 = vector.multi_reduction <add>, %280, %cst_111 [1] : vector<128x1xf32> to vector<128xf32>
    %282 = vector.shape_cast %281 : vector<128xf32> to vector<128x1xf32>
    %283 = tpu.reciprocal %282 : vector<128x1xf32> -> vector<128x1xf32>
    %284 = arith.mulf %280, %283 : vector<128x1xf32>
    %cst_112 = arith.constant dense<0xFF800000> : vector<128xf32>
    %285 = vector.multi_reduction <maximumf>, %276, %cst_112 [1] : vector<128x8xf32> to vector<128xf32>
    %286 = vector.shape_cast %285 : vector<128xf32> to vector<128x1xf32>
    %287 = vector.broadcast %286 : vector<128x1xf32> to vector<128x8xf32>
    %288 = arith.subf %276, %287 : vector<128x8xf32>
    %289 = math.exp %288 : vector<128x8xf32>
    %cst_113 = arith.constant dense<0.000000e+00> : vector<128xf32>
    %290 = vector.multi_reduction <add>, %289, %cst_113 [1] : vector<128x8xf32> to vector<128xf32>
    %291 = vector.shape_cast %290 : vector<128xf32> to vector<128x1xf32>
    %292 = tpu.reciprocal %291 : vector<128x1xf32> -> vector<128x1xf32>
    %293 = vector.broadcast %292 : vector<128x1xf32> to vector<128x8xf32>
    %294 = arith.mulf %289, %293 : vector<128x8xf32>
    %295 = math.log %291 : vector<128x1xf32>
    %296 = vector.broadcast %295 : vector<128x1xf32> to vector<128x8xf32>
    %297 = arith.subf %288, %296 : vector<128x8xf32>
    %298 = vector.broadcast %284 : vector<128x1xf32> to vector<128x8xf32>
    %299 = arith.subf %297, %298 : vector<128x8xf32>
    %300 = arith.mulf %294, %299 : vector<128x8xf32>
    %cst_114 = arith.constant dense<0.000000e+00> : vector<8xf32>
    %301 = vector.multi_reduction <add>, %300, %cst_114 [0] : vector<128x8xf32> to vector<8xf32>
    %302 = vector.shape_cast %301 : vector<8xf32> to vector<1x8xf32>
    %cst_115 = arith.constant 0.000000e+00 : f32
    %303 = vector.broadcast %cst_115 : f32 to vector<1x8xf32>
    %304 = arith.subf %303, %302 : vector<1x8xf32>
    %cst_116 = arith.constant dense<0xFF800000> : vector<1xf32>
    %305 = vector.multi_reduction <maximumf>, %304, %cst_116 [1] : vector<1x8xf32> to vector<1xf32>
    %306 = vector.shape_cast %305 : vector<1xf32> to vector<1x1xf32>
    %307 = vector.broadcast %306 : vector<1x1xf32> to vector<1x8xf32>
    %308 = arith.subf %304, %307 : vector<1x8xf32>
    %309 = math.exp %308 : vector<1x8xf32>
    %cst_117 = arith.constant dense<0.000000e+00> : vector<1xf32>
    %310 = vector.multi_reduction <add>, %309, %cst_117 [1] : vector<1x8xf32> to vector<1xf32>
    %311 = vector.shape_cast %310 : vector<1xf32> to vector<1x1xf32>
    %312 = tpu.reciprocal %311 : vector<1x1xf32> -> vector<1x1xf32>
    %313 = vector.broadcast %312 : vector<1x1xf32> to vector<1x8xf32>
    %314 = arith.mulf %309, %313 : vector<1x8xf32>
    %c6_118 = arith.constant 6 : index
    %c0_119 = arith.constant 0 : index
    %315 = vector.load %arg4[%c6_118, %c0_119] : memref<8x8xf32, #tpu.memory_space<vmem>>, vector<1x8xf32>
    tpu.vector_store %arg4[%c6_118, %c0_119], %314 {strides = array<i32>} : memref<8x8xf32, #tpu.memory_space<vmem>>, vector<1x8xf32>,
    %c7 = arith.constant 7 : index
    %c0_120 = arith.constant 0 : index
    %c0_121 = arith.constant 0 : index
    %316 = vector.load %arg1[%c7, %c0_120, %c0_121] : memref<8x128x1xf32, #tpu.memory_space<vmem>>, vector<1x128x1xf32>
    %317 = vector.shape_cast %316 : vector<1x128x1xf32> to vector<128x1xf32>
    %c7_122 = arith.constant 7 : index
    %c0_123 = arith.constant 0 : index
    %c0_124 = arith.constant 0 : index
    %318 = vector.load %arg2[%c7_122, %c0_123, %c0_124] : memref<8x128x8xf32, #tpu.memory_space<vmem>>, vector<1x128x8xf32>
    %319 = vector.shape_cast %318 : vector<1x128x8xf32> to vector<128x8xf32>
    %cst_125 = arith.constant dense<0.000000e+00> : vector<128x1xf32>
    %320 = tpu.matmul %0, %317, %cst_125 {dimension_numbers = #tpu.dot_dimension_numbers<[1], [0], [0], [1], [0, 0, 1, 1], [], []>} : vector<128x128xf32>, vector<128x1xf32>, vector<128x1xf32> -> vector<128x1xf32>
    %cst_126 = arith.constant dense<0.000000e+00> : vector<128x8xf32>
    %321 = tpu.matmul %0, %319, %cst_126 {dimension_numbers = #tpu.dot_dimension_numbers<[1], [0], [0], [1], [0, 0, 1, 1], [], []>} : vector<128x128xf32>, vector<128x8xf32>, vector<128x8xf32> -> vector<128x8xf32>
    %cst_127 = arith.constant dense<0xFF800000> : vector<128xf32>
    %322 = vector.multi_reduction <maximumf>, %320, %cst_127 [1] : vector<128x1xf32> to vector<128xf32>
    %323 = vector.shape_cast %322 : vector<128xf32> to vector<128x1xf32>
    %324 = arith.subf %320, %323 : vector<128x1xf32>
    %325 = math.exp %324 : vector<128x1xf32>
    %cst_128 = arith.constant dense<0.000000e+00> : vector<128xf32>
    %326 = vector.multi_reduction <add>, %325, %cst_128 [1] : vector<128x1xf32> to vector<128xf32>
    %327 = vector.shape_cast %326 : vector<128xf32> to vector<128x1xf32>
    %328 = tpu.reciprocal %327 : vector<128x1xf32> -> vector<128x1xf32>
    %329 = arith.mulf %325, %328 : vector<128x1xf32>
    %cst_129 = arith.constant dense<0xFF800000> : vector<128xf32>
    %330 = vector.multi_reduction <maximumf>, %321, %cst_129 [1] : vector<128x8xf32> to vector<128xf32>
    %331 = vector.shape_cast %330 : vector<128xf32> to vector<128x1xf32>
    %332 = vector.broadcast %331 : vector<128x1xf32> to vector<128x8xf32>
    %333 = arith.subf %321, %332 : vector<128x8xf32>
    %334 = math.exp %333 : vector<128x8xf32>
    %cst_130 = arith.constant dense<0.000000e+00> : vector<128xf32>
    %335 = vector.multi_reduction <add>, %334, %cst_130 [1] : vector<128x8xf32> to vector<128xf32>
    %336 = vector.shape_cast %335 : vector<128xf32> to vector<128x1xf32>
    %337 = tpu.reciprocal %336 : vector<128x1xf32> -> vector<128x1xf32>
    %338 = vector.broadcast %337 : vector<128x1xf32> to vector<128x8xf32>
    %339 = arith.mulf %334, %338 : vector<128x8xf32>
    %340 = math.log %336 : vector<128x1xf32>
    %341 = vector.broadcast %340 : vector<128x1xf32> to vector<128x8xf32>
    %342 = arith.subf %333, %341 : vector<128x8xf32>
    %343 = vector.broadcast %329 : vector<128x1xf32> to vector<128x8xf32>
    %344 = arith.subf %342, %343 : vector<128x8xf32>
    %345 = arith.mulf %339, %344 : vector<128x8xf32>
    %cst_131 = arith.constant dense<0.000000e+00> : vector<8xf32>
    %346 = vector.multi_reduction <add>, %345, %cst_131 [0] : vector<128x8xf32> to vector<8xf32>
    %347 = vector.shape_cast %346 : vector<8xf32> to vector<1x8xf32>
    %cst_132 = arith.constant 0.000000e+00 : f32
    %348 = vector.broadcast %cst_132 : f32 to vector<1x8xf32>
    %349 = arith.subf %348, %347 : vector<1x8xf32>
    %cst_133 = arith.constant dense<0xFF800000> : vector<1xf32>
    %350 = vector.multi_reduction <maximumf>, %349, %cst_133 [1] : vector<1x8xf32> to vector<1xf32>
    %351 = vector.shape_cast %350 : vector<1xf32> to vector<1x1xf32>
    %352 = vector.broadcast %351 : vector<1x1xf32> to vector<1x8xf32>
    %353 = arith.subf %349, %352 : vector<1x8xf32>
    %354 = math.exp %353 : vector<1x8xf32>
    %cst_134 = arith.constant dense<0.000000e+00> : vector<1xf32>
    %355 = vector.multi_reduction <add>, %354, %cst_134 [1] : vector<1x8xf32> to vector<1xf32>
    %356 = vector.shape_cast %355 : vector<1xf32> to vector<1x1xf32>
    %357 = tpu.reciprocal %356 : vector<1x1xf32> -> vector<1x1xf32>
    %358 = vector.broadcast %357 : vector<1x1xf32> to vector<1x8xf32>
    %359 = arith.mulf %354, %358 : vector<1x8xf32>
    %c7_135 = arith.constant 7 : index
    %c0_136 = arith.constant 0 : index
    %360 = vector.load %arg4[%c7_135, %c0_136] : memref<8x8xf32, #tpu.memory_space<vmem>>, vector<1x8xf32>
    tpu.vector_store %arg4[%c7_135, %c0_136], %359 {strides = array<i32>} : memref<8x8xf32, #tpu.memory_space<vmem>>, vector<1x8xf32>,
    return
  }
  func.func @transform_0(%arg0: i32) -> (i32, i32, i32) {
    %c0_i32 = arith.constant 0 : i32
    %c0_i32_0 = arith.constant 0 : i32
    %c0_i32_1 = arith.constant 0 : i32
    return %arg0, %c0_i32, %c0_i32_0 : i32, i32, i32
  }
  func.func @transform_1(%arg0: i32) -> (i32, i32, i32) {
    %c0_i32 = arith.constant 0 : i32
    %c0_i32_0 = arith.constant 0 : i32
    %c0_i32_1 = arith.constant 0 : i32
    return %arg0, %c0_i32, %c0_i32_0 : i32, i32, i32
  }
  func.func @transform_2(%arg0: i32) -> (i32, i32) {
    %c0_i32 = arith.constant 0 : i32
    %c0_i32_0 = arith.constant 0 : i32
    %c0_i32_1 = arith.constant 0 : i32
    return %c0_i32, %c0_i32_0 : i32, i32
  }
  func.func @transform_3(%arg0: i32) -> (i32, i32) {
    %c0_i32 = arith.constant 0 : i32
    %c0_i32_0 = arith.constant 0 : i32
    return %arg0, %c0_i32 : i32, i32
  }
}

</mosaic_0001>

<bundles_post_ra>
// kernel: tpu_custom_call.1
= control target key start
LH: loop header
LB: loop body
LE: loop exit
PB: predicated region body
PF: predicated region fallthrough
CT: control target
= control target key end

     0   :  { %s9792_s12 = smov 0   ;;  %s14492_s0 = inlined_call_operand.vmem [shape: f32[16,128,1], index: 0, kind: input, shape index: {}]   ;;  %s14493_s1 = inlined_call_operand.vmem [shape: f32[16,128,8], index: 1, kind: input, shape index: {}]   ;;  %s14494_s2 = inlined_call_operand.vmem [shape: f32[128,128], index: 2, kind: input, shape index: {}]   ;;  %s14495_s3 = inlined_call_operand.vmem [shape: f32[16,8], index: 3, kind: output, shape index: {}]  }
   0x1 LB: > { %s9798_s13 = sadd.s32 4294967295, %s9769_s12   ;;  %p6732_p0 = scmp.ge.s32.totalorder %s9769_s12, 1  ;;  %s9769_s12 = sphi %s9792_s12, %s13_s12  }
   0x2   : > { %p151_p1 = scmp.lt.s32.totalorder %s9769_s12, 3 }
   0x4   : > { %p152_p2 = pnand %p6732_p0, %p151_p1 }
   0x6   : > { %155 = sbr.rel (%p152_p2) target bundleno = 3432 (0xd68), region = 32 }
   0xb   : > { %s6733_s14 = sshll.u32 %s9798_s13, 3  ;;  %v9806_v0 = vld [vmem:[%s14494_s2] sm:$0xff]  ;;  %v9855_v33 = vld [vmem:[%s14494_s2 + $0x8] sm:$0xff]  ;;  %v9861_v35 = vld [vmem:[%s14494_s2 + $0x10] sm:$0xff]  ;;  %vm633_vm0 = vcmask 64512   ;;  %p195_p4 = scmp.lt.s32.totalorder %s9798_s13, 1 }
   0xc   : > { %p182_p3 = scmp.lt.s32.totalorder %s6733_s14, 15  ;;  %7568 = vmatprep.mubr.f32.mxu1 %v9806_v0  ;;  %7512 = vmatprep.mubr.f32.mxu0 %v9806_v0  ;;  %v9869_v37 = vld [vmem:[%s14494_s2 + $0x18] sm:$0xff]  ;;  %v9876_v39 = vld [vmem:[%s14494_s2 + $0x20] sm:$0xff]  ;;  %v9885_v41 = vld [vmem:[%s14494_s2 + $0x28] sm:$0xff]  ;;  %vm1019_vm1 = vcmask 57344  }
   0xd   : > { %v9891_v43 = vld [vmem:[%s14494_s2 + $0x30] sm:$0xff]  ;;  %v9901_v45 = vld [vmem:[%s14494_s2 + $0x38] sm:$0xff]  ;;  %v9907_v47 = vld [vmem:[%s14494_s2 + $0x40] sm:$0xff]  ;;  %s15884_s13 = smov (!%p195_p4, %s9798_s13), 1 }
   0xe   : > { %s15882_s14 = smov (!%p182_p3, %s6733_s14), 15  ;;  %v9917_v49 = vld [vmem:[%s14494_s2 + $0x48] sm:$0xff]  ;;  %v9923_v51 = vld [vmem:[%s14494_s2 + $0x50] sm:$0xff]  ;;  %v9933_v53 = vld [vmem:[%s14494_s2 + $0x58] sm:$0xff] }
   0xf   : > { %s6966_s17 = sshll.u32 %s15882_s14, 7  ;;  %v9939_v55 = vld [vmem:[%s14494_s2 + $0x60] sm:$0xff]  ;;  %v9949_v57 = vld [vmem:[%s14494_s2 + $0x68] sm:$0xff]  ;;  %v9955_v59 = vld [vmem:[%s14494_s2 + $0x70] sm:$0xff] }
  0x10   : > { %s9813_s20 = scalar_lea.vmem %s14493_s1, %s6966_s17  ;;  %s9818_s23 = scalar_lea.vmem %s14492_s0, %s6966_s17  ;;  %v9965_v61 = vld [vmem:[%s14494_s2 + $0x78] sm:$0xff] }
  0x11   : > { %v246_v1 = vld [vmem:[%s9813_s20 + $0x78] sm:$0xff]  ;;  %v245_v2 = vld [vmem:[%s9813_s20 + $0x70] sm:$0xff]  ;;  %v244_v5 = vld [vmem:[%s9813_s20 + $0x68] sm:$0xff] }
  0x12   : > { %v230_v3 = vld [vmem:[%s9818_s23 + $0x78] sm:$0xff]  ;;  %7536 = vmatprep.subr.mxu1 %v246_v1  ;;  %v229_v4 = vld [vmem:[%s9818_s23 + $0x70] sm:$0xff]  ;;  %v228_v6 = vld [vmem:[%s9818_s23 + $0x68] sm:$0xff] }
  0x13   : > { %7480 = vmatprep.subr.mxu0 %v230_v3  ;;  %7537 = vmatpush3.msra.mxu1 %v246_v1  ;;  %v243_v7 = vld [vmem:[%s9813_s20 + $0x60] sm:$0xff]  ;;  %v242_v9 = vld [vmem:[%s9813_s20 + $0x58] sm:$0xff]  ;;  %v241_v11 = vld [vmem:[%s9813_s20 + $0x50] sm:$0xff]  ;;  %v9771_v1 = vmov 0  }
  0x14   : > { %7481 = vmatpush3.msra.mxu0 %v230_v3  ;;  %7538 = vmatprep.subr.mxu1 %v245_v2  ;;  %v227_v8 = vld [vmem:[%s9818_s23 + $0x60] sm:$0xff]  ;;  %v226_v10 = vld [vmem:[%s9818_s23 + $0x58] sm:$0xff]  ;;  %v225_v12 = vld [vmem:[%s9818_s23 + $0x50] sm:$0xff] }
  0x15   : > { %7482 = vmatprep.subr.mxu0 %v229_v4  ;;  %7539 = vmatpush3.msra.mxu1 %v245_v2  ;;  %v240_v13 = vld [vmem:[%s9813_s20 + $0x48] sm:$0xff]  ;;  %v239_v15 = vld [vmem:[%s9813_s20 + $0x40] sm:$0xff]  ;;  %v238_v17 = vld [vmem:[%s9813_s20 + $0x38] sm:$0xff] }
  0x16   : > { %7483 = vmatpush3.msra.mxu0 %v229_v4  ;;  %7540 = vmatprep.subr.mxu1 %v244_v5  ;;  %v224_v14 = vld [vmem:[%s9818_s23 + $0x48] sm:$0xff]  ;;  %v223_v16 = vld [vmem:[%s9818_s23 + $0x40] sm:$0xff]  ;;  %v222_v18 = vld [vmem:[%s9818_s23 + $0x38] sm:$0xff] }
  0x17   : > { %7484 = vmatprep.subr.mxu0 %v228_v6  ;;  %7541 = vmatpush3.msra.mxu1 %v244_v5  ;;  %v237_v19 = vld [vmem:[%s9813_s20 + $0x30] sm:$0xff]  ;;  %v236_v21 = vld [vmem:[%s9813_s20 + $0x28] sm:$0xff]  ;;  %v235_v23 = vld [vmem:[%s9813_s20 + $0x20] sm:$0xff] }
  0x18   : > { %7485 = vmatpush3.msra.mxu0 %v228_v6  ;;  %7542 = vmatprep.subr.mxu1 %v243_v7  ;;  %v221_v20 = vld [vmem:[%s9818_s23 + $0x30] sm:$0xff]  ;;  %v220_v22 = vld [vmem:[%s9818_s23 + $0x28] sm:$0xff]  ;;  %v219_v24 = vld [vmem:[%s9818_s23 + $0x20] sm:$0xff] }
  0x19   : > { %7486 = vmatprep.subr.mxu0 %v227_v8  ;;  %7543 = vmatpush3.msra.mxu1 %v243_v7  ;;  %v234_v25 = vld [vmem:[%s9813_s20 + $0x18] sm:$0xff]  ;;  %v233_v27 = vld [vmem:[%s9813_s20 + $0x10] sm:$0xff]  ;;  %v232_v29 = vld [vmem:[%s9813_s20 + $0x8] sm:$0xff] }
  0x1a   : > { %7487 = vmatpush3.msra.mxu0 %v227_v8  ;;  %7544 = vmatprep.subr.mxu1 %v242_v9  ;;  %v218_v26 = vld [vmem:[%s9818_s23 + $0x18] sm:$0xff]  ;;  %v217_v28 = vld [vmem:[%s9818_s23 + $0x10] sm:$0xff]  ;;  %v216_v30 = vld [vmem:[%s9818_s23 + $0x8] sm:$0xff] }
  0x1b   : > { %7488 = vmatprep.subr.mxu0 %v226_v10  ;;  %7545 = vmatpush3.msra.mxu1 %v242_v9  ;;  %v231_v31 = vld [vmem:[%s9813_s20] sm:$0xff]  ;;  %v6771_v34 = vld [vmem:[%s9813_s20 + $0xf8] sm:$0xff]  ;;  %v6770_v36 = vld [vmem:[%s9813_s20 + $0xf0] sm:$0xff] }
  0x1c   : > { %7489 = vmatpush3.msra.mxu0 %v226_v10  ;;  %7546 = vmatprep.subr.mxu1 %v241_v11  ;;  %v215_v32 = vld [vmem:[%s9818_s23] sm:$0xff]  ;;  %v6769_v38 = vld [vmem:[%s9813_s20 + $0xe8] sm:$0xff]  ;;  %v6767_v42 = vld [vmem:[%s9813_s20 + $0xd8] sm:$0xff] }
  0x1d   : > { %7490 = vmatprep.subr.mxu0 %v225_v12  ;;  %7547 = vmatpush3.msra.mxu1 %v241_v11  ;;  %v6768_v40 = vld [vmem:[%s9813_s20 + $0xe0] sm:$0xff]  ;;  %v6766_v44 = vld [vmem:[%s9813_s20 + $0xd0] sm:$0xff]  ;;  %v6765_v46 = vld [vmem:[%s9813_s20 + $0xc8] sm:$0xff] }
  0x1e   : > { %7491 = vmatpush3.msra.mxu0 %v225_v12  ;;  %7548 = vmatprep.subr.mxu1 %v240_v13  ;;  %v6764_v48 = vld [vmem:[%s9813_s20 + $0xc0] sm:$0xff]  ;;  %v6763_v50 = vld [vmem:[%s9813_s20 + $0xb8] sm:$0xff]  ;;  %v6762_v52 = vld [vmem:[%s9813_s20 + $0xb0] sm:$0xff] }
  0x1f   : > { %7492 = vmatprep.subr.mxu0 %v224_v14  ;;  %7549 = vmatpush3.msra.mxu1 %v240_v13  ;;  %v6761_v54 = vld [vmem:[%s9813_s20 + $0xa8] sm:$0xff]  ;;  %v6760_v56 = vld [vmem:[%s9813_s20 + $0xa0] sm:$0xff]  ;;  %v6759_v58 = vld [vmem:[%s9813_s20 + $0x98] sm:$0xff] }
  0x20   : > { %7493 = vmatpush3.msra.mxu0 %v224_v14  ;;  %7550 = vmatprep.subr.mxu1 %v239_v15  ;;  %v6758_v60 = vld [vmem:[%s9813_s20 + $0x90] sm:$0xff]  ;;  %v6757_v62 = vld [vmem:[%s9813_s20 + $0x88] sm:$0xff]  ;;  %v6756_v63 = vld [vmem:[%s9813_s20 + $0x80] sm:$0xff] }
  0x21   : > { %7494 = vmatprep.subr.mxu0 %v223_v16  ;;  %7551 = vmatpush3.msra.mxu1 %v239_v15  ;;  %v6755_v2 = vld [vmem:[%s9818_s23 + $0xf8] sm:$0xff]  ;;  %v6754_v3 = vld [vmem:[%s9818_s23 + $0xf0] sm:$0xff]  ;;  %v6753_v4 = vld [vmem:[%s9818_s23 + $0xe8] sm:$0xff] }
  0x22   : > { %7495 = vmatpush3.msra.mxu0 %v223_v16  ;;  %7552 = vmatprep.subr.mxu1 %v238_v17  ;;  %v6803_v5 = vld [vmem:[%s9813_s20 + $0x178] sm:$0xff]  ;;  %v6802_v6 = vld [vmem:[%s9813_s20 + $0x170] sm:$0xff]  ;;  %v6752_v7 = vld [vmem:[%s9818_s23 + $0xe0] sm:$0xff] }
  0x23   : > { %7496 = vmatprep.subr.mxu0 %v222_v18  ;;  %7553 = vmatpush3.msra.mxu1 %v238_v17  ;;  %v6801_v8 = vld [vmem:[%s9813_s20 + $0x168] sm:$0xff]  ;;  %v6751_v9 = vld [vmem:[%s9818_s23 + $0xd8] sm:$0xff]  ;;  %v6750_v10 = vld [vmem:[%s9818_s23 + $0xd0] sm:$0xff] }
  0x24   : > { %7497 = vmatpush3.msra.mxu0 %v222_v18  ;;  %7554 = vmatprep.subr.mxu1 %v237_v19  ;;  %v6749_v11 = vld [vmem:[%s9818_s23 + $0xc8] sm:$0xff]  ;;  %v6748_v12 = vld [vmem:[%s9818_s23 + $0xc0] sm:$0xff]  ;;  %v6747_v13 = vld [vmem:[%s9818_s23 + $0xb8] sm:$0xff] }
  0x25   : > { %7498 = vmatprep.subr.mxu0 %v221_v20  ;;  %7555 = vmatpush3.msra.mxu1 %v237_v19  ;;  %v6800_v14 = vld [vmem:[%s9813_s20 + $0x160] sm:$0xff]  ;;  %v6746_v15 = vld [vmem:[%s9818_s23 + $0xb0] sm:$0xff]  ;;  %v6799_v16 = vld [vmem:[%s9813_s20 + $0x158] sm:$0xff] }
  0x26   : > { %7499 = vmatpush3.msra.mxu0 %v221_v20  ;;  %7556 = vmatprep.subr.mxu1 %v236_v21  ;;  %v6745_v17 = vld [vmem:[%s9818_s23 + $0xa8] sm:$0xff]  ;;  %v6798_v18 = vld [vmem:[%s9813_s20 + $0x150] sm:$0xff]  ;;  %v6744_v19 = vld [vmem:[%s9818_s23 + $0xa0] sm:$0xff] }
  0x27   : > { %7500 = vmatprep.subr.mxu0 %v220_v22  ;;  %7557 = vmatpush3.msra.mxu1 %v236_v21  ;;  %v6797_v20 = vld [vmem:[%s9813_s20 + $0x148] sm:$0xff]  ;;  %v6743_v21 = vld [vmem:[%s9818_s23 + $0x98] sm:$0xff] }
  0x28   : > { %7501 = vmatpush3.msra.mxu0 %v220_v22  ;;  %7558 = vmatprep.subr.mxu1 %v235_v23  ;;  %v6796_v22 = vld [vmem:[%s9813_s20 + $0x140] sm:$0xff] }
  0x29   : > { %7502 = vmatprep.subr.mxu0 %v219_v24  ;;  %7559 = vmatpush3.msra.mxu1 %v235_v23  ;;  %v6742_v23 = vld [vmem:[%s9818_s23 + $0x90] sm:$0xff] }
  0x2a   : > { %7503 = vmatpush3.msra.mxu0 %v219_v24  ;;  %7560 = vmatprep.subr.mxu1 %v234_v25  ;;  %v6795_v24 = vld [vmem:[%s9813_s20 + $0x138] sm:$0xff] }
  0x2b   : > { %7504 = vmatprep.subr.mxu0 %v218_v26  ;;  %7561 = vmatpush3.msra.mxu1 %v234_v25  ;;  %v6741_v25 = vld [vmem:[%s9818_s23 + $0x88] sm:$0xff] }
  0x2c   : > { %7505 = vmatpush3.msra.mxu0 %v218_v26  ;;  %7562 = vmatprep.subr.mxu1 %v233_v27  ;;  %v6794_v26 = vld [vmem:[%s9813_s20 + $0x130] sm:$0xff] }
  0x2d   : > { %7506 = vmatprep.subr.mxu0 %v217_v28  ;;  %7563 = vmatpush3.msra.mxu1 %v233_v27  ;;  %v6740_v27 = vld [vmem:[%s9818_s23 + $0x80] sm:$0xff] }
  0x2e   : > { %7507 = vmatpush3.msra.mxu0 %v217_v28  ;;  %7564 = vmatprep.subr.mxu1 %v232_v29  ;;  %v6793_v28 = vld [vmem:[%s9813_s20 + $0x128] sm:$0xff] }
  0x2f   : > { %7508 = vmatprep.subr.mxu0 %v216_v30  ;;  %7565 = vmatpush3.msra.mxu1 %v232_v29  ;;  %v6792_v29 = vld [vmem:[%s9813_s20 + $0x120] sm:$0xff] }
  0x30   : > { %7509 = vmatpush3.msra.mxu0 %v216_v30  ;;  %7566 = vmatprep.subr.mxu1 %v231_v31  ;;  %v6791_v30 = vld [vmem:[%s9813_s20 + $0x118] sm:$0xff] }
  0x31   : > { %7510 = vmatprep.subr.mxu0 %v215_v32  ;;  %7567 = vmatpush3.msra.mxu1 %v231_v31  ;;  %v6790_v31 = vld [vmem:[%s9813_s20 + $0x110] sm:$0xff] }
  0x32   : > { %7511 = vmatpush3.msra.mxu0 %v215_v32  ;;  %7569 = vmatmul.mubr.f32.vlgmr.msra.gmra.mxu1 %v9855_v33  ;;  %v6789_v32 = vld [vmem:[%s9813_s20 + $0x108] sm:$0xff] }
  0x33   : > { %7648 = vmatprep.subr.mxu1 %v6771_v34  ;;  %7571 = vmatprep.mubr.f32.mxu1 %v9861_v35 }
  0x34   : > { %7649 = vmatpush3.msra.mxu1 %v6771_v34  ;;  %7513 = vmatmul.mubr.f32.vlgmr.msra.gmra.mxu0 %v9855_v33  ;;  %v6788_v34 = vld [vmem:[%s9813_s20 + $0x100] sm:$0xff] }
  0x35   : > { %7650 = vmatprep.subr.mxu1 %v6770_v36  ;;  %7515 = vmatprep.mubr.f32.mxu0 %v9861_v35 }
  0x36   : > { %7651 = vmatpush3.msra.mxu1 %v6770_v36  ;;  %8385 = vset.pattern.permute.xlu1 %v9771_v1 }
  0x37   : > { %7572 = vmatmul.mubr.f32.gmra.mxu1 %v9869_v37  ;;  %7652 = vmatprep.subr.mxu1 %v6769_v38 }
  0x38   : > { %7653 = vmatpush3.msra.mxu1 %v6769_v38  ;;  %7574 = vmatprep.mubr.f32.mxu1 %v9876_v39 }
  0x39   : > { %7654 = vmatprep.subr.mxu1 %v6768_v40  ;;  %7516 = vmatmul.mubr.f32.gmra.mxu0 %v9869_v37 }
  0x3a   : > { %7655 = vmatpush3.msra.mxu1 %v6768_v40  ;;  %7518 = vmatprep.mubr.f32.mxu0 %v9876_v39 }
  0x3b   : > { %7575 = vmatmul.mubr.f32.gmra.mxu1 %v9885_v41  ;;  %7656 = vmatprep.subr.mxu1 %v6767_v42 }
  0x3c   : > { %7657 = vmatpush3.msra.mxu1 %v6767_v42  ;;  %7577 = vmatprep.mubr.f32.mxu1 %v9891_v43 }
  0x3d   : > { %7658 = vmatprep.subr.mxu1 %v6766_v44  ;;  %7519 = vmatmul.mubr.f32.gmra.mxu0 %v9885_v41 }
  0x3e   : > { %7659 = vmatpush3.msra.mxu1 %v6766_v44  ;;  %7521 = vmatprep.mubr.f32.mxu0 %v9891_v43 }
  0x3f   : > { %7578 = vmatmul.mubr.f32.gmra.mxu1 %v9901_v45  ;;  %7660 = vmatprep.subr.mxu1 %v6765_v46 }
  0x40   : > { %7661 = vmatpush3.msra.mxu1 %v6765_v46  ;;  %7580 = vmatprep.mubr.f32.mxu1 %v9907_v47 }
  0x41   : > { %7662 = vmatprep.subr.mxu1 %v6764_v48  ;;  %7522 = vmatmul.mubr.f32.gmra.mxu0 %v9901_v45 }
  0x42   : > { %7663 = vmatpush3.msra.mxu1 %v6764_v48  ;;  %7524 = vmatprep.mubr.f32.mxu0 %v9907_v47 }
  0x43   : > { %7581 = vmatmul.mubr.f32.gmra.mxu1 %v9917_v49  ;;  %7664 = vmatprep.subr.mxu1 %v6763_v50 }
  0x44   : > { %7665 = vmatpush3.msra.mxu1 %v6763_v50  ;;  %7583 = vmatprep.mubr.f32.mxu1 %v9923_v51 }
  0x45   : > { %7666 = vmatprep.subr.mxu1 %v6762_v52  ;;  %7525 = vmatmul.mubr.f32.gmra.mxu0 %v9917_v49 }
  0x46   : > { %7667 = vmatpush3.msra.mxu1 %v6762_v52  ;;  %7527 = vmatprep.mubr.f32.mxu0 %v9923_v51 }
  0x47   : > { %7584 = vmatmul.mubr.f32.gmra.mxu1 %v9933_v53  ;;  %7668 = vmatprep.subr.mxu1 %v6761_v54 }
  0x48   : > { %7669 = vmatpush3.msra.mxu1 %v6761_v54  ;;  %7586 = vmatprep.mubr.f32.mxu1 %v9939_v55 }
  0x49   : > { %7670 = vmatprep.subr.mxu1 %v6760_v56  ;;  %7528 = vmatmul.mubr.f32.gmra.mxu0 %v9933_v53 }
  0x4a   : > { %7671 = vmatpush3.msra.mxu1 %v6760_v56  ;;  %7530 = vmatprep.mubr.f32.mxu0 %v9939_v55 }
  0x4b   : > { %7587 = vmatmul.mubr.f32.gmra.mxu1 %v9949_v57  ;;  %7672 = vmatprep.subr.mxu1 %v6759_v58 }
  0x4c   : > { %7673 = vmatpush3.msra.mxu1 %v6759_v58  ;;  %7589 = vmatprep.mubr.f32.mxu1 %v9955_v59 }
  0x4d   : > { %7674 = vmatprep.subr.mxu1 %v6758_v60  ;;  %7531 = vmatmul.mubr.f32.gmra.mxu0 %v9949_v57 }
  0x4e   : > { %7675 = vmatpush3.msra.mxu1 %v6758_v60  ;;  %7533 = vmatprep.mubr.f32.mxu0 %v9955_v59 }
  0x4f   : > { %7590 = vmatmul.mubr.f32.gmra.mxu1 %v9965_v61  ;;  %7676 = vmatprep.subr.mxu1 %v6757_v62 }
  0x50   : > { %7677 = vmatpush3.msra.mxu1 %v6757_v62  ;;  %7680 = vmatprep.mubr.f32.mxu1 %v9806_v0 }
  0x51   : > { %7678 = vmatprep.subr.mxu1 %v6756_v63  ;;  %7534 = vmatmul.mubr.f32.gmra.mxu0 %v9965_v61 }
  0x52   : > { %7679 = vmatpush3.msra.mxu1 %v6756_v63  ;;  %7624 = vmatprep.mubr.f32.mxu0 %v9806_v0 }
  0x53   : > { %7681 = vmatmul.mubr.f32.vlgmr.msra.gmra.mxu1 %v9855_v33  ;;  %8386 = vset.pattern.permute.xlu0 %v9771_v1 }
  0x54   : > { %7683 = vmatprep.mubr.f32.mxu1 %v9861_v35  ;;  %7592 = vmatprep.subr.mxu0 %v6755_v2 }
  0x55   : > { %7593 = vmatpush3.msra.mxu0 %v6755_v2  ;;  %7760 = vmatprep.subr.mxu1 %v6803_v5 }
  0x56   : > { %7594 = vmatprep.subr.mxu0 %v6754_v3  ;;  %7761 = vmatpush3.msra.mxu1 %v6803_v5 }
  0x57   : > { %7684 = vmatmul.mubr.f32.gmra.mxu1 %v9869_v37  ;;  %7595 = vmatpush3.msra.mxu0 %v6754_v3 }
  0x58   : > { %7686 = vmatprep.mubr.f32.mxu1 %v9876_v39  ;;  %7596 = vmatprep.subr.mxu0 %v6753_v4 }
  0x59   : > { %7762 = vmatprep.subr.mxu1 %v6802_v6  ;;  %7597 = vmatpush3.msra.mxu0 %v6753_v4 }
  0x5a   : > { %7763 = vmatpush3.msra.mxu1 %v6802_v6  ;;  %7598 = vmatprep.subr.mxu0 %v6752_v7 }
  0x5b   : > { %7687 = vmatmul.mubr.f32.gmra.mxu1 %v9885_v41  ;;  %7764 = vmatprep.subr.mxu1 %v6801_v8 }
  0x5c   : > { %7689 = vmatprep.mubr.f32.mxu1 %v9891_v43  ;;  %7599 = vmatpush3.msra.mxu0 %v6752_v7 }
  0x5d   : > { %7765 = vmatpush3.msra.mxu1 %v6801_v8  ;;  %7600 = vmatprep.subr.mxu0 %v6751_v9 }
  0x5e   : > { %7601 = vmatpush3.msra.mxu0 %v6751_v9  ;;  %7766 = vmatprep.subr.mxu1 %v6800_v14 }
  0x5f   : > { %7690 = vmatmul.mubr.f32.gmra.mxu1 %v9901_v45  ;;  %7602 = vmatprep.subr.mxu0 %v6750_v10 }
  0x60   : > { %7692 = vmatprep.mubr.f32.mxu1 %v9907_v47  ;;  %7603 = vmatpush3.msra.mxu0 %v6750_v10 }
  0x61   : > { %7604 = vmatprep.subr.mxu0 %v6749_v11  ;;  %7767 = vmatpush3.msra.mxu1 %v6800_v14 }
  0x62   : > { %7605 = vmatpush3.msra.mxu0 %v6749_v11  ;;  %7768 = vmatprep.subr.mxu1 %v6799_v16 }
  0x63   : > { %7693 = vmatmul.mubr.f32.gmra.mxu1 %v9917_v49  ;;  %7606 = vmatprep.subr.mxu0 %v6748_v12 }
  0x64   : > { %7695 = vmatprep.mubr.f32.mxu1 %v9923_v51  ;;  %7607 = vmatpush3.msra.mxu0 %v6748_v12 }
  0x65   : > { %7608 = vmatprep.subr.mxu0 %v6747_v13  ;;  %7769 = vmatpush3.msra.mxu1 %v6799_v16 }
  0x66   : > { %7609 = vmatpush3.msra.mxu0 %v6747_v13  ;;  %7770 = vmatprep.subr.mxu1 %v6798_v18 }
  0x67   : > { %7696 = vmatmul.mubr.f32.gmra.mxu1 %v9933_v53  ;;  %7610 = vmatprep.subr.mxu0 %v6746_v15 }
  0x68   : > { %7698 = vmatprep.mubr.f32.mxu1 %v9939_v55  ;;  %7611 = vmatpush3.msra.mxu0 %v6746_v15 }
  0x69   : > { %7612 = vmatprep.subr.mxu0 %v6745_v17  ;;  %7771 = vmatpush3.msra.mxu1 %v6798_v18 }
  0x6a   : > { %7613 = vmatpush3.msra.mxu0 %v6745_v17  ;;  %7772 = vmatprep.subr.mxu1 %v6797_v20 }
  0x6b   : > { %7699 = vmatmul.mubr.f32.gmra.mxu1 %v9949_v57  ;;  %7614 = vmatprep.subr.mxu0 %v6744_v19 }
  0x6c   : > { %7701 = vmatprep.mubr.f32.mxu1 %v9955_v59  ;;  %7615 = vmatpush3.msra.mxu0 %v6744_v19 }
  0x6d   : > { %7773 = vmatpush3.msra.mxu1 %v6797_v20  ;;  %7616 = vmatprep.subr.mxu0 %v6743_v21 }
  0x6e   : > { %7774 = vmatprep.subr.mxu1 %v6796_v22  ;;  %7617 = vmatpush3.msra.mxu0 %v6743_v21 }
  0x6f   : > { %7702 = vmatmul.mubr.f32.gmra.mxu1 %v9965_v61  ;;  %7618 = vmatprep.subr.mxu0 %v6742_v23 }
  0x70   : > { %7792 = vmatprep.mubr.f32.mxu1 %v9806_v0  ;;  %7775 = vmatpush3.msra.mxu1 %v6796_v22 }
  0x71   : > { %7776 = vmatprep.subr.mxu1 %v6795_v24  ;;  %7619 = vmatpush3.msra.mxu0 %v6742_v23 }
  0x72   : > { %7777 = vmatpush3.msra.mxu1 %v6795_v24  ;;  %7620 = vmatprep.subr.mxu0 %v6741_v25 }
  0x73   : > { %7778 = vmatprep.subr.mxu1 %v6794_v26  ;;  %7621 = vmatpush3.msra.mxu0 %v6741_v25 }
  0x74   : > { %7779 = vmatpush3.msra.mxu1 %v6794_v26  ;;  %7622 = vmatprep.subr.mxu0 %v6740_v27 }
  0x75   : > { %7780 = vmatprep.subr.mxu1 %v6793_v28  ;;  %7623 = vmatpush3.msra.mxu0 %v6740_v27 }
  0x76   : > { %7781 = vmatpush3.msra.mxu1 %v6793_v28  ;;  %7625 = vmatmul.mubr.f32.vlgmr.msra.gmra.mxu0 %v9855_v33 }
  0x77   : > { %7782 = vmatprep.subr.mxu1 %v6792_v29  ;;  %7627 = vmatprep.mubr.f32.mxu0 %v9861_v35 }
  0x78   : > { %7783 = vmatpush3.msra.mxu1 %v6792_v29 }
  0x79   : > { %7784 = vmatprep.subr.mxu1 %v6791_v30 }
  0x7a   : > { %7785 = vmatpush3.msra.mxu1 %v6791_v30  ;;  %7628 = vmatmul.mubr.f32.gmra.mxu0 %v9869_v37 }
  0x7b   : > { %7786 = vmatprep.subr.mxu1 %v6790_v31  ;;  %7630 = vmatprep.mubr.f32.mxu0 %v9876_v39 }
  0x7c   : > { %7787 = vmatpush3.msra.mxu1 %v6790_v31 }
  0x7d   : > { %7788 = vmatprep.subr.mxu1 %v6789_v32 }
  0x7e   : > { %7789 = vmatpush3.msra.mxu1 %v6789_v32  ;;  %7631 = vmatmul.mubr.f32.gmra.mxu0 %v9885_v41 }
  0x7f   : > { %7790 = vmatprep.subr.mxu1 %v6788_v34  ;;  %7633 = vmatprep.mubr.f32.mxu0 %v9891_v43 }
  0x80   : > { %7791 = vmatpush3.msra.mxu1 %v6788_v34 }
  0x81   : > { %7793 = vmatmul.mubr.f32.vlgmr.msra.gmra.mxu1 %v9855_v33 }
  0x82   : > { %7795 = vmatprep.mubr.f32.mxu1 %v9861_v35  ;;  %7634 = vmatmul.mubr.f32.gmra.mxu0 %v9901_v45 }
  0x83   : > { %7636 = vmatprep.mubr.f32.mxu0 %v9907_v47 }
  0x85   : > { %7796 = vmatmul.mubr.f32.gmra.mxu1 %v9869_v37 }
  0x86   : > { %7798 = vmatprep.mubr.f32.mxu1 %v9876_v39  ;;  %7637 = vmatmul.mubr.f32.gmra.mxu0 %v9917_v49 }
  0x87   : > { %7639 = vmatprep.mubr.f32.mxu0 %v9923_v51 }
  0x89   : > { %7799 = vmatmul.mubr.f32.gmra.mxu1 %v9885_v41 }
  0x8a   : > { %7801 = vmatprep.mubr.f32.mxu1 %v9891_v43  ;;  %7640 = vmatmul.mubr.f32.gmra.mxu0 %v9933_v53 }
  0x8b   : > { %7642 = vmatprep.mubr.f32.mxu0 %v9939_v55 }
  0x8d   : > { %7802 = vmatmul.mubr.f32.gmra.mxu1 %v9901_v45 }
  0x8e   : > { %7804 = vmatprep.mubr.f32.mxu1 %v9907_v47  ;;  %7643 = vmatmul.mubr.f32.gmra.mxu0 %v9949_v57 }
  0x8f   : > { %7645 = vmatprep.mubr.f32.mxu0 %v9955_v59 }
  0x91   : > { %7805 = vmatmul.mubr.f32.gmra.mxu1 %v9917_v49 }
  0x92   : > { %7807 = vmatprep.mubr.f32.mxu1 %v9923_v51  ;;  %7646 = vmatmul.mubr.f32.gmra.mxu0 %v9965_v61 }
  0x93   : > { %7736 = vmatprep.mubr.f32.mxu0 %v9806_v0 }
  0x95   : > { %7808 = vmatmul.mubr.f32.gmra.mxu1 %v9933_v53 }
  0x96   : > { %7810 = vmatprep.mubr.f32.mxu1 %v9939_v55 }
  0x99   : > { %7811 = vmatmul.mubr.f32.gmra.mxu1 %v9949_v57 }
  0x9a   : > { %7813 = vmatprep.mubr.f32.mxu1 %v9955_v59 }
  0x9d   : > { %7814 = vmatmul.mubr.f32.gmra.mxu1 %v9965_v61 }
  0x9e   : > { %7904 = vmatprep.mubr.f32.mxu1 %v9806_v0 }
  0xf2   : > { %v10041_v33 = vpop.f32.mrf.mxu1 }
  0xf3   : > { %14881 = vst [vmem:[#allocation2_spill] sm:$0xff] %v10041_v33  ;;  %v637_v35 = vsel %vm633_vm0, %v10041_v33, -inf }
  0xf4   : > { %638 = vmax.xlane.f32.xlu0 %v637_v35  ;;  %v10046_v36 = vpop.f32.mrf.mxu1  ;;  %v7514_v42 = vpop.f32.mrf.mxu0 }
  0xf5   : > { %v634_v38 = vsel %vm633_vm0, %v10046_v36, -inf  ;;  %v538_v48 = vsub.f32 %v7514_v42, %v7514_v42 }
  0xf6   : > { %v313_v49 = vpop.f32.mrf.mxu0 }
  0xf7   : > { %v10050_v37 = vpop.f32.mrf.mxu1  ;;  %v537_v53 = vsub.f32 %v313_v49, %v313_v49  ;;  %v555_v55 = vmul.f32 1.442695, %v538_v48 }
  0xf8   : > { %14882 = vst [vmem:[#allocation3_spill] sm:$0xff] %v10050_v37  ;;  %v643_v39 = vsel %vm633_vm0, %v10050_v37, -inf  ;;  %635 = vmax.xlane.f32.xlu0 %v634_v38  ;;  %v6838_v37 = vld [vmem:[%s9818_s23 + $0x210] sm:$0xff] }
  0xf9   : > { %644 = vmax.xlane.f32.xlu1 %v643_v39  ;;  %v10058_v40 = vpop.f32.mrf.mxu1  ;;  %v553_v59 = vmul.f32 1.442695, %v537_v53  ;;  %8387 = vpow2.f32 %v555_v55  ;;  %v7517_v15 = vpop.f32.mrf.mxu0 }
  0xfa   : > { %v640_v43 = vsel %vm633_vm0, %v10058_v40, -inf  ;;  %v540_v23 = vsub.f32 %v7517_v15, %v7517_v15 }
  0xfb   : > { %v10062_v41 = vpop.f32.mrf.mxu1  ;;  %8389 = vpow2.f32 %v553_v59  ;;  %v323_v18 = vpop.f32.mrf.mxu0 }
  0xfc   : > { %14883 = vst [vmem:[#allocation4_spill] sm:$0xff] %v10062_v41  ;;  %v649_v46 = vsel %vm633_vm0, %v10062_v41, -inf  ;;  %v559_v25 = vmul.f32 1.442695, %v540_v23  ;;  %v539_v26 = vsub.f32 %v323_v18, %v323_v18 }
  0xfd   : > { %641 = vmax.xlane.f32.xlu1 %v640_v43  ;;  %v10068_v44 = vpop.f32.mrf.mxu1  ;;  %v7520_v20 = vpop.f32.mrf.mxu0 }
  0xfe   : > { %v646_v45 = vsel %vm633_vm0, %v10068_v44, -inf  ;;  %v557_v29 = vmul.f32 1.442695, %v539_v26 }
  0xff   : > { %647 = vmax.xlane.f32.xlu0 %v646_v45  ;;  %v10075_v47 = vpop.f32.mrf.mxu1  ;;  %v333_v21 = vpop.f32.mrf.mxu0 }
 0x100   : > { %14884 = vst [vmem:[#allocation5_spill] sm:$0xff] %v10075_v47  ;;  %v655_v52 = vsel %vm633_vm0, %v10075_v47, -inf }
 0x101   : > { %650 = vmax.xlane.f32.xlu1 %v649_v46  ;;  %v10078_v50 = vpop.f32.mrf.mxu1  ;;  %v10127_v22 = vpop.f32.mrf.mxu0 }
 0x102   : > { %v652_v51 = vsel %vm633_vm0, %v10078_v50, -inf }
 0x103   : > { %653 = vmax.xlane.f32.xlu0 %v652_v51  ;;  %v10085_v54 = vpop.f32.mrf.mxu1  ;;  %v10129_v24 = vpop.f32.mrf.mxu0 }
 0x104   : > { %14885 = vst [vmem:[#allocation6_spill] sm:$0xff] %v10085_v54  ;;  %v661_v58 = vsel %vm633_vm0, %v10085_v54, -inf }
 0x105   : > { %656 = vmax.xlane.f32.xlu1 %v655_v52  ;;  %v10088_v56 = vpop.f32.mrf.mxu1  ;;  %v7526_v28 = vpop.f32.mrf.mxu0 }
 0x106   : > { %v658_v57 = vsel %vm633_vm0, %v10088_v56, -inf  ;;  %v8388_v9 = vpop.eup %8387  ;;  %v546_v30 = vsub.f32 %v7526_v28, %v7526_v28 }
 0x107   : > { %659 = vmax.xlane.f32.xlu0 %v658_v57  ;;  %v10095_v60 = vpop.f32.mrf.mxu1  ;;  %8391 = vrcp.f32 %v8388_v9 }
 0x108   : > { %14886 = vst [vmem:[#allocation7_spill] sm:$0xff] %v10095_v60  ;;  %v667_v0 = vsel %vm633_vm0, %v10095_v60, -inf  ;;  %v8390_v13 = vpop.eup %8389  ;;  %v571_v32 = vmul.f32 1.442695, %v546_v30  ;;  %v544_v30 = vsub.f32 %v10127_v22, %v10127_v22 }
 0x109   : > { %662 = vmax.xlane.f32.xlu1 %v661_v58  ;;  %v10097_v62 = vpop.f32.mrf.mxu1  ;;  %8393 = vrcp.f32 %v8390_v13 }
 0x10a   : > { %v664_v61 = vsel %vm633_vm0, %v10097_v62, -inf  ;;  %8395 = vpow2.f32 %v559_v25 }
 0x10b   : > { %665 = vmax.xlane.f32.xlu0 %v664_v61  ;;  %v10103_v63 = vpop.f32.mrf.mxu1  ;;  %8397 = vpow2.f32 %v557_v29  ;;  %v10151_v61 = vpop.f32.mrf.mxu0 }
 0x10c   : > { %14887 = vst [vmem:[#allocation8_spill] sm:$0xff] %v10103_v63  ;;  %v673_v3 = vsel %vm633_vm0, %v10103_v63, -inf  ;;  %8399 = vpow2.f32 %v571_v32 }
 0x10d   : > { %668 = vmax.xlane.f32.xlu1 %v667_v0  ;;  %v10105_v1 = vpop.f32.mrf.mxu1  ;;  %v542_v0 = vsub.f32 %v7520_v20, %v7520_v20 }
 0x10e   : > { %v670_v2 = vsel %vm633_vm0, %v10105_v1, -inf }
 0x10f   : > { %671 = vmax.xlane.f32.xlu0 %v670_v2  ;;  %v10111_v4 = vpop.f32.mrf.mxu1  ;;  %v7529_v2 = vpop.f32.mrf.mxu0 }
 0x110   : > { %14888 = vst [vmem:[#allocation9_spill] sm:$0xff] %v10111_v4  ;;  %v679_v7 = vsel %vm633_vm0, %v10111_v4, -inf }
 0x111   : > { %674 = vmax.xlane.f32.xlu1 %v673_v3  ;;  %v10113_v5 = vpop.f32.mrf.mxu1  ;;  %v563_v3 = vmul.f32 1.442695, %v542_v0  ;;  %v363_v28 = vpop.f32.mrf.mxu0 }
 0x112   : > { %v676_v6 = vsel %vm633_vm0, %v10113_v5, -inf }
 0x113   : > { %v10119_v8 = vpop.f32.mrf.mxu1  ;;  %677 = vmax.xlane.f32.xlu0 %v676_v6  ;;  %v541_v6 = vsub.f32 %v333_v21, %v333_v21  ;;  %v7532_v29 = vpop.f32.mrf.mxu0 }
 0x114   : > { %14889 = vst [vmem:[#allocation10_spill] sm:$0xff] %v10119_v8  ;;  %v1444_v12 = vsel %vm633_vm0, %v10119_v8, -inf  ;;  %v8392_v14 = vpop.eup %8391  ;;  %v550_v32 = vsub.f32 %v7532_v29, %v7532_v29 }
 0x115   : > { %680 = vmax.xlane.f32.xlu1 %v679_v7  ;;  %v10121_v10 = vpop.f32.mrf.mxu1  ;;  %v618_v17 = vmul.f32 %v8392_v14, %v8388_v9  ;;  %v548_v7 = vsub.f32 %v7529_v2, %v7529_v2  ;;  %v561_v9 = vmul.f32 1.442695, %v541_v6 }
 0x116   : > { %v1441_v11 = vsel %vm633_vm0, %v10121_v10, -inf  ;;  %v8394_v16 = vpop.eup %8393 }
 0x117   : > { %1442 = vmax.xlane.f32.xlu0 %v1441_v11  ;;  %v617_v19 = vmul.f32 %v8394_v16, %v8390_v13  ;;  %v10131_v27 = vpop.f32.mrf.mxu1  ;;  %v8396_v39 = vpop.eup %8395  ;;  %v575_v11 = vmul.f32 1.442695, %v548_v7 }
 0x118   : > { %14890 = vst [vmem:[#allocation11_spill] sm:$0xff] %v10131_v27  ;;  %v1450_v43 = vsel %vm633_vm0, %v10131_v27, -inf  ;;  %8401 = vrcp.f32 %v8396_v39  ;;  %v8398_v46 = vpop.eup %8397 }
 0x119   : > { %1445 = vmax.xlane.f32.xlu1 %v1444_v12  ;;  %v10133_v31 = vpop.f32.mrf.mxu1  ;;  %8403 = vrcp.f32 %v8398_v46  ;;  %v8400_v51 = vpop.eup %8399 }
 0x11a   : > { %v1447_v38 = vsel %vm633_vm0, %v10133_v31, -inf  ;;  %8405 = vrcp.f32 %v8400_v51 }
 0x11b   : > { %v10135_v34 = vpop.f32.mrf.mxu1  ;;  %8407 = vpow2.f32 %v563_v3  ;;  %v10173_v3 = vpop.f32.mrf.mxu0 }
 0x11c   : > { %14891 = vst [vmem:[#allocation12_spill] sm:$0xff] %v10135_v34  ;;  %8409 = vpow2.f32 %v561_v9  ;;  %v1456_v15 = vsel %vm633_vm0, %v10135_v34, -inf  ;;  %v545_v9 = vsub.f32 %v10151_v61, %v10151_v61 }
 0x11d   : > { %v10137_v35 = vpop.f32.mrf.mxu1  ;;  %8411 = vpow2.f32 %v575_v11  ;;  %v7535_v6 = vpop.f32.mrf.mxu0 }
 0x11e   : > { %v1453_v45 = vsel %vm633_vm0, %v10137_v35, -inf  ;;  %v552_v7 = vsub.f32 %v7535_v6, %v7535_v6  ;;  %v6787_v6 = vld [vmem:[%s9818_s23 + $0x178] sm:$0xff] }
 0x11f   : > { %v10141_v42 = vpop.f32.mrf.mxu1  ;;  %7704 = vmatprep.subr.mxu0 %v6787_v6 }
 0x120   : > { %14892 = vst [vmem:[#allocation13_spill] sm:$0xff] %v10141_v42  ;;  %v1462_v22 = vsel %vm633_vm0, %v10141_v42, -inf  ;;  %v583_v11 = vmul.f32 1.442695, %v552_v7  ;;  %7705 = vmatpush3.msra.mxu0 %v6787_v6  ;;  %v6829_v6 = vld [vmem:[%s9813_s20 + $0x1c8] sm:$0xff] }
 0x121   : > { %v10147_v48 = vpop.f32.mrf.mxu1 }
 0x122   : > { %v1459_v49 = vsel %vm633_vm0, %v10147_v48, -inf }
 0x123   : > { %v10153_v12 = vpop.f32.mrf.mxu1 }
 0x124   : > { %14893 = vst [vmem:[#allocation14_spill] sm:$0xff] %v10153_v12 }
 0x125   : > { %v8402_v52 = vpop.eup %8401  ;;  %v10155_v14 = vpop.f32.mrf.mxu1 }
 0x126   : > { %v620_v53 = vmul.f32 %v8402_v52, %v8396_v39  ;;  %v8404_v55 = vpop.eup %8403  ;;  %v1465_v16 = vsel %vm633_vm0, %v10155_v14, -inf  ;;  %v543_v39 = vsub.f32 %v10129_v24, %v10129_v24 }
 0x127   : > { %v619_v57 = vmul.f32 %v8404_v55, %v8398_v46  ;;  %v8406_v58 = vpop.eup %8405  ;;  %v10165_v46 = vpop.f32.mrf.mxu1 }
 0x128   : > { %v626_v59 = vmul.f32 %v8406_v58, %v8400_v51  ;;  %v8408_v13 = vpop.eup %8407  ;;  %14894 = vst [vmem:[#allocation15_spill] sm:$0xff] %v10165_v46 }
 0x129   : > { %8413 = vrcp.f32 %v8408_v13 }
 0x12a   : > { %865 = vperm.xlu1 %8385, %v618_v17   ;;  %v8410_v17 = vpop.eup %8409 }
 0x12b   : > { %v8412_v18 = vpop.eup %8411  ;;  %8415 = vrcp.f32 %v8410_v17 }
 0x12c   : > { %8417 = vrcp.f32 %v8412_v18 }
 0x12d   : > { %860 = vperm.xlu0 %8386, %v617_v19  }
 0x136   : > { %v8414_v19 = vpop.eup %8413 }
 0x137   : > { %v622_v20 = vmul.f32 %v8414_v19, %v8408_v13  ;;  %v569_v13 = vmul.f32 1.442695, %v545_v9  ;;  %v6786_v9 = vld [vmem:[%s9818_s23 + $0x170] sm:$0xff] }
 0x138   : > { %v8416_v21 = vpop.eup %8415  ;;  %7706 = vmatprep.subr.mxu0 %v6786_v9 }
 0x139   : > { %v8418_v23 = vpop.eup %8417  ;;  %v621_v25 = vmul.f32 %v8416_v21, %v8410_v17  ;;  %7707 = vmatpush3.msra.mxu0 %v6786_v9  ;;  %v6775_v9 = vld [vmem:[%s9818_s23 + $0x118] sm:$0xff] }
 0x13a   : > { %v628_v26 = vmul.f32 %v8418_v23, %v8412_v18 }
 0x14c   : > { %1448 = vmax.xlane.f32.xlu0 %v1447_v38  ;;  %v567_v38 = vmul.f32 1.442695, %v544_v30 }
 0x14e   : > { %1451 = vmax.xlane.f32.xlu1 %v1450_v43  ;;  %v579_v43 = vmul.f32 1.442695, %v550_v32  ;;  %8419 = vpow2.f32 %v567_v38  ;;  %v547_v32 = vsub.f32 %v363_v28, %v363_v28 }
 0x150   : > { %1454 = vmax.xlane.f32.xlu0 %v1453_v45  ;;  %v565_v45 = vmul.f32 1.442695, %v543_v39  ;;  %8421 = vpow2.f32 %v579_v43  ;;  %v573_v43 = vmul.f32 1.442695, %v547_v32 }
 0x152   : > { %8423 = vpow2.f32 %v565_v45 }
 0x154   : > { %1460 = vmax.xlane.f32.xlu0 %v1459_v49  ;;  %v10167_v49 = vpop.f32.mrf.mxu1 }
 0x155   : > { %v1471_v51 = vsel %vm633_vm0, %v10167_v49, -inf }
 0x15b   : > { %v8420_v52 = vpop.eup %8419 }
 0x15c   : > { %8425 = vrcp.f32 %v8420_v52 }
 0x15f   : > { %875 = vperm.xlu1 %8385, %v620_v53   ;;  %v8422_v53 = vpop.eup %8421 }
 0x160   : > { %v8424_v24 = vpop.eup %8423  ;;  %8427 = vrcp.f32 %v8422_v53 }
 0x161   : > { %8429 = vrcp.f32 %v8424_v24 }
 0x162   : > { %8431 = vpow2.f32 %v583_v11 }
 0x163   : > { %870 = vperm.xlu1 %8385, %v619_v57   ;;  %8433 = vpow2.f32 %v569_v13  ;;  %v6785_v13 = vld [vmem:[%s9818_s23 + $0x168] sm:$0xff] }
 0x164   : > { %7708 = vmatprep.subr.mxu0 %v6785_v13 }
 0x165   : > { %7709 = vmatpush3.msra.mxu0 %v6785_v13  ;;  %v6774_v13 = vld [vmem:[%s9818_s23 + $0x110] sm:$0xff] }
 0x169   : > { %v8426_v55 = vpop.eup %8425 }
 0x16a   : > { %905 = vperm.xlu0 %8386, %v626_v59   ;;  %v624_v58 = vmul.f32 %v8426_v55, %v8420_v52 }
 0x16d   : > { %v8428_v57 = vpop.eup %8427 }
 0x16e   : > { %v8430_v59 = vpop.eup %8429  ;;  %v630_v0 = vmul.f32 %v8428_v57, %v8422_v53 }
 0x16f   : > { %v623_v2 = vmul.f32 %v8430_v59, %v8424_v24  ;;  %v8432_v18 = vpop.eup %8431 }
 0x170   : > { %v8434_v19 = vpop.eup %8433  ;;  %8435 = vrcp.f32 %v8432_v18 }
 0x171   : > { %8437 = vrcp.f32 %v8434_v19 }
 0x172   : > { %8439 = vpow2.f32 %v573_v43  ;;  %v6832_v43 = vld [vmem:[%s9813_s20 + $0x1e0] sm:$0xff] }
 0x17d   : > { %v8436_v61 = vpop.eup %8435 }
 0x17e   : > { %v8438_v21 = vpop.eup %8437  ;;  %v632_v23 = vmul.f32 %v8436_v61, %v8432_v18  ;;  %v6783_v61 = vld [vmem:[%s9818_s23 + $0x158] sm:$0xff] }
 0x187   : > { %1457 = vmax.xlane.f32.xlu1 %v1456_v15  ;;  %v10177_v15 = vpop.f32.mrf.mxu1 }
 0x188   : > { %14895 = vst [vmem:[#allocation16_spill] sm:$0xff] %v10177_v15 }
 0x189   : > { %1466 = vmax.xlane.f32.xlu0 %v1465_v16  ;;  %v10179_v16 = vpop.f32.mrf.mxu1 }
 0x18a   : > { %v1477_v17 = vsel %vm633_vm0, %v10179_v16, -inf }
 0x18b   : > { %v10189_v52 = vpop.f32.mrf.mxu1 }
 0x18c   : > { %14896 = vst [vmem:[#allocation17_spill] sm:$0xff] %v10189_v52 }
 0x198   : > { %885 = vperm.xlu1 %8385, %v622_v20   ;;  %v1468_v20 = vsel %vm633_vm0, %v10153_v12, -inf }
 0x19c   : > { %880 = vperm.xlu1 %8385, %v621_v25   ;;  %v625_v25 = vmul.f32 %v8438_v21, %v8434_v19  ;;  %v6835_v19 = vld [vmem:[%s9813_s20 + $0x1f8] sm:$0xff]  ;;  %v6834_v21 = vld [vmem:[%s9813_s20 + $0x1f0] sm:$0xff] }
 0x19d   : > { %7872 = vmatprep.subr.mxu1 %v6835_v19 }
 0x19e   : > { %7873 = vmatpush3.msra.mxu1 %v6835_v19  ;;  %v6773_v19 = vld [vmem:[%s9818_s23 + $0x108] sm:$0xff] }
 0x19f   : > { %915 = vperm.xlu0 %8386, %v628_v26   ;;  %v10185_v26 = vpop.f32.mrf.mxu0  ;;  %7874 = vmatprep.subr.mxu1 %v6834_v21 }
 0x1a0   : > { %7875 = vmatpush3.msra.mxu1 %v6834_v21  ;;  %v6772_v21 = vld [vmem:[%s9818_s23 + $0x100] sm:$0xff] }
 0x1a1   : > { %v10187_v29 = vpop.f32.mrf.mxu0 }
 0x1a2   : > { %v1346_v12 = vsub.f32 %v10187_v29, %v10187_v29 }
 0x1a3   : > { %v1121_v30 = vpop.f32.mrf.mxu0 }
 0x1a4   : > { %v1345_v38 = vsub.f32 %v1121_v30, %v1121_v30  ;;  %v6833_v30 = vld [vmem:[%s9813_s20 + $0x1e8] sm:$0xff]  ;;  %v1363_v42 = vmul.f32 1.442695, %v1346_v12 }
 0x1a5   : > { %v7629_v39 = vpop.f32.mrf.mxu0  ;;  %7876 = vmatprep.subr.mxu1 %v6833_v30 }
 0x1a6   : > { %v1361_v45 = vmul.f32 1.442695, %v1345_v38  ;;  %v6781_v38 = vld [vmem:[%s9818_s23 + $0x148] sm:$0xff]  ;;  %7877 = vmatpush3.msra.mxu1 %v6833_v30 }
 0x1a7   : > { %7878 = vmatprep.subr.mxu1 %v6832_v43  ;;  %v10239_v30 = vld [vmem:[%s14494_s2 + $0x8] sm:$0xff] }
 0x1a8   : > { %8441 = vpow2.f32 %v1361_v45  ;;  %v6779_v45 = vld [vmem:[%s9818_s23 + $0x138] sm:$0xff]  ;;  %7879 = vmatpush3.msra.mxu1 %v6832_v43 }
 0x1a9   : > { %v10254_v43 = vld [vmem:[%s14494_s2 + $0x18] sm:$0xff] }
 0x1be   : > { %1472 = vmax.xlane.f32.xlu0 %v1471_v51  ;;  %v1348_v51 = vsub.f32 %v7629_v39, %v7629_v39  ;;  %v6780_v39 = vld [vmem:[%s9818_s23 + $0x140] sm:$0xff] }
 0x1c0   : > { %1463 = vmax.xlane.f32.xlu1 %v1462_v22  ;;  %v1367_v53 = vmul.f32 1.442695, %v1348_v51  ;;  %v10191_v22 = vpop.f32.mrf.mxu1  ;;  %v6831_v51 = vld [vmem:[%s9813_s20 + $0x1d8] sm:$0xff] }
 0x1c1   : > { %v1483_v55 = vsel %vm633_vm0, %v10191_v22, -inf  ;;  %7880 = vmatprep.subr.mxu1 %v6831_v51 }
 0x1c2   : > { %8443 = vpow2.f32 %v1367_v53  ;;  %v10193_v24 = vpop.f32.mrf.mxu1  ;;  %v10217_v53 = vpop.f32.mrf.mxu0  ;;  %7881 = vmatpush3.msra.mxu1 %v6831_v51  ;;  %v6820_v51 = vld [vmem:[%s9813_s20 + $0x180] sm:$0xff] }
 0x1c3   : > { %14897 = vst [vmem:[#allocation18_spill] sm:$0xff] %v10193_v24 }
 0x1c4   : > { %v10197_v28 = vpop.f32.mrf.mxu1 }
 0x1c5   : > { %v2247_v57 = vsel %vm633_vm0, %v10197_v28, -inf }
 0x1d1   : > { %895 = vperm.xlu1 %8385, %v624_v58   ;;  %v8440_v58 = vpop.eup %8439 }
 0x1d2   : > { %v8442_v59 = vpop.eup %8441  ;;  %8445 = vrcp.f32 %v8440_v58 }
 0x1d3   : > { %8447 = vrcp.f32 %v8442_v59 }
 0x1d4   : > { %925 = vperm.xlu0 %8386, %v630_v0   ;;  %v1474_v0 = vsel %vm633_vm0, %v10165_v46, -inf }
 0x1d5   : > { %890 = vperm.xlu1 %8385, %v623_v2   ;;  %v8444_v2 = vpop.eup %8443 }
 0x1d6   : > { %8449 = vrcp.f32 %v8444_v2 }
 0x1df   : > { %v8446_v7 = vpop.eup %8445 }
 0x1e0   : > { %v8448_v11 = vpop.eup %8447  ;;  %v627_v18 = vmul.f32 %v8446_v7, %v8440_v58  ;;  %v549_v58 = vsub.f32 %v10173_v3, %v10173_v3 }
 0x1e2   : > { %v577_v7 = vmul.f32 1.442695, %v549_v58 }
 0x1e4   : > { %8451 = vpow2.f32 %v577_v7 }
 0x1f3   : > { %1478 = vmax.xlane.f32.xlu0 %v1477_v17  ;;  %v6784_v17 = vld [vmem:[%s9818_s23 + $0x160] sm:$0xff] }
 0x1f4   : > { %7710 = vmatprep.subr.mxu0 %v6784_v17 }
 0x1f5   : > { %7711 = vmatpush3.msra.mxu0 %v6784_v17  ;;  %v6827_v17 = vld [vmem:[%s9813_s20 + $0x1b8] sm:$0xff] }
 0x1f6   : > { %7712 = vmatprep.subr.mxu0 %v6783_v61 }
 0x1f7   : > { %7713 = vmatpush3.msra.mxu0 %v6783_v61  ;;  %v6825_v61 = vld [vmem:[%s9813_s20 + $0x1a8] sm:$0xff] }
 0x1f9   : > { %1469 = vmax.xlane.f32.xlu1 %v1468_v20  ;;  %v1425_v20 = vmul.f32 %v8448_v11, %v8442_v59  ;;  %v6777_v59 = vld [vmem:[%s9818_s23 + $0x128] sm:$0xff]  ;;  %v6828_v11 = vld [vmem:[%s9813_s20 + $0x1c0] sm:$0xff] }
 0x209   : > { %935 = vperm.xlu0 %8386, %v632_v23   ;;  %v8450_v23 = vpop.eup %8449 }
 0x20a   : > { %900 = vperm.xlu1 %8385, %v625_v25   ;;  %v6782_v25 = vld [vmem:[%s9818_s23 + $0x150] sm:$0xff]  ;;  %v1428_v32 = vmul.f32 %v8450_v23, %v8444_v2  ;;  %v6776_v2 = vld [vmem:[%s9818_s23 + $0x120] sm:$0xff] }
 0x20b   : > { %7714 = vmatprep.subr.mxu0 %v6782_v25  ;;  %v6824_v23 = vld [vmem:[%s9813_s20 + $0x1a0] sm:$0xff] }
 0x20c   : > { %7715 = vmatpush3.msra.mxu0 %v6782_v25  ;;  %v6823_v25 = vld [vmem:[%s9813_s20 + $0x198] sm:$0xff] }
 0x20d   : > { %7716 = vmatprep.subr.mxu0 %v6781_v38 }
 0x20e   : > { %7717 = vmatpush3.msra.mxu0 %v6781_v38  ;;  %v10246_v38 = vld [vmem:[%s14494_s2 + $0x10] sm:$0xff] }
 0x20f   : > { %7718 = vmatprep.subr.mxu0 %v6780_v39 }
 0x210   : > { %7719 = vmatpush3.msra.mxu0 %v6780_v39  ;;  %v10249_v39 = vpop.f32.mrf.mxu1 }
 0x211   : > { %7720 = vmatprep.subr.mxu0 %v6779_v45  ;;  %14898 = vst [vmem:[#allocation19_spill] sm:$0xff] %v10249_v39 }
 0x212   : > { %7721 = vmatpush3.msra.mxu0 %v6779_v45  ;;  %v6821_v45 = vld [vmem:[%s9813_s20 + $0x188] sm:$0xff]  ;;  %v10265_v58 = vpop.f32.mrf.mxu1 }
 0x228   : > { %1484 = vmax.xlane.f32.xlu0 %v1483_v55  ;;  %v6778_v55 = vld [vmem:[%s9818_s23 + $0x130] sm:$0xff] }
 0x229   : > { %7722 = vmatprep.subr.mxu0 %v6778_v55 }
 0x22a   : > { %7723 = vmatpush3.msra.mxu0 %v6778_v55  ;;  %v10262_v55 = vld [vmem:[%s14494_s2 + $0x20] sm:$0xff] }
 0x22b   : > { %7724 = vmatprep.subr.mxu0 %v6777_v59 }
 0x22c   : > { %2248 = vmax.xlane.f32.xlu0 %v2247_v57  ;;  %v6830_v57 = vld [vmem:[%s9813_s20 + $0x1d0] sm:$0xff]  ;;  %7725 = vmatpush3.msra.mxu0 %v6777_v59  ;;  %v1480_v59 = vsel %vm633_vm0, %v10177_v15, -inf  ;;  %v1486_v15 = vsel %vm633_vm0, %v10189_v52, -inf }
 0x22d   : > { %7882 = vmatprep.subr.mxu1 %v6830_v57  ;;  %7726 = vmatprep.subr.mxu0 %v6776_v2 }
 0x22e   : > { %1475 = vmax.xlane.f32.xlu1 %v1474_v0  ;;  %v7632_v0 = vpop.f32.mrf.mxu0  ;;  %7883 = vmatpush3.msra.mxu1 %v6830_v57  ;;  %v8452_v57 = vpop.eup %8451 }
 0x22f   : > { %7884 = vmatprep.subr.mxu1 %v6829_v6  ;;  %v1350_v3 = vsub.f32 %v7632_v0, %v7632_v0  ;;  %7727 = vmatpush3.msra.mxu0 %v6776_v2  ;;  %v10272_v0 = vld [vmem:[%s14494_s2 + $0x28] sm:$0xff]  ;;  %v2253_v2 = vsel %vm633_vm0, %v10265_v58, -inf }
 0x230   : > { %7885 = vmatpush3.msra.mxu1 %v6829_v6  ;;  %7728 = vmatprep.subr.mxu0 %v6775_v9  ;;  %v10280_v6 = vld [vmem:[%s14494_s2 + $0x30] sm:$0xff] }
 0x231   : > { %7886 = vmatprep.subr.mxu1 %v6828_v11  ;;  %7729 = vmatpush3.msra.mxu0 %v6775_v9  ;;  %v10294_v9 = vld [vmem:[%s14494_s2 + $0x40] sm:$0xff] }
 0x232   : > { %7887 = vmatpush3.msra.mxu1 %v6828_v11  ;;  %7730 = vmatprep.subr.mxu0 %v6774_v13  ;;  %v10302_v11 = vld [vmem:[%s14494_s2 + $0x48] sm:$0xff] }
 0x233   : > { %7888 = vmatprep.subr.mxu1 %v6827_v17  ;;  %7731 = vmatpush3.msra.mxu0 %v6774_v13  ;;  %v10308_v13 = vld [vmem:[%s14494_s2 + $0x50] sm:$0xff] }
 0x234   : > { %7889 = vmatpush3.msra.mxu1 %v6827_v17  ;;  %7732 = vmatprep.subr.mxu0 %v6773_v19  ;;  %v10316_v17 = vld [vmem:[%s14494_s2 + $0x58] sm:$0xff] }
 0x235   : > { %7733 = vmatpush3.msra.mxu0 %v6773_v19 }
 0x236   : > { %7734 = vmatprep.subr.mxu0 %v6772_v21 }
 0x237   : > { %7735 = vmatpush3.msra.mxu0 %v6772_v21  ;;  %v10336_v21 = vld [vmem:[%s14494_s2 + $0x70] sm:$0xff] }
 0x238   : > { %7737 = vmatmul.mubr.f32.vlgmr.msra.gmra.mxu0 %v10239_v30 }
 0x239   : > { %7739 = vmatprep.mubr.f32.mxu0 %v10246_v38 }
 0x23c   : > { %7740 = vmatmul.mubr.f32.gmra.mxu0 %v10254_v43 }
 0x23d   : > { %7742 = vmatprep.mubr.f32.mxu0 %v10262_v55 }
 0x23f   : > { %910 = vperm.xlu1 %8385, %v627_v18   ;;  %v6826_v18 = vld [vmem:[%s9813_s20 + $0x1b0] sm:$0xff] }
 0x240   : > { %7890 = vmatprep.subr.mxu1 %v6826_v18  ;;  %7743 = vmatmul.mubr.f32.gmra.mxu0 %v10272_v0 }
 0x241   : > { %7891 = vmatpush3.msra.mxu1 %v6826_v18  ;;  %7745 = vmatprep.mubr.f32.mxu0 %v10280_v6  ;;  %v10322_v18 = vld [vmem:[%s14494_s2 + $0x60] sm:$0xff] }
 0x242   : > { %1667 = vperm.xlu0 %8386, %v1425_v20   ;;  %v1371_v20 = vmul.f32 1.442695, %v1350_v3  ;;  %7892 = vmatprep.subr.mxu1 %v6825_v61  ;;  %v10288_v3 = vld [vmem:[%s14494_s2 + $0x38] sm:$0xff] }
 0x243   : > { %7893 = vmatpush3.msra.mxu1 %v6825_v61 }
 0x244   : > { %8453 = vpow2.f32 %v1371_v20  ;;  %7894 = vmatprep.subr.mxu1 %v6824_v23  ;;  %7746 = vmatmul.mubr.f32.gmra.mxu0 %v10288_v3  ;;  %v10330_v20 = vld [vmem:[%s14494_s2 + $0x68] sm:$0xff] }
 0x245   : > { %7895 = vmatpush3.msra.mxu1 %v6824_v23  ;;  %8455 = vrcp.f32 %v8452_v57  ;;  %7748 = vmatprep.mubr.f32.mxu0 %v10294_v9 }
 0x246   : > { %1682 = vperm.xlu0 %8386, %v1428_v32   ;;  %v6822_v32 = vld [vmem:[%s9813_s20 + $0x190] sm:$0xff]  ;;  %7896 = vmatprep.subr.mxu1 %v6823_v25 }
 0x247   : > { %7897 = vmatpush3.msra.mxu1 %v6823_v25  ;;  %v10344_v25 = vld [vmem:[%s14494_s2 + $0x78] sm:$0xff] }
 0x248   : > { %7898 = vmatprep.subr.mxu1 %v6822_v32  ;;  %7749 = vmatmul.mubr.f32.gmra.mxu0 %v10302_v11 }
 0x249   : > { %7899 = vmatpush3.msra.mxu1 %v6822_v32  ;;  %7751 = vmatprep.mubr.f32.mxu0 %v10308_v13  ;;  %v10350_v32 = vld [vmem:[%s14494_s2] sm:$0xff] }
 0x24a   : > { %7900 = vmatprep.subr.mxu1 %v6821_v45 }
 0x24b   : > { %7901 = vmatpush3.msra.mxu1 %v6821_v45 }
 0x24c   : > { %7902 = vmatprep.subr.mxu1 %v6820_v51  ;;  %7752 = vmatmul.mubr.f32.gmra.mxu0 %v10316_v17 }
 0x24d   : > { %7903 = vmatpush3.msra.mxu1 %v6820_v51  ;;  %7754 = vmatprep.mubr.f32.mxu0 %v10322_v18  ;;  %v10357_v51 = vpop.f32.mrf.mxu0 }
 0x24e   : > { %7905 = vmatmul.mubr.f32.vlgmr.msra.gmra.mxu1 %v10239_v30 }
 0x24f   : > { %7907 = vmatprep.mubr.f32.mxu1 %v10246_v38 }
 0x250   : > { %7755 = vmatmul.mubr.f32.gmra.mxu0 %v10330_v20 }
 0x251   : > { %v8454_v7 = vpop.eup %8453  ;;  %7757 = vmatprep.mubr.f32.mxu0 %v10336_v21 }
 0x252   : > { %8457 = vrcp.f32 %v8454_v7  ;;  %7908 = vmatmul.mubr.f32.gmra.mxu1 %v10254_v43  ;;  %v8456_v19 = vpop.eup %8455 }
 0x253   : > { %7910 = vmatprep.mubr.f32.mxu1 %v10262_v55  ;;  %v629_v61 = vmul.f32 %v8456_v19, %v8452_v57  ;;  %v551_v57 = vsub.f32 %v10185_v26, %v10185_v26 }
 0x254   : > { %7758 = vmatmul.mubr.f32.gmra.mxu0 %v10344_v25 }
 0x255   : > { %7848 = vmatprep.mubr.f32.mxu0 %v10350_v32 }
 0x256   : > { %7911 = vmatmul.mubr.f32.gmra.mxu1 %v10272_v0 }
 0x257   : > { %7913 = vmatprep.mubr.f32.mxu1 %v10280_v6 }
 0x25a   : > { %7914 = vmatmul.mubr.f32.gmra.mxu1 %v10288_v3 }
 0x25b   : > { %7916 = vmatprep.mubr.f32.mxu1 %v10294_v9 }
 0x25e   : > { %7917 = vmatmul.mubr.f32.gmra.mxu1 %v10302_v11 }
 0x25f   : > { %v8458_v23 = vpop.eup %8457  ;;  %7919 = vmatprep.mubr.f32.mxu1 %v10308_v13 }
 0x260   : > { %v1430_v45 = vmul.f32 %v8458_v23, %v8454_v7 }
 0x262   : > { %7920 = vmatmul.mubr.f32.gmra.mxu1 %v10316_v17 }
 0x263   : > { %1481 = vmax.xlane.f32.xlu1 %v1480_v59  ;;  %7922 = vmatprep.mubr.f32.mxu1 %v10322_v18  ;;  %v7635_v59 = vpop.f32.mrf.mxu0 }
 0x264   : > { %v1352_v7 = vsub.f32 %v7635_v59, %v7635_v59 }
 0x265   : > { %2254 = vmax.xlane.f32.xlu0 %v2253_v2  ;;  %v581_v2 = vmul.f32 1.442695, %v551_v57 }
 0x266   : > { %7923 = vmatmul.mubr.f32.gmra.mxu1 %v10330_v20  ;;  %v1375_v19 = vmul.f32 1.442695, %v1352_v7 }
 0x267   : > { %7925 = vmatprep.mubr.f32.mxu1 %v10336_v21  ;;  %8459 = vpow2.f32 %v581_v2 }
 0x268   : > { %8461 = vpow2.f32 %v1375_v19  ;;  %v10371_v19 = vpop.f32.mrf.mxu0 }
 0x26a   : > { %7926 = vmatmul.mubr.f32.gmra.mxu1 %v10344_v25  ;;  %v7638_v52 = vpop.f32.mrf.mxu0 }
 0x26b   : > { %8016 = vmatprep.mubr.f32.mxu1 %v10350_v32  ;;  %v1354_v34 = vsub.f32 %v7638_v52, %v7638_v52 }
 0x26c   : > { %v10383_v52 = vpop.f32.mrf.mxu0 }
 0x26d   : > { %v1379_v27 = vmul.f32 1.442695, %v1354_v34 }
 0x274   : > { %920 = vperm.xlu1 %8385, %v629_v61   ;;  %v10363_v61 = vpop.f32.mrf.mxu1  ;;  %v8460_v23 = vpop.eup %8459 }
 0x275   : > { %14899 = vst [vmem:[#allocation20_spill] sm:$0xff] %v10363_v61  ;;  %8463 = vrcp.f32 %v8460_v23  ;;  %v8462_v46 = vpop.eup %8461 }
 0x276   : > { %8465 = vrcp.f32 %v8462_v46 }
 0x277   : > { %8467 = vpow2.f32 %v1363_v42 }
 0x278   : > { %8469 = vpow2.f32 %v1379_v27 }
 0x27b   : > { %1692 = vperm.xlu0 %8386, %v1430_v45   ;;  %v10365_v45 = vpop.f32.mrf.mxu1 }
 0x27c   : > { %v2259_v26 = vsel %vm633_vm0, %v10365_v45, -inf }
 0x282   : > { %v8464_v57 = vpop.eup %8463 }
 0x283   : > { %v631_v59 = vmul.f32 %v8464_v57, %v8460_v23  ;;  %v8466_v2 = vpop.eup %8465  ;;  %v1347_v57 = vsub.f32 %v10217_v53, %v10217_v53 }
 0x284   : > { %v1432_v7 = vmul.f32 %v8466_v2, %v8462_v46  ;;  %v2250_v46 = vsel %vm633_vm0, %v10193_v24, -inf }
 0x285   : > { %v1365_v2 = vmul.f32 1.442695, %v1347_v57  ;;  %v1349_v57 = vsub.f32 %v10357_v51, %v10357_v51 }
 0x298   : > { %1487 = vmax.xlane.f32.xlu1 %v1486_v15  ;;  %v10375_v15 = vpop.f32.mrf.mxu1 }
 0x299   : > { %14900 = vst [vmem:[#allocation21_spill] sm:$0xff] %v10375_v15 }
 0x29a   : > { %2260 = vmax.xlane.f32.xlu0 %v2259_v26  ;;  %v8468_v26 = vpop.eup %8467  ;;  %v10377_v8 = vpop.f32.mrf.mxu1 }
 0x29b   : > { %8471 = vrcp.f32 %v8468_v26  ;;  %v2265_v23 = vsel %vm633_vm0, %v10377_v8, -inf  ;;  %v8470_v29 = vpop.eup %8469 }
 0x29c   : > { %8473 = vrcp.f32 %v8470_v29 }
 0x29d   : > { %8475 = vpow2.f32 %v1365_v2  ;;  %v1369_v2 = vmul.f32 1.442695, %v1349_v57  ;;  %v1351_v57 = vsub.f32 %v10371_v19, %v10371_v19 }
 0x2a8   : > { %v8472_v12 = vpop.eup %8471 }
 0x2a9   : > { %930 = vperm.xlu1 %8385, %v631_v59   ;;  %v1426_v42 = vmul.f32 %v8472_v12, %v8468_v26  ;;  %v8474_v34 = vpop.eup %8473  ;;  %v7641_v59 = vpop.f32.mrf.mxu0  ;;  %v2256_v26 = vsel %vm633_vm0, %v10249_v39, -inf }
 0x2aa   : > { %v1434_v27 = vmul.f32 %v8474_v34, %v8470_v29 }
 0x2b0   : > { %1702 = vperm.xlu0 %8386, %v1432_v7   ;;  %v1356_v7 = vsub.f32 %v7641_v59, %v7641_v59 }
 0x2b2   : > { %v1383_v24 = vmul.f32 1.442695, %v1356_v7 }
 0x2b4   : > { %8477 = vpow2.f32 %v1383_v24 }
 0x2cd   : > { %2251 = vmax.xlane.f32.xlu1 %v2250_v46  ;;  %v10387_v46 = vpop.f32.mrf.mxu1 }
 0x2ce   : > { %14901 = vst [vmem:[#allocation22_spill] sm:$0xff] %v10387_v46 }
 0x2cf   : > { %2266 = vmax.xlane.f32.xlu0 %v2265_v23  ;;  %v8476_v23 = vpop.eup %8475  ;;  %v10389_v4 = vpop.f32.mrf.mxu1 }
 0x2d0   : > { %8479 = vrcp.f32 %v8476_v23  ;;  %v2271_v29 = vsel %vm633_vm0, %v10389_v4, -inf  ;;  %v8478_v53 = vpop.eup %8477 }
 0x2d1   : > { %8481 = vrcp.f32 %v8478_v53 }
 0x2d2   : > { %8483 = vpow2.f32 %v1369_v2  ;;  %v1373_v2 = vmul.f32 1.442695, %v1351_v57  ;;  %v1353_v57 = vsub.f32 %v10383_v52, %v10383_v52  ;;  %v2274_v52 = vsel %vm633_vm0, %v10387_v46, -inf  ;;  %v6815_v46 = vld [vmem:[%s9818_s23 + $0x1d8] sm:$0xff] }
 0x2dd   : > { %v8480_v12 = vpop.eup %8479 }
 0x2de   : > { %1672 = vperm.xlu1 %8385, %v1426_v42   ;;  %v1427_v42 = vmul.f32 %v8480_v12, %v8476_v23  ;;  %v8482_v34 = vpop.eup %8481  ;;  %v2262_v23 = vsel %vm633_vm0, %v10363_v61, -inf }
 0x2df   : > { %v1436_v24 = vmul.f32 %v8482_v34, %v8478_v53 }
 0x2e5   : > { %1712 = vperm.xlu0 %8386, %v1434_v27   ;;  %v10395_v27 = vpop.f32.mrf.mxu0 }
 0x2e7   : > { %v7644_v59 = vpop.f32.mrf.mxu0 }
 0x2e8   : > { %v1358_v7 = vsub.f32 %v7644_v59, %v7644_v59 }
 0x2ea   : > { %v1387_v39 = vmul.f32 1.442695, %v1358_v7 }
 0x2ec   : > { %8485 = vpow2.f32 %v1387_v39 }
 0x302   : > { %2257 = vmax.xlane.f32.xlu1 %v2256_v26  ;;  %v10399_v26 = vpop.f32.mrf.mxu1 }
 0x303   : > { %14902 = vst [vmem:[#allocation23_spill] sm:$0xff] %v10399_v26 }
 0x304   : > { %2272 = vmax.xlane.f32.xlu0 %v2271_v29  ;;  %v8484_v29 = vpop.eup %8483  ;;  %v10401_v63 = vpop.f32.mrf.mxu1 }
 0x305   : > { %8487 = vrcp.f32 %v8484_v29  ;;  %v2277_v53 = vsel %vm633_vm0, %v10401_v63, -inf  ;;  %v8486_v51 = vpop.eup %8485 }
 0x306   : > { %8489 = vrcp.f32 %v8486_v51 }
 0x307   : > { %8491 = vpow2.f32 %v1373_v2  ;;  %v1377_v2 = vmul.f32 1.442695, %v1353_v57 }
 0x312   : > { %v8488_v12 = vpop.eup %8487 }
 0x313   : > { %1677 = vperm.xlu1 %8385, %v1427_v42   ;;  %v1429_v42 = vmul.f32 %v8488_v12, %v8484_v29  ;;  %v8490_v34 = vpop.eup %8489  ;;  %v2268_v29 = vsel %vm633_vm0, %v10375_v15, -inf }
 0x314   : > { %v1438_v39 = vmul.f32 %v8490_v34, %v8486_v51 }
 0x31a   : > { %1722 = vperm.xlu0 %8386, %v1436_v24   ;;  %v10407_v24 = vpop.f32.mrf.mxu0 }
 0x31c   : > { %v7647_v59 = vpop.f32.mrf.mxu0 }
 0x31d   : > { %v1360_v7 = vsub.f32 %v7647_v59, %v7647_v59 }
 0x31f   : > { %v1391_v61 = vmul.f32 1.442695, %v1360_v7 }
 0x321   : > { %8493 = vpow2.f32 %v1391_v61 }
 0x337   : > { %2263 = vmax.xlane.f32.xlu1 %v2262_v23  ;;  %v10411_v23 = vpop.f32.mrf.mxu1 }
 0x338   : > { %14903 = vst [vmem:[#allocation24_spill] sm:$0xff] %v10411_v23 }
 0x339   : > { %2278 = vmax.xlane.f32.xlu0 %v2277_v53  ;;  %v8492_v53 = vpop.eup %8491  ;;  %v10413_v60 = vpop.f32.mrf.mxu1 }
 0x33a   : > { %8495 = vrcp.f32 %v8492_v53  ;;  %v2283_v51 = vsel %vm633_vm0, %v10413_v60, -inf  ;;  %v8494_v19 = vpop.eup %8493 }
 0x33b   : > { %8497 = vrcp.f32 %v8494_v19  ;;  %v10425_v47 = vpop.f32.mrf.mxu1 }
 0x33c   : > { %8499 = vpow2.f32 %v1377_v2  ;;  %14904 = vst [vmem:[#allocation25_spill] sm:$0xff] %v10425_v47 }
 0x347   : > { %v8496_v12 = vpop.eup %8495 }
 0x348   : > { %1687 = vperm.xlu1 %8385, %v1429_v42   ;;  %v1431_v42 = vmul.f32 %v8496_v12, %v8492_v53  ;;  %v8498_v34 = vpop.eup %8497 }
 0x349   : > { %v1440_v61 = vmul.f32 %v8498_v34, %v8494_v19  ;;  %v10427_v19 = vpop.f32.mrf.mxu1  ;;  %v8500_v12 = vpop.eup %8499 }
 0x34a   : > { %14905 = vst [vmem:[#allocation26_spill] sm:$0xff] %v10427_v19  ;;  %v2289_v34 = vsel %vm633_vm0, %v10427_v19, -inf }
 0x34f   : > { %1732 = vperm.xlu0 %8386, %v1438_v39   ;;  %v10419_v39 = vpop.f32.mrf.mxu0 }
 0x351   : > { %v10423_v59 = vpop.f32.mrf.mxu0 }
 0x353   : > { %v1927_v7 = vpop.f32.mrf.mxu0 }
 0x355   : > { %v7741_v15 = vpop.f32.mrf.mxu0 }
 0x356   : > { %v2154_v54 = vsub.f32 %v7741_v15, %v7741_v15 }
 0x358   : > { %v2173_v53 = vmul.f32 1.442695, %v2154_v54 }
 0x36c   : > { %2269 = vmax.xlane.f32.xlu1 %v2268_v29  ;;  %v2151_v29 = vsub.f32 %v1927_v7, %v1927_v7 }
 0x36e   : > { %2284 = vmax.xlane.f32.xlu0 %v2283_v51  ;;  %v2167_v51 = vmul.f32 1.442695, %v2151_v29  ;;  %v6819_v29 = vld [vmem:[%s9818_s23 + $0x1f8] sm:$0xff] }
 0x36f   : > { %7816 = vmatprep.subr.mxu0 %v6819_v29 }
 0x370   : > { %8501 = vpow2.f32 %v2167_v51  ;;  %7817 = vmatpush3.msra.mxu0 %v6819_v29  ;;  %v6818_v51 = vld [vmem:[%s9818_s23 + $0x1f0] sm:$0xff] }
 0x371   : > { %8503 = vpow2.f32 %v2173_v53  ;;  %v6817_v53 = vld [vmem:[%s9818_s23 + $0x1e8] sm:$0xff]  ;;  %7818 = vmatprep.subr.mxu0 %v6818_v51 }
 0x372   : > { %8505 = vrcp.f32 %v8500_v12  ;;  %7819 = vmatpush3.msra.mxu0 %v6818_v51  ;;  %v6813_v51 = vld [vmem:[%s9818_s23 + $0x1c8] sm:$0xff] }
 0x373   : > { %7820 = vmatprep.subr.mxu0 %v6817_v53 }
 0x374   : > { %7821 = vmatpush3.msra.mxu0 %v6817_v53  ;;  %v6812_v53 = vld [vmem:[%s9818_s23 + $0x1c0] sm:$0xff] }
 0x37d   : > { %1697 = vperm.xlu1 %8385, %v1431_v42   ;;  %v10429_v42 = vpop.f32.mrf.mxu1 }
 0x37e   : > { %14906 = vst [vmem:[#allocation27_spill] sm:$0xff] %v10429_v42 }
 0x37f   : > { %v10435_v15 = vpop.f32.mrf.mxu1 }
 0x380   : > { %14907 = vst [vmem:[#allocation28_spill] sm:$0xff] %v10435_v15  ;;  %v3053_v54 = vsel %vm633_vm0, %v10435_v15, -inf }
 0x384   : > { %1742 = vperm.xlu0 %8386, %v1440_v61   ;;  %v8502_v61 = vpop.eup %8501 }
 0x385   : > { %8507 = vrcp.f32 %v8502_v61  ;;  %v8504_v57 = vpop.eup %8503 }
 0x386   : > { %v8506_v2 = vpop.eup %8505  ;;  %8509 = vrcp.f32 %v8504_v57 }
 0x387   : > { %v1433_v7 = vmul.f32 %v8506_v2, %v8500_v12  ;;  %v6814_v12 = vld [vmem:[%s9818_s23 + $0x1d0] sm:$0xff]  ;;  %v6867_v2 = vld [vmem:[%s9813_s20 + $0x278] sm:$0xff] }
 0x388   : > { %7984 = vmatprep.subr.mxu1 %v6867_v2 }
 0x389   : > { %7985 = vmatpush3.msra.mxu1 %v6867_v2  ;;  %v6862_v2 = vld [vmem:[%s9813_s20 + $0x250] sm:$0xff] }
 0x3a1   : > { %2275 = vmax.xlane.f32.xlu1 %v2274_v52  ;;  %v8508_v52 = vpop.eup %8507 }
 0x3a2   : > { %v8510_v41 = vpop.eup %8509 }
 0x3a3   : > { %2290 = vmax.xlane.f32.xlu0 %v2289_v34  ;;  %v6816_v34 = vld [vmem:[%s9818_s23 + $0x1e0] sm:$0xff]  ;;  %v2234_v29 = vmul.f32 %v8510_v41, %v8504_v57  ;;  %v6810_v57 = vld [vmem:[%s9818_s23 + $0x1b0] sm:$0xff] }
 0x3a4   : > { %7822 = vmatprep.subr.mxu0 %v6816_v34  ;;  %v6864_v41 = vld [vmem:[%s9813_s20 + $0x260] sm:$0xff] }
 0x3a5   : > { %7823 = vmatpush3.msra.mxu0 %v6816_v34 }
 0x3a6   : > { %7824 = vmatprep.subr.mxu0 %v6815_v46 }
 0x3a7   : > { %3054 = vmax.xlane.f32.xlu0 %v3053_v54  ;;  %v2231_v54 = vmul.f32 %v8508_v52, %v8502_v61  ;;  %7825 = vmatpush3.msra.mxu0 %v6815_v46  ;;  %v6866_v61 = vld [vmem:[%s9813_s20 + $0x270] sm:$0xff]  ;;  %v6865_v52 = vld [vmem:[%s9813_s20 + $0x268] sm:$0xff]  ;;  %v10454_v46 = vpop.f32.mrf.mxu0 }
 0x3a8   : > { %7826 = vmatprep.subr.mxu0 %v6814_v12  ;;  %7986 = vmatprep.subr.mxu1 %v6866_v61 }
 0x3a9   : > { %7827 = vmatpush3.msra.mxu0 %v6814_v12  ;;  %7987 = vmatpush3.msra.mxu1 %v6866_v61  ;;  %v6809_v12 = vld [vmem:[%s9818_s23 + $0x1a8] sm:$0xff] }
 0x3aa   : > { %7828 = vmatprep.subr.mxu0 %v6813_v51  ;;  %7988 = vmatprep.subr.mxu1 %v6865_v52 }
 0x3ab   : > { %7829 = vmatpush3.msra.mxu0 %v6813_v51  ;;  %7989 = vmatpush3.msra.mxu1 %v6865_v52  ;;  %v6861_v51 = vld [vmem:[%s9813_s20 + $0x248] sm:$0xff]  ;;  %v6860_v52 = vld [vmem:[%s9813_s20 + $0x240] sm:$0xff] }
 0x3ac   : > { %7830 = vmatprep.subr.mxu0 %v6812_v53  ;;  %7990 = vmatprep.subr.mxu1 %v6864_v41 }
 0x3ad   : > { %7831 = vmatpush3.msra.mxu0 %v6812_v53  ;;  %7991 = vmatpush3.msra.mxu1 %v6864_v41  ;;  %v6807_v53 = vld [vmem:[%s9818_s23 + $0x198] sm:$0xff]  ;;  %v6805_v41 = vld [vmem:[%s9818_s23 + $0x188] sm:$0xff] }
 0x3b2   : > { %1707 = vperm.xlu1 %8385, %v1433_v7   ;;  %v1355_v7 = vsub.f32 %v10395_v27, %v10395_v27  ;;  %v6811_v27 = vld [vmem:[%s9818_s23 + $0x1b8] sm:$0xff] }
 0x3b3   : > { %7832 = vmatprep.subr.mxu0 %v6811_v27 }
 0x3b4   : > { %v1381_v34 = vmul.f32 1.442695, %v1355_v7  ;;  %7833 = vmatpush3.msra.mxu0 %v6811_v27  ;;  %v7744_v7 = vpop.f32.mrf.mxu0  ;;  %v6859_v27 = vld [vmem:[%s9813_s20 + $0x238] sm:$0xff] }
 0x3b5   : > { %7834 = vmatprep.subr.mxu0 %v6810_v57  ;;  %v2156_v61 = vsub.f32 %v7744_v7, %v7744_v7 }
 0x3b6   : > { %8511 = vpow2.f32 %v1381_v34  ;;  %7835 = vmatpush3.msra.mxu0 %v6810_v57  ;;  %v6806_v34 = vld [vmem:[%s9818_s23 + $0x190] sm:$0xff] }
 0x3b7   : > { %7836 = vmatprep.subr.mxu0 %v6809_v12  ;;  %v2177_v57 = vmul.f32 1.442695, %v2156_v61  ;;  %v6855_v61 = vld [vmem:[%s9813_s20 + $0x218] sm:$0xff] }
 0x3b8   : > { %7837 = vmatpush3.msra.mxu0 %v6809_v12  ;;  %v6804_v12 = vld [vmem:[%s9818_s23 + $0x180] sm:$0xff] }
 0x3b9   : > { %8513 = vpow2.f32 %v2177_v57 }
 0x3bd   : > { %2473 = vperm.xlu0 %8386, %v2231_v54   ;;  %v6863_v54 = vld [vmem:[%s9813_s20 + $0x258] sm:$0xff] }
 0x3be   : > { %7992 = vmatprep.subr.mxu1 %v6863_v54 }
 0x3bf   : > { %7993 = vmatpush3.msra.mxu1 %v6863_v54  ;;  %v6858_v54 = vld [vmem:[%s9813_s20 + $0x230] sm:$0xff] }
 0x3c0   : > { %7994 = vmatprep.subr.mxu1 %v6862_v2 }
 0x3c1   : > { %2488 = vperm.xlu0 %8386, %v2234_v29   ;;  %v6808_v29 = vld [vmem:[%s9818_s23 + $0x1a0] sm:$0xff]  ;;  %7995 = vmatpush3.msra.mxu1 %v6862_v2  ;;  %v6857_v2 = vld [vmem:[%s9813_s20 + $0x228] sm:$0xff] }
 0x3c2   : > { %7838 = vmatprep.subr.mxu0 %v6808_v29  ;;  %7996 = vmatprep.subr.mxu1 %v6861_v51 }
 0x3c3   : > { %7839 = vmatpush3.msra.mxu0 %v6808_v29  ;;  %7997 = vmatpush3.msra.mxu1 %v6861_v51  ;;  %v8512_v7 = vpop.eup %8511  ;;  %v6856_v29 = vld [vmem:[%s9813_s20 + $0x220] sm:$0xff]  ;;  %v2280_v51 = vsel %vm633_vm0, %v10399_v26, -inf  ;;  %v6847_v26 = vld [vmem:[%s9818_s23 + $0x258] sm:$0xff] }
 0x3c4   : > { %7840 = vmatprep.subr.mxu0 %v6807_v53  ;;  %7998 = vmatprep.subr.mxu1 %v6860_v52  ;;  %8515 = vrcp.f32 %v8512_v7 }
 0x3c5   : > { %7841 = vmatpush3.msra.mxu0 %v6807_v53  ;;  %7999 = vmatpush3.msra.mxu1 %v6860_v52  ;;  %v10476_v53 = vpop.f32.mrf.mxu1  ;;  %v6854_v52 = vld [vmem:[%s9813_s20 + $0x210] sm:$0xff] }
 0x3c6   : > { %7842 = vmatprep.subr.mxu0 %v6806_v34  ;;  %8000 = vmatprep.subr.mxu1 %v6859_v27  ;;  %14908 = vst [vmem:[#allocation29_spill] sm:$0xff] %v10476_v53 }
 0x3c7   : > { %7843 = vmatpush3.msra.mxu0 %v6806_v34  ;;  %8001 = vmatpush3.msra.mxu1 %v6859_v27  ;;  %v6853_v34 = vld [vmem:[%s9813_s20 + $0x208] sm:$0xff]  ;;  %v10482_v27 = vpop.f32.mrf.mxu1 }
 0x3c8   : > { %7844 = vmatprep.subr.mxu0 %v6805_v41  ;;  %8002 = vmatprep.subr.mxu1 %v6858_v54  ;;  %14909 = vst [vmem:[#allocation30_spill] sm:$0xff] %v10482_v27  ;;  %v3059_v57 = vsel %vm633_vm0, %v10482_v27, -inf }
 0x3c9   : > { %7845 = vmatpush3.msra.mxu0 %v6805_v41  ;;  %8003 = vmatpush3.msra.mxu1 %v6858_v54  ;;  %v6852_v41 = vld [vmem:[%s9813_s20 + $0x200] sm:$0xff]  ;;  %v8514_v54 = vpop.eup %8513 }
 0x3ca   : > { %7846 = vmatprep.subr.mxu0 %v6804_v12  ;;  %8004 = vmatprep.subr.mxu1 %v6857_v2  ;;  %8517 = vrcp.f32 %v8514_v54 }
 0x3cb   : > { %7847 = vmatpush3.msra.mxu0 %v6804_v12  ;;  %8005 = vmatpush3.msra.mxu1 %v6857_v2 }
 0x3cc   : > { %7849 = vmatmul.mubr.f32.vlgmr.msra.gmra.mxu0 %v10239_v30  ;;  %8006 = vmatprep.subr.mxu1 %v6856_v29 }
 0x3cd   : > { %7851 = vmatprep.mubr.f32.mxu0 %v10246_v38  ;;  %8007 = vmatpush3.msra.mxu1 %v6856_v29 }
 0x3ce   : > { %8008 = vmatprep.subr.mxu1 %v6855_v61 }
 0x3cf   : > { %8009 = vmatpush3.msra.mxu1 %v6855_v61 }
 0x3d0   : > { %7852 = vmatmul.mubr.f32.gmra.mxu0 %v10254_v43  ;;  %8010 = vmatprep.subr.mxu1 %v6854_v52 }
 0x3d1   : > { %7854 = vmatprep.mubr.f32.mxu0 %v10262_v55  ;;  %8011 = vmatpush3.msra.mxu1 %v6854_v52  ;;  %v8516_v12 = vpop.eup %8515 }
 0x3d2   : > { %8012 = vmatprep.subr.mxu1 %v6853_v34  ;;  %v1435_v2 = vmul.f32 %v8516_v12, %v8512_v7  ;;  %v1359_v7 = vsub.f32 %v10419_v39, %v10419_v39 }
 0x3d3   : > { %8013 = vmatpush3.msra.mxu1 %v6853_v34 }
 0x3d4   : > { %7855 = vmatmul.mubr.f32.gmra.mxu0 %v10272_v0  ;;  %8014 = vmatprep.subr.mxu1 %v6852_v41 }
 0x3d5   : > { %7857 = vmatprep.mubr.f32.mxu0 %v10280_v6  ;;  %8015 = vmatpush3.msra.mxu1 %v6852_v41 }
 0x3d6   : > { %2281 = vmax.xlane.f32.xlu1 %v2280_v51  ;;  %8017 = vmatmul.mubr.f32.vlgmr.msra.gmra.mxu1 %v10239_v30  ;;  %v1389_v51 = vmul.f32 1.442695, %v1359_v7 }
 0x3d7   : > { %8019 = vmatprep.mubr.f32.mxu1 %v10246_v38  ;;  %v8518_v30 = vpop.eup %8517  ;;  %v1357_v38 = vsub.f32 %v10407_v24, %v10407_v24 }
 0x3d8   : > { %7858 = vmatmul.mubr.f32.gmra.mxu0 %v10288_v3 }
 0x3d9   : > { %7860 = vmatprep.mubr.f32.mxu0 %v10294_v9 }
 0x3da   : > { %8020 = vmatmul.mubr.f32.gmra.mxu1 %v10254_v43  ;;  %v2236_v43 = vmul.f32 %v8518_v30, %v8514_v54  ;;  %v2292_v54 = vsel %vm633_vm0, %v10425_v47, -inf  ;;  %v6850_v47 = vld [vmem:[%s9818_s23 + $0x270] sm:$0xff] }
 0x3db   : > { %8022 = vmatprep.mubr.f32.mxu1 %v10262_v55  ;;  %v1385_v55 = vmul.f32 1.442695, %v1357_v38 }
 0x3dc   : > { %7861 = vmatmul.mubr.f32.gmra.mxu0 %v10302_v11 }
 0x3dd   : > { %7863 = vmatprep.mubr.f32.mxu0 %v10308_v13  ;;  %8519 = vpow2.f32 %v1385_v55 }
 0x3de   : > { %8023 = vmatmul.mubr.f32.gmra.mxu1 %v10272_v0  ;;  %v10514_v0 = vpop.f32.mrf.mxu0 }
 0x3df   : > { %8025 = vmatprep.mubr.f32.mxu1 %v10280_v6 }
 0x3e0   : > { %3060 = vmax.xlane.f32.xlu0 %v3059_v57  ;;  %7864 = vmatmul.mubr.f32.gmra.mxu0 %v10316_v17  ;;  %v7747_v6 = vpop.f32.mrf.mxu0 }
 0x3e1   : > { %7866 = vmatprep.mubr.f32.mxu0 %v10322_v18 }
 0x3e2   : > { %8026 = vmatmul.mubr.f32.gmra.mxu1 %v10288_v3  ;;  %v2158_v3 = vsub.f32 %v7747_v6, %v7747_v6  ;;  %v10529_v61 = vpop.f32.mrf.mxu0  ;;  %v2152_v6 = vsub.f32 %v10423_v59, %v10423_v59 }
 0x3e3   : > { %8028 = vmatprep.mubr.f32.mxu1 %v10294_v9 }
 0x3e4   : > { %7867 = vmatmul.mubr.f32.gmra.mxu0 %v10330_v20  ;;  %v2181_v9 = vmul.f32 1.442695, %v2158_v3  ;;  %v7750_v52 = vpop.f32.mrf.mxu0 }
 0x3e5   : > { %7869 = vmatprep.mubr.f32.mxu0 %v10336_v21  ;;  %v2160_v34 = vsub.f32 %v7750_v52, %v7750_v52 }
 0x3e6   : > { %8029 = vmatmul.mubr.f32.gmra.mxu1 %v10302_v11  ;;  %8521 = vpow2.f32 %v2181_v9  ;;  %v2169_v9 = vmul.f32 1.442695, %v2152_v6  ;;  %v3062_v6 = vsel %vm633_vm0, %v10476_v53, -inf  ;;  %v6851_v53 = vld [vmem:[%s9818_s23 + $0x278] sm:$0xff] }
 0x3e7   : > { %1717 = vperm.xlu1 %8385, %v1435_v2   ;;  %8031 = vmatprep.mubr.f32.mxu1 %v10308_v13  ;;  %v2286_v13 = vsel %vm633_vm0, %v10411_v23, -inf  ;;  %v2185_v41 = vmul.f32 1.442695, %v2160_v34  ;;  %v6849_v23 = vld [vmem:[%s9818_s23 + $0x268] sm:$0xff] }
 0x3e8   : > { %7870 = vmatmul.mubr.f32.gmra.mxu0 %v10344_v25  ;;  %7928 = vmatprep.subr.mxu0 %v6851_v53 }
 0x3e9   : > { %7960 = vmatprep.mubr.f32.mxu0 %v10350_v32  ;;  %7929 = vmatpush3.msra.mxu0 %v6851_v53 }
 0x3ea   : > { %8032 = vmatmul.mubr.f32.gmra.mxu1 %v10316_v17  ;;  %v8520_v11 = vpop.eup %8519  ;;  %v10521_v17 = vpop.f32.mrf.mxu1  ;;  %7930 = vmatprep.subr.mxu0 %v6850_v47 }
 0x3eb   : > { %8034 = vmatprep.mubr.f32.mxu1 %v10322_v18  ;;  %8523 = vrcp.f32 %v8520_v11  ;;  %14910 = vst [vmem:[#allocation31_spill] sm:$0xff] %v10521_v17  ;;  %7931 = vmatpush3.msra.mxu0 %v6850_v47  ;;  %v6844_v47 = vld [vmem:[%s9818_s23 + $0x240] sm:$0xff] }
 0x3ec   : > { %v10523_v18 = vpop.f32.mrf.mxu1  ;;  %7932 = vmatprep.subr.mxu0 %v6849_v23 }
 0x3ed   : > { %14911 = vst [vmem:[#allocation32_spill] sm:$0xff] %v10523_v18  ;;  %7933 = vmatpush3.msra.mxu0 %v6849_v23 }
 0x3ee   : > { %8035 = vmatmul.mubr.f32.gmra.mxu1 %v10330_v20  ;;  %v3065_v20 = vsel %vm633_vm0, %v10523_v18, -inf  ;;  %v10533_v12 = vpop.f32.mrf.mxu1 }
 0x3ef   : > { %8037 = vmatprep.mubr.f32.mxu1 %v10336_v21  ;;  %14912 = vst [vmem:[#allocation33_spill] sm:$0xff] %v10533_v12 }
 0x3f0   : > { %v10535_v2 = vpop.f32.mrf.mxu1 }
 0x3f1   : > { %14913 = vst [vmem:[#allocation34_spill] sm:$0xff] %v10535_v2  ;;  %v3071_v39 = vsel %vm633_vm0, %v10535_v2, -inf }
 0x3f2   : > { %8038 = vmatmul.mubr.f32.gmra.mxu1 %v10344_v25 }
 0x3f3   : > { %8128 = vmatprep.mubr.f32.mxu1 %v10350_v32  ;;  %v8522_v21 = vpop.eup %8521 }
 0x3f4   : > { %8525 = vrcp.f32 %v8522_v21 }
 0x3f5   : > { %8527 = vpow2.f32 %v1389_v51 }
 0x3f6   : > { %2498 = vperm.xlu0 %8386, %v2236_v43   ;;  %8529 = vpow2.f32 %v2185_v41  ;;  %v2153_v41 = vsub.f32 %v10454_v46, %v10454_v46 }
 0x3f8   : > { %v8524_v25 = vpop.eup %8523 }
 0x3f9   : > { %v1437_v32 = vmul.f32 %v8524_v25, %v8520_v11  ;;  %v10541_v11 = vpop.f32.mrf.mxu0 }
 0x401   : > { %v8526_v24 = vpop.eup %8525 }
 0x402   : > { %v2238_v29 = vmul.f32 %v8526_v24, %v8522_v21  ;;  %v8528_v57 = vpop.eup %8527  ;;  %v10545_v24 = vpop.f32.mrf.mxu1 }
 0x403   : > { %8531 = vrcp.f32 %v8528_v57  ;;  %v8530_v30 = vpop.eup %8529  ;;  %14914 = vst [vmem:[#allocation35_spill] sm:$0xff] %v10545_v24 }
 0x404   : > { %8533 = vrcp.f32 %v8530_v30  ;;  %v10547_v7 = vpop.f32.mrf.mxu1 }
 0x405   : > { %8535 = vpow2.f32 %v2169_v9  ;;  %14915 = vst [vmem:[#allocation36_spill] sm:$0xff] %v10547_v7  ;;  %v3077_v59 = vsel %vm633_vm0, %v10547_v7, -inf }
 0x40b   : > { %2287 = vmax.xlane.f32.xlu1 %v2286_v13  ;;  %v7753_v13 = vpop.f32.mrf.mxu0 }
 0x410   : > { %v8532_v38 = vpop.eup %8531 }
 0x411   : > { %v1439_v43 = vmul.f32 %v8532_v38, %v8528_v57  ;;  %v8534_v55 = vpop.eup %8533 }
 0x412   : > { %v2240_v3 = vmul.f32 %v8534_v55, %v8530_v30  ;;  %v8536_v25 = vpop.eup %8535 }
 0x415   : > { %3066 = vmax.xlane.f32.xlu0 %v3065_v20  ;;  %v2162_v20 = vsub.f32 %v7753_v13, %v7753_v13 }
 0x417   : > { %v2189_v21 = vmul.f32 1.442695, %v2162_v20 }
 0x419   : > { %8537 = vpow2.f32 %v2189_v21 }
 0x41a   : > { %8539 = vrcp.f32 %v8536_v25 }
 0x41c   : > { %1727 = vperm.xlu1 %8385, %v1437_v32   ;;  %v3056_v32 = vsel %vm633_vm0, %v10429_v42, -inf }
 0x42b   : > { %2508 = vperm.xlu0 %8386, %v2238_v29   ;;  %v8538_v29 = vpop.eup %8537 }
 0x42c   : > { %v8540_v51 = vpop.eup %8539  ;;  %8541 = vrcp.f32 %v8538_v29 }
 0x42d   : > { %v2232_v52 = vmul.f32 %v8540_v51, %v8536_v25 }
 0x439   : > { %v8542_v34 = vpop.eup %8541 }
 0x43a   : > { %v2242_v57 = vmul.f32 %v8542_v34, %v8538_v29  ;;  %v10565_v29 = vpop.xlane.xlu0 %638 }
 0x43b   : > { %14918 = vst [vmem:[#allocation39_spill] sm:$0xff] %v10565_v29 }
 0x440   : > { %2293 = vmax.xlane.f32.xlu1 %v2292_v54  ;;  %v2171_v54 = vmul.f32 1.442695, %v2153_v41 }
 0x442   : > { %8543 = vpow2.f32 %v2171_v54 }
 0x44a   : > { %3072 = vmax.xlane.f32.xlu0 %v3071_v39  ;;  %v10553_v39 = vpop.f32.mrf.mxu0 }
 0x44b   : > { %v2161_v29 = vsub.f32 %v10553_v39, %v10553_v39  ;;  %v10724_v39 = vld [vmem:[%s14494_s2 + $0x68] sm:$0xff] }
 0x44c   : > { %v7756_v30 = vpop.f32.mrf.mxu0  ;;  %14938 = vst [vmem:[#allocation59_spill] sm:$0xff] %v10724_v39 }
 0x44d   : > { %v2164_v38 = vsub.f32 %v7756_v30, %v7756_v30  ;;  %v3068_v30 = vsel %vm633_vm0, %v10521_v17, -inf }
 0x44f   : > { %v8544_v55 = vpop.eup %8543 }
 0x451   : > { %1737 = vperm.xlu1 %8385, %v1439_v43   ;;  %v2193_v43 = vmul.f32 1.442695, %v2164_v38 }
 0x453   : > { %8545 = vpow2.f32 %v2193_v43 }
 0x454   : > { %8547 = vrcp.f32 %v8544_v55 }
 0x460   : > { %2518 = vperm.xlu0 %8386, %v2240_v3   ;;  %v10557_v3 = vpop.f32.mrf.mxu1  ;;  %v8546_v13 = vpop.eup %8545 }
 0x461   : > { %14916 = vst [vmem:[#allocation37_spill] sm:$0xff] %v10557_v3  ;;  %v8548_v20 = vpop.eup %8547  ;;  %8549 = vrcp.f32 %v8546_v13 }
 0x462   : > { %v10559_v9 = vpop.f32.mrf.mxu1  ;;  %v2233_v21 = vmul.f32 %v8548_v20, %v8544_v55 }
 0x463   : > { %14917 = vst [vmem:[#allocation38_spill] sm:$0xff] %v10559_v9  ;;  %v3083_v46 = vsel %vm633_vm0, %v10559_v9, -inf  ;;  %v10730_v9 = vld [vmem:[%s14494_s2 + $0x70] sm:$0xff] }
 0x464   : > { %v10571_v38 = vpop.f32.mrf.mxu1  ;;  %14939 = vst [vmem:[#allocation60_spill] sm:$0xff] %v10730_v9 }
 0x465   : > { %14919 = vst [vmem:[#allocation40_spill] sm:$0xff] %v10571_v38 }
 0x46e   : > { %v8550_v25 = vpop.eup %8549 }
 0x475   : > { %3057 = vmax.xlane.f32.xlu1 %v3056_v32  ;;  %v2155_v32 = vsub.f32 %v10514_v0, %v10514_v0  ;;  %v10573_v0 = vpop.f32.mrf.mxu1 }
 0x476   : > { %14920 = vst [vmem:[#allocation41_spill] sm:$0xff] %v10573_v0  ;;  %v3089_v43 = vsel %vm633_vm0, %v10573_v0, -inf }
 0x477   : > { %v2175_v51 = vmul.f32 1.442695, %v2155_v32 }
 0x479   : > { %8551 = vpow2.f32 %v2175_v51 }
 0x47f   : > { %3078 = vmax.xlane.f32.xlu0 %v3077_v59  ;;  %v2244_v59 = vmul.f32 %v8550_v25, %v8546_v13 }
 0x486   : > { %2478 = vperm.xlu1 %8385, %v2232_v52   ;;  %v10567_v52 = vpop.f32.mrf.mxu0  ;;  %v8552_v54 = vpop.eup %8551 }
 0x488   : > { %v7759_v34 = vpop.f32.mrf.mxu0 }
 0x489   : > { %v2166_v41 = vsub.f32 %v7759_v34, %v7759_v34 }
 0x48a   : > { %v10583_v51 = vpop.f32.mrf.mxu0 }
 0x48c   : > { %v10585_v34 = vpop.f32.mrf.mxu0 }
 0x495   : > { %2528 = vperm.xlu0 %8386, %v2242_v57   ;;  %v2197_v57 = vmul.f32 1.442695, %v2166_v41  ;;  %v2733_v41 = vpop.f32.mrf.mxu0 }
 0x497   : > { %8553 = vpow2.f32 %v2197_v57  ;;  %v2957_v57 = vsub.f32 %v2733_v41, %v2733_v41 }
 0x498   : > { %8555 = vrcp.f32 %v8552_v54 }
 0x4a4   : > { %v8554_v55 = vpop.eup %8553 }
 0x4a5   : > { %8557 = vrcp.f32 %v8554_v55 }
 0x4aa   : > { %3063 = vmax.xlane.f32.xlu1 %v3062_v6  ;;  %v10577_v6 = vpop.xlane.xlu0 %635 }
 0x4ab   : > { %v10871_v19 = vsub.f32 %v10046_v36, %v10577_v6 }
 0x4ad   : > { %14972 = vst [vmem:[#allocation93_spill] sm:$0xff] %v10871_v19 }
 0x4ae   : > { %v10581_v32 = vpop.xlane.xlu0 %647 }
 0x4b2   : > { %v10599_v41 = vpop.xlane.xlu0 %653 }
 0x4b4   : > { %3084 = vmax.xlane.f32.xlu0 %v3083_v46  ;;  %v8556_v46 = vpop.eup %8555 }
 0x4b5   : > { %v2235_v13 = vmul.f32 %v8556_v46, %v8552_v54  ;;  %v8558_v20 = vpop.eup %8557  ;;  %v2973_v54 = vmul.f32 1.442695, %v2957_v57 }
 0x4b6   : > { %v2246_v25 = vmul.f32 %v8558_v20, %v8554_v55  ;;  %v10591_v55 = vpop.xlane.xlu1 %644 }
 0x4b7   : > { %14922 = vst [vmem:[#allocation43_spill] sm:$0xff] %v10591_v55  ;;  %v10672_v55 = vld [vmem:[%s14494_s2 + $0x28] sm:$0xff] }
 0x4b8   : > { %14930 = vst [vmem:[#allocation51_spill] sm:$0xff] %v10672_v55 }
 0x4ba   : > { %v10607_v17 = vpop.xlane.xlu1 %641 }
 0x4bb   : > { %2483 = vperm.xlu1 %8385, %v2233_v21   ;;  %v2157_v21 = vsub.f32 %v10529_v61, %v10529_v61  ;;  %v3074_v61 = vsel %vm633_vm0, %v10533_v12, -inf }
 0x4ca   : > { %2538 = vperm.xlu0 %8386, %v2244_v59   ;;  %v2179_v59 = vmul.f32 1.442695, %v2157_v21 }
 0x4cc   : > { %8559 = vpow2.f32 %v2179_v59 }
 0x4df   : > { %3069 = vmax.xlane.f32.xlu1 %v3068_v30  ;;  %v7853_v30 = vpop.f32.mrf.mxu0 }
 0x4e0   : > { %v2960_v46 = vsub.f32 %v7853_v30, %v7853_v30 }
 0x4e1   : > { %v10623_v23 = vpop.f32.mrf.mxu0 }
 0x4e2   : > { %v2979_v20 = vmul.f32 1.442695, %v2960_v46 }
 0x4e9   : > { %3090 = vmax.xlane.f32.xlu0 %v3089_v43  ;;  %v8560_v43 = vpop.eup %8559 }
 0x4ea   : > { %8561 = vrcp.f32 %v8560_v43 }
 0x4eb   : > { %8563 = vpow2.f32 %v2973_v54 }
 0x4ec   : > { %8565 = vpow2.f32 %v2979_v20 }
 0x4f0   : > { %2493 = vperm.xlu1 %8385, %v2235_v13   ;;  %v10587_v13 = vpop.f32.mrf.mxu1 }
 0x4f1   : > { %14921 = vst [vmem:[#allocation42_spill] sm:$0xff] %v10587_v13 }
 0x4f2   : > { %v10593_v21 = vpop.f32.mrf.mxu1 }
 0x4f3   : > { %14923 = vst [vmem:[#allocation44_spill] sm:$0xff] %v10593_v21  ;;  %v3095_v59 = vsel %vm633_vm0, %v10593_v21, -inf  ;;  %v2187_v21 = vmul.f32 1.442695, %v2161_v29  ;;  %v10736_v29 = vld [vmem:[%s14494_s2 + $0x78] sm:$0xff] }
 0x4f4   : > { %14940 = vst [vmem:[#allocation61_spill] sm:$0xff] %v10736_v29 }
 0x4f7   : > { %v8562_v54 = vpop.eup %8561 }
 0x4f8   : > { %v8564_v46 = vpop.eup %8563  ;;  %v2237_v20 = vmul.f32 %v8562_v54, %v8560_v43 }
 0x4f9   : > { %8567 = vrcp.f32 %v8564_v46  ;;  %v8566_v12 = vpop.eup %8565 }
 0x4fa   : > { %8569 = vrcp.f32 %v8566_v12 }
 0x4ff   : > { %2548 = vperm.xlu0 %8386, %v2246_v25   ;;  %v10595_v25 = vpop.f32.mrf.mxu1 }
 0x500   : > { %14924 = vst [vmem:[#allocation45_spill] sm:$0xff] %v10595_v25 }
 0x501   : > { %v10601_v57 = vpop.f32.mrf.mxu1 }
 0x502   : > { %14925 = vst [vmem:[#allocation46_spill] sm:$0xff] %v10601_v57  ;;  %v3859_v30 = vsel %vm633_vm0, %v10601_v57, -inf  ;;  %v10718_v57 = vld [vmem:[%s14494_s2 + $0x60] sm:$0xff] }
 0x503   : > { %14937 = vst [vmem:[#allocation58_spill] sm:$0xff] %v10718_v57 }
 0x506   : > { %v8568_v42 = vpop.eup %8567 }
 0x507   : > { %v3037_v43 = vmul.f32 %v8568_v42, %v8564_v46  ;;  %v8570_v54 = vpop.eup %8569  ;;  %v6845_v42 = vld [vmem:[%s9818_s23 + $0x248] sm:$0xff] }
 0x508   : > { %v3040_v53 = vmul.f32 %v8570_v54, %v8566_v12  ;;  %v6843_v12 = vld [vmem:[%s9818_s23 + $0x238] sm:$0xff] }
 0x514   : > { %3075 = vmax.xlane.f32.xlu1 %v3074_v61  ;;  %v10605_v61 = vpop.xlane.xlu0 %659 }
 0x51e   : > { %3096 = vmax.xlane.f32.xlu0 %v3095_v59  ;;  %v2159_v59 = vsub.f32 %v10541_v11, %v10541_v11  ;;  %v6848_v11 = vld [vmem:[%s9818_s23 + $0x260] sm:$0xff] }
 0x51f   : > { %7934 = vmatprep.subr.mxu0 %v6848_v11 }
 0x520   : > { %7935 = vmatpush3.msra.mxu0 %v6848_v11  ;;  %v6841_v11 = vld [vmem:[%s9818_s23 + $0x228] sm:$0xff] }
 0x521   : > { %7936 = vmatprep.subr.mxu0 %v6847_v26 }
 0x522   : > { %3860 = vmax.xlane.f32.xlu0 %v3859_v30  ;;  %v2183_v30 = vmul.f32 1.442695, %v2159_v59  ;;  %v6846_v59 = vld [vmem:[%s9818_s23 + $0x250] sm:$0xff]  ;;  %7937 = vmatpush3.msra.mxu0 %v6847_v26 }
 0x523   : > { %7938 = vmatprep.subr.mxu0 %v6846_v59 }
 0x524   : > { %8571 = vpow2.f32 %v2183_v30  ;;  %7939 = vmatpush3.msra.mxu0 %v6846_v59  ;;  %v6842_v30 = vld [vmem:[%s9818_s23 + $0x230] sm:$0xff]  ;;  %v3080_v59 = vsel %vm633_vm0, %v10545_v24, -inf }
 0x525   : > { %2503 = vperm.xlu1 %8385, %v2237_v20   ;;  %v10614_v20 = vpop.xlane.xlu0 %665  ;;  %7940 = vmatprep.subr.mxu0 %v6845_v42 }
 0x526   : > { %7941 = vmatpush3.msra.mxu0 %v6845_v42  ;;  %v6839_v42 = vld [vmem:[%s9818_s23 + $0x218] sm:$0xff] }
 0x527   : > { %7942 = vmatprep.subr.mxu0 %v6844_v47 }
 0x528   : > { %7943 = vmatpush3.msra.mxu0 %v6844_v47  ;;  %v10632_v47 = vpop.xlane.xlu1 %650 }
 0x529   : > { %v10620_v46 = vpop.xlane.xlu0 %671  ;;  %7944 = vmatprep.subr.mxu0 %v6843_v12  ;;  %14926 = vst [vmem:[#allocation47_spill] sm:$0xff] %v10632_v47 }
 0x52a   : > { %7945 = vmatpush3.msra.mxu0 %v6843_v12 }
 0x52b   : > { %7946 = vmatprep.subr.mxu0 %v6842_v30 }
 0x52c   : > { %7947 = vmatpush3.msra.mxu0 %v6842_v30  ;;  %v6837_v30 = vld [vmem:[%s9818_s23 + $0x208] sm:$0xff]  ;;  %v10667_v47 = vpop.xlane.xlu1 %656 }
 0x52d   : > { %7948 = vmatprep.subr.mxu0 %v6841_v11  ;;  %14929 = vst [vmem:[#allocation50_spill] sm:$0xff] %v10667_v47  ;;  %v10675_v33 = vpop.xlane.xlu0 %677  ;;  %v10704_v47 = vld [vmem:[%s14494_s2 + $0x50] sm:$0xff] }
 0x52e   : > { %7949 = vmatpush3.msra.mxu0 %v6841_v11  ;;  %v10637_v11 = vpop.f32.mrf.mxu1  ;;  %14935 = vst [vmem:[#allocation56_spill] sm:$0xff] %v10704_v47 }
 0x52f   : > { %14927 = vst [vmem:[#allocation48_spill] sm:$0xff] %v10637_v11 }
 0x531   : > { %v8572_v26 = vpop.eup %8571  ;;  %v10745_v2 = vpop.xlane.xlu0 %1442 }
 0x532   : > { %8573 = vrcp.f32 %v8572_v26 }
 0x538   : > { %3279 = vperm.xlu0 %8386, %v3037_v43   ;;  %v7856_v43 = vpop.f32.mrf.mxu0 }
 0x539   : > { %v2962_v54 = vsub.f32 %v7856_v43, %v7856_v43  ;;  %v6836_v43 = vld [vmem:[%s9818_s23 + $0x200] sm:$0xff] }
 0x53b   : > { %v2983_v12 = vmul.f32 1.442695, %v2962_v54  ;;  %v10648_v54 = vld [vmem:[%s14494_s2 + $0x10] sm:$0xff] }
 0x53c   : > { %3294 = vperm.xlu0 %8386, %v3040_v53   ;;  %v6840_v53 = vld [vmem:[%s9818_s23 + $0x220] sm:$0xff] }
 0x53d   : > { %7950 = vmatprep.subr.mxu0 %v6840_v53  ;;  %8575 = vpow2.f32 %v2983_v12  ;;  %v10662_v12 = vld [vmem:[%s14494_s2 + $0x20] sm:$0xff] }
 0x53e   : > { %7951 = vmatpush3.msra.mxu0 %v6840_v53  ;;  %v10651_v53 = vpop.f32.mrf.mxu1 }
 0x53f   : > { %7952 = vmatprep.subr.mxu0 %v6839_v42  ;;  %14928 = vst [vmem:[#allocation49_spill] sm:$0xff] %v10651_v53 }
 0x540   : > { %7953 = vmatpush3.msra.mxu0 %v6839_v42  ;;  %v10656_v42 = vld [vmem:[%s14494_s2 + $0x18] sm:$0xff]  ;;  %v10753_v18 = vpop.f32.mrf.mxu1 }
 0x541   : > { %7954 = vmatprep.subr.mxu0 %v6838_v37  ;;  %14943 = vst [vmem:[#allocation64_spill] sm:$0xff] %v10753_v18 }
 0x542   : > { %7955 = vmatpush3.msra.mxu0 %v6838_v37  ;;  %v8574_v37 = vpop.eup %8573 }
 0x543   : > { %7956 = vmatprep.subr.mxu0 %v6837_v30 }
 0x544   : > { %7957 = vmatpush3.msra.mxu0 %v6837_v30  ;;  %v2239_v30 = vmul.f32 %v8574_v37, %v8572_v26  ;;  %v10680_v26 = vld [vmem:[%s14494_s2 + $0x30] sm:$0xff]  ;;  %v10686_v37 = vld [vmem:[%s14494_s2 + $0x38] sm:$0xff] }
 0x545   : > { %7958 = vmatprep.subr.mxu0 %v6836_v43  ;;  %14931 = vst [vmem:[#allocation52_spill] sm:$0xff] %v10680_v26  ;;  %14932 = vst [vmem:[#allocation53_spill] sm:$0xff] %v10686_v37 }
 0x546   : > { %7959 = vmatpush3.msra.mxu0 %v6836_v43  ;;  %v3865_v43 = vsel %vm633_vm0, %v10651_v53, -inf  ;;  %v10712_v53 = vld [vmem:[%s14494_s2 + $0x58] sm:$0xff] }
 0x547   : > { %14936 = vst [vmem:[#allocation57_spill] sm:$0xff] %v10712_v53 }
 0x549   : > { %3081 = vmax.xlane.f32.xlu1 %v3080_v59  ;;  %v10642_v59 = vld [vmem:[%s14494_s2 + $0x8] sm:$0xff] }
 0x54a   : > { %7961 = vmatmul.mubr.f32.vlgmr.msra.gmra.mxu0 %v10642_v59  ;;  %v8576_v24 = vpop.eup %8575 }
 0x54b   : > { %7963 = vmatprep.mubr.f32.mxu0 %v10648_v54  ;;  %8577 = vrcp.f32 %v8576_v24 }
 0x54c   : > { %8579 = vpow2.f32 %v2187_v21 }
 0x54e   : > { %7964 = vmatmul.mubr.f32.gmra.mxu0 %v10656_v42 }
 0x54f   : > { %7966 = vmatprep.mubr.f32.mxu0 %v10662_v12 }
 0x552   : > { %7967 = vmatmul.mubr.f32.gmra.mxu0 %v10672_v55 }
 0x553   : > { %7969 = vmatprep.mubr.f32.mxu0 %v10680_v26 }
 0x556   : > { %7970 = vmatmul.mubr.f32.gmra.mxu0 %v10686_v37 }
 0x558   : > { %v8578_v0 = vpop.eup %8577 }
 0x559   : > { %v3042_v7 = vmul.f32 %v8578_v0, %v8576_v24  ;;  %v8580_v0 = vpop.eup %8579 }
 0x55a   : > { %2513 = vperm.xlu1 %8385, %v2239_v30   ;;  %v10692_v30 = vld [vmem:[%s14494_s2 + $0x40] sm:$0xff]  ;;  %8581 = vrcp.f32 %v8580_v0 }
 0x55b   : > { %3866 = vmax.xlane.f32.xlu0 %v3865_v43  ;;  %14933 = vst [vmem:[#allocation54_spill] sm:$0xff] %v10692_v30  ;;  %7972 = vmatprep.mubr.f32.mxu0 %v10692_v30  ;;  %v10698_v43 = vld [vmem:[%s14494_s2 + $0x48] sm:$0xff] }
 0x55c   : > { %14934 = vst [vmem:[#allocation55_spill] sm:$0xff] %v10698_v43  ;;  %7973 = vmatmul.mubr.f32.gmra.mxu0 %v10698_v43 }
 0x55d   : > { %7975 = vmatprep.mubr.f32.mxu0 %v10704_v47  ;;  %v10755_v47 = vpop.f32.mrf.mxu1 }
 0x55e   : > { %14944 = vst [vmem:[#allocation65_spill] sm:$0xff] %v10755_v47  ;;  %v3871_v43 = vsel %vm633_vm0, %v10755_v47, -inf }
 0x560   : > { %7976 = vmatmul.mubr.f32.gmra.mxu0 %v10712_v53 }
 0x561   : > { %7978 = vmatprep.mubr.f32.mxu0 %v10718_v57  ;;  %v3086_v57 = vsel %vm633_vm0, %v10557_v3, -inf  ;;  %v10761_v3 = vpop.permute.xlu0 %860 }
 0x562   : > { %14946 = vst [vmem:[#allocation67_spill] sm:$0xff] %v10761_v3 }
 0x564   : > { %7979 = vmatmul.mubr.f32.gmra.mxu0 %v10724_v39  ;;  %v10742_v39 = vld [vmem:[%s14494_s2] sm:$0xff] }
 0x565   : > { %7981 = vmatprep.mubr.f32.mxu0 %v10730_v9  ;;  %14941 = vst [vmem:[#allocation62_spill] sm:$0xff] %v10742_v39  ;;  %v10747_v9 = vpop.f32.mrf.mxu0  ;;  %v10765_v30 = vpop.xlane.xlu0 %1448 }
 0x567   : > { %v7859_v24 = vpop.f32.mrf.mxu0 }
 0x568   : > { %7982 = vmatmul.mubr.f32.gmra.mxu0 %v10736_v29  ;;  %v2964_v21 = vsub.f32 %v7859_v24, %v7859_v24  ;;  %v10751_v29 = vpop.xlane.xlu1 %662 }
 0x569   : > { %8072 = vmatprep.mubr.f32.mxu0 %v10742_v39  ;;  %14942 = vst [vmem:[#allocation63_spill] sm:$0xff] %v10751_v29  ;;  %v8582_v39 = vpop.eup %8581 }
 0x56a   : > { %v2987_v53 = vmul.f32 1.442695, %v2964_v21 }
 0x56c   : > { %8583 = vpow2.f32 %v2987_v53  ;;  %v10759_v24 = vpop.xlane.xlu1 %668 }
 0x56d   : > { %14945 = vst [vmem:[#allocation66_spill] sm:$0xff] %v10759_v24 }
 0x571   : > { %3304 = vperm.xlu0 %8386, %v3042_v7   ;;  %v2241_v7 = vmul.f32 %v8582_v39, %v8580_v0  ;;  %v10767_v39 = vpop.f32.mrf.mxu0 }
 0x573   : > { %v7862_v0 = vpop.f32.mrf.mxu0 }
 0x574   : > { %v2966_v24 = vsub.f32 %v7862_v0, %v7862_v0 }
 0x579   : > { %v8584_v27 = vpop.eup %8583 }
 0x57a   : > { %8585 = vrcp.f32 %v8584_v27 }
 0x57e   : > { %3087 = vmax.xlane.f32.xlu1 %v3086_v57  ;;  %v2163_v57 = vsub.f32 %v10567_v52, %v10567_v52  ;;  %v2991_v52 = vmul.f32 1.442695, %v2966_v24  ;;  %v2165_v24 = vsub.f32 %v10583_v51, %v10583_v51 }
 0x580   : > { %v2191_v53 = vmul.f32 1.442695, %v2163_v57  ;;  %v10773_v57 = vpop.f32.mrf.mxu1 }
 0x582   : > { %8587 = vpow2.f32 %v2191_v53  ;;  %v10775_v53 = vpop.f32.mrf.mxu1 }
 0x583   : > { %14948 = vst [vmem:[#allocation69_spill] sm:$0xff] %v10775_v53 }
 0x587   : > { %v8586_v21 = vpop.eup %8585 }
 0x588   : > { %v3044_v29 = vmul.f32 %v8586_v21, %v8584_v27  ;;  %v3877_v21 = vsel %vm633_vm0, %v10775_v53, -inf }
 0x58f   : > { %2523 = vperm.xlu1 %8385, %v2241_v7   ;;  %v8588_v47 = vpop.eup %8587  ;;  %v3092_v7 = vsel %vm633_vm0, %v10571_v38, -inf  ;;  %v10781_v38 = vpop.xlane.xlu0 %1454 }
 0x590   : > { %3872 = vmax.xlane.f32.xlu0 %v3871_v43  ;;  %8589 = vrcp.f32 %v8588_v47  ;;  %v10771_v43 = vpop.xlane.xlu1 %674 }
 0x591   : > { %14947 = vst [vmem:[#allocation68_spill] sm:$0xff] %v10771_v43  ;;  %8591 = vpow2.f32 %v2991_v52 }
 0x593   : > { %v10785_v37 = vpop.xlane.xlu0 %1460 }
 0x594   : > { %v10779_v0 = vpop.xlane.xlu1 %680 }
 0x595   : > { %14949 = vst [vmem:[#allocation70_spill] sm:$0xff] %v10779_v0 }
 0x59d   : > { %v8590_v27 = vpop.eup %8589 }
 0x59e   : > { %v8592_v3 = vpop.eup %8591 }
 0x59f   : > { %8593 = vrcp.f32 %v8592_v3 }
 0x5a6   : > { %3314 = vperm.xlu0 %8386, %v3044_v29   ;;  %v2243_v29 = vmul.f32 %v8590_v27, %v8588_v47  ;;  %v10787_v47 = vpop.f32.mrf.mxu0 }
 0x5a8   : > { %v7865_v27 = vpop.f32.mrf.mxu0 }
 0x5a9   : > { %v2968_v0 = vsub.f32 %v7865_v27, %v7865_v27 }
 0x5ab   : > { %v2995_v51 = vmul.f32 1.442695, %v2968_v0  ;;  %v2958_v0 = vsub.f32 %v10585_v34, %v10585_v34 }
 0x5ac   : > { %v8594_v52 = vpop.eup %8593 }
 0x5ad   : > { %v3046_v43 = vmul.f32 %v8594_v52, %v8592_v3 }
 0x5b3   : > { %3093 = vmax.xlane.f32.xlu1 %v3092_v7  ;;  %v2195_v7 = vmul.f32 1.442695, %v2165_v24  ;;  %v10793_v24 = vpop.f32.mrf.mxu1 }
 0x5b4   : > { %14951 = vst [vmem:[#allocation72_spill] sm:$0xff] %v10793_v24 }
 0x5b5   : > { %8595 = vpow2.f32 %v2195_v7  ;;  %v10795_v7 = vpop.f32.mrf.mxu1 }
 0x5b6   : > { %14952 = vst [vmem:[#allocation73_spill] sm:$0xff] %v10795_v7  ;;  %v3883_v52 = vsel %vm633_vm0, %v10795_v7, -inf }
 0x5c2   : > { %v8596_v53 = vpop.eup %8595 }
 0x5c3   : > { %8597 = vrcp.f32 %v8596_v53 }
 0x5c4   : > { %2533 = vperm.xlu1 %8385, %v2243_v29   ;;  %v3098_v29 = vsel %vm633_vm0, %v10587_v13, -inf  ;;  %8599 = vpow2.f32 %v2995_v51  ;;  %v10801_v13 = vpop.permute.xlu0 %905 }
 0x5c5   : > { %3878 = vmax.xlane.f32.xlu0 %v3877_v21  ;;  %v10791_v21 = vpop.xlane.xlu1 %1445  ;;  %14954 = vst [vmem:[#allocation75_spill] sm:$0xff] %v10801_v13 }
 0x5c6   : > { %14950 = vst [vmem:[#allocation71_spill] sm:$0xff] %v10791_v21 }
 0x5c8   : > { %v10805_v26 = vpop.xlane.xlu0 %1466 }
 0x5c9   : > { %v10799_v27 = vpop.permute.xlu1 %865 }
 0x5ca   : > { %14953 = vst [vmem:[#allocation74_spill] sm:$0xff] %v10799_v27 }
 0x5d0   : > { %v8598_v3 = vpop.eup %8597 }
 0x5d1   : > { %v8600_v15 = vpop.eup %8599 }
 0x5d2   : > { %8601 = vrcp.f32 %v8600_v15 }
 0x5db   : > { %3324 = vperm.xlu0 %8386, %v3046_v43   ;;  %v2245_v43 = vmul.f32 %v8598_v3, %v8596_v53  ;;  %v10807_v53 = vpop.f32.mrf.mxu0 }
 0x5dd   : > { %v7868_v3 = vpop.f32.mrf.mxu0 }
 0x5de   : > { %v2970_v27 = vsub.f32 %v7868_v3, %v7868_v3 }
 0x5df   : > { %v8602_v51 = vpop.eup %8601 }
 0x5e0   : > { %v3048_v21 = vmul.f32 %v8602_v51, %v8600_v15  ;;  %v2999_v34 = vmul.f32 1.442695, %v2970_v27  ;;  %v2959_v27 = vsub.f32 %v10623_v23, %v10623_v23 }
 0x5e8   : > { %3099 = vmax.xlane.f32.xlu1 %v3098_v29  ;;  %v2975_v29 = vmul.f32 1.442695, %v2958_v0  ;;  %v10813_v0 = vpop.f32.mrf.mxu1 }
 0x5e9   : > { %14956 = vst [vmem:[#allocation77_spill] sm:$0xff] %v10813_v0 }
 0x5ea   : > { %8603 = vpow2.f32 %v2975_v29  ;;  %v10815_v29 = vpop.f32.mrf.mxu1 }
 0x5eb   : > { %14957 = vst [vmem:[#allocation78_spill] sm:$0xff] %v10815_v29  ;;  %v3889_v51 = vsel %vm633_vm0, %v10815_v29, -inf  ;;  %v3868_v29 = vsel %vm633_vm0, %v10637_v11, -inf }
 0x5f7   : > { %v8604_v7 = vpop.eup %8603 }
 0x5f8   : > { %8605 = vrcp.f32 %v8604_v7 }
 0x5f9   : > { %2543 = vperm.xlu1 %8385, %v2245_v43   ;;  %v3862_v43 = vsel %vm633_vm0, %v10595_v25, -inf  ;;  %8607 = vpow2.f32 %v2999_v34  ;;  %v10821_v25 = vpop.permute.xlu0 %915 }
 0x5fa   : > { %3884 = vmax.xlane.f32.xlu0 %v3883_v52  ;;  %v10811_v52 = vpop.xlane.xlu1 %1451  ;;  %14959 = vst [vmem:[#allocation80_spill] sm:$0xff] %v10821_v25 }
 0x5fb   : > { %14955 = vst [vmem:[#allocation76_spill] sm:$0xff] %v10811_v52 }
 0x5fd   : > { %v10825_v0 = vpop.xlane.xlu0 %1472 }
 0x5fe   : > { %v10819_v3 = vpop.permute.xlu1 %875 }
 0x5ff   : > { %14958 = vst [vmem:[#allocation79_spill] sm:$0xff] %v10819_v3 }
 0x605   : > { %v8606_v15 = vpop.eup %8605 }
 0x606   : > { %v8608_v13 = vpop.eup %8607 }
 0x607   : > { %8609 = vrcp.f32 %v8608_v13 }
 0x610   : > { %3334 = vperm.xlu0 %8386, %v3048_v21   ;;  %v3038_v21 = vmul.f32 %v8606_v15, %v8604_v7  ;;  %v10827_v7 = vpop.permute.xlu0 %925  ;;  %v10829_v15 = vpop.f32.mrf.mxu0 }
 0x611   : > { %14960 = vst [vmem:[#allocation81_spill] sm:$0xff] %v10827_v7  ;;  %14961 = vst [vmem:[#allocation82_spill] sm:$0xff] %v10829_v15 }
 0x612   : > { %v7871_v3 = vpop.f32.mrf.mxu0 }
 0x614   : > { %v8610_v34 = vpop.eup %8609 }
 0x615   : > { %v3050_v52 = vmul.f32 %v8610_v34, %v8608_v13 }
 0x61d   : > { %3863 = vmax.xlane.f32.xlu1 %v3862_v43  ;;  %v2977_v43 = vmul.f32 1.442695, %v2959_v27  ;;  %v10837_v27 = vpop.permute.xlu1 %870 }
 0x61e   : > { %14963 = vst [vmem:[#allocation84_spill] sm:$0xff] %v10837_v27 }
 0x61f   : > { %8611 = vpow2.f32 %v2977_v43  ;;  %v10841_v43 = vpop.f32.mrf.mxu1 }
 0x620   : > { %14964 = vst [vmem:[#allocation85_spill] sm:$0xff] %v10841_v43 }
 0x621   : > { %v10845_v15 = vpop.f32.mrf.mxu1  ;;  %v10851_v27 = vpop.xlane.xlu1 %1457 }
 0x622   : > { %14965 = vst [vmem:[#allocation86_spill] sm:$0xff] %v10845_v15  ;;  %14967 = vst [vmem:[#allocation88_spill] sm:$0xff] %v10851_v27 }
 0x62c   : > { %v8612_v25 = vpop.eup %8611 }
 0x62d   : > { %8613 = vrcp.f32 %v8612_v25 }
 0x62e   : > { %3284 = vperm.xlu1 %8385, %v3038_v21   ;;  %v10831_v21 = vpop.xlane.xlu0 %1478 }
 0x62f   : > { %3890 = vmax.xlane.f32.xlu0 %v3889_v51  ;;  %v2972_v51 = vsub.f32 %v7871_v3, %v7871_v3 }
 0x631   : > { %v3003_v13 = vmul.f32 1.442695, %v2972_v51 }
 0x632   : > { %v10835_v23 = vpop.permute.xlu0 %935 }
 0x633   : > { %14962 = vst [vmem:[#allocation83_spill] sm:$0xff] %v10835_v23  ;;  %8615 = vpow2.f32 %v3003_v13  ;;  %v3895_v23 = vsel %vm633_vm0, %v10845_v15, -inf  ;;  %v2961_v13 = vsub.f32 %v10747_v9, %v10747_v9  ;;  %v3874_v9 = vsel %vm633_vm0, %v10753_v18, -inf }
 0x63a   : > { %v8614_v7 = vpop.eup %8613 }
 0x63b   : > { %v3039_v11 = vmul.f32 %v8614_v7, %v8612_v25 }
 0x640   : > { %v8616_v55 = vpop.eup %8615 }
 0x641   : > { %8617 = vrcp.f32 %v8616_v55 }
 0x645   : > { %3344 = vperm.xlu0 %8386, %v3050_v52   ;;  %v10839_v52 = vpop.xlane.xlu0 %1484 }
 0x649   : > { %v10843_v34 = vpop.xlane.xlu0 %2248 }
 0x64d   : > { %v10847_v3 = vpop.permute.xlu0 %1667 }
 0x64e   : > { %14966 = vst [vmem:[#allocation87_spill] sm:$0xff] %v10847_v3  ;;  %v2981_v3 = vmul.f32 1.442695, %v2961_v13  ;;  %v8618_v25 = vpop.eup %8617 }
 0x64f   : > { %v3052_v15 = vmul.f32 %v8618_v25, %v8616_v55  ;;  %v10879_v55 = vpop.permute.xlu1 %885 }
 0x650   : > { %8619 = vpow2.f32 %v2981_v3  ;;  %14975 = vst [vmem:[#allocation96_spill] sm:$0xff] %v10879_v55  ;;  %v10884_v3 = vsub.f32 %v10058_v40, %v10607_v17 }
 0x652   : > { %3869 = vmax.xlane.f32.xlu1 %v3868_v29  ;;  %v10853_v29 = vpop.permute.xlu0 %1682  ;;  %14976 = vst [vmem:[#allocation97_spill] sm:$0xff] %v10884_v3 }
 0x653   : > { %14968 = vst [vmem:[#allocation89_spill] sm:$0xff] %v10853_v29 }
 0x656   : > { %v10855_v51 = vpop.xlane.xlu0 %2254 }
 0x65a   : > { %v10859_v43 = vpop.permute.xlu0 %1692 }
 0x65b   : > { %14969 = vst [vmem:[#allocation90_spill] sm:$0xff] %v10859_v43 }
 0x65d   : > { %v8620_v29 = vpop.eup %8619 }
 0x65e   : > { %v10861_v7 = vpop.xlane.xlu0 %2260  ;;  %8621 = vrcp.f32 %v8620_v29 }
 0x662   : > { %v10863_v27 = vpop.permute.xlu0 %1702 }
 0x663   : > { %3289 = vperm.xlu1 %8385, %v3039_v11   ;;  %14970 = vst [vmem:[#allocation91_spill] sm:$0xff] %v10863_v27  ;;  %v702_v27 = vmul.f32 1.442695, %v10884_v3 }
 0x664   : > { %3896 = vmax.xlane.f32.xlu0 %v3895_v23  ;;  %v10867_v23 = vpop.f32.mrf.mxu0 }
 0x665   : > { %14971 = vst [vmem:[#allocation92_spill] sm:$0xff] %v10867_v23 }
 0x666   : > { %v10865_v11 = vpop.xlane.xlu0 %2266  ;;  %v10875_v13 = vpop.f32.mrf.mxu0 }
 0x667   : > { %14973 = vst [vmem:[#allocation94_spill] sm:$0xff] %v10875_v13  ;;  %v10891_v13 = vpop.f32.mrf.mxu1 }
 0x668   : > { %v3539_v25 = vpop.f32.mrf.mxu0  ;;  %14978 = vst [vmem:[#allocation99_spill] sm:$0xff] %v10891_v13 }
 0x669   : > { %v3763_v6 = vsub.f32 %v3539_v25, %v3539_v25  ;;  %v10899_v25 = vpop.permute.xlu1 %880 }
 0x66a   : > { %v10877_v43 = vpop.permute.xlu0 %1712  ;;  %14979 = vst [vmem:[#allocation100_spill] sm:$0xff] %v10899_v25 }
 0x66b   : > { %14974 = vst [vmem:[#allocation95_spill] sm:$0xff] %v10877_v43  ;;  %v3779_v43 = vmul.f32 1.442695, %v3763_v6 }
 0x66e   : > { %v10886_v36 = vpop.xlane.xlu0 %2272 }
 0x672   : > { %v10889_v18 = vpop.permute.xlu0 %1722 }
 0x673   : > { %14977 = vst [vmem:[#allocation98_spill] sm:$0xff] %v10889_v18 }
 0x676   : > { %v10893_v55 = vpop.xlane.xlu0 %2278 }
 0x67a   : > { %3354 = vperm.xlu0 %8386, %v3052_v15   ;;  %v698_v15 = vmul.f32 1.442695, %v10871_v19  ;;  %v10895_v19 = vpop.f32.mrf.mxu1  ;;  %v10903_v18 = vpop.permute.xlu0 %1732 }
 0x67b   : > { %v3901_v17 = vsel %vm633_vm0, %v10895_v19, -inf  ;;  %14981 = vst [vmem:[#allocation102_spill] sm:$0xff] %v10903_v18 }
 0x67c   : > { %8623 = vpow2.f32 %v698_v15 }
 0x67d   : > { %8625 = vpow2.f32 %v702_v27 }
 0x67e   : > { %8627 = vpow2.f32 %v3779_v43  ;;  %v10909_v43 = vpop.xlane.xlu0 %2284 }
 0x682   : > { %v10913_v25 = vpop.permute.xlu0 %1742 }
 0x683   : > { %14983 = vst [vmem:[#allocation104_spill] sm:$0xff] %v10913_v25 }
 0x687   : > { %3875 = vmax.xlane.f32.xlu1 %v3874_v9  ;;  %v8622_v9 = vpop.eup %8621 }
 0x688   : > { %v3041_v40 = vmul.f32 %v8622_v9, %v8620_v29 }
 0x689   : > { %v10901_v15 = vpop.eup %8623 }
 0x68a   : > { %14980 = vst [vmem:[#allocation101_spill] sm:$0xff] %v10901_v15  ;;  %v730_v27 = vsel %vm633_vm0, %v10901_v15, 0.0  ;;  %v10907_v6 = vpop.eup %8625 }
 0x68b   : > { %14982 = vst [vmem:[#allocation103_spill] sm:$0xff] %v10907_v6  ;;  %v8628_v29 = vpop.eup %8627  ;;  %v736_v9 = vsel %vm633_vm0, %v10907_v6, 0.0 }
 0x68c   : > { %8629 = vrcp.f32 %v8628_v29 }
 0x698   : > { %3299 = vperm.xlu1 %8385, %v3041_v40   ;;  %v2963_v40 = vsub.f32 %v10767_v39, %v10767_v39  ;;  %v10927_v39 = vpop.xlane.xlu1 %1463 }
 0x699   : > { %3902 = vmax.xlane.f32.xlu0 %v3901_v17  ;;  %v10917_v17 = vpop.xlane.xlu0 %2290  ;;  %v8630_v3 = vpop.eup %8629 }
 0x69a   : > { %v2985_v18 = vmul.f32 1.442695, %v2963_v40 }
 0x69c   : > { %8631 = vpow2.f32 %v2985_v18  ;;  %v10931_v18 = vsub.f32 %v10068_v44, %v10581_v32 }
 0x69d   : > { %731 = vadd.xlane.f32.xlu0 %v730_v27  ;;  %v10919_v15 = vpop.xlane.xlu0 %3054  ;;  %v3843_v27 = vmul.f32 %v8630_v3, %v8628_v29  ;;  %v10938_v3 = vsub.f32 %v10078_v50, %v10599_v41 }
 0x69e   : > { %14986 = vst [vmem:[#allocation107_spill] sm:$0xff] %v10931_v18  ;;  %v706_v25 = vmul.f32 1.442695, %v10931_v18  ;;  %v11717_v18 = vld [vmem:[%s14494_s2 + $0x58] sm:$0xff] }
 0x69f   : > { %14987 = vst [vmem:[#allocation108_spill] sm:$0xff] %v10938_v3 }
 0x6a1   : > { %737 = vadd.xlane.f32.xlu0 %v736_v9  ;;  %v10921_v13 = vpop.permute.xlu0 %2473  ;;  %v3880_v9 = vsel %vm633_vm0, %v10773_v57, -inf }
 0x6a2   : > { %14984 = vst [vmem:[#allocation105_spill] sm:$0xff] %v10921_v13  ;;  %v10952_v13 = vsub.f32 %v10097_v62, %v10614_v20  ;;  %v10966_v62 = vsub.f32 %v10113_v5, %v10675_v33  ;;  %v2965_v33 = vsub.f32 %v10787_v47, %v10787_v47  ;;  %v10999_v47 = vsub.f32 %v10137_v35, %v10781_v38 }
 0x6a4   : > { %14990 = vst [vmem:[#allocation111_spill] sm:$0xff] %v10952_v13  ;;  %v718_v41 = vmul.f32 1.442695, %v10952_v13  ;;  %14994 = vst [vmem:[#allocation115_spill] sm:$0xff] %v10966_v62 }
 0x6a5   : > { %v10923_v6 = vpop.permute.xlu0 %2488  ;;  %15001 = vst [vmem:[#allocation122_spill] sm:$0xff] %v10999_v47 }
 0x6a6   : > { %14985 = vst [vmem:[#allocation106_spill] sm:$0xff] %v10923_v6 }
 0x6a9   : > { %v8632_v23 = vpop.eup %8631  ;;  %v10933_v40 = vpop.xlane.xlu0 %3060 }
 0x6aa   : > { %8633 = vrcp.f32 %v8632_v23 }
 0x6ab   : > { %8635 = vpow2.f32 %v706_v25  ;;  %v10957_v25 = vsub.f32 %v10105_v1, %v10620_v46  ;;  %v726_v1 = vmul.f32 1.442695, %v10966_v62  ;;  %v10975_v46 = vsub.f32 %v10121_v10, %v10745_v2  ;;  %v6920_v62 = vld [vmem:[%s9813_s20 + $0x320] sm:$0xff] }
 0x6ad   : > { %v10940_v29 = vpop.permute.xlu0 %2498  ;;  %14991 = vst [vmem:[#allocation112_spill] sm:$0xff] %v10957_v25  ;;  %14996 = vst [vmem:[#allocation117_spill] sm:$0xff] %v10975_v46  ;;  %v1505_v5 = vmul.f32 1.442695, %v10975_v46 }
 0x6ae   : > { %14988 = vst [vmem:[#allocation109_spill] sm:$0xff] %v10940_v29 }
 0x6b1   : > { %v10947_v6 = vpop.xlane.xlu0 %3066 }
 0x6b7   : > { %4085 = vperm.xlu0 %8386, %v3843_v27   ;;  %v710_v27 = vmul.f32 1.442695, %v10938_v3  ;;  %v8634_v44 = vpop.eup %8633  ;;  %v6955_v3 = vld [vmem:[%s9813_s20 + $0x3b8] sm:$0xff] }
 0x6b8   : > { %v3043_v50 = vmul.f32 %v8634_v44, %v8632_v23  ;;  %v10970_v23 = vpop.eup %8635 }
 0x6b9   : > { %8637 = vpow2.f32 %v710_v27  ;;  %v722_v27 = vmul.f32 1.442695, %v10957_v25  ;;  %14995 = vst [vmem:[#allocation116_spill] sm:$0xff] %v10970_v23  ;;  %v742_v44 = vsel %vm633_vm0, %v10970_v23, 0.0  ;;  %v15182_v25 = vld [vmem:[#allocation5_spill] sm:$0xff] }
 0x6bc   : > { %3881 = vmax.xlane.f32.xlu1 %v3880_v9  ;;  %v10945_v9 = vsub.f32 %v10088_v56, %v10605_v61  ;;  %v10959_v56 = vpop.permute.xlu1 %895  ;;  %v10961_v61 = vpop.permute.xlu0 %2508 }
 0x6bd   : > { %14992 = vst [vmem:[#allocation113_spill] sm:$0xff] %v10959_v56  ;;  %14993 = vst [vmem:[#allocation114_spill] sm:$0xff] %v10961_v61 }
 0x6be   : > { %14989 = vst [vmem:[#allocation110_spill] sm:$0xff] %v10945_v9  ;;  %v714_v32 = vmul.f32 1.442695, %v10945_v9  ;;  %v15186_v9 = vld [vmem:[#allocation6_spill] sm:$0xff] }
 0x6c0   : > { %8639 = vpow2.f32 %v714_v32  ;;  %v10968_v20 = vpop.xlane.xlu0 %3072 }
 0x6c1   : > { %8641 = vpow2.f32 %v718_v41  ;;  %v10988_v41 = vsub.f32 %v10133_v31, %v10765_v30 }
 0x6c2   : > { %8643 = vpow2.f32 %v722_v27 }
 0x6c3   : > { %8645 = vpow2.f32 %v726_v1  ;;  %14999 = vst [vmem:[#allocation120_spill] sm:$0xff] %v10988_v41  ;;  %v1513_v1 = vmul.f32 1.442695, %v10999_v47 }
 0x6c4   : > { %8647 = vpow2.f32 %v1505_v5 }
 0x6c6   : > { %v10979_v32 = vpop.eup %8637 }
 0x6c7   : > { %14997 = vst [vmem:[#allocation118_spill] sm:$0xff] %v10979_v32  ;;  %v748_v10 = vsel %vm633_vm0, %v10979_v32, 0.0  ;;  %v11661_v32 = vld [vmem:[%s14494_s2 + $0x30] sm:$0xff] }
 0x6cd   : > { %3309 = vperm.xlu1 %8385, %v3043_v50   ;;  %v10981_v50 = vpop.permute.xlu0 %2518  ;;  %v10992_v2 = vpop.eup %8639 }
 0x6ce   : > { %14998 = vst [vmem:[#allocation119_spill] sm:$0xff] %v10981_v50  ;;  %15000 = vst [vmem:[#allocation121_spill] sm:$0xff] %v10992_v2  ;;  %v1509_v50 = vmul.f32 1.442695, %v10988_v41  ;;  %v754_v31 = vsel %vm633_vm0, %v10992_v2, 0.0  ;;  %v11003_v30 = vpop.eup %8641  ;;  %v15125_v41 = vld [vmem:[#allocation99_spill] sm:$0xff] }
 0x6cf   : > { %15002 = vst [vmem:[#allocation123_spill] sm:$0xff] %v11003_v30  ;;  %v760_v35 = vsel %vm633_vm0, %v11003_v30, 0.0  ;;  %v11014_v38 = vpop.eup %8643 }
 0x6d0   : > { %15005 = vst [vmem:[#allocation126_spill] sm:$0xff] %v11014_v38 }
 0x6d1   : > { %v10994_v27 = vpop.xlane.xlu0 %3078 }
 0x6d5   : > { %v11010_v5 = vpop.permute.xlu0 %2528 }
 0x6d6   : > { %743 = vadd.xlane.f32.xlu0 %v742_v44  ;;  %v2989_v44 = vmul.f32 1.442695, %v2965_v33  ;;  %v11008_v33 = vsub.f32 %v10147_v48, %v10785_v37  ;;  %15004 = vst [vmem:[#allocation125_spill] sm:$0xff] %v11010_v5  ;;  %v766_v48 = vsel %vm633_vm0, %v11014_v38, 0.0  ;;  %v11025_v37 = vpop.eup %8645  ;;  %v6898_v5 = vld [vmem:[%s9813_s20 + $0x2f0] sm:$0xff] }
 0x6d7   : > { %15007 = vst [vmem:[#allocation128_spill] sm:$0xff] %v11025_v37 }
 0x6d8   : > { %8649 = vpow2.f32 %v2989_v44  ;;  %15003 = vst [vmem:[#allocation124_spill] sm:$0xff] %v11008_v33 }
 0x6d9   : > { %8651 = vpow2.f32 %v1509_v50  ;;  %v11019_v50 = vsub.f32 %v10155_v14, %v10805_v26  ;;  %v11021_v44 = vpop.xlane.xlu0 %3084  ;;  %v772_v14 = vsel %vm633_vm0, %v11025_v37, 0.0  ;;  %v11035_v26 = vpop.eup %8647 }
 0x6da   : > { %749 = vadd.xlane.f32.xlu0 %v748_v10  ;;  %8653 = vpow2.f32 %v1513_v1  ;;  %v1517_v10 = vmul.f32 1.442695, %v11008_v33  ;;  %15009 = vst [vmem:[#allocation130_spill] sm:$0xff] %v11035_v26 }
 0x6db   : > { %15006 = vst [vmem:[#allocation127_spill] sm:$0xff] %v11019_v50  ;;  %v1521_v1 = vmul.f32 1.442695, %v11019_v50 }
 0x6dc   : > { %8655 = vpow2.f32 %v1517_v10  ;;  %v6897_v10 = vld [vmem:[%s9813_s20 + $0x2e8] sm:$0xff] }
 0x6dd   : > { %v11038_v61 = vpop.permute.xlu0 %2538  ;;  %8657 = vpow2.f32 %v1521_v1 }
 0x6de   : > { %755 = vadd.xlane.f32.xlu0 %v754_v31  ;;  %v6899_v31 = vld [vmem:[%s9813_s20 + $0x2f8] sm:$0xff]  ;;  %15010 = vst [vmem:[#allocation131_spill] sm:$0xff] %v11038_v61  ;;  %v6896_v61 = vld [vmem:[%s9813_s20 + $0x2e0] sm:$0xff] }
 0x6df   : > { %8096 = vmatprep.subr.mxu1 %v6899_v31 }
 0x6e0   : > { %8097 = vmatpush3.msra.mxu1 %v6899_v31  ;;  %v1537_v31 = vsel %vm633_vm0, %v11035_v26, 0.0 }
 0x6e1   : > { %8098 = vmatprep.subr.mxu1 %v6898_v5  ;;  %v11055_v1 = vpop.xlane.xlu0 %3090 }
 0x6e2   : > { %761 = vadd.xlane.f32.xlu0 %v760_v35  ;;  %v11031_v35 = vsub.f32 %v10167_v49, %v10825_v0  ;;  %8099 = vmatpush3.msra.mxu1 %v6898_v5  ;;  %v11046_v0 = vsub.f32 %v10179_v16, %v10831_v21  ;;  %v3886_v5 = vsel %vm633_vm0, %v10793_v24, -inf  ;;  %v6895_v16 = vld [vmem:[%s9813_s20 + $0x2d8] sm:$0xff]  ;;  %v11059_v21 = vpop.permute.xlu1 %890 }
 0x6e3   : > { %8100 = vmatprep.subr.mxu1 %v6897_v10  ;;  %15013 = vst [vmem:[#allocation134_spill] sm:$0xff] %v11059_v21 }
 0x6e4   : > { %15008 = vst [vmem:[#allocation129_spill] sm:$0xff] %v11031_v35  ;;  %v1525_v49 = vmul.f32 1.442695, %v11031_v35  ;;  %15011 = vst [vmem:[#allocation132_spill] sm:$0xff] %v11046_v0  ;;  %8101 = vmatpush3.msra.mxu1 %v6897_v10  ;;  %v1529_v29 = vmul.f32 1.442695, %v11046_v0 }
 0x6e5   : > { %8102 = vmatprep.subr.mxu1 %v6896_v61 }
 0x6e6   : > { %767 = vadd.xlane.f32.xlu0 %v766_v48  ;;  %v11041_v48 = vpop.eup %8649  ;;  %8103 = vmatpush3.msra.mxu1 %v6896_v61  ;;  %v6894_v61 = vld [vmem:[%s9813_s20 + $0x2d0] sm:$0xff] }
 0x6e7   : > { %8659 = vrcp.f32 %v11041_v48  ;;  %8104 = vmatprep.subr.mxu1 %v6895_v16 }
 0x6e8   : > { %8661 = vpow2.f32 %v1525_v49  ;;  %8105 = vmatpush3.msra.mxu1 %v6895_v16  ;;  %v6893_v49 = vld [vmem:[%s9813_s20 + $0x2c8] sm:$0xff]  ;;  %v6892_v16 = vld [vmem:[%s9813_s20 + $0x2c0] sm:$0xff] }
 0x6e9   : > { %8106 = vmatprep.subr.mxu1 %v6894_v61  ;;  %8663 = vpow2.f32 %v1529_v29  ;;  %v6891_v29 = vld [vmem:[%s9813_s20 + $0x2b8] sm:$0xff] }
 0x6ea   : > { %773 = vadd.xlane.f32.xlu0 %v772_v14  ;;  %v11050_v14 = vpop.eup %8651  ;;  %8107 = vmatpush3.msra.mxu1 %v6894_v61 }
 0x6eb   : > { %15012 = vst [vmem:[#allocation133_spill] sm:$0xff] %v11050_v14  ;;  %v1543_v10 = vsel %vm633_vm0, %v11050_v14, 0.0  ;;  %v11068_v56 = vpop.eup %8653  ;;  %8108 = vmatprep.subr.mxu1 %v6893_v49 }
 0x6ec   : > { %15015 = vst [vmem:[#allocation136_spill] sm:$0xff] %v11068_v56  ;;  %8109 = vmatpush3.msra.mxu1 %v6893_v49  ;;  %v6890_v49 = vld [vmem:[%s9813_s20 + $0x2b0] sm:$0xff] }
 0x6ed   : > { %8110 = vmatprep.subr.mxu1 %v6892_v16 }
 0x6ee   : > { %1538 = vadd.xlane.f32.xlu0 %v1537_v31  ;;  %v11064_v31 = vsub.f32 %v10191_v22, %v10839_v52  ;;  %v11075_v22 = vsub.f32 %v10197_v28, %v10843_v34  ;;  %v11077_v52 = vpop.permute.xlu0 %2548  ;;  %8111 = vmatpush3.msra.mxu1 %v6892_v16  ;;  %v11088_v34 = vsub.f32 %v10265_v58, %v10855_v51 }
 0x6ef   : > { %15017 = vst [vmem:[#allocation138_spill] sm:$0xff] %v11077_v52  ;;  %8112 = vmatprep.subr.mxu1 %v6891_v29  ;;  %v11101_v51 = vsub.f32 %v10365_v45, %v10861_v7  ;;  %v11115_v7 = vsub.f32 %v10377_v8, %v10865_v11  ;;  %v11128_v8 = vsub.f32 %v10389_v4, %v10886_v36 }
 0x6f0   : > { %15014 = vst [vmem:[#allocation135_spill] sm:$0xff] %v11064_v31  ;;  %v1533_v0 = vmul.f32 1.442695, %v11064_v31  ;;  %15016 = vst [vmem:[#allocation137_spill] sm:$0xff] %v11075_v22  ;;  %v2311_v28 = vmul.f32 1.442695, %v11075_v22  ;;  %8113 = vmatpush3.msra.mxu1 %v6891_v29  ;;  %v11140_v4 = vsub.f32 %v10401_v63, %v10893_v55  ;;  %v2967_v55 = vsub.f32 %v10807_v53, %v10807_v53 }
 0x6f1   : > { %3887 = vmax.xlane.f32.xlu1 %v3886_v5  ;;  %v1549_v5 = vsel %vm633_vm0, %v11068_v56, 0.0  ;;  %15019 = vst [vmem:[#allocation140_spill] sm:$0xff] %v11088_v34  ;;  %8114 = vmatprep.subr.mxu1 %v6890_v49  ;;  %v2315_v58 = vmul.f32 1.442695, %v11088_v34  ;;  %15021 = vst [vmem:[#allocation142_spill] sm:$0xff] %v11101_v51  ;;  %v11121_v34 = vpop.xlane.xlu1 %1469 }
 0x6f2   : > { %1544 = vadd.xlane.f32.xlu0 %v1543_v10  ;;  %v11081_v10 = vpop.eup %8655  ;;  %8665 = vpow2.f32 %v1533_v0  ;;  %v11090_v61 = vpop.xlane.xlu0 %3096  ;;  %8115 = vmatpush3.msra.mxu1 %v6890_v49  ;;  %v6889_v0 = vld [vmem:[%s9813_s20 + $0x2a8] sm:$0xff]  ;;  %v6887_v49 = vld [vmem:[%s9813_s20 + $0x298] sm:$0xff]  ;;  %v2319_v45 = vmul.f32 1.442695, %v11101_v51  ;;  %15023 = vst [vmem:[#allocation144_spill] sm:$0xff] %v11115_v7  ;;  %15025 = vst [vmem:[#allocation146_spill] sm:$0xff] %v11128_v8 }
 0x6f3   : > { %15018 = vst [vmem:[#allocation139_spill] sm:$0xff] %v11081_v10  ;;  %v1555_v52 = vsel %vm633_vm0, %v11081_v10, 0.0  ;;  %8667 = vpow2.f32 %v2311_v28  ;;  %8116 = vmatprep.subr.mxu1 %v6889_v0  ;;  %15028 = vst [vmem:[#allocation149_spill] sm:$0xff] %v11140_v4  ;;  %v2331_v63 = vmul.f32 1.442695, %v11140_v4 }
 0x6f4   : > { %8117 = vmatpush3.msra.mxu1 %v6889_v0  ;;  %8669 = vpow2.f32 %v2315_v58  ;;  %v2323_v58 = vmul.f32 1.442695, %v11115_v7  ;;  %v2993_v53 = vmul.f32 1.442695, %v2967_v55 }
 0x6f5   : > { %8671 = vpow2.f32 %v2319_v45 }
 0x6f6   : > { %1550 = vadd.xlane.f32.xlu0 %v1549_v5  ;;  %v11094_v5 = vpop.eup %8657  ;;  %v11108_v29 = vpop.xlane.xlu0 %3860  ;;  %8673 = vpow2.f32 %v2323_v58 }
 0x6f7   : > { %15020 = vst [vmem:[#allocation141_spill] sm:$0xff] %v11094_v5  ;;  %v8660_v16 = vpop.eup %8659  ;;  %v1561_v22 = vsel %vm633_vm0, %v11094_v5, 0.0 }
 0x6f8   : > { %v11105_v31 = vpop.eup %8661  ;;  %v3045_v28 = vmul.f32 %v8660_v16, %v11041_v48  ;;  %v6886_v48 = vld [vmem:[%s9813_s20 + $0x290] sm:$0xff]  ;;  %v6885_v16 = vld [vmem:[%s9813_s20 + $0x288] sm:$0xff] }
 0x6f9   : > { %15022 = vst [vmem:[#allocation143_spill] sm:$0xff] %v11105_v31  ;;  %v11119_v0 = vpop.eup %8663 }
 0x6fa   : > { %1556 = vadd.xlane.f32.xlu0 %v1555_v52  ;;  %v6888_v52 = vld [vmem:[%s9813_s20 + $0x2a0] sm:$0xff]  ;;  %15024 = vst [vmem:[#allocation145_spill] sm:$0xff] %v11119_v0  ;;  %v11130_v11 = vpop.permute.xlu0 %3279 }
 0x6fb   : > { %8118 = vmatprep.subr.mxu1 %v6888_v52  ;;  %15026 = vst [vmem:[#allocation147_spill] sm:$0xff] %v11130_v11 }
 0x6fc   : > { %8119 = vmatpush3.msra.mxu1 %v6888_v52  ;;  %v1573_v52 = vsel %vm633_vm0, %v11119_v0, 0.0 }
 0x6fd   : > { %8120 = vmatprep.subr.mxu1 %v6887_v49 }
 0x6fe   : > { %1562 = vadd.xlane.f32.xlu0 %v1561_v22  ;;  %v1567_v22 = vsel %vm633_vm0, %v11105_v31, 0.0  ;;  %8121 = vmatpush3.msra.mxu1 %v6887_v49  ;;  %v2327_v49 = vmul.f32 1.442695, %v11128_v8 }
 0x6ff   : > { %8122 = vmatprep.subr.mxu1 %v6886_v48  ;;  %v11134_v51 = vpop.eup %8665 }
 0x700   : > { %8123 = vmatpush3.msra.mxu1 %v6886_v48  ;;  %15027 = vst [vmem:[#allocation148_spill] sm:$0xff] %v11134_v51  ;;  %v1579_v36 = vsel %vm633_vm0, %v11134_v51, 0.0  ;;  %v11144_v45 = vpop.eup %8667  ;;  %v11152_v48 = vsub.f32 %v10413_v60, %v10909_v43  ;;  %8675 = vpow2.f32 %v2327_v49  ;;  %v15036_v49 = vld [vmem:[#allocation51_spill] sm:$0xff] }
 0x701   : > { %8124 = vmatprep.subr.mxu1 %v6885_v16  ;;  %15029 = vst [vmem:[#allocation150_spill] sm:$0xff] %v11144_v45  ;;  %v11159_v58 = vpop.eup %8669  ;;  %8677 = vpow2.f32 %v2331_v63 }
 0x702   : > { %1568 = vadd.xlane.f32.xlu0 %v1567_v22  ;;  %3319 = vperm.xlu1 %8385, %v3045_v28   ;;  %v6884_v28 = vld [vmem:[%s9813_s20 + $0x280] sm:$0xff]  ;;  %v11147_v22 = vpop.permute.xlu0 %3294  ;;  %15031 = vst [vmem:[#allocation152_spill] sm:$0xff] %v11152_v48  ;;  %15032 = vst [vmem:[#allocation153_spill] sm:$0xff] %v11159_v58  ;;  %v2335_v60 = vmul.f32 1.442695, %v11152_v48 }
 0x703   : > { %8125 = vmatpush3.msra.mxu1 %v6885_v16  ;;  %15030 = vst [vmem:[#allocation151_spill] sm:$0xff] %v11147_v22  ;;  %v2343_v16 = vsel %vm633_vm0, %v11144_v45, 0.0  ;;  %v15052_v22 = vld [vmem:[#allocation57_spill] sm:$0xff] }
 0x704   : > { %8126 = vmatprep.subr.mxu1 %v6884_v28  ;;  %8679 = vpow2.f32 %v2335_v60 }
 0x705   : > { %8127 = vmatpush3.msra.mxu1 %v6884_v28  ;;  %v11172_v28 = vpop.eup %8671  ;;  %8681 = vpow2.f32 %v2993_v53 }
 0x706   : > { %1574 = vadd.xlane.f32.xlu0 %v1573_v52  ;;  %8129 = vmatmul.mubr.f32.vlgmr.msra.gmra.mxu1 %v10642_v59  ;;  %v11162_v59 = vpop.xlane.xlu0 %3866  ;;  %v2349_v52 = vsel %vm633_vm0, %v11159_v58, 0.0  ;;  %15035 = vst [vmem:[#allocation154_spill] sm:$0xff] %v11172_v28  ;;  %v2355_v55 = vsel %vm633_vm0, %v11172_v28, 0.0 }
 0x707   : > { %8131 = vmatprep.mubr.f32.mxu1 %v10648_v54  ;;  %v15033_v54 = vld [vmem:[#allocation26_spill] sm:$0xff] }
 0x708   : > { %v11168_v43 = vsub.f32 %v15033_v54, %v10917_v17  ;;  %v15042_v54 = vld [vmem:[#allocation53_spill] sm:$0xff] }
 0x70a   : > { %1580 = vadd.xlane.f32.xlu0 %v1579_v36  ;;  %8132 = vmatmul.mubr.f32.gmra.mxu1 %v10656_v42  ;;  %15034 = vst [vmem:[#allocation26_spill] sm:$0xff] %v11168_v43  ;;  %v15037_v42 = vld [vmem:[#allocation52_spill] sm:$0xff]  ;;  %v11181_v17 = vpop.permute.xlu0 %3304 }
 0x70b   : > { %8134 = vmatprep.mubr.f32.mxu1 %v10662_v12  ;;  %v2339_v12 = vmul.f32 1.442695, %v11168_v43  ;;  %v15038_v36 = vld [vmem:[#allocation28_spill] sm:$0xff]  ;;  %15040 = vst [vmem:[#allocation52_spill] sm:$0xff] %v11181_v17  ;;  %v15065_v43 = vld [vmem:[#allocation61_spill] sm:$0xff] }
 0x70c   : > { %v11179_v63 = vsub.f32 %v15038_v36, %v10919_v15 }
 0x70d   : > { %8683 = vpow2.f32 %v2339_v12  ;;  %v15049_v12 = vld [vmem:[#allocation32_spill] sm:$0xff] }
 0x70e   : > { %2344 = vadd.xlane.f32.xlu0 %v2343_v16  ;;  %8135 = vmatmul.mubr.f32.gmra.mxu1 %v15036_v49  ;;  %15039 = vst [vmem:[#allocation51_spill] sm:$0xff] %v11179_v63  ;;  %v11185_v16 = vpop.eup %8673  ;;  %v3117_v60 = vmul.f32 1.442695, %v11179_v63  ;;  %v15044_v49 = vld [vmem:[#allocation30_spill] sm:$0xff] }
 0x70f   : > { %8137 = vmatprep.mubr.f32.mxu1 %v15037_v42  ;;  %15041 = vst [vmem:[#allocation28_spill] sm:$0xff] %v11185_v16  ;;  %v11192_v15 = vsub.f32 %v15044_v49, %v10933_v40  ;;  %v11194_v42 = vpop.xlane.xlu0 %3872  ;;  %v2361_v53 = vsel %vm633_vm0, %v11185_v16, 0.0  ;;  %v11198_v36 = vpop.eup %8675 }
 0x710   : > { %8685 = vpow2.f32 %v3117_v60  ;;  %v2367_v49 = vsel %vm633_vm0, %v11198_v36, 0.0  ;;  %v11209_v17 = vpop.eup %8677 }
 0x711   : > { %15045 = vst [vmem:[#allocation53_spill] sm:$0xff] %v11192_v15  ;;  %v3121_v40 = vmul.f32 1.442695, %v11192_v15  ;;  %v11216_v11 = vpop.eup %8679 }
 0x712   : > { %2350 = vadd.xlane.f32.xlu0 %v2349_v52  ;;  %8138 = vmatmul.mubr.f32.gmra.mxu1 %v15042_v54  ;;  %v15043_v52 = vld [vmem:[#allocation54_spill] sm:$0xff]  ;;  %v15048_v54 = vld [vmem:[#allocation56_spill] sm:$0xff]  ;;  %15055 = vst [vmem:[#allocation32_spill] sm:$0xff] %v11216_v11  ;;  %v8682_v15 = vpop.eup %8681 }
 0x713   : > { %8140 = vmatprep.mubr.f32.mxu1 %v15043_v52  ;;  %15046 = vst [vmem:[#allocation54_spill] sm:$0xff] %v11198_v36  ;;  %v11204_v52 = vsub.f32 %v15049_v12, %v10947_v6  ;;  %8687 = vpow2.f32 %v3121_v40  ;;  %v15056_v6 = vld [vmem:[#allocation34_spill] sm:$0xff]  ;;  %v2373_v12 = vsel %vm633_vm0, %v11209_v17, 0.0 }
 0x714   : > { %v11220_v60 = vsub.f32 %v15056_v6, %v10968_v20  ;;  %v15061_v20 = vld [vmem:[#allocation36_spill] sm:$0xff] }
 0x715   : > { %15050 = vst [vmem:[#allocation30_spill] sm:$0xff] %v11204_v52  ;;  %v11233_v6 = vsub.f32 %v15061_v20, %v10994_v27  ;;  %v15067_v27 = vld [vmem:[#allocation38_spill] sm:$0xff] }
 0x716   : > { %2356 = vadd.xlane.f32.xlu0 %v2355_v55  ;;  %v15047_v55 = vld [vmem:[#allocation55_spill] sm:$0xff]  ;;  %15057 = vst [vmem:[#allocation57_spill] sm:$0xff] %v11220_v60  ;;  %v3129_v40 = vmul.f32 1.442695, %v11220_v60  ;;  %v11246_v20 = vsub.f32 %v15067_v27, %v11021_v44 }
 0x717   : > { %8141 = vmatmul.mubr.f32.gmra.mxu1 %v15047_v55  ;;  %15051 = vst [vmem:[#allocation55_spill] sm:$0xff] %v11209_v17  ;;  %v15054_v55 = vld [vmem:[#allocation58_spill] sm:$0xff] }
 0x718   : > { %8143 = vmatprep.mubr.f32.mxu1 %v15048_v54  ;;  %v3125_v54 = vmul.f32 1.442695, %v11204_v52  ;;  %v15060_v52 = vld [vmem:[#allocation60_spill] sm:$0xff]  ;;  %15062 = vst [vmem:[#allocation58_spill] sm:$0xff] %v11233_v6 }
 0x719   : > { %15068 = vst [vmem:[#allocation60_spill] sm:$0xff] %v11246_v20 }
 0x71a   : > { %2362 = vadd.xlane.f32.xlu0 %v2361_v53  ;;  %v11212_v53 = vpop.permute.xlu0 %3314  ;;  %8689 = vpow2.f32 %v3125_v54  ;;  %v11237_v63 = vpop.eup %8683  ;;  %v3133_v54 = vmul.f32 1.442695, %v11233_v6 }
 0x71b   : > { %8144 = vmatmul.mubr.f32.gmra.mxu1 %v15052_v22  ;;  %15053 = vst [vmem:[#allocation56_spill] sm:$0xff] %v11212_v53  ;;  %v15059_v53 = vld [vmem:[#allocation77_spill] sm:$0xff]  ;;  %8691 = vrcp.f32 %v8682_v15  ;;  %15063 = vst [vmem:[#allocation34_spill] sm:$0xff] %v11237_v63  ;;  %v2385_v48 = vsel %vm633_vm0, %v11237_v63, 0.0 }
 0x71c   : > { %8146 = vmatprep.mubr.f32.mxu1 %v15054_v55  ;;  %v3892_v55 = vsel %vm633_vm0, %v15059_v53, -inf  ;;  %8693 = vpow2.f32 %v3129_v40 }
 0x71d   : > { %8695 = vpow2.f32 %v3133_v54 }
 0x71e   : > { %2368 = vadd.xlane.f32.xlu0 %v2367_v49  ;;  %v15058_v49 = vld [vmem:[#allocation59_spill] sm:$0xff]  ;;  %v11225_v22 = vpop.xlane.xlu0 %3878 }
 0x71f   : > { %8147 = vmatmul.mubr.f32.gmra.mxu1 %v15058_v49  ;;  %v11239_v49 = vpop.permute.xlu1 %900 }
 0x720   : > { %8149 = vmatprep.mubr.f32.mxu1 %v15060_v52  ;;  %15064 = vst [vmem:[#allocation59_spill] sm:$0xff] %v11239_v49  ;;  %v15066_v52 = vld [vmem:[#allocation62_spill] sm:$0xff] }
 0x722   : > { %2374 = vadd.xlane.f32.xlu0 %v2373_v12  ;;  %v2379_v12 = vsel %vm633_vm0, %v11216_v11, 0.0  ;;  %v11248_v60 = vpop.permute.xlu0 %3324  ;;  %v11252_v11 = vpop.eup %8685 }
 0x723   : > { %8150 = vmatmul.mubr.f32.gmra.mxu1 %v15065_v43  ;;  %15069 = vst [vmem:[#allocation36_spill] sm:$0xff] %v11248_v60  ;;  %15070 = vst [vmem:[#allocation61_spill] sm:$0xff] %v11252_v11  ;;  %v3137_v43 = vmul.f32 1.442695, %v11246_v20  ;;  %v3149_v44 = vsel %vm633_vm0, %v11252_v11, 0.0 }
 0x724   : > { %8240 = vmatprep.mubr.f32.mxu1 %v15066_v52  ;;  %v11261_v52 = vpop.eup %8687 }
 0x725   : > { %15073 = vst [vmem:[#allocation38_spill] sm:$0xff] %v11261_v52  ;;  %8697 = vpow2.f32 %v3137_v43  ;;  %v15078_v43 = vld [vmem:[#allocation46_spill] sm:$0xff] }
 0x726   : > { %2380 = vadd.xlane.f32.xlu0 %v2379_v12  ;;  %3893 = vmax.xlane.f32.xlu1 %v3892_v55  ;;  %v15071_v55 = vld [vmem:[#allocation41_spill] sm:$0xff]  ;;  %v3885_v12 = vpop.xlane.xlu0 %3884 }
 0x727   : > { %v11257_v40 = vsub.f32 %v15071_v55, %v11055_v1  ;;  %v11263_v27 = vpop.eup %8689  ;;  %v3155_v1 = vsel %vm633_vm0, %v11261_v52, 0.0 }
 0x728   : > { %15074 = vst [vmem:[#allocation41_spill] sm:$0xff] %v11263_v27  ;;  %v8692_v55 = vpop.eup %8691  ;;  %v3161_v6 = vsel %vm633_vm0, %v11263_v27, 0.0 }
 0x729   : > { %15072 = vst [vmem:[#allocation62_spill] sm:$0xff] %v11257_v40  ;;  %v3141_v60 = vmul.f32 1.442695, %v11257_v40  ;;  %v11279_v40 = vsub.f32 %v15078_v43, %v11108_v29  ;;  %v3047_v11 = vmul.f32 %v8692_v55, %v8682_v15  ;;  %v11292_v29 = vpop.f32.mrf.mxu0 }
 0x72a   : > { %2386 = vadd.xlane.f32.xlu0 %v2385_v48  ;;  %v15075_v48 = vld [vmem:[#allocation44_spill] sm:$0xff]  ;;  %v11272_v20 = vpop.permute.xlu0 %3334 }
 0x72b   : > { %v11268_v54 = vsub.f32 %v15075_v48, %v11090_v61  ;;  %15077 = vst [vmem:[#allocation155_spill] sm:$0xff] %v11272_v20  ;;  %8699 = vpow2.f32 %v3141_v60  ;;  %15079 = vst [vmem:[#allocation46_spill] sm:$0xff] %v11279_v40  ;;  %v11281_v61 = vpop.eup %8693  ;;  %v11283_v48 = vpop.xlane.xlu1 %1475  ;;  %v15081_v20 = vld [vmem:[#allocation49_spill] sm:$0xff] }
 0x72c   : > { %15080 = vst [vmem:[#allocation156_spill] sm:$0xff] %v11281_v61  ;;  %v11288_v60 = vsub.f32 %v15081_v20, %v11162_v59  ;;  %v11294_v15 = vpop.eup %8695  ;;  %v11305_v20 = vpop.f32.mrf.mxu0 }
 0x72d   : > { %15076 = vst [vmem:[#allocation44_spill] sm:$0xff] %v11268_v54  ;;  %15083 = vst [vmem:[#allocation157_spill] sm:$0xff] %v11294_v15  ;;  %v3173_v59 = vsel %vm633_vm0, %v11294_v15, 0.0  ;;  %v15091_v15 = vld [vmem:[#allocation82_spill] sm:$0xff] }
 0x72e   : > { %3150 = vadd.xlane.f32.xlu0 %v3149_v44  ;;  %v3145_v44 = vmul.f32 1.442695, %v11268_v54  ;;  %v3891_v52 = vpop.xlane.xlu0 %3890  ;;  %15082 = vst [vmem:[#allocation49_spill] sm:$0xff] %v11288_v60  ;;  %v3167_v54 = vsel %vm633_vm0, %v11281_v61, 0.0  ;;  %v2969_v61 = vsub.f32 %v15091_v15, %v15091_v15 }
 0x730   : > { %8701 = vpow2.f32 %v3145_v44 }
 0x732   : > { %3156 = vadd.xlane.f32.xlu0 %v3155_v1  ;;  %v3923_v1 = vmul.f32 1.442695, %v11279_v40  ;;  %v11301_v44 = vpop.permute.xlu0 %3344  ;;  %v11307_v43 = vpop.eup %8697 }
 0x733   : > { %15086 = vst [vmem:[#allocation158_spill] sm:$0xff] %v11301_v44  ;;  %15087 = vst [vmem:[#allocation159_spill] sm:$0xff] %v11307_v43 }
 0x734   : > { %8703 = vpow2.f32 %v3923_v1  ;;  %v15088_v1 = vld [vmem:[#allocation69_spill] sm:$0xff] }
 0x736   : > { %3162 = vadd.xlane.f32.xlu0 %v3161_v6  ;;  %v3927_v6 = vmul.f32 1.442695, %v11288_v60  ;;  %v11312_v60 = vsub.f32 %v15088_v1, %v11225_v22  ;;  %v3897_v40 = vpop.xlane.xlu0 %3896 }
 0x737   : > { %3329 = vperm.xlu1 %8385, %v3047_v11   ;;  %v15084_v11 = vld [vmem:[#allocation65_spill] sm:$0xff] }
 0x738   : > { %v11299_v55 = vsub.f32 %v15084_v11, %v11194_v42  ;;  %8705 = vpow2.f32 %v3927_v6  ;;  %15089 = vst [vmem:[#allocation69_spill] sm:$0xff] %v11312_v60  ;;  %v3179_v42 = vsel %vm633_vm0, %v11307_v43, 0.0  ;;  %v7968_v11 = vpop.f32.mrf.mxu0  ;;  %v11316_v44 = vpop.eup %8699  ;;  %v3935_v6 = vmul.f32 1.442695, %v11312_v60 }
 0x739   : > { %15090 = vst [vmem:[#allocation160_spill] sm:$0xff] %v11316_v44  ;;  %v3185_v22 = vsel %vm633_vm0, %v11316_v44, 0.0  ;;  %v2997_v43 = vmul.f32 1.442695, %v2969_v61  ;;  %v15099_v44 = vld [vmem:[#allocation86_spill] sm:$0xff] }
 0x73a   : > { %3168 = vadd.xlane.f32.xlu0 %v3167_v54  ;;  %15085 = vst [vmem:[#allocation65_spill] sm:$0xff] %v11299_v55  ;;  %v3931_v54 = vmul.f32 1.442695, %v11299_v55  ;;  %v11326_v1 = vpop.f32.mrf.mxu0  ;;  %v11330_v63 = vpop.permute.xlu0 %3354  ;;  %v11341_v4 = vsub.f32 %v15099_v44, %v3897_v40 }
 0x73b   : > { %15095 = vst [vmem:[#allocation161_spill] sm:$0xff] %v11330_v63 }
 0x73c   : > { %8707 = vpow2.f32 %v3931_v54  ;;  %v15096_v54 = vld [vmem:[#allocation78_spill] sm:$0xff]  ;;  %15100 = vst [vmem:[#allocation86_spill] sm:$0xff] %v11341_v4 }
 0x73d   : > { %v11328_v27 = vpop.eup %8701  ;;  %8709 = vpow2.f32 %v3935_v6 }
 0x73e   : > { %3174 = vadd.xlane.f32.xlu0 %v3173_v59  ;;  %v15092_v59 = vld [vmem:[#allocation73_spill] sm:$0xff]  ;;  %8711 = vpow2.f32 %v2997_v43  ;;  %v3903_v61 = vpop.xlane.xlu0 %3902 }
 0x73f   : > { %v11322_v55 = vsub.f32 %v15092_v59, %v3885_v12  ;;  %15094 = vst [vmem:[#allocation73_spill] sm:$0xff] %v11328_v27  ;;  %v3191_v12 = vsel %vm633_vm0, %v11328_v27, 0.0  ;;  %v7971_v59 = vpop.f32.mrf.mxu0  ;;  %v11352_v43 = vsub.f32 %v10895_v19, %v3903_v61 }
 0x741   : > { %15093 = vst [vmem:[#allocation82_spill] sm:$0xff] %v11322_v55  ;;  %v3939_v15 = vmul.f32 1.442695, %v11322_v55  ;;  %v11338_v60 = vpop.eup %8703  ;;  %v3947_v55 = vmul.f32 1.442695, %v11341_v4  ;;  %15102 = vst [vmem:[#allocation164_spill] sm:$0xff] %v11352_v43 }
 0x742   : > { %3180 = vadd.xlane.f32.xlu0 %v3179_v42  ;;  %v11334_v42 = vsub.f32 %v15096_v54, %v3891_v52  ;;  %15098 = vst [vmem:[#allocation162_spill] sm:$0xff] %v11338_v60  ;;  %v11346_v52 = vpop.f32.mrf.mxu0  ;;  %v11354_v40 = vpop.xlane.xlu0 %731 }
 0x743   : > { %8713 = vpow2.f32 %v3939_v15 }
 0x744   : > { %15097 = vst [vmem:[#allocation78_spill] sm:$0xff] %v11334_v42  ;;  %v3943_v6 = vmul.f32 1.442695, %v11334_v42  ;;  %v7974_v15 = vpop.f32.mrf.mxu0  ;;  %v3951_v42 = vmul.f32 1.442695, %v11352_v43 }
 0x745   : > { %v11348_v54 = vpop.eup %8705  ;;  %v3772_v7 = vsub.f32 %v7974_v15, %v7974_v15 }
 0x746   : > { %3186 = vadd.xlane.f32.xlu0 %v3185_v22  ;;  %v3955_v22 = vsel %vm633_vm0, %v11338_v60, 0.0  ;;  %15101 = vst [vmem:[#allocation163_spill] sm:$0xff] %v11348_v54  ;;  %8715 = vpow2.f32 %v3943_v6  ;;  %v3961_v44 = vsel %vm633_vm0, %v11348_v54, 0.0  ;;  %v11365_v61 = vpop.f32.mrf.mxu0  ;;  %v11369_v54 = vpop.xlane.xlu0 %737 }
 0x747   : > { %8717 = vpow2.f32 %v3947_v55  ;;  %v15105_v55 = vld [vmem:[#allocation85_spill] sm:$0xff] }
 0x748   : > { %8719 = vpow2.f32 %v3951_v42  ;;  %v3898_v43 = vsel %vm633_vm0, %v15105_v55, -inf  ;;  %v7977_v63 = vpop.f32.mrf.mxu0  ;;  %v15190_v55 = vld [vmem:[#allocation7_spill] sm:$0xff] }
 0x74a   : > { %3192 = vadd.xlane.f32.xlu0 %v3191_v12  ;;  %v11358_v12 = vpop.eup %8707  ;;  %v11383_v17 = vpop.f32.mrf.mxu0 }
 0x74b   : > { %15103 = vst [vmem:[#allocation165_spill] sm:$0xff] %v11358_v12  ;;  %v3967_v19 = vsel %vm633_vm0, %v11358_v12, 0.0  ;;  %v11367_v6 = vpop.eup %8709  ;;  %v11377_v12 = vpop.permute.xlu1 %910 }
 0x74c   : > { %15104 = vst [vmem:[#allocation166_spill] sm:$0xff] %v11367_v6  ;;  %v8712_v4 = vpop.eup %8711  ;;  %15107 = vst [vmem:[#allocation168_spill] sm:$0xff] %v11377_v12 }
 0x74d   : > { %8721 = vrcp.f32 %v8712_v4 }
 0x74e   : > { %3956 = vadd.xlane.f32.xlu0 %v3955_v22  ;;  %v3766_v22 = vsub.f32 %v11292_v29, %v11292_v29  ;;  %v3973_v29 = vsel %vm633_vm0, %v11367_v6, 0.0 }
 0x750   : > { %v3785_v60 = vmul.f32 1.442695, %v3766_v22  ;;  %v11375_v27 = vpop.eup %8713  ;;  %v3770_v22 = vsub.f32 %v7971_v59, %v7971_v59 }
 0x751   : > { %15106 = vst [vmem:[#allocation167_spill] sm:$0xff] %v11375_v27 }
 0x752   : > { %3962 = vadd.xlane.f32.xlu0 %v3961_v44  ;;  %v3768_v44 = vsub.f32 %v7968_v11, %v7968_v11  ;;  %8723 = vpow2.f32 %v3785_v60  ;;  %v3979_v11 = vsel %vm633_vm0, %v11375_v27, 0.0 }
 0x753   : > { %v11385_v8 = vpop.eup %8715 }
 0x754   : > { %v3789_v42 = vmul.f32 1.442695, %v3768_v44  ;;  %15109 = vst [vmem:[#allocation170_spill] sm:$0xff] %v11385_v8  ;;  %v11389_v36 = vpop.eup %8717  ;;  %v3985_v60 = vsel %vm633_vm0, %v11385_v8, 0.0 }
 0x755   : > { %15110 = vst [vmem:[#allocation171_spill] sm:$0xff] %v11389_v36  ;;  %v3991_v44 = vsel %vm633_vm0, %v11389_v36, 0.0  ;;  %v11397_v27 = vpop.eup %8719 }
 0x756   : > { %3968 = vadd.xlane.f32.xlu0 %v3967_v19  ;;  %v11379_v19 = vpop.permute.xlu0 %4085  ;;  %8725 = vpow2.f32 %v3789_v42  ;;  %15111 = vst [vmem:[#allocation172_spill] sm:$0xff] %v11397_v27  ;;  %v3997_v8 = vsel %vm633_vm0, %v11397_v27, 0.0 }
 0x757   : > { %15108 = vst [vmem:[#allocation169_spill] sm:$0xff] %v11379_v19  ;;  %v3774_v19 = vsub.f32 %v7977_v63, %v7977_v63  ;;  %v11407_v63 = vpop.xlane.xlu1 %1481 }
 0x759   : > { %v3801_v16 = vmul.f32 1.442695, %v3774_v19 }
 0x75a   : > { %3974 = vadd.xlane.f32.xlu0 %v3973_v29  ;;  %v3793_v29 = vmul.f32 1.442695, %v3770_v22  ;;  %v8722_v22 = vpop.eup %8721 }
 0x75b   : > { %3899 = vmax.xlane.f32.xlu1 %v3898_v43  ;;  %v7980_v43 = vpop.f32.mrf.mxu0  ;;  %v3049_v36 = vmul.f32 %v8722_v22, %v8712_v4 }
 0x75c   : > { %8727 = vpow2.f32 %v3793_v29  ;;  %v3776_v29 = vsub.f32 %v7980_v43, %v7980_v43 }
 0x75d   : > { %v11399_v42 = vpop.f32.mrf.mxu0 }
 0x75e   : > { %3980 = vadd.xlane.f32.xlu0 %v3979_v11  ;;  %v3797_v11 = vmul.f32 1.442695, %v3772_v7 }
 0x75f   : > { %v11387_v6 = vpop.xlane.xlu0 %743  ;;  %v7983_v28 = vpop.f32.mrf.mxu0 }
 0x760   : > { %8729 = vpow2.f32 %v3797_v11  ;;  %v3778_v45 = vsub.f32 %v7983_v28, %v7983_v28  ;;  %v15120_v28 = vld [vmem:[#allocation92_spill] sm:$0xff] }
 0x761   : > { %v2971_v0 = vsub.f32 %v15120_v28, %v15120_v28 }
 0x762   : > { %3986 = vadd.xlane.f32.xlu0 %v3985_v60  ;;  %v8724_v60 = vpop.eup %8723  ;;  %v3809_v19 = vmul.f32 1.442695, %v3778_v45 }
 0x763   : > { %v11393_v59 = vpop.xlane.xlu0 %749  ;;  %8731 = vrcp.f32 %v8724_v60  ;;  %v8726_v7 = vpop.eup %8725  ;;  %v3001_v10 = vmul.f32 1.442695, %v2971_v0 }
 0x764   : > { %8733 = vpow2.f32 %v3801_v16  ;;  %v15118_v16 = vld [vmem:[#allocation2_spill] sm:$0xff] }
 0x765   : > { %8735 = vrcp.f32 %v8726_v7 }
 0x766   : > { %3992 = vadd.xlane.f32.xlu0 %v3991_v44  ;;  %v3805_v44 = vmul.f32 1.442695, %v3776_v29 }
 0x767   : > { %v11401_v15 = vpop.xlane.xlu0 %755 }
 0x768   : > { %15112 = vst [vmem:[#allocation173_spill] sm:$0xff] %v11401_v15  ;;  %8737 = vpow2.f32 %v3805_v44 }
 0x769   : > { %v8728_v27 = vpop.eup %8727 }
 0x76a   : > { %3998 = vadd.xlane.f32.xlu0 %v3997_v8  ;;  %8739 = vrcp.f32 %v8728_v27 }
 0x76b   : > { %v11405_v58 = vpop.xlane.xlu0 %761  ;;  %8741 = vpow2.f32 %v3809_v19 }
 0x76c   : > { %15113 = vst [vmem:[#allocation174_spill] sm:$0xff] %v11405_v58  ;;  %3339 = vperm.xlu1 %8385, %v3049_v36   ;;  %v15117_v36 = vld [vmem:[#allocation39_spill] sm:$0xff] }
 0x76d   : > { %v8730_v8 = vpop.eup %8729  ;;  %v11417_v29 = vsub.f32 %v15118_v16, %v15117_v36 }
 0x76e   : > { %8743 = vrcp.f32 %v8730_v8 }
 0x76f   : > { %v11409_v51 = vpop.xlane.xlu0 %767  ;;  %15119 = vst [vmem:[#allocation39_spill] sm:$0xff] %v11417_v29  ;;  %v700_v19 = vmul.f32 1.442695, %v11417_v29 }
 0x770   : > { %15114 = vst [vmem:[#allocation175_spill] sm:$0xff] %v11409_v51  ;;  %v8732_v11 = vpop.eup %8731  ;;  %v11763_v51 = vld [vmem:[%s14494_s2 + $0x78] sm:$0xff] }
 0x771   : > { %v8734_v22 = vpop.eup %8733  ;;  %v3846_v44 = vmul.f32 %v8732_v11, %v8724_v60 }
 0x772   : > { %v8736_v45 = vpop.eup %8735  ;;  %8745 = vrcp.f32 %v8734_v22 }
 0x773   : > { %v11411_v43 = vpop.xlane.xlu0 %773  ;;  %v3848_v33 = vmul.f32 %v8736_v45, %v8726_v7  ;;  %v3904_v7 = vsel %vm633_vm0, %v15125_v41, -inf }
 0x774   : > { %15115 = vst [vmem:[#allocation176_spill] sm:$0xff] %v11411_v43 }
 0x775   : > { %v8738_v5 = vpop.eup %8737 }
 0x776   : > { %8747 = vrcp.f32 %v8738_v5 }
 0x777   : > { %v11413_v4 = vpop.xlane.xlu0 %1538  ;;  %v8740_v50 = vpop.eup %8739  ;;  %8749 = vpow2.f32 %v700_v19 }
 0x778   : > { %15116 = vst [vmem:[#allocation177_spill] sm:$0xff] %v11413_v4  ;;  %v8742_v36 = vpop.eup %8741  ;;  %8751 = vpow2.f32 %v3001_v10  ;;  %v3850_v28 = vmul.f32 %v8740_v50, %v8728_v27  ;;  %v11436_v19 = vpop.permute.xlu1 %920 }
 0x779   : > { %8753 = vrcp.f32 %v8742_v36  ;;  %15128 = vst [vmem:[#allocation182_spill] sm:$0xff] %v11436_v19 }
 0x77b   : > { %v11421_v31 = vpop.xlane.xlu0 %1544  ;;  %v8744_v47 = vpop.eup %8743 }
 0x77c   : > { %15121 = vst [vmem:[#allocation2_spill] sm:$0xff] %v11421_v31  ;;  %v3852_v60 = vmul.f32 %v8744_v47, %v8730_v8  ;;  %v11440_v27 = vpop.xlane.xlu1 %1487 }
 0x77f   : > { %v11424_v35 = vpop.xlane.xlu0 %1550  ;;  %v8746_v11 = vpop.eup %8745 }
 0x780   : > { %15122 = vst [vmem:[#allocation92_spill] sm:$0xff] %v11424_v35  ;;  %4100 = vperm.xlu0 %8386, %v3846_v44   ;;  %v3854_v0 = vmul.f32 %v8746_v11, %v8734_v22 }
 0x783   : > { %v11426_v16 = vpop.xlane.xlu0 %1556  ;;  %v8748_v14 = vpop.eup %8747 }
 0x784   : > { %15123 = vst [vmem:[#allocation178_spill] sm:$0xff] %v11426_v16  ;;  %4110 = vperm.xlu0 %8386, %v3848_v33   ;;  %v11432_v45 = vpop.eup %8749  ;;  %v3856_v33 = vmul.f32 %v8748_v14, %v8738_v5  ;;  %v11448_v14 = vpop.permute.xlu1 %930 }
 0x785   : > { %15126 = vst [vmem:[#allocation180_spill] sm:$0xff] %v11432_v45  ;;  %v8752_v44 = vpop.eup %8751  ;;  %v733_v50 = vsel %vm633_vm0, %v11432_v45, 0.0  ;;  %15132 = vst [vmem:[#allocation186_spill] sm:$0xff] %v11448_v14 }
 0x786   : > { %v8754_v47 = vpop.eup %8753  ;;  %8755 = vrcp.f32 %v8752_v44 }
 0x787   : > { %v11428_v56 = vpop.xlane.xlu0 %1562  ;;  %v3858_v8 = vmul.f32 %v8754_v47, %v8742_v36  ;;  %v15136_v36 = vld [vmem:[#allocation3_spill] sm:$0xff] }
 0x788   : > { %4120 = vperm.xlu0 %8386, %v3850_v28   ;;  %15124 = vst [vmem:[#allocation179_spill] sm:$0xff] %v11428_v56  ;;  %v6957_v56 = vld [vmem:[%s9813_s20 + $0x3c8] sm:$0xff] }
 0x78b   : > { %v11434_v10 = vpop.xlane.xlu0 %1568 }
 0x78c   : > { %4130 = vperm.xlu0 %8386, %v3852_v60   ;;  %15127 = vst [vmem:[#allocation181_spill] sm:$0xff] %v11434_v10  ;;  %v6919_v10 = vld [vmem:[%s9813_s20 + $0x318] sm:$0xff] }
 0x78f   : > { %v11442_v22 = vpop.xlane.xlu0 %1574 }
 0x790   : > { %4140 = vperm.xlu0 %8386, %v3854_v0   ;;  %3905 = vmax.xlane.f32.xlu1 %v3904_v7  ;;  %15129 = vst [vmem:[#allocation183_spill] sm:$0xff] %v11442_v22  ;;  %v11452_v7 = vpop.xlane.xlu1 %2251 }
 0x793   : > { %v11444_v28 = vpop.xlane.xlu0 %1580  ;;  %v8756_v60 = vpop.eup %8755 }
 0x794   : > { %4150 = vperm.xlu0 %8386, %v3856_v33   ;;  %734 = vadd.xlane.f32.xlu1 %v733_v50  ;;  %15130 = vst [vmem:[#allocation184_spill] sm:$0xff] %v11444_v28  ;;  %v3051_v0 = vmul.f32 %v8756_v60, %v8752_v44  ;;  %v15135_v33 = vld [vmem:[#allocation43_spill] sm:$0xff]  ;;  %v11460_v50 = vpop.permute.xlu1 %1672 }
 0x795   : > { %v11458_v47 = vsub.f32 %v15136_v36, %v15135_v33  ;;  %15138 = vst [vmem:[#allocation3_spill] sm:$0xff] %v11460_v50 }
 0x797   : > { %v11446_v11 = vpop.xlane.xlu0 %2344  ;;  %15137 = vst [vmem:[#allocation43_spill] sm:$0xff] %v11458_v47  ;;  %v704_v44 = vmul.f32 1.442695, %v11458_v47 }
 0x798   : > { %4160 = vperm.xlu0 %8386, %v3858_v8   ;;  %15131 = vst [vmem:[#allocation185_spill] sm:$0xff] %v11446_v11  ;;  %v15139_v8 = vld [vmem:[#allocation94_spill] sm:$0xff]  ;;  %v11465_v60 = vpop.xlane.xlu1 %2257 }
 0x799   : > { %v3764_v26 = vsub.f32 %v15139_v8, %v15139_v8  ;;  %8757 = vpow2.f32 %v704_v44 }
 0x79b   : > { %v11450_v5 = vpop.xlane.xlu0 %2350 }
 0x79c   : > { %15133 = vst [vmem:[#allocation187_spill] sm:$0xff] %v11450_v5  ;;  %v3781_v5 = vmul.f32 1.442695, %v3764_v26  ;;  %v11469_v11 = vpop.permute.xlu1 %1677 }
 0x79d   : > { %15141 = vst [vmem:[#allocation189_spill] sm:$0xff] %v11469_v11 }
 0x79e   : > { %8759 = vpow2.f32 %v3781_v5 }
 0x79f   : > { %v11454_v45 = vpop.xlane.xlu0 %2356 }
 0x7a0   : > { %15134 = vst [vmem:[#allocation188_spill] sm:$0xff] %v11454_v45  ;;  %v11473_v33 = vpop.xlane.xlu1 %2263 }
 0x7a4   : > { %v11477_v50 = vpop.permute.xlu1 %1687 }
 0x7a5   : > { %3349 = vperm.xlu1 %8385, %v3051_v0   ;;  %v11467_v0 = vpop.xlane.xlu0 %2362  ;;  %15144 = vst [vmem:[#allocation192_spill] sm:$0xff] %v11477_v50 }
 0x7a6   : > { %15140 = vst [vmem:[#allocation94_spill] sm:$0xff] %v11467_v0  ;;  %v11479_v8 = vpop.eup %8757 }
 0x7a7   : > { %15145 = vst [vmem:[#allocation193_spill] sm:$0xff] %v11479_v8  ;;  %v739_v26 = vsel %vm633_vm0, %v11479_v8, 0.0 }
 0x7a8   : > { %v11483_v37 = vpop.xlane.xlu1 %2269 }
 0x7a9   : > { %v11471_v45 = vpop.xlane.xlu0 %2368 }
 0x7aa   : > { %15142 = vst [vmem:[#allocation190_spill] sm:$0xff] %v11471_v45 }
 0x7ab   : > { %v8760_v47 = vpop.eup %8759 }
 0x7ac   : > { %8761 = vrcp.f32 %v8760_v47 }
 0x7ad   : > { %v11475_v36 = vpop.xlane.xlu0 %2374 }
 0x7ae   : > { %15143 = vst [vmem:[#allocation191_spill] sm:$0xff] %v11475_v36  ;;  %v11493_v36 = vpop.permute.xlu1 %1697 }
 0x7af   : > { %15149 = vst [vmem:[#allocation197_spill] sm:$0xff] %v11493_v36 }
 0x7b1   : > { %v11481_v29 = vpop.xlane.xlu0 %2380 }
 0x7b2   : > { %15146 = vst [vmem:[#allocation194_spill] sm:$0xff] %v11481_v29  ;;  %v11501_v11 = vpop.xlane.xlu1 %2275 }
 0x7b5   : > { %v11489_v44 = vpop.xlane.xlu0 %2386 }
 0x7b6   : > { %15148 = vst [vmem:[#allocation196_spill] sm:$0xff] %v11489_v44 }
 0x7b9   : > { %v11503_v8 = vpop.xlane.xlu0 %3150  ;;  %v8762_v36 = vpop.eup %8761 }
 0x7ba   : > { %15151 = vst [vmem:[#allocation199_spill] sm:$0xff] %v11503_v8  ;;  %v3844_v8 = vmul.f32 %v8762_v36, %v8760_v47 }
 0x7bd   : > { %v11517_v38 = vpop.xlane.xlu0 %3156 }
 0x7be   : > { %15155 = vst [vmem:[#allocation203_spill] sm:$0xff] %v11517_v38 }
 0x7c6   : > { %v11487_v5 = vpop.f32.mrf.mxu1 }
 0x7c7   : > { %15147 = vst [vmem:[#allocation195_spill] sm:$0xff] %v11487_v5 }
 0x7c8   : > { %v11491_v45 = vpop.f32.mrf.mxu1 }
 0x7c9   : > { %740 = vadd.xlane.f32.xlu1 %v739_v26  ;;  %v4665_v0 = vsel %vm633_vm0, %v11491_v45, -inf }
 0x7ca   : > { %v11497_v50 = vpop.f32.mrf.mxu1  ;;  %4666 = vmax.xlane.f32.xlu0 %v4665_v0  ;;  %v11515_v0 = vpop.permute.xlu1 %1707 }
 0x7cb   : > { %15150 = vst [vmem:[#allocation198_spill] sm:$0xff] %v11497_v50  ;;  %15154 = vst [vmem:[#allocation202_spill] sm:$0xff] %v11515_v0  ;;  %v15163_v0 = vld [vmem:[#allocation4_spill] sm:$0xff] }
 0x7cc   : > { %v11499_v29 = vpop.f32.mrf.mxu1 }
 0x7cd   : > { %v4671_v26 = vsel %vm633_vm0, %v11499_v29, -inf }
 0x7ce   : > { %v11507_v5 = vpop.f32.mrf.mxu1  ;;  %4672 = vmax.xlane.f32.xlu0 %v4671_v26  ;;  %v11525_v30 = vpop.xlane.xlu1 %2281 }
 0x7cf   : > { %15152 = vst [vmem:[#allocation200_spill] sm:$0xff] %v11507_v5 }
 0x7d0   : > { %v11509_v44 = vpop.f32.mrf.mxu1 }
 0x7d1   : > { %v4677_v14 = vsel %vm633_vm0, %v11509_v44, -inf }
 0x7d2   : > { %v11513_v50 = vpop.f32.mrf.mxu1  ;;  %4678 = vmax.xlane.f32.xlu0 %v4677_v14  ;;  %v11537_v36 = vpop.permute.xlu1 %1717 }
 0x7d3   : > { %15153 = vst [vmem:[#allocation201_spill] sm:$0xff] %v11513_v50  ;;  %v11529_v50 = vpop.xlane.xlu0 %3162  ;;  %15159 = vst [vmem:[#allocation207_spill] sm:$0xff] %v11537_v36  ;;  %v3765_v36 = vsub.f32 %v11305_v20, %v11305_v20  ;;  %v6931_v20 = vld [vmem:[%s9813_s20 + $0x378] sm:$0xff] }
 0x7d4   : > { %v11519_v28 = vpop.f32.mrf.mxu1  ;;  %15157 = vst [vmem:[#allocation205_spill] sm:$0xff] %v11529_v50  ;;  %v15162_v50 = vld [vmem:[#allocation47_spill] sm:$0xff]  ;;  %8208 = vmatprep.subr.mxu1 %v6931_v20 }
 0x7d5   : > { %v4683_v5 = vsel %vm633_vm0, %v11519_v28, -inf  ;;  %v11547_v19 = vsub.f32 %v15163_v0, %v15162_v50  ;;  %8209 = vmatpush3.msra.mxu1 %v6931_v20  ;;  %v6925_v20 = vld [vmem:[%s9813_s20 + $0x348] sm:$0xff] }
 0x7d6   : > { %4684 = vmax.xlane.f32.xlu0 %v4683_v5 }
 0x7d7   : > { %v11523_v26 = vpop.f32.mrf.mxu1  ;;  %15164 = vst [vmem:[#allocation47_spill] sm:$0xff] %v11547_v19 }
 0x7d8   : > { %15156 = vst [vmem:[#allocation204_spill] sm:$0xff] %v11523_v26  ;;  %v11543_v26 = vpop.xlane.xlu0 %3168 }
 0x7d9   : > { %v11527_v46 = vpop.f32.mrf.mxu1  ;;  %15161 = vst [vmem:[#allocation209_spill] sm:$0xff] %v11543_v26  ;;  %v3783_v26 = vmul.f32 1.442695, %v3765_v36 }
 0x7da   : > { %4090 = vperm.xlu1 %8385, %v3844_v8   ;;  %v4689_v14 = vsel %vm633_vm0, %v11527_v46, -inf }
 0x7db   : > { %v11533_v38 = vpop.f32.mrf.mxu1  ;;  %4690 = vmax.xlane.f32.xlu0 %v4689_v14  ;;  %v11551_v14 = vpop.xlane.xlu1 %2287 }
 0x7dc   : > { %15158 = vst [vmem:[#allocation206_spill] sm:$0xff] %v11533_v38  ;;  %v11560_v12 = vpop.xlane.xlu0 %3174 }
 0x7dd   : > { %v11535_v47 = vpop.f32.mrf.mxu1  ;;  %15166 = vst [vmem:[#allocation210_spill] sm:$0xff] %v11560_v12  ;;  %v6929_v12 = vld [vmem:[%s9813_s20 + $0x368] sm:$0xff] }
 0x7de   : > { %v4695_v8 = vsel %vm633_vm0, %v11535_v47, -inf }
 0x7df   : > { %v11541_v5 = vpop.f32.mrf.mxu1  ;;  %4696 = vmax.xlane.f32.xlu0 %v4695_v8  ;;  %v11566_v49 = vpop.permute.xlu1 %1727 }
 0x7e0   : > { %15160 = vst [vmem:[#allocation208_spill] sm:$0xff] %v11541_v5  ;;  %v708_v5 = vmul.f32 1.442695, %v11547_v19  ;;  %15167 = vst [vmem:[#allocation211_spill] sm:$0xff] %v11566_v49  ;;  %v6928_v19 = vld [vmem:[%s9813_s20 + $0x360] sm:$0xff]  ;;  %v6926_v49 = vld [vmem:[%s9813_s20 + $0x350] sm:$0xff] }
 0x7e1   : > { %v11549_v38 = vpop.f32.mrf.mxu1 }
 0x7e2   : > { %v4701_v22 = vsel %vm633_vm0, %v11549_v38, -inf  ;;  %8763 = vpow2.f32 %v708_v5 }
 0x7e3   : > { %4702 = vmax.xlane.f32.xlu0 %v4701_v22  ;;  %v11557_v8 = vpop.f32.mrf.mxu1  ;;  %v6930_v22 = vld [vmem:[%s9813_s20 + $0x370] sm:$0xff]  ;;  %8765 = vpow2.f32 %v3783_v26  ;;  %v11570_v36 = vpop.xlane.xlu1 %2293 }
 0x7e4   : > { %15165 = vst [vmem:[#allocation4_spill] sm:$0xff] %v11557_v8  ;;  %8210 = vmatprep.subr.mxu1 %v6930_v22  ;;  %v11572_v8 = vpop.xlane.xlu0 %3180 }
 0x7e5   : > { %v11562_v50 = vpop.f32.mrf.mxu1  ;;  %15168 = vst [vmem:[#allocation212_spill] sm:$0xff] %v11572_v8  ;;  %8211 = vmatpush3.msra.mxu1 %v6930_v22  ;;  %v6924_v22 = vld [vmem:[%s9813_s20 + $0x340] sm:$0xff] }
 0x7e6   : > { %v4707_v0 = vsel %vm633_vm0, %v11562_v50, -inf  ;;  %8212 = vmatprep.subr.mxu1 %v6929_v12 }
 0x7e7   : > { %4708 = vmax.xlane.f32.xlu0 %v4707_v0  ;;  %8213 = vmatpush3.msra.mxu1 %v6929_v12  ;;  %v6927_v0 = vld [vmem:[%s9813_s20 + $0x358] sm:$0xff]  ;;  %v11578_v26 = vpop.permute.xlu1 %1737 }
 0x7e8   : > { %8214 = vmatprep.subr.mxu1 %v6928_v19  ;;  %15169 = vst [vmem:[#allocation213_spill] sm:$0xff] %v11578_v26  ;;  %v11580_v5 = vpop.xlane.xlu0 %3186  ;;  %v6923_v26 = vld [vmem:[%s9813_s20 + $0x338] sm:$0xff] }
 0x7e9   : > { %8215 = vmatpush3.msra.mxu1 %v6928_v19  ;;  %15170 = vst [vmem:[#allocation214_spill] sm:$0xff] %v11580_v5  ;;  %v6922_v5 = vld [vmem:[%s9813_s20 + $0x330] sm:$0xff] }
 0x7ea   : > { %8216 = vmatprep.subr.mxu1 %v6927_v0 }
 0x7eb   : > { %8217 = vmatpush3.msra.mxu1 %v6927_v0  ;;  %v11586_v12 = vpop.xlane.xlu1 %3057 }
 0x7ec   : > { %8218 = vmatprep.subr.mxu1 %v6926_v49  ;;  %v11588_v2 = vpop.xlane.xlu0 %3192 }
 0x7ed   : > { %8219 = vmatpush3.msra.mxu1 %v6926_v49  ;;  %15172 = vst [vmem:[#allocation216_spill] sm:$0xff] %v11588_v2 }
 0x7ee   : > { %8220 = vmatprep.subr.mxu1 %v6925_v20 }
 0x7ef   : > { %v11584_v8 = vpop.eup %8763  ;;  %8221 = vmatpush3.msra.mxu1 %v6925_v20  ;;  %v11594_v0 = vpop.permute.xlu1 %2478  ;;  %v6921_v20 = vld [vmem:[%s9813_s20 + $0x328] sm:$0xff] }
 0x7f0   : > { %15171 = vst [vmem:[#allocation215_spill] sm:$0xff] %v11584_v8  ;;  %v8766_v19 = vpop.eup %8765  ;;  %8222 = vmatprep.subr.mxu1 %v6924_v22  ;;  %v745_v49 = vsel %vm633_vm0, %v11584_v8, 0.0  ;;  %15173 = vst [vmem:[#allocation217_spill] sm:$0xff] %v11594_v0  ;;  %v6918_v8 = vld [vmem:[%s9813_s20 + $0x310] sm:$0xff] }
 0x7f1   : > { %8223 = vmatpush3.msra.mxu1 %v6924_v22  ;;  %8767 = vrcp.f32 %v8766_v19  ;;  %v11598_v22 = vpop.xlane.xlu0 %3956 }
 0x7f2   : > { %8224 = vmatprep.subr.mxu1 %v6923_v26  ;;  %15174 = vst [vmem:[#allocation218_spill] sm:$0xff] %v11598_v22  ;;  %v6917_v22 = vld [vmem:[%s9813_s20 + $0x308] sm:$0xff] }
 0x7f3   : > { %8225 = vmatpush3.msra.mxu1 %v6923_v26  ;;  %v11600_v2 = vpop.xlane.xlu1 %3063 }
 0x7f4   : > { %8226 = vmatprep.subr.mxu1 %v6922_v5 }
 0x7f5   : > { %8227 = vmatpush3.msra.mxu1 %v6922_v5  ;;  %v11604_v26 = vpop.xlane.xlu0 %3962 }
 0x7f6   : > { %8228 = vmatprep.subr.mxu1 %v6921_v20  ;;  %15175 = vst [vmem:[#allocation219_spill] sm:$0xff] %v11604_v26  ;;  %v11625_v26 = vld [vmem:[%s14494_s2 + $0x10] sm:$0xff] }
 0x7f7   : > { %8229 = vmatpush3.msra.mxu1 %v6921_v20  ;;  %v11606_v5 = vpop.permute.xlu1 %2483  ;;  %v6916_v20 = vld [vmem:[%s9813_s20 + $0x300] sm:$0xff] }
 0x7f8   : > { %8230 = vmatprep.subr.mxu1 %v6920_v62  ;;  %15176 = vst [vmem:[#allocation220_spill] sm:$0xff] %v11606_v5 }
 0x7f9   : > { %8231 = vmatpush3.msra.mxu1 %v6920_v62  ;;  %v11612_v62 = vpop.xlane.xlu0 %3968 }
 0x7fa   : > { %8232 = vmatprep.subr.mxu1 %v6919_v10  ;;  %15177 = vst [vmem:[#allocation221_spill] sm:$0xff] %v11612_v62  ;;  %v6960_v62 = vld [vmem:[%s9813_s20 + $0x3e0] sm:$0xff] }
 0x7fb   : > { %8233 = vmatpush3.msra.mxu1 %v6919_v10  ;;  %v11610_v0 = vpop.xlane.xlu1 %3069  ;;  %v6963_v10 = vld [vmem:[%s9813_s20 + $0x3f8] sm:$0xff] }
 0x7fc   : > { %8234 = vmatprep.subr.mxu1 %v6918_v8 }
 0x7fd   : > { %8235 = vmatpush3.msra.mxu1 %v6918_v8  ;;  %v11618_v8 = vld [vmem:[%s14494_s2 + $0x8] sm:$0xff] }
 0x7fe   : > { %746 = vadd.xlane.f32.xlu1 %v745_v49  ;;  %v8768_v49 = vpop.eup %8767  ;;  %8236 = vmatprep.subr.mxu1 %v6917_v22 }
 0x7ff   : > { %8237 = vmatpush3.msra.mxu1 %v6917_v22  ;;  %v3845_v21 = vmul.f32 %v8768_v49, %v8766_v19  ;;  %v6962_v22 = vld [vmem:[%s9813_s20 + $0x3f0] sm:$0xff]  ;;  %v11629_v19 = vpop.permute.xlu1 %2493  ;;  %v11631_v49 = vpop.xlane.xlu0 %3974 }
 0x800   : > { %8238 = vmatprep.subr.mxu1 %v6916_v20  ;;  %15178 = vst [vmem:[#allocation222_spill] sm:$0xff] %v11629_v19  ;;  %15179 = vst [vmem:[#allocation223_spill] sm:$0xff] %v11631_v49  ;;  %v11652_v19 = vld [vmem:[%s14494_s2 + $0x28] sm:$0xff] }
 0x801   : > { %8239 = vmatpush3.msra.mxu1 %v6916_v20  ;;  %v11636_v20 = vld [vmem:[%s14494_s2 + $0x18] sm:$0xff] }
 0x802   : > { %8241 = vmatmul.mubr.f32.vlgmr.msra.gmra.mxu1 %v11618_v8  ;;  %8320 = vmatprep.subr.mxu1 %v6963_v10 }
 0x803   : > { %8243 = vmatprep.mubr.f32.mxu1 %v11625_v26  ;;  %8321 = vmatpush3.msra.mxu1 %v6963_v10  ;;  %v11643_v10 = vld [vmem:[%s14494_s2 + $0x20] sm:$0xff]  ;;  %v11647_v49 = vpop.xlane.xlu1 %3075  ;;  %v11656_v5 = vpop.xlane.xlu0 %3980 }
 0x804   : > { %8322 = vmatprep.subr.mxu1 %v6962_v22  ;;  %15180 = vst [vmem:[#allocation224_spill] sm:$0xff] %v11656_v5  ;;  %v11672_v5 = vld [vmem:[%s14494_s2 + $0x38] sm:$0xff] }
 0x805   : > { %8323 = vmatpush3.msra.mxu1 %v6962_v22  ;;  %v6959_v22 = vld [vmem:[%s9813_s20 + $0x3d8] sm:$0xff] }
 0x806   : > { %8244 = vmatmul.mubr.f32.gmra.mxu1 %v11636_v20 }
 0x807   : > { %8246 = vmatprep.mubr.f32.mxu1 %v11643_v10  ;;  %v11676_v13 = vpop.permute.xlu1 %2503  ;;  %v11690_v16 = vpop.xlane.xlu0 %3986 }
 0x808   : > { %15184 = vst [vmem:[#allocation5_spill] sm:$0xff] %v11676_v13  ;;  %15188 = vst [vmem:[#allocation6_spill] sm:$0xff] %v11690_v16  ;;  %v6954_v13 = vld [vmem:[%s9813_s20 + $0x3b0] sm:$0xff]  ;;  %v15189_v16 = vld [vmem:[#allocation66_spill] sm:$0xff] }
 0x809   : > { %v11711_v35 = vsub.f32 %v15190_v55, %v15189_v16  ;;  %v11725_v55 = vld [vmem:[%s14494_s2 + $0x60] sm:$0xff] }
 0x80a   : > { %8247 = vmatmul.mubr.f32.gmra.mxu1 %v11652_v19 }
 0x80b   : > { %8249 = vmatprep.mubr.f32.mxu1 %v11661_v32  ;;  %15191 = vst [vmem:[#allocation66_spill] sm:$0xff] %v11711_v35  ;;  %v11720_v53 = vpop.xlane.xlu0 %3992  ;;  %v720_v16 = vmul.f32 1.442695, %v11711_v35 }
 0x80c   : > { %15192 = vst [vmem:[#allocation7_spill] sm:$0xff] %v11720_v53  ;;  %v11740_v53 = vld [vmem:[%s14494_s2 + $0x68] sm:$0xff] }
 0x80e   : > { %8250 = vmatmul.mubr.f32.gmra.mxu1 %v11672_v5 }
 0x80f   : > { %4095 = vperm.xlu1 %8385, %v3845_v21   ;;  %v6961_v21 = vld [vmem:[%s9813_s20 + $0x3e8] sm:$0xff]  ;;  %v11757_v43 = vpop.xlane.xlu0 %3998 }
 0x810   : > { %8324 = vmatprep.subr.mxu1 %v6961_v21 }
 0x811   : > { %8325 = vmatpush3.msra.mxu1 %v6961_v21  ;;  %v6958_v21 = vld [vmem:[%s9813_s20 + $0x3d0] sm:$0xff] }
 0x812   : > { %8326 = vmatprep.subr.mxu1 %v6960_v62 }
 0x813   : > { %8327 = vmatpush3.msra.mxu1 %v6960_v62  ;;  %v15181_v62 = vld [vmem:[#allocation50_spill] sm:$0xff]  ;;  %v11776_v58 = vpop.permute.xlu0 %4100 }
 0x814   : > { %8328 = vmatprep.subr.mxu1 %v6959_v22  ;;  %v11666_v23 = vsub.f32 %v15182_v25, %v15181_v62  ;;  %v11681_v25 = vld [vmem:[%s14494_s2 + $0x40] sm:$0xff]  ;;  %v15185_v62 = vld [vmem:[#allocation63_spill] sm:$0xff] }
 0x815   : > { %8329 = vmatpush3.msra.mxu1 %v6959_v22  ;;  %v6956_v22 = vld [vmem:[%s9813_s20 + $0x3c0] sm:$0xff]  ;;  %8252 = vmatprep.mubr.f32.mxu1 %v11681_v25  ;;  %v11687_v41 = vsub.f32 %v15186_v9, %v15185_v62  ;;  %v11704_v9 = vld [vmem:[%s14494_s2 + $0x50] sm:$0xff] }
 0x816   : > { %15183 = vst [vmem:[#allocation50_spill] sm:$0xff] %v11666_v23  ;;  %8330 = vmatprep.subr.mxu1 %v6958_v21 }
 0x817   : > { %8331 = vmatpush3.msra.mxu1 %v6958_v21  ;;  %v712_v21 = vmul.f32 1.442695, %v11666_v23  ;;  %15187 = vst [vmem:[#allocation63_spill] sm:$0xff] %v11687_v41  ;;  %v11699_v23 = vpop.xlane.xlu1 %3081  ;;  %v716_v62 = vmul.f32 1.442695, %v11687_v41  ;;  %v15194_v41 = vld [vmem:[#allocation8_spill] sm:$0xff] }
 0x818   : > { %8332 = vmatprep.subr.mxu1 %v6957_v56 }
 0x819   : > { %8333 = vmatpush3.msra.mxu1 %v6957_v56  ;;  %v11695_v56 = vld [vmem:[%s14494_s2 + $0x48] sm:$0xff]  ;;  %8769 = vpow2.f32 %v712_v21  ;;  %v15193_v21 = vld [vmem:[#allocation68_spill] sm:$0xff] }
 0x81a   : > { %8334 = vmatprep.subr.mxu1 %v6956_v22  ;;  %8253 = vmatmul.mubr.f32.gmra.mxu1 %v11695_v56  ;;  %8771 = vpow2.f32 %v716_v62  ;;  %v11732_v31 = vsub.f32 %v15194_v41, %v15193_v21  ;;  %v11746_v41 = vld [vmem:[%s14494_s2 + $0x70] sm:$0xff]  ;;  %v6949_v62 = vld [vmem:[%s9813_s20 + $0x388] sm:$0xff]  ;;  %v15197_v21 = vld [vmem:[#allocation70_spill] sm:$0xff] }
 0x81b   : > { %8335 = vmatpush3.msra.mxu1 %v6956_v22  ;;  %8255 = vmatprep.mubr.f32.mxu1 %v11704_v9  ;;  %v6953_v22 = vld [vmem:[%s9813_s20 + $0x3a8] sm:$0xff]  ;;  %v11734_v24 = vpop.permute.xlu1 %2513  ;;  %8773 = vpow2.f32 %v720_v16 }
 0x81c   : > { %8336 = vmatprep.subr.mxu1 %v6955_v3  ;;  %15195 = vst [vmem:[#allocation68_spill] sm:$0xff] %v11732_v31  ;;  %15196 = vst [vmem:[#allocation8_spill] sm:$0xff] %v11734_v24  ;;  %v15198_v24 = vld [vmem:[#allocation9_spill] sm:$0xff] }
 0x81d   : > { %8337 = vmatpush3.msra.mxu1 %v6955_v3  ;;  %v6952_v3 = vld [vmem:[%s9813_s20 + $0x3a0] sm:$0xff]  ;;  %v11753_v35 = vsub.f32 %v15198_v24, %v15197_v21  ;;  %15200 = vst [vmem:[#allocation9_spill] sm:$0xff] %v11757_v43  ;;  %v15201_v21 = vld [vmem:[#allocation71_spill] sm:$0xff] }
 0x81e   : > { %8338 = vmatprep.subr.mxu1 %v6954_v13  ;;  %8256 = vmatmul.mubr.f32.gmra.mxu1 %v11717_v18  ;;  %v9746_v24 = vld [vmem:[%s14494_s2] sm:$0xff]  ;;  %15203 = vst [vmem:[#allocation71_spill] sm:$0xff] %v11776_v58 }
 0x81f   : > { %8339 = vmatpush3.msra.mxu1 %v6954_v13  ;;  %8258 = vmatprep.mubr.f32.mxu1 %v11725_v55  ;;  %v6951_v13 = vld [vmem:[%s9813_s20 + $0x398] sm:$0xff]  ;;  %15199 = vst [vmem:[#allocation70_spill] sm:$0xff] %v11753_v35  ;;  %v11755_v4 = vpop.xlane.xlu1 %3087  ;;  %v728_v16 = vmul.f32 1.442695, %v11753_v35  ;;  %v15206_v35 = vld [vmem:[#allocation11_spill] sm:$0xff] }
 0x820   : > { %8340 = vmatprep.subr.mxu1 %v6953_v22 }
 0x821   : > { %8341 = vmatpush3.msra.mxu1 %v6953_v22  ;;  %v6950_v22 = vld [vmem:[%s9813_s20 + $0x390] sm:$0xff] }
 0x822   : > { %8342 = vmatprep.subr.mxu1 %v6952_v3  ;;  %8259 = vmatmul.mubr.f32.gmra.mxu1 %v11740_v53 }
 0x823   : > { %8343 = vmatpush3.msra.mxu1 %v6952_v3  ;;  %8261 = vmatprep.mubr.f32.mxu1 %v11746_v41  ;;  %v724_v3 = vmul.f32 1.442695, %v11732_v31 }
 0x824   : > { %8344 = vmatprep.subr.mxu1 %v6951_v13 }
 0x825   : > { %8345 = vmatpush3.msra.mxu1 %v6951_v13  ;;  %v6948_v13 = vld [vmem:[%s9813_s20 + $0x380] sm:$0xff]  ;;  %8775 = vpow2.f32 %v724_v3 }
 0x826   : > { %8346 = vmatprep.subr.mxu1 %v6950_v22  ;;  %8262 = vmatmul.mubr.f32.gmra.mxu1 %v11763_v51  ;;  %v11774_v31 = vpop.eup %8769  ;;  %8777 = vpow2.f32 %v728_v16  ;;  %v15208_v16 = vld [vmem:[#allocation88_spill] sm:$0xff] }
 0x827   : > { %8347 = vmatpush3.msra.mxu1 %v6950_v22  ;;  %8352 = vmatprep.mubr.f32.mxu1 %v9746_v24  ;;  %v15202_v22 = vld [vmem:[#allocation10_spill] sm:$0xff]  ;;  %v15205_v24 = vld [vmem:[#allocation76_spill] sm:$0xff] }
 0x828   : > { %8348 = vmatprep.subr.mxu1 %v6949_v62  ;;  %v11772_v43 = vsub.f32 %v15202_v22, %v15201_v21  ;;  %v11785_v15 = vsub.f32 %v15206_v35, %v15205_v24  ;;  %v751_v21 = vsel %vm633_vm0, %v11774_v31, 0.0  ;;  %v11789_v22 = vpop.eup %8771  ;;  %v15209_v35 = vld [vmem:[#allocation12_spill] sm:$0xff] }
 0x829   : > { %8349 = vmatpush3.msra.mxu1 %v6949_v62  ;;  %v11779_v62 = vpop.permute.xlu1 %2523  ;;  %v11800_v24 = vsub.f32 %v15209_v35, %v15208_v16  ;;  %v757_v58 = vsel %vm633_vm0, %v11789_v22, 0.0 }
 0x82a   : > { %8350 = vmatprep.subr.mxu1 %v6948_v13  ;;  %15204 = vst [vmem:[#allocation10_spill] sm:$0xff] %v11779_v62  ;;  %v1507_v3 = vmul.f32 1.442695, %v11772_v43  ;;  %v11804_v62 = vpop.eup %8773 }
 0x82b   : > { %8351 = vmatpush3.msra.mxu1 %v6948_v13  ;;  %v11794_v13 = vpop.permute.xlu0 %4110 }
 0x82c   : > { %8353 = vmatmul.mubr.f32.vlgmr.msra.gmra.mxu1 %v11618_v8  ;;  %15207 = vst [vmem:[#allocation76_spill] sm:$0xff] %v11794_v13  ;;  %8779 = vpow2.f32 %v1507_v3 }
 0x82d   : > { %8355 = vmatprep.mubr.f32.mxu1 %v11625_v26  ;;  %v11792_v8 = vpop.xlane.xlu1 %3093  ;;  %v1511_v26 = vmul.f32 1.442695, %v11785_v15 }
 0x82f   : > { %8781 = vpow2.f32 %v1511_v26  ;;  %v11819_v13 = vpop.permute.xlu0 %4120 }
 0x830   : > { %8356 = vmatmul.mubr.f32.gmra.mxu1 %v11636_v20  ;;  %v1515_v20 = vmul.f32 1.442695, %v11800_v24  ;;  %15213 = vst [vmem:[#allocation12_spill] sm:$0xff] %v11819_v13 }
 0x831   : > { %8358 = vmatprep.mubr.f32.mxu1 %v11643_v10  ;;  %v15210_v10 = vld [vmem:[#allocation13_spill] sm:$0xff]  ;;  %v11817_v35 = vpop.permute.xlu1 %2533 }
 0x832   : > { %v11811_v3 = vsub.f32 %v15210_v10, %v10927_v39  ;;  %v11815_v16 = vpop.eup %8775  ;;  %15212 = vst [vmem:[#allocation88_spill] sm:$0xff] %v11817_v35  ;;  %8783 = vpow2.f32 %v1515_v20  ;;  %v15214_v39 = vld [vmem:[#allocation14_spill] sm:$0xff]  ;;  %v15349_v35 = vld [vmem:[#allocation115_spill] sm:$0xff] }
 0x833   : > { %752 = vadd.xlane.f32.xlu1 %v751_v21  ;;  %v763_v21 = vsel %vm633_vm0, %v11804_v62, 0.0  ;;  %v11830_v26 = vpop.eup %8777 }
 0x834   : > { %8359 = vmatmul.mubr.f32.gmra.mxu1 %v11652_v19  ;;  %15211 = vst [vmem:[#allocation11_spill] sm:$0xff] %v11811_v3  ;;  %v769_v19 = vsel %vm633_vm0, %v11815_v16, 0.0 }
 0x835   : > { %8361 = vmatprep.mubr.f32.mxu1 %v11661_v32  ;;  %v1519_v32 = vmul.f32 1.442695, %v11811_v3  ;;  %v11832_v10 = vpop.xlane.xlu1 %3099 }
 0x837   : > { %758 = vadd.xlane.f32.xlu1 %v757_v58  ;;  %v11826_v58 = vsub.f32 %v15214_v39, %v11121_v34  ;;  %8785 = vpow2.f32 %v1519_v32  ;;  %v15217_v34 = vld [vmem:[#allocation15_spill] sm:$0xff]  ;;  %v15220_v32 = vld [vmem:[#allocation16_spill] sm:$0xff] }
 0x838   : > { %8362 = vmatmul.mubr.f32.gmra.mxu1 %v11672_v5  ;;  %v11835_v5 = vpop.permute.xlu0 %4130  ;;  %v11841_v20 = vsub.f32 %v15217_v34, %v11283_v48 }
 0x839   : > { %8364 = vmatprep.mubr.f32.mxu1 %v11681_v25  ;;  %15215 = vst [vmem:[#allocation13_spill] sm:$0xff] %v11826_v58  ;;  %15216 = vst [vmem:[#allocation14_spill] sm:$0xff] %v11835_v5  ;;  %v1523_v25 = vmul.f32 1.442695, %v11826_v58  ;;  %v11845_v39 = vpop.eup %8779 }
 0x83a   : > { %15218 = vst [vmem:[#allocation15_spill] sm:$0xff] %v11841_v20  ;;  %v1540_v48 = vsel %vm633_vm0, %v11845_v39, 0.0 }
 0x83b   : > { %764 = vadd.xlane.f32.xlu1 %v763_v21  ;;  %v775_v21 = vsel %vm633_vm0, %v11830_v26, 0.0  ;;  %8787 = vpow2.f32 %v1523_v25 }
 0x83c   : > { %8365 = vmatmul.mubr.f32.gmra.mxu1 %v11695_v56  ;;  %v11848_v56 = vpop.permute.xlu1 %2543  ;;  %v11858_v34 = vpop.eup %8781 }
 0x83d   : > { %8367 = vmatprep.mubr.f32.mxu1 %v11704_v9  ;;  %15219 = vst [vmem:[#allocation225_spill] sm:$0xff] %v11848_v56  ;;  %v1527_v9 = vmul.f32 1.442695, %v11841_v20  ;;  %v11860_v5 = vpop.permute.xlu0 %4140 }
 0x83e   : > { %15222 = vst [vmem:[#allocation226_spill] sm:$0xff] %v11860_v5 }
 0x83f   : > { %770 = vadd.xlane.f32.xlu1 %v769_v19  ;;  %v11854_v19 = vsub.f32 %v15220_v32, %v11407_v63  ;;  %8789 = vpow2.f32 %v1527_v9  ;;  %v15223_v63 = vld [vmem:[#allocation17_spill] sm:$0xff]  ;;  %v11873_v32 = vpop.eup %8783  ;;  %v15226_v9 = vld [vmem:[#allocation18_spill] sm:$0xff] }
 0x840   : > { %8368 = vmatmul.mubr.f32.gmra.mxu1 %v11717_v18  ;;  %v11863_v18 = vpop.xlane.xlu1 %3863  ;;  %v11869_v25 = vsub.f32 %v15223_v63, %v11440_v27  ;;  %v1552_v27 = vsel %vm633_vm0, %v11873_v32, 0.0 }
 0x841   : > { %8370 = vmatprep.mubr.f32.mxu1 %v11725_v55  ;;  %15221 = vst [vmem:[#allocation16_spill] sm:$0xff] %v11854_v19  ;;  %v1531_v55 = vmul.f32 1.442695, %v11854_v19 }
 0x842   : > { %15224 = vst [vmem:[#allocation17_spill] sm:$0xff] %v11869_v25 }
 0x843   : > { %776 = vadd.xlane.f32.xlu1 %v775_v21  ;;  %v1546_v21 = vsel %vm633_vm0, %v11858_v34, 0.0  ;;  %8791 = vpow2.f32 %v1531_v55 }
 0x844   : > { %8371 = vmatmul.mubr.f32.gmra.mxu1 %v11740_v53  ;;  %v11876_v53 = vpop.permute.xlu0 %4150  ;;  %v11885_v63 = vpop.eup %8785 }
 0x845   : > { %8373 = vmatprep.mubr.f32.mxu1 %v11746_v41  ;;  %15225 = vst [vmem:[#allocation227_spill] sm:$0xff] %v11876_v53  ;;  %v1535_v41 = vmul.f32 1.442695, %v11869_v25  ;;  %15228 = vst [vmem:[#allocation228_spill] sm:$0xff] %v11885_v63  ;;  %v11887_v5 = vpop.permute.xlu1 %3284  ;;  %v1558_v53 = vsel %vm633_vm0, %v11885_v63, 0.0  ;;  %v15353_v63 = vld [vmem:[#allocation183_spill] sm:$0xff] }
 0x846   : > { %15229 = vst [vmem:[#allocation229_spill] sm:$0xff] %v11887_v5 }
 0x847   : > { %1541 = vadd.xlane.f32.xlu1 %v1540_v48  ;;  %v11881_v48 = vsub.f32 %v15226_v9, %v11452_v7  ;;  %8793 = vpow2.f32 %v1535_v41  ;;  %v15234_v41 = vld [vmem:[#allocation20_spill] sm:$0xff] }
 0x848   : > { %8374 = vmatmul.mubr.f32.gmra.mxu1 %v11763_v51  ;;  %v11896_v7 = vpop.eup %8787  ;;  %v11900_v13 = vpop.permute.xlu0 %4160  ;;  %v11905_v5 = vsub.f32 %v15234_v41, %v11473_v33 }
 0x849   : > { %15227 = vst [vmem:[#allocation18_spill] sm:$0xff] %v11881_v48  ;;  %v2313_v51 = vmul.f32 1.442695, %v11881_v48  ;;  %15232 = vst [vmem:[#allocation230_spill] sm:$0xff] %v11896_v7  ;;  %v11898_v9 = vpop.xlane.xlu1 %3869 }
 0x84a   : > { %15233 = vst [vmem:[#allocation231_spill] sm:$0xff] %v11900_v13  ;;  %15235 = vst [vmem:[#allocation20_spill] sm:$0xff] %v11905_v5  ;;  %v15238_v13 = vld [vmem:[#allocation21_spill] sm:$0xff]  ;;  %v2321_v33 = vmul.f32 1.442695, %v11905_v5 }
 0x84b   : > { %1547 = vadd.xlane.f32.xlu1 %v1546_v21  ;;  %v15230_v21 = vld [vmem:[#allocation19_spill] sm:$0xff]  ;;  %8795 = vpow2.f32 %v2313_v51 }
 0x84c   : > { %v11892_v55 = vsub.f32 %v15230_v21, %v11465_v60  ;;  %v1564_v60 = vsel %vm633_vm0, %v11896_v7, 0.0  ;;  %v11909_v21 = vpop.eup %8789 }
 0x84d   : > { %15236 = vst [vmem:[#allocation232_spill] sm:$0xff] %v11909_v21  ;;  %v11918_v51 = vpop.permute.xlu1 %3289  ;;  %v1570_v41 = vsel %vm633_vm0, %v11909_v21, 0.0 }
 0x84e   : > { %15231 = vst [vmem:[#allocation19_spill] sm:$0xff] %v11892_v55  ;;  %15240 = vst [vmem:[#allocation234_spill] sm:$0xff] %v11918_v51 }
 0x84f   : > { %1553 = vadd.xlane.f32.xlu1 %v1552_v27  ;;  %v2317_v27 = vmul.f32 1.442695, %v11892_v55 }
 0x850   : > { %v11924_v25 = vpop.eup %8791 }
 0x851   : > { %8797 = vpow2.f32 %v2317_v27  ;;  %15241 = vst [vmem:[#allocation235_spill] sm:$0xff] %v11924_v25  ;;  %v11934_v27 = vpop.xlane.xlu1 %3875 }
 0x853   : > { %1559 = vadd.xlane.f32.xlu1 %v1558_v53  ;;  %v4667_v48 = vpop.xlane.xlu0 %4666  ;;  %v11916_v53 = vsub.f32 %v15238_v13, %v11483_v37  ;;  %v15243_v13 = vld [vmem:[#allocation22_spill] sm:$0xff] }
 0x854   : > { %v11912_v56 = vsub.f32 %v11491_v45, %v4667_v48  ;;  %v11932_v48 = vsub.f32 %v15243_v13, %v11501_v11 }
 0x855   : > { %15239 = vst [vmem:[#allocation21_spill] sm:$0xff] %v11916_v53  ;;  %v2325_v37 = vmul.f32 1.442695, %v11916_v53 }
 0x856   : > { %15237 = vst [vmem:[#allocation233_spill] sm:$0xff] %v11912_v56  ;;  %v4729_v55 = vmul.f32 1.442695, %v11912_v56  ;;  %15244 = vst [vmem:[#allocation22_spill] sm:$0xff] %v11932_v48  ;;  %v1576_v56 = vsel %vm633_vm0, %v11924_v25, 0.0 }
 0x857   : > { %1565 = vadd.xlane.f32.xlu1 %v1564_v60  ;;  %v4673_v60 = vpop.xlane.xlu0 %4672  ;;  %v2329_v11 = vmul.f32 1.442695, %v11932_v48 }
 0x858   : > { %8799 = vpow2.f32 %v4729_v55  ;;  %v11927_v45 = vsub.f32 %v11499_v29, %v4673_v60  ;;  %v15247_v60 = vld [vmem:[#allocation23_spill] sm:$0xff] }
 0x859   : > { %8801 = vpow2.f32 %v2321_v33  ;;  %v11947_v13 = vsub.f32 %v15247_v60, %v11525_v30  ;;  %v15252_v30 = vld [vmem:[#allocation24_spill] sm:$0xff] }
 0x85a   : > { %15242 = vst [vmem:[#allocation236_spill] sm:$0xff] %v11927_v45  ;;  %v4733_v51 = vmul.f32 1.442695, %v11927_v45 }
 0x85b   : > { %1571 = vadd.xlane.f32.xlu1 %v1570_v41  ;;  %v11939_v41 = vpop.eup %8793  ;;  %v4679_v55 = vpop.xlane.xlu0 %4678  ;;  %15248 = vst [vmem:[#allocation23_spill] sm:$0xff] %v11947_v13 }
 0x85c   : > { %15245 = vst [vmem:[#allocation237_spill] sm:$0xff] %v11939_v41  ;;  %8803 = vpow2.f32 %v4733_v51  ;;  %v11942_v29 = vsub.f32 %v11509_v44, %v4679_v55  ;;  %v1582_v33 = vsel %vm633_vm0, %v11939_v41, 0.0  ;;  %v11952_v53 = vpop.eup %8795  ;;  %v11962_v55 = vsub.f32 %v15252_v30, %v11551_v14 }
 0x85d   : > { %8805 = vpow2.f32 %v2325_v37  ;;  %15249 = vst [vmem:[#allocation239_spill] sm:$0xff] %v11952_v53  ;;  %v2333_v37 = vmul.f32 1.442695, %v11947_v13  ;;  %v2346_v60 = vsel %vm633_vm0, %v11952_v53, 0.0 }
 0x85e   : > { %15246 = vst [vmem:[#allocation238_spill] sm:$0xff] %v11942_v29  ;;  %v4737_v45 = vmul.f32 1.442695, %v11942_v29  ;;  %15253 = vst [vmem:[#allocation24_spill] sm:$0xff] %v11962_v55  ;;  %v11967_v48 = vpop.eup %8797  ;;  %v2337_v14 = vmul.f32 1.442695, %v11962_v55 }
 0x85f   : > { %1577 = vadd.xlane.f32.xlu1 %v1576_v56  ;;  %v11954_v56 = vpop.permute.xlu1 %3299  ;;  %v4685_v51 = vpop.xlane.xlu0 %4684  ;;  %15254 = vst [vmem:[#allocation242_spill] sm:$0xff] %v11967_v48 }
 0x860   : > { %15250 = vst [vmem:[#allocation240_spill] sm:$0xff] %v11954_v56  ;;  %8807 = vpow2.f32 %v4737_v45  ;;  %v11957_v44 = vsub.f32 %v11519_v28, %v4685_v51  ;;  %v15257_v51 = vld [vmem:[#allocation25_spill] sm:$0xff] }
 0x861   : > { %8809 = vpow2.f32 %v2329_v11  ;;  %v11979_v30 = vsub.f32 %v15257_v51, %v11570_v36 }
 0x862   : > { %15251 = vst [vmem:[#allocation241_spill] sm:$0xff] %v11957_v44  ;;  %v4741_v29 = vmul.f32 1.442695, %v11957_v44  ;;  %v2352_v44 = vsel %vm633_vm0, %v11967_v48, 0.0 }
 0x863   : > { %1583 = vadd.xlane.f32.xlu1 %v1582_v33  ;;  %v11969_v33 = vpop.xlane.xlu1 %3881  ;;  %15258 = vst [vmem:[#allocation25_spill] sm:$0xff] %v11979_v30  ;;  %v2341_v36 = vmul.f32 1.442695, %v11979_v30 }
 0x864   : > { %v4691_v45 = vpop.xlane.xlu0 %4690  ;;  %8811 = vpow2.f32 %v4741_v29 }
 0x865   : > { %v11972_v28 = vsub.f32 %v11527_v46, %v4691_v45  ;;  %v11974_v11 = vpop.eup %8799  ;;  %8813 = vpow2.f32 %v2333_v37 }
 0x866   : > { %15256 = vst [vmem:[#allocation244_spill] sm:$0xff] %v11974_v11  ;;  %v4761_v29 = vsel %vm633_vm0, %v11974_v11, 0.0  ;;  %v15264_v11 = vld [vmem:[#allocation27_spill] sm:$0xff] }
 0x867   : > { %2347 = vadd.xlane.f32.xlu1 %v2346_v60  ;;  %15255 = vst [vmem:[#allocation243_spill] sm:$0xff] %v11972_v28  ;;  %v4745_v56 = vmul.f32 1.442695, %v11972_v28  ;;  %v11986_v60 = vpop.eup %8801  ;;  %4762 = vadd.xlane.f32.xlu0 %v4761_v29  ;;  %v11994_v51 = vpop.permute.xlu1 %3309  ;;  %v12000_v55 = vsub.f32 %v15264_v11, %v11586_v12 }
 0x868   : > { %15259 = vst [vmem:[#allocation245_spill] sm:$0xff] %v11986_v60  ;;  %v4697_v46 = vpop.xlane.xlu0 %4696  ;;  %15262 = vst [vmem:[#allocation248_spill] sm:$0xff] %v11994_v51 }
 0x869   : > { %8815 = vpow2.f32 %v4745_v56  ;;  %v11989_v37 = vsub.f32 %v11535_v47, %v4697_v46  ;;  %v11991_v45 = vpop.eup %8803  ;;  %15265 = vst [vmem:[#allocation27_spill] sm:$0xff] %v12000_v55  ;;  %v3769_v46 = vsub.f32 %v11346_v52, %v11346_v52 }
 0x86a   : > { %15261 = vst [vmem:[#allocation247_spill] sm:$0xff] %v11991_v45  ;;  %8817 = vpow2.f32 %v2337_v14  ;;  %v11996_v28 = vpop.eup %8805  ;;  %v4767_v47 = vsel %vm633_vm0, %v11991_v45, 0.0  ;;  %v3767_v14 = vsub.f32 %v11326_v1, %v11326_v1  ;;  %v3119_v1 = vmul.f32 1.442695, %v12000_v55 }
 0x86b   : > { %2353 = vadd.xlane.f32.xlu1 %v2352_v44  ;;  %15260 = vst [vmem:[#allocation246_spill] sm:$0xff] %v11989_v37  ;;  %15263 = vst [vmem:[#allocation249_spill] sm:$0xff] %v11996_v28  ;;  %v2358_v44 = vsel %vm633_vm0, %v11986_v60, 0.0  ;;  %v4749_v56 = vmul.f32 1.442695, %v11989_v37  ;;  %4768 = vadd.xlane.f32.xlu0 %v4767_v47  ;;  %v12016_v37 = vpop.xlane.xlu1 %3887  ;;  %v2364_v45 = vsel %vm633_vm0, %v11996_v28, 0.0 }
 0x86c   : > { %v4703_v29 = vpop.xlane.xlu0 %4702  ;;  %v3791_v30 = vmul.f32 1.442695, %v3769_v46  ;;  %v15329_v60 = vld [vmem:[#allocation84_spill] sm:$0xff] }
 0x86d   : > { %8819 = vpow2.f32 %v4749_v56  ;;  %v12012_v12 = vsub.f32 %v11549_v38, %v4703_v29  ;;  %v12014_v11 = vpop.eup %8807  ;;  %v3787_v56 = vmul.f32 1.442695, %v3767_v14  ;;  %v3773_v14 = vsub.f32 %v11383_v17, %v11383_v17  ;;  %v15278_v17 = vld [vmem:[#allocation33_spill] sm:$0xff] }
 0x86e   : > { %15267 = vst [vmem:[#allocation251_spill] sm:$0xff] %v12014_v11  ;;  %8821 = vpow2.f32 %v2341_v36  ;;  %v12020_v51 = vpop.eup %8809  ;;  %v4773_v38 = vsel %vm633_vm0, %v12014_v11, 0.0  ;;  %v15271_v36 = vld [vmem:[#allocation31_spill] sm:$0xff] }
 0x86f   : > { %2359 = vadd.xlane.f32.xlu1 %v2358_v44  ;;  %15266 = vst [vmem:[#allocation250_spill] sm:$0xff] %v12012_v12  ;;  %15268 = vst [vmem:[#allocation252_spill] sm:$0xff] %v12020_v51  ;;  %v15269_v44 = vld [vmem:[#allocation29_spill] sm:$0xff]  ;;  %v4753_v52 = vmul.f32 1.442695, %v12012_v12  ;;  %4774 = vadd.xlane.f32.xlu0 %v4773_v38  ;;  %v12032_v29 = vsub.f32 %v15271_v36, %v11610_v0  ;;  %v12060_v38 = vsub.f32 %v15278_v17, %v11647_v49 }
 0x870   : > { %v12025_v47 = vsub.f32 %v15269_v44, %v11600_v2  ;;  %v4709_v13 = vpop.xlane.xlu0 %4708  ;;  %v3771_v2 = vsub.f32 %v11365_v61, %v11365_v61  ;;  %v2370_v44 = vsel %vm633_vm0, %v12020_v51, 0.0  ;;  %v3775_v61 = vsub.f32 %v11399_v42, %v11399_v42  ;;  %v15324_v51 = vld [vmem:[#allocation2_spill] sm:$0xff] }
 0x871   : > { %15272 = vst [vmem:[#allocation31_spill] sm:$0xff] %v12032_v29  ;;  %8823 = vpow2.f32 %v4753_v52  ;;  %v12034_v55 = vpop.eup %8811  ;;  %v12041_v12 = vsub.f32 %v11562_v50, %v4709_v13  ;;  %v12052_v52 = vpop.permute.xlu1 %3319  ;;  %v3127_v13 = vmul.f32 1.442695, %v12032_v29  ;;  %15279 = vst [vmem:[#allocation33_spill] sm:$0xff] %v12060_v38 }
 0x872   : > { %15270 = vst [vmem:[#allocation29_spill] sm:$0xff] %v12025_v47  ;;  %15273 = vst [vmem:[#allocation253_spill] sm:$0xff] %v12034_v55  ;;  %8825 = vpow2.f32 %v3119_v1  ;;  %v3123_v0 = vmul.f32 1.442695, %v12025_v47  ;;  %v4779_v46 = vsel %vm633_vm0, %v12034_v55, 0.0  ;;  %v15283_v55 = vld [vmem:[#allocation37_spill] sm:$0xff] }
 0x873   : > { %2365 = vadd.xlane.f32.xlu1 %v2364_v45  ;;  %15274 = vst [vmem:[#allocation254_spill] sm:$0xff] %v12041_v12  ;;  %v12043_v45 = vpop.eup %8813  ;;  %8827 = vpow2.f32 %v3787_v56  ;;  %15276 = vst [vmem:[#allocation256_spill] sm:$0xff] %v12052_v52  ;;  %v4757_v50 = vmul.f32 1.442695, %v12041_v12  ;;  %4780 = vadd.xlane.f32.xlu0 %v4779_v46  ;;  %v3795_v36 = vmul.f32 1.442695, %v3771_v2  ;;  %v12074_v49 = vsub.f32 %v15283_v55, %v11755_v4 }
 0x874   : > { %15275 = vst [vmem:[#allocation255_spill] sm:$0xff] %v12043_v45  ;;  %8829 = vpow2.f32 %v3791_v30  ;;  %v2376_v56 = vsel %vm633_vm0, %v12043_v45, 0.0  ;;  %v3799_v12 = vmul.f32 1.442695, %v3773_v14  ;;  %v3803_v2 = vmul.f32 1.442695, %v3775_v61 }
 0x875   : > { %8831 = vpow2.f32 %v4757_v50  ;;  %15284 = vst [vmem:[#allocation37_spill] sm:$0xff] %v12074_v49  ;;  %v12076_v17 = vpop.xlane.xlu1 %3893  ;;  %v3131_v14 = vmul.f32 1.442695, %v12060_v38  ;;  %v15318_v47 = vld [vmem:[#allocation177_spill] sm:$0xff] }
 0x876   : > { %v12056_v1 = vpop.eup %8815  ;;  %8833 = vpow2.f32 %v3123_v0  ;;  %v15285_v0 = vld [vmem:[#allocation40_spill] sm:$0xff] }
 0x877   : > { %2371 = vadd.xlane.f32.xlu1 %v2370_v44  ;;  %15277 = vst [vmem:[#allocation257_spill] sm:$0xff] %v12056_v1  ;;  %v12064_v42 = vpop.eup %8817  ;;  %v15281_v44 = vld [vmem:[#allocation35_spill] sm:$0xff]  ;;  %v4785_v30 = vsel %vm633_vm0, %v12056_v1, 0.0  ;;  %8835 = vpow2.f32 %v3127_v13  ;;  %v12080_v50 = vsub.f32 %v15285_v0, %v11792_v8  ;;  %v15291_v13 = vld [vmem:[#allocation45_spill] sm:$0xff] }
 0x878   : > { %15280 = vst [vmem:[#allocation258_spill] sm:$0xff] %v12064_v42  ;;  %v12068_v46 = vsub.f32 %v15281_v44, %v11699_v23  ;;  %4786 = vadd.xlane.f32.xlu0 %v4785_v30  ;;  %v15288_v44 = vld [vmem:[#allocation42_spill] sm:$0xff]  ;;  %8837 = vpow2.f32 %v3795_v36  ;;  %v2382_v4 = vsel %vm633_vm0, %v12064_v42, 0.0  ;;  %v12096_v8 = vsub.f32 %v15291_v13, %v11863_v18 }
 0x879   : > { %15286 = vst [vmem:[#allocation40_spill] sm:$0xff] %v12080_v50  ;;  %v12087_v1 = vsub.f32 %v15288_v44, %v11832_v10  ;;  %8839 = vpow2.f32 %v3799_v12  ;;  %v3139_v30 = vmul.f32 1.442695, %v12074_v49  ;;  %v15293_v10 = vld [vmem:[#allocation48_spill] sm:$0xff]  ;;  %v3143_v0 = vmul.f32 1.442695, %v12080_v50  ;;  %v12109_v12 = vpop.permute.xlu1 %3329 }
 0x87a   : > { %15282 = vst [vmem:[#allocation35_spill] sm:$0xff] %v12068_v46  ;;  %v12082_v23 = vpop.eup %8819  ;;  %v3135_v61 = vmul.f32 1.442695, %v12068_v46  ;;  %15292 = vst [vmem:[#allocation45_spill] sm:$0xff] %v12096_v8  ;;  %v12103_v36 = vsub.f32 %v15293_v10, %v11898_v9  ;;  %8841 = vpow2.f32 %v3803_v2  ;;  %v15297_v9 = vld [vmem:[#allocation64_spill] sm:$0xff] }
 0x87b   : > { %2377 = vadd.xlane.f32.xlu1 %v2376_v56  ;;  %15287 = vst [vmem:[#allocation259_spill] sm:$0xff] %v12082_v23  ;;  %15289 = vst [vmem:[#allocation42_spill] sm:$0xff] %v12087_v1  ;;  %v12091_v55 = vpop.eup %8821  ;;  %v4791_v56 = vsel %vm633_vm0, %v12082_v23, 0.0  ;;  %8843 = vpow2.f32 %v3131_v14  ;;  %v3147_v18 = vmul.f32 1.442695, %v12087_v1  ;;  %v12116_v2 = vsub.f32 %v15297_v9, %v11934_v27 }
 0x87c   : > { %15290 = vst [vmem:[#allocation260_spill] sm:$0xff] %v12091_v55  ;;  %15294 = vst [vmem:[#allocation48_spill] sm:$0xff] %v12103_v36  ;;  %4792 = vadd.xlane.f32.xlu0 %v4791_v56  ;;  %v2388_v13 = vsel %vm633_vm0, %v12091_v55, 0.0  ;;  %8845 = vpow2.f32 %v3135_v61  ;;  %v3925_v23 = vmul.f32 1.442695, %v12096_v8 }
 0x87d   : > { %15296 = vst [vmem:[#allocation262_spill] sm:$0xff] %v12109_v12  ;;  %15298 = vst [vmem:[#allocation64_spill] sm:$0xff] %v12116_v2  ;;  %8847 = vpow2.f32 %v3139_v30  ;;  %v3929_v14 = vmul.f32 1.442695, %v12103_v36  ;;  %v12127_v11 = vpop.xlane.xlu1 %3899  ;;  %v3933_v9 = vmul.f32 1.442695, %v12116_v2 }
 0x87e   : > { %v12106_v44 = vpop.eup %8823  ;;  %8849 = vpow2.f32 %v3143_v0  ;;  %v15316_v12 = vld [vmem:[#allocation176_spill] sm:$0xff] }
 0x87f   : > { %2383 = vadd.xlane.f32.xlu1 %v2382_v4  ;;  %15295 = vst [vmem:[#allocation261_spill] sm:$0xff] %v12106_v44  ;;  %v4797_v4 = vsel %vm633_vm0, %v12106_v44, 0.0  ;;  %v12120_v56 = vpop.eup %8825  ;;  %8851 = vpow2.f32 %v3147_v18 }
 0x880   : > { %15299 = vst [vmem:[#allocation263_spill] sm:$0xff] %v12120_v56  ;;  %4798 = vadd.xlane.f32.xlu0 %v4797_v4  ;;  %v12123_v10 = vpop.eup %8827  ;;  %8853 = vpow2.f32 %v3925_v23  ;;  %v3152_v30 = vsel %vm633_vm0, %v12120_v56, 0.0 }
 0x881   : > { %v12125_v61 = vpop.eup %8829  ;;  %8855 = vpow2.f32 %v3929_v14  ;;  %v12151_v14 = vsub.f32 %v10773_v57, %v11969_v33 }
 0x882   : > { %v12129_v27 = vpop.eup %8831  ;;  %8857 = vrcp.f32 %v12123_v10 }
 0x883   : > { %2389 = vadd.xlane.f32.xlu1 %v2388_v13  ;;  %15300 = vst [vmem:[#allocation264_spill] sm:$0xff] %v12129_v27  ;;  %v12134_v44 = vpop.eup %8833  ;;  %v4803_v0 = vsel %vm633_vm0, %v12129_v27, 0.0  ;;  %8859 = vrcp.f32 %v12125_v61  ;;  %15303 = vst [vmem:[#allocation267_spill] sm:$0xff] %v12151_v14  ;;  %v3937_v57 = vmul.f32 1.442695, %v12151_v14 }
 0x884   : > { %15301 = vst [vmem:[#allocation265_spill] sm:$0xff] %v12134_v44  ;;  %4804 = vadd.xlane.f32.xlu0 %v4803_v0  ;;  %v12139_v18 = vpop.eup %8835  ;;  %8861 = vpow2.f32 %v3933_v9  ;;  %v3158_v13 = vsel %vm633_vm0, %v12134_v44, 0.0 }
 0x885   : > { %15302 = vst [vmem:[#allocation266_spill] sm:$0xff] %v12139_v18  ;;  %v12142_v23 = vpop.eup %8837  ;;  %8863 = vlog2.f32 %v11354_v40  ;;  %v3164_v27 = vsel %vm633_vm0, %v12139_v18, 0.0 }
 0x886   : > { %v12146_v4 = vpop.eup %8839  ;;  %8865 = vlog2.f32 %v11369_v54 }
 0x887   : > { %3153 = vadd.xlane.f32.xlu1 %v3152_v30  ;;  %v12153_v30 = vpop.permute.xlu1 %3339  ;;  %v12155_v0 = vpop.eup %8841  ;;  %8867 = vrcp.f32 %v12142_v23 }
 0x888   : > { %15304 = vst [vmem:[#allocation268_spill] sm:$0xff] %v12153_v30  ;;  %v12159_v9 = vpop.eup %8843  ;;  %8869 = vrcp.f32 %v12146_v4 }
 0x889   : > { %15305 = vst [vmem:[#allocation269_spill] sm:$0xff] %v12159_v9  ;;  %v12164_v2 = vpop.eup %8845  ;;  %8871 = vrcp.f32 %v12155_v0  ;;  %v3170_v14 = vsel %vm633_vm0, %v12159_v9, 0.0 }
 0x88a   : > { %15306 = vst [vmem:[#allocation270_spill] sm:$0xff] %v12164_v2  ;;  %8873 = vrcp.f32 %v11354_v40  ;;  %v3176_v30 = vsel %vm633_vm0, %v12164_v2, 0.0 }
 0x88b   : > { %3159 = vadd.xlane.f32.xlu1 %v3158_v13  ;;  %v12168_v33 = vpop.xlane.xlu1 %3905  ;;  %v12170_v13 = vpop.eup %8847  ;;  %8875 = vlog2.f32 %v11387_v6 }
 0x88c   : > { %15307 = vst [vmem:[#allocation271_spill] sm:$0xff] %v12170_v13  ;;  %v12173_v36 = vpop.eup %8849  ;;  %8877 = vrcp.f32 %v11369_v54  ;;  %v15312_v54 = vld [vmem:[#allocation173_spill] sm:$0xff]  ;;  %v3182_v18 = vsel %vm633_vm0, %v12170_v13, 0.0 }
 0x88d   : > { %15308 = vst [vmem:[#allocation272_spill] sm:$0xff] %v12173_v36  ;;  %v12176_v8 = vpop.eup %8851  ;;  %8879 = vpow2.f32 %v3937_v57 }
 0x88e   : > { %15309 = vst [vmem:[#allocation273_spill] sm:$0xff] %v12176_v8  ;;  %v12181_v1 = vpop.eup %8853  ;;  %8881 = vrcp.f32 %v11387_v6  ;;  %v15315_v6 = vld [vmem:[#allocation175_spill] sm:$0xff] }
 0x88f   : > { %3165 = vadd.xlane.f32.xlu1 %v3164_v27  ;;  %15310 = vst [vmem:[#allocation274_spill] sm:$0xff] %v12181_v1  ;;  %v12183_v27 = vpop.eup %8855  ;;  %8883 = vlog2.f32 %v11393_v59  ;;  %v12189_v50 = vpop.xlane.xlu1 %734 }
 0x890   : > { %15311 = vst [vmem:[#allocation275_spill] sm:$0xff] %v12183_v27  ;;  %v12186_v40 = vpop.eup %8857  ;;  %8885 = vlog2.f32 %v15312_v54 }
 0x891   : > { %v12191_v49 = vpop.eup %8859 }
 0x892   : > { %v12196_v46 = vpop.eup %8861 }
 0x893   : > { %3171 = vadd.xlane.f32.xlu1 %v3170_v14  ;;  %15313 = vst [vmem:[#allocation173_spill] sm:$0xff] %v12196_v46  ;;  %v15314_v14 = vld [vmem:[#allocation174_spill] sm:$0xff]  ;;  %v8864_v57 = vpop.eup %8863  ;;  %v12209_v44 = vpop.permute.xlu1 %3349 }
 0x894   : > { %8887 = vlog2.f32 %v15314_v14  ;;  %v8866_v9 = vpop.eup %8865  ;;  %v811_v2 = vmul.f32 0.6931472, %v8864_v57  ;;  %15317 = vst [vmem:[#allocation174_spill] sm:$0xff] %v12209_v44 }
 0x895   : > { %8889 = vlog2.f32 %v15315_v6  ;;  %v12201_v38 = vpop.eup %8867  ;;  %v815_v52 = vmul.f32 0.6931472, %v8866_v9 }
 0x896   : > { %8891 = vrcp.f32 %v11393_v59  ;;  %v12206_v29 = vpop.eup %8869  ;;  %v15319_v59 = vld [vmem:[#allocation72_spill] sm:$0xff] }
 0x897   : > { %3177 = vadd.xlane.f32.xlu1 %v3176_v30  ;;  %8893 = vlog2.f32 %v15316_v12  ;;  %v12211_v30 = vpop.eup %8871  ;;  %v12216_v56 = vsub.f32 %v15319_v59, %v12016_v37  ;;  %v12224_v9 = vpop.xlane.xlu1 %740  ;;  %v15323_v37 = vld [vmem:[#allocation97_spill] sm:$0xff] }
 0x898   : > { %8895 = vrcp.f32 %v15312_v54  ;;  %v8874_v55 = vpop.eup %8873  ;;  %v3188_v54 = vsel %vm633_vm0, %v12173_v36, 0.0  ;;  %v844_v59 = vsub.f32 %v15323_v37, %v815_v52  ;;  %v15325_v36 = vld [vmem:[#allocation77_spill] sm:$0xff]  ;;  %v15327_v52 = vld [vmem:[#allocation67_spill] sm:$0xff] }
 0x899   : > { %8897 = vlog2.f32 %v15318_v47  ;;  %15320 = vst [vmem:[#allocation175_spill] sm:$0xff] %v12216_v56  ;;  %v8876_v13 = vpop.eup %8875 }
 0x89a   : > { %8899 = vrcp.f32 %v15314_v14  ;;  %v8878_v57 = vpop.eup %8877  ;;  %v3941_v14 = vmul.f32 1.442695, %v12216_v56  ;;  %v819_v45 = vmul.f32 0.6931472, %v8876_v13  ;;  %v15328_v13 = vld [vmem:[#allocation101_spill] sm:$0xff]  ;;  %v940_v5 = vsub.f32 %v844_v59, %v15329_v60 }
 0x89b   : > { %3183 = vadd.xlane.f32.xlu1 %v3182_v18  ;;  %8901 = vrcp.f32 %v15315_v6  ;;  %v15321_v18 = vld [vmem:[#allocation93_spill] sm:$0xff]  ;;  %v12226_v42 = vpop.eup %8879  ;;  %v794_v28 = vmul.f32 %v8874_v55, %v15328_v13  ;;  %v12246_v41 = vpop.permute.xlu1 %4090  ;;  %v3958_v60 = vsel %vm633_vm0, %v12181_v1, 0.0 }
 0x89c   : > { %v842_v44 = vsub.f32 %v15321_v18, %v811_v2  ;;  %8903 = vrcp.f32 %v15316_v12  ;;  %15322 = vst [vmem:[#allocation176_spill] sm:$0xff] %v12226_v42  ;;  %v8882_v6 = vpop.eup %8881  ;;  %v12234_v2 = vsub.f32 %v15325_v36, %v12076_v17  ;;  %v15330_v36 = vld [vmem:[#allocation107_spill] sm:$0xff]  ;;  %15332 = vst [vmem:[#allocation72_spill] sm:$0xff] %v12246_v41 }
 0x89d   : > { %8905 = vlog2.f32 %v12189_v50  ;;  %v8884_v12 = vpop.eup %8883  ;;  %v846_v48 = vsub.f32 %v15330_v36, %v819_v45  ;;  %v15336_v36 = vld [vmem:[#allocation178_spill] sm:$0xff] }
 0x89e   : > { %8907 = vlog2.f32 %v15324_v51  ;;  %15326 = vst [vmem:[#allocation177_spill] sm:$0xff] %v12234_v2  ;;  %v8886_v18 = vpop.eup %8885  ;;  %v938_v37 = vsub.f32 %v842_v44, %v15327_v52  ;;  %v823_v53 = vmul.f32 0.6931472, %v8884_v12  ;;  %v15333_v52 = vld [vmem:[#allocation103_spill] sm:$0xff] }
 0x89f   : > { %3189 = vadd.xlane.f32.xlu1 %v3188_v54  ;;  %8909 = vrcp.f32 %v15318_v47  ;;  %v3194_v54 = vsel %vm633_vm0, %v12176_v8, 0.0  ;;  %v15331_v47 = vld [vmem:[#allocation92_spill] sm:$0xff]  ;;  %v3945_v8 = vmul.f32 1.442695, %v12234_v2  ;;  %v827_v59 = vmul.f32 0.6931472, %v8886_v18 }
 0x8a0   : > { %8911 = vrcp.f32 %v15324_v51  ;;  %v796_v51 = vmul.f32 %v8878_v57, %v15333_v52  ;;  %v954_v55 = vmul.f32 %v938_v37, %v794_v28  ;;  %v3970_v57 = vsel %vm633_vm0, %v12196_v46, 0.0  ;;  %v15337_v2 = vld [vmem:[#allocation100_spill] sm:$0xff] }
 0x8a1   : > { %v8888_v56 = vpop.eup %8887  ;;  %8913 = vpow2.f32 %v3941_v14  ;;  %v942_v41 = vsub.f32 %v846_v48, %v15337_v2  ;;  %v15338_v28 = vld [vmem:[#allocation108_spill] sm:$0xff]  ;;  %v15341_v48 = vld [vmem:[#allocation110_spill] sm:$0xff] }
 0x8a2   : > { %v8890_v17 = vpop.eup %8889  ;;  %8915 = vrcp.f32 %v15331_v47  ;;  %v831_v14 = vmul.f32 0.6931472, %v8888_v56  ;;  %v848_v18 = vsub.f32 %v15338_v28, %v823_v53  ;;  %v12264_v56 = vpop.xlane.xlu1 %746  ;;  %v850_v2 = vsub.f32 %v15341_v48, %v827_v59  ;;  %v15342_v53 = vld [vmem:[#allocation111_spill] sm:$0xff]  ;;  %v15344_v28 = vld [vmem:[#allocation116_spill] sm:$0xff]  ;;  %v15347_v59 = vld [vmem:[#allocation134_spill] sm:$0xff] }
 0x8a3   : > { %3195 = vadd.xlane.f32.xlu1 %v3194_v54  ;;  %v8892_v44 = vpop.eup %8891  ;;  %v15334_v54 = vld [vmem:[#allocation85_spill] sm:$0xff]  ;;  %8917 = vlog2.f32 %v12224_v9  ;;  %v835_v13 = vmul.f32 0.6931472, %v8890_v17 }
 0x8a4   : > { %v12251_v25 = vsub.f32 %v15334_v54, %v12127_v11  ;;  %v8894_v45 = vpop.eup %8893  ;;  %8919 = vlog2.f32 %v15331_v47  ;;  %v3964_v11 = vsel %vm633_vm0, %v12183_v27, 0.0  ;;  %v956_v54 = vmul.f32 %v940_v5, %v796_v51  ;;  %v15343_v51 = vld [vmem:[#allocation179_spill] sm:$0xff]  ;;  %v15345_v27 = vld [vmem:[#allocation112_spill] sm:$0xff] }
 0x8a5   : > { %v8896_v12 = vpop.eup %8895  ;;  %8921 = vlog2.f32 %v15336_v36  ;;  %v839_v47 = vmul.f32 0.6931472, %v8894_v45  ;;  %v12273_v5 = vsel %vm633_vm0, %v954_v55, 0.0  ;;  %v854_v19 = vsub.f32 %v15345_v27, %v835_v13  ;;  %v15346_v55 = vld [vmem:[#allocation118_spill] sm:$0xff]  ;;  %v15350_v13 = vld [vmem:[#allocation121_spill] sm:$0xff] }
 0x8a6   : > { %15335 = vst [vmem:[#allocation93_spill] sm:$0xff] %v12251_v25  ;;  %v8898_v52 = vpop.eup %8897  ;;  %8923 = vpow2.f32 %v3945_v8  ;;  %v3949_v17 = vmul.f32 1.442695, %v12251_v25  ;;  %v852_v8 = vsub.f32 %v15342_v53, %v831_v14  ;;  %v798_v25 = vmul.f32 %v8882_v6, %v15344_v28  ;;  %v15348_v14 = vld [vmem:[#allocation181_spill] sm:$0xff]  ;;  %v15351_v28 = vld [vmem:[#allocation59_spill] sm:$0xff] }
 0x8a7   : > { %3959 = vadd.xlane.f32.xlu1 %v3958_v60  ;;  %v8900_v37 = vpop.eup %8899  ;;  %v15339_v60 = vld [vmem:[#allocation99_spill] sm:$0xff]  ;;  %8925 = vrcp.f32 %v12189_v50  ;;  %v800_v21 = vmul.f32 %v8892_v44, %v15346_v55  ;;  %v944_v48 = vsub.f32 %v848_v18, %v15347_v59  ;;  %v856_v20 = vsub.f32 %v15349_v35, %v839_v47  ;;  %v15354_v18 = vld [vmem:[#allocation182_spill] sm:$0xff]  ;;  %v15355_v59 = vld [vmem:[#allocation117_spill] sm:$0xff] }
 0x8a8   : > { %v12269_v1 = vsub.f32 %v15339_v60, %v12168_v33  ;;  %v8902_v46 = vpop.eup %8901  ;;  %8927 = vlog2.f32 %v15343_v51  ;;  %v1618_v33 = vmul.f32 0.6931472, %v8898_v52  ;;  %v12282_v60 = vsel %vm633_vm0, %v956_v54, 0.0  ;;  %v15352_v54 = vld [vmem:[#allocation168_spill] sm:$0xff] }
 0x8a9   : > { %v8904_v45 = vpop.eup %8903  ;;  %8929 = vlog2.f32 %v12264_v56  ;;  %v802_v52 = vmul.f32 %v8896_v12, %v15350_v13  ;;  %v946_v7 = vsub.f32 %v850_v2, %v15351_v28  ;;  %v948_v58 = vsub.f32 %v852_v8, %v15352_v54  ;;  %v15358_v2 = vld [vmem:[#allocation184_spill] sm:$0xff]  ;;  %v15359_v28 = vld [vmem:[#allocation126_spill] sm:$0xff] }
 0x8aa   : > { %15340 = vst [vmem:[#allocation97_spill] sm:$0xff] %v12269_v1  ;;  %v8906_v50 = vpop.eup %8905  ;;  %8931 = vlog2.f32 %v15348_v14  ;;  %v3953_v27 = vmul.f32 1.442695, %v12269_v1  ;;  %v950_v55 = vsub.f32 %v854_v19, %v15354_v18  ;;  %v960_v47 = vmul.f32 %v944_v48, %v800_v21 }
 0x8ab   : > { %3965 = vadd.xlane.f32.xlu1 %v3964_v11  ;;  %v8908_v53 = vpop.eup %8907  ;;  %v958_v11 = vmul.f32 %v942_v41, %v798_v25  ;;  %8933 = vpow2.f32 %v3949_v17  ;;  %v1649_v25 = vsub.f32 %v15355_v59, %v1618_v33  ;;  %v813_v41 = vmul.f32 0.6931472, %v8906_v50  ;;  %v15357_v17 = vld [vmem:[#allocation123_spill] sm:$0xff] }
 0x8ac   : > { %v8910_v6 = vpop.eup %8909  ;;  %8935 = vlog2.f32 %v15353_v63  ;;  %v804_v12 = vmul.f32 %v8900_v37, %v15357_v17  ;;  %v1622_v13 = vmul.f32 0.6931472, %v8908_v53  ;;  %v806_v54 = vmul.f32 %v8902_v46, %v15359_v28  ;;  %v15361_v53 = vld [vmem:[#allocation128_spill] sm:$0xff]  ;;  %v15362_v46 = vld [vmem:[#allocation87_spill] sm:$0xff] }
 0x8ad   : > { %v8912_v44 = vpop.eup %8911  ;;  %8937 = vrcp.f32 %v12224_v9  ;;  %v3976_v19 = vsel %vm633_vm0, %v12226_v42, 0.0  ;;  %v12305_v9 = vsel %vm633_vm0, %v958_v11, 0.0  ;;  %v962_v50 = vmul.f32 %v946_v7, %v802_v52  ;;  %v15365_v42 = vld [vmem:[#allocation120_spill] sm:$0xff] }
 0x8ae   : > { %v12296_v35 = vpop.eup %8913  ;;  %8939 = vlog2.f32 %v15358_v2  ;;  %v964_v21 = vmul.f32 %v948_v58, %v804_v12  ;;  %v966_v48 = vmul.f32 %v950_v55, %v806_v54  ;;  %v808_v18 = vmul.f32 %v8904_v45, %v15361_v53  ;;  %v12334_v12 = vpop.permute.xlu1 %4095  ;;  %v15369_v54 = vld [vmem:[#allocation133_spill] sm:$0xff]  ;;  %v15372_v53 = vld [vmem:[#allocation180_spill] sm:$0xff] }
 0x8af   : > { %3971 = vadd.xlane.f32.xlu1 %v3970_v57  ;;  %15356 = vst [vmem:[#allocation2_spill] sm:$0xff] %v12296_v35  ;;  %v8916_v8 = vpop.eup %8915  ;;  %v15360_v57 = vld [vmem:[#allocation186_spill] sm:$0xff]  ;;  %8941 = vpow2.f32 %v3953_v27  ;;  %v1745_v59 = vsub.f32 %v1649_v25, %v15362_v46  ;;  %v12312_v28 = vsel %vm633_vm0, %v960_v47, 0.0  ;;  %v1651_v7 = vsub.f32 %v15365_v42, %v1622_v13  ;;  %15368 = vst [vmem:[#allocation67_spill] sm:$0xff] %v12334_v12  ;;  %v15386_v12 = vld [vmem:[#allocation188_spill] sm:$0xff] }
 0x8b0   : > { %v952_v1 = vsub.f32 %v856_v20, %v15360_v57  ;;  %v8918_v33 = vpop.eup %8917  ;;  %8943 = vrcp.f32 %v15336_v36  ;;  %v15363_v20 = vld [vmem:[#allocation39_spill] sm:$0xff]  ;;  %v15364_v57 = vld [vmem:[#allocation130_spill] sm:$0xff]  ;;  %v3982_v45 = vsel %vm633_vm0, %v12296_v35, 0.0  ;;  %v12323_v25 = vsel %vm633_vm0, %v962_v50, 0.0 }
 0x8b1   : > { %v8920_v37 = vpop.eup %8919  ;;  %v843_v27 = vsub.f32 %v15363_v20, %v813_v41  ;;  %v1601_v11 = vmul.f32 %v8910_v6, %v15364_v57  ;;  %8945 = vrcp.f32 %v15343_v51  ;;  %v817_v52 = vmul.f32 0.6931472, %v8918_v33  ;;  %v15370_v33 = vld [vmem:[#allocation189_spill] sm:$0xff] }
 0x8b2   : > { %v8922_v17 = vpop.eup %8921  ;;  %v968_v36 = vmul.f32 %v952_v1, %v808_v18  ;;  %8947 = vrcp.f32 %v12264_v56  ;;  %v12326_v41 = vsel %vm633_vm0, %v964_v21, 0.0  ;;  %v1626_v6 = vmul.f32 0.6931472, %v8920_v37  ;;  %v15367_v56 = vld [vmem:[#allocation74_spill] sm:$0xff]  ;;  %v15371_v37 = vld [vmem:[#allocation185_spill] sm:$0xff] }
 0x8b3   : > { %3977 = vadd.xlane.f32.xlu1 %v3976_v19  ;;  %v12317_v58 = vpop.eup %8923  ;;  %8949 = vrcp.f32 %v15348_v14  ;;  %v12330_v1 = vsel %vm633_vm0, %v966_v48, 0.0  ;;  %v1761_v51 = vmul.f32 %v1745_v59, %v1601_v11  ;;  %v939_v47 = vsub.f32 %v843_v27, %v15367_v56  ;;  %v15373_v48 = vld [vmem:[#allocation43_spill] sm:$0xff]  ;;  %v3609_v59 = vpop.f32.mrf.mxu0  ;;  %v15376_v11 = vld [vmem:[#allocation122_spill] sm:$0xff] }
 0x8b4   : > { %15366 = vst [vmem:[#allocation77_spill] sm:$0xff] %v12317_v58  ;;  %v8926_v55 = vpop.eup %8925  ;;  %8951 = vrcp.f32 %v15353_v63  ;;  %v1603_v19 = vmul.f32 %v8912_v44, %v15369_v54  ;;  %v1747_v50 = vsub.f32 %v1651_v7, %v15370_v33  ;;  %v1630_v21 = vmul.f32 0.6931472, %v8922_v17  ;;  %v15375_v44 = vld [vmem:[#allocation136_spill] sm:$0xff] }
 0x8b5   : > { %v8928_v42 = vpop.eup %8927  ;;  %8953 = vlog2.f32 %v15371_v37  ;;  %v795_v18 = vmul.f32 %v8926_v55, %v15372_v53  ;;  %v845_v46 = vsub.f32 %v15373_v48, %v817_v52  ;;  %v3988_v63 = vsel %vm633_vm0, %v12317_v58, 0.0  ;;  %v15377_v53 = vld [vmem:[#allocation124_spill] sm:$0xff]  ;;  %v15378_v48 = vld [vmem:[#allocation187_spill] sm:$0xff] }
 0x8b6   : > { %v8930_v13 = vpop.eup %8929  ;;  %v12344_v20 = vsel %vm633_vm0, %v968_v36, 0.0  ;;  %v1605_v57 = vmul.f32 %v8916_v8, %v15375_v44  ;;  %v1653_v17 = vsub.f32 %v15376_v11, %v1626_v6  ;;  %v1634_v7 = vmul.f32 0.6931472, %v8928_v42 }
 0x8b7   : > { %3983 = vadd.xlane.f32.xlu1 %v3982_v45  ;;  %v8932_v14 = vpop.eup %8931  ;;  %8955 = vrcp.f32 %v15358_v2  ;;  %v12352_v52 = vsel %vm633_vm0, %v1761_v51, 0.0  ;;  %v955_v55 = vmul.f32 %v939_v47, %v795_v18  ;;  %v821_v56 = vmul.f32 0.6931472, %v8930_v13  ;;  %v15381_v47 = vld [vmem:[#allocation192_spill] sm:$0xff]  ;;  %v15382_v18 = vld [vmem:[#allocation127_spill] sm:$0xff] }
 0x8b8   : > { %v12346_v27 = vpop.eup %8933  ;;  %8957 = vrcp.f32 %v15371_v37  ;;  %v12355_v33 = vmul.f32 %v1747_v50, %v1603_v19  ;;  %v1655_v8 = vsub.f32 %v15377_v53, %v1630_v21  ;;  %v3777_v6 = vsub.f32 %v3609_v59, %v3609_v59 }
 0x8b9   : > { %15374 = vst [vmem:[#allocation101_spill] sm:$0xff] %v12346_v27  ;;  %v8936_v45 = vpop.eup %8935  ;;  %8959 = vlog2.f32 %v15378_v48  ;;  %v1638_v2 = vmul.f32 0.6931472, %v8932_v14  ;;  %v3994_v51 = vsel %vm633_vm0, %v12346_v27, 0.0  ;;  %v1749_v13 = vsub.f32 %v1653_v17, %v15381_v47  ;;  %v15383_v14 = vld [vmem:[#allocation193_spill] sm:$0xff] }
 0x8ba   : > { %v8938_v54 = vpop.eup %8937  ;;  %v1657_v19 = vsub.f32 %v15382_v18, %v1634_v7  ;;  %v1642_v50 = vmul.f32 0.6931472, %v8936_v45  ;;  %v971_v59 = vsel %vm633_vm0, %v955_v55, 0.0  ;;  %v15385_v27 = vld [vmem:[#allocation197_spill] sm:$0xff]  ;;  %v3807_v17 = vmul.f32 1.442695, %v3777_v6 }
 0x8bb   : > { %3989 = vadd.xlane.f32.xlu1 %v3988_v63  ;;  %v8940_v42 = vpop.eup %8939  ;;  %v15379_v63 = vld [vmem:[#allocation79_spill] sm:$0xff]  ;;  %v797_v11 = vmul.f32 %v8938_v54, %v15383_v14  ;;  %v1751_v58 = vsub.f32 %v1655_v8, %v15385_v27  ;;  %v15387_v45 = vld [vmem:[#allocation129_spill] sm:$0xff]  ;;  %v972_v14 = vadd.f32 %v971_v59, %v12273_v5  ;;  %v1765_v8 = vmul.f32 %v1749_v13, %v1605_v57  ;;  %v15390_v6 = vld [vmem:[#allocation202_spill] sm:$0xff] }
 0x8bc   : > { %v753_v36 = vpop.xlane.xlu1 %752  ;;  %v941_v44 = vsub.f32 %v845_v46, %v15379_v63  ;;  %v12362_v37 = vpop.eup %8941  ;;  %v15384_v46 = vld [vmem:[#allocation47_spill] sm:$0xff]  ;;  %v1646_v35 = vmul.f32 0.6931472, %v8940_v42  ;;  %v1659_v47 = vsub.f32 %v15387_v45, %v1638_v2  ;;  %v1753_v42 = vsub.f32 %v1657_v19, %v15390_v6  ;;  %v15391_v2 = vld [vmem:[#allocation96_spill] sm:$0xff] }
 0x8bd   : > { %8961 = vlog2.f32 %v753_v36  ;;  %15380 = vst [vmem:[#allocation84_spill] sm:$0xff] %v12362_v37  ;;  %v8944_v21 = vpop.eup %8943  ;;  %v847_v53 = vsub.f32 %v15384_v46, %v821_v56  ;;  %v4000_v55 = vsel %vm633_vm0, %v12362_v37, 0.0  ;;  %v15388_v54 = vld [vmem:[#allocation139_spill] sm:$0xff]  ;;  %v15389_v56 = vld [vmem:[#allocation132_spill] sm:$0xff]  ;;  %v15392_v37 = vld [vmem:[#allocation141_spill] sm:$0xff] }
 0x8be   : > { %8963 = vrcp.f32 %v15378_v48  ;;  %v8946_v7 = vpop.eup %8945  ;;  %v957_v48 = vmul.f32 %v941_v44, %v797_v11  ;;  %v1607_v18 = vmul.f32 %v8944_v21, %v15388_v54  ;;  %v15393_v21 = vld [vmem:[#allocation135_spill] sm:$0xff] }
 0x8bf   : > { %3995 = vadd.xlane.f32.xlu1 %v3994_v51  ;;  %8965 = vrcp.f32 %v753_v36  ;;  %v8948_v51 = vpop.eup %8947  ;;  %v1661_v36 = vsub.f32 %v15389_v56, %v1642_v50  ;;  %v943_v44 = vsub.f32 %v847_v53, %v15391_v2  ;;  %v1609_v3 = vmul.f32 %v8946_v7, %v15392_v37  ;;  %v15394_v5 = vld [vmem:[#allocation207_spill] sm:$0xff]  ;;  %v15398_v56 = vld [vmem:[#allocation94_spill] sm:$0xff] }
 0x8c0   : > { %v759_v63 = vpop.xlane.xlu1 %758  ;;  %8967 = vlog2.f32 %v15386_v12  ;;  %v8950_v27 = vpop.eup %8949  ;;  %v1767_v45 = vmul.f32 %v1751_v58, %v1607_v18  ;;  %v1663_v54 = vsub.f32 %v15393_v21, %v1646_v35  ;;  %v1755_v59 = vsub.f32 %v1659_v47, %v15394_v5  ;;  %v15395_v57 = vld [vmem:[#allocation215_spill] sm:$0xff]  ;;  %v15399_v35 = vld [vmem:[#allocation145_spill] sm:$0xff] }
 0x8c1   : > { %8969 = vlog2.f32 %v759_v63  ;;  %v8952_v46 = vpop.eup %8951  ;;  %v799_v13 = vmul.f32 %v8948_v51, %v15395_v57  ;;  %v15396_v19 = vld [vmem:[#allocation143_spill] sm:$0xff]  ;;  %v974_v58 = vadd.f32 %v12282_v60, %v972_v14  ;;  %v1769_v7 = vmul.f32 %v1753_v42, %v1609_v3 }
 0x8c2   : > { %8971 = vrcp.f32 %v759_v63  ;;  %v8954_v50 = vpop.eup %8953  ;;  %v975_v63 = vsel %vm633_vm0, %v957_v48, 0.0  ;;  %v15400_v48 = vld [vmem:[#allocation213_spill] sm:$0xff]  ;;  %v12398_v60 = vsel %vm633_vm0, %v1765_v8, 0.0  ;;  %v12401_v42 = vsel %vm633_vm0, %v1767_v45, 0.0 }
 0x8c3   : > { %4001 = vadd.xlane.f32.xlu1 %v4000_v55  ;;  %8973 = vrcp.f32 %v15386_v12  ;;  %v1611_v12 = vmul.f32 %v8950_v27, %v15396_v19  ;;  %v15397_v55 = vld [vmem:[#allocation211_spill] sm:$0xff]  ;;  %v959_v18 = vmul.f32 %v943_v44, %v799_v13  ;;  %v1759_v2 = vsub.f32 %v1663_v54, %v15400_v48  ;;  %v15402_v54 = vld [vmem:[#allocation190_spill] sm:$0xff]  ;;  %v15403_v13 = vld [vmem:[#allocation137_spill] sm:$0xff] }
 0x8c4   : > { %v765_v11 = vpop.xlane.xlu1 %764  ;;  %8975 = vpow2.f32 %v3807_v17  ;;  %v1757_v53 = vsub.f32 %v1661_v36, %v15397_v55  ;;  %v8956_v37 = vpop.eup %8955  ;;  %v1613_v17 = vmul.f32 %v8952_v46, %v15399_v35  ;;  %v2424_v51 = vmul.f32 0.6931472, %v8954_v50 }
 0x8c5   : > { %8977 = vlog2.f32 %v765_v11  ;;  %v8958_v6 = vpop.eup %8957  ;;  %v976_v27 = vadd.f32 %v975_v63, %v974_v58  ;;  %v12395_v36 = vsel %vm633_vm0, %v12355_v33, 0.0  ;;  %v1771_v3 = vmul.f32 %v1755_v59, %v1611_v12 }
 0x8c6   : > { %8979 = vrcp.f32 %v15398_v56  ;;  %v8960_v21 = vpop.eup %8959  ;;  %v1773_v44 = vmul.f32 %v1757_v53, %v1613_v17  ;;  %v12406_v5 = vsel %vm633_vm0, %v1769_v7, 0.0  ;;  %v979_v33 = vsel %vm633_vm0, %v959_v18, 0.0  ;;  %v15406_v18 = vld [vmem:[#allocation153_spill] sm:$0xff] }
 0x8c7   : > { %8981 = vrcp.f32 %v765_v11  ;;  %v15401_v11 = vld [vmem:[#allocation148_spill] sm:$0xff]  ;;  %v2455_v19 = vsub.f32 %v15403_v13, %v2424_v51  ;;  %v2428_v45 = vmul.f32 0.6931472, %v8960_v21  ;;  %v978_v12 = vadd.f32 %v12305_v9, %v976_v27  ;;  %v12423_v9 = vpop.f32.mrf.mxu1  ;;  %v15407_v51 = vld [vmem:[#allocation191_spill] sm:$0xff]  ;;  %v15408_v27 = vld [vmem:[#allocation113_spill] sm:$0xff] }
 0x8c8   : > { %v771_v47 = vpop.xlane.xlu1 %770  ;;  %8983 = vlog2.f32 %v15398_v56  ;;  %v1615_v46 = vmul.f32 %v8956_v37, %v15401_v11  ;;  %v12412_v53 = vsel %vm633_vm0, %v1771_v3, 0.0  ;;  %v15404_v56 = vld [vmem:[#allocation150_spill] sm:$0xff]  ;;  %v12417_v17 = vsel %vm633_vm0, %v1773_v44, 0.0  ;;  %v15409_v44 = vld [vmem:[#allocation105_spill] sm:$0xff] }
 0x8c9   : > { %8985 = vlog2.f32 %v771_v47  ;;  %v2407_v58 = vmul.f32 %v8958_v6, %v15404_v56  ;;  %v15405_v37 = vld [vmem:[#allocation50_spill] sm:$0xff]  ;;  %v980_v48 = vadd.f32 %v979_v33, %v978_v12  ;;  %v12433_v33 = vpop.f32.mrf.mxu1  ;;  %v15411_v56 = vld [vmem:[#allocation63_spill] sm:$0xff] }
 0x8ca   : > { %v8962_v14 = vpop.eup %8961  ;;  %8987 = vrcp.f32 %v15402_v54  ;;  %v1775_v57 = vmul.f32 %v1759_v2, %v1615_v46  ;;  %v2551_v46 = vsub.f32 %v2455_v19, %v15409_v44  ;;  %v3849_v44 = vmul.f32 %v12191_v49, %v12125_v61 }
 0x8cb   : > { %v8964_v50 = vpop.eup %8963  ;;  %v825_v63 = vmul.f32 0.6931472, %v8962_v14  ;;  %8989 = vrcp.f32 %v771_v47 }
 0x8cc   : > { %v777_v8 = vpop.xlane.xlu1 %776  ;;  %v8966_v59 = vpop.eup %8965  ;;  %v12420_v47 = vmul.f32 %v8964_v50, %v15406_v18 }
 0x8cd   : > { %v8968_v55 = vpop.eup %8967  ;;  %v849_v7 = vsub.f32 %v15405_v37, %v825_v63  ;;  %8991 = vlog2.f32 %v777_v8  ;;  %v801_v6 = vmul.f32 %v8966_v59, %v11774_v31  ;;  %v15410_v63 = vld [vmem:[#allocation140_spill] sm:$0xff]  ;;  %v3847_v59 = vmul.f32 %v12186_v40, %v12123_v10 }
 0x8ce   : > { %v8970_v35 = vpop.eup %8969  ;;  %8993 = vlog2.f32 %v15402_v54  ;;  %v2457_v50 = vsub.f32 %v15410_v63, %v2428_v45  ;;  %v12431_v54 = vsel %vm633_vm0, %v1775_v57, 0.0  ;;  %v2567_v40 = vmul.f32 %v2551_v46, %v2407_v58 }
 0x8cf   : > { %v8972_v2 = vpop.eup %8971  ;;  %8995 = vrcp.f32 %v15407_v51  ;;  %v945_v21 = vsub.f32 %v849_v7, %v15408_v27  ;;  %v829_v3 = vmul.f32 0.6931472, %v8970_v35  ;;  %v2432_v7 = vmul.f32 0.6931472, %v8968_v55  ;;  %v15412_v35 = vld [vmem:[#allocation75_spill] sm:$0xff]  ;;  %v15413_v55 = vld [vmem:[#allocation154_spill] sm:$0xff] }
 0x8d0   : > { %v1542_v14 = vpop.xlane.xlu1 %1541  ;;  %v8974_v11 = vpop.eup %8973  ;;  %8997 = vrcp.f32 %v777_v8  ;;  %v982_v8 = vadd.f32 %v12312_v28, %v980_v48  ;;  %v803_v57 = vmul.f32 %v8972_v2, %v11789_v22  ;;  %v15414_v2 = vld [vmem:[#allocation66_spill] sm:$0xff] }
 0x8d1   : > { %v12435_v13 = vpop.eup %8975  ;;  %v961_v12 = vmul.f32 %v945_v21, %v801_v6  ;;  %v851_v31 = vsub.f32 %v15411_v56, %v829_v3  ;;  %8999 = vlog2.f32 %v1542_v14  ;;  %v12445_v21 = vpop.f32.mrf.mxu1  ;;  %v2411_v3 = vmul.f32 %v8974_v11, %v15413_v55 }
 0x8d2   : > { %v8978_v37 = vpop.eup %8977  ;;  %9001 = vlog2.f32 %v15407_v51 }
 0x8d3   : > { %v8980_v19 = vpop.eup %8979  ;;  %v983_v45 = vsel %vm633_vm0, %v961_v12, 0.0  ;;  %v947_v18 = vsub.f32 %v851_v31, %v15412_v35  ;;  %v833_v6 = vmul.f32 0.6931472, %v8978_v37  ;;  %9003 = vrcp.f32 %v1542_v14  ;;  %v12452_v14 = vpop.f32.mrf.mxu1  ;;  %v15415_v12 = vld [vmem:[#allocation220_spill] sm:$0xff]  ;;  %v15416_v31 = vld [vmem:[#allocation142_spill] sm:$0xff] }
 0x8d4   : > { %4105 = vperm.xlu1 %8385, %v3847_v59   ;;  %v1548_v27 = vpop.xlane.xlu1 %1547  ;;  %v8982_v10 = vpop.eup %8981  ;;  %9005 = vrcp.f32 %v12435_v13  ;;  %v984_v28 = vadd.f32 %v983_v45, %v982_v8  ;;  %v2553_v56 = vsub.f32 %v2457_v50, %v15415_v12  ;;  %v2459_v58 = vsub.f32 %v15416_v31, %v2432_v7  ;;  %v15417_v8 = vld [vmem:[#allocation80_spill] sm:$0xff]  ;;  %v15421_v12 = vld [vmem:[#allocation81_spill] sm:$0xff] }
 0x8d5   : > { %v8984_v48 = vpop.eup %8983  ;;  %v963_v22 = vmul.f32 %v947_v18, %v803_v57  ;;  %v853_v51 = vsub.f32 %v15414_v2, %v833_v6  ;;  %9007 = vlog2.f32 %v1548_v27  ;;  %v805_v37 = vmul.f32 %v8982_v10, %v11804_v62  ;;  %v12460_v61 = vpop.f32.mrf.mxu1  ;;  %v15418_v18 = vld [vmem:[#allocation194_spill] sm:$0xff] }
 0x8d6   : > { %v8986_v63 = vpop.eup %8985  ;;  %v986_v11 = vadd.f32 %v12323_v25, %v984_v28  ;;  %9009 = vrcp.f32 %v1548_v27  ;;  %v12463_v50 = vsel %vm633_vm0, %v2567_v40, 0.0  ;;  %v2436_v7 = vmul.f32 0.6931472, %v8984_v48  ;;  %v15419_v27 = vld [vmem:[#allocation68_spill] sm:$0xff]  ;;  %v15420_v2 = vld [vmem:[#allocation222_spill] sm:$0xff] }
 0x8d7   : > { %v8988_v46 = vpop.eup %8987  ;;  %v987_v59 = vsel %vm633_vm0, %v963_v22, 0.0  ;;  %v949_v57 = vsub.f32 %v853_v51, %v15417_v8  ;;  %v837_v45 = vmul.f32 0.6931472, %v8986_v63  ;;  %9011 = vrcp.f32 %v15418_v18  ;;  %v12469_v10 = vpop.f32.mrf.mxu1 }
 0x8d8   : > { %4115 = vperm.xlu1 %8385, %v3849_v44   ;;  %v1554_v49 = vpop.xlane.xlu1 %1553  ;;  %v8990_v35 = vpop.eup %8989  ;;  %v988_v25 = vadd.f32 %v987_v59, %v986_v11  ;;  %v3851_v62 = vmul.f32 %v12201_v38, %v12142_v23  ;;  %v2569_v22 = vmul.f32 %v2553_v56, %v12420_v47  ;;  %v2555_v51 = vsub.f32 %v2459_v58, %v15420_v2  ;;  %v15423_v56 = vld [vmem:[#allocation144_spill] sm:$0xff] }
 0x8d9   : > { %v965_v6 = vmul.f32 %v949_v57, %v805_v37  ;;  %v855_v55 = vsub.f32 %v15419_v27, %v837_v45  ;;  %9013 = vlog2.f32 %v1554_v49  ;;  %v807_v63 = vmul.f32 %v8990_v35, %v11815_v16  ;;  %v12477_v23 = vpop.f32.mrf.mxu1  ;;  %v15422_v37 = vld [vmem:[#allocation28_spill] sm:$0xff]  ;;  %v15424_v45 = vld [vmem:[#allocation70_spill] sm:$0xff] }
 0x8da   : > { %v8992_v28 = vpop.eup %8991  ;;  %v990_v40 = vadd.f32 %v12326_v41, %v988_v25  ;;  %9015 = vrcp.f32 %v1554_v49  ;;  %v2413_v47 = vmul.f32 %v8980_v19, %v15422_v37  ;;  %v2461_v58 = vsub.f32 %v15423_v56, %v2436_v7  ;;  %v15425_v27 = vld [vmem:[#allocation196_spill] sm:$0xff] }
 0x8db   : > { %v8994_v48 = vpop.eup %8993  ;;  %v991_v44 = vsel %vm633_vm0, %v965_v6, 0.0  ;;  %v951_v31 = vsub.f32 %v855_v55, %v15421_v12  ;;  %v841_v11 = vmul.f32 0.6931472, %v8992_v28  ;;  %9017 = vlog2.f32 %v15418_v18  ;;  %v12485_v35 = vpop.f32.mrf.mxu1 }
 0x8dc   : > { %4125 = vperm.xlu1 %8385, %v3851_v62   ;;  %v1560_v38 = vpop.xlane.xlu1 %1559  ;;  %v8996_v59 = vpop.eup %8995  ;;  %v992_v41 = vadd.f32 %v991_v44, %v990_v40  ;;  %v3853_v16 = vmul.f32 %v12206_v29, %v12146_v4  ;;  %v12488_v6 = vsel %vm633_vm0, %v2569_v22, 0.0  ;;  %v2571_v19 = vmul.f32 %v2555_v51, %v2411_v3  ;;  %v15426_v62 = vld [vmem:[#allocation83_spill] sm:$0xff]  ;;  %v15427_v44 = vld [vmem:[#allocation5_spill] sm:$0xff]  ;;  %v15428_v51 = vld [vmem:[#allocation54_spill] sm:$0xff] }
 0x8dd   : > { %v8998_v8 = vpop.eup %8997  ;;  %v967_v57 = vmul.f32 %v951_v31, %v807_v63  ;;  %v857_v49 = vsub.f32 %v15424_v45, %v841_v11  ;;  %9019 = vlog2.f32 %v1560_v38  ;;  %v12494_v4 = vpop.f32.mrf.mxu1  ;;  %v2557_v22 = vsub.f32 %v2461_v58, %v15427_v44 }
 0x8de   : > { %v9000_v25 = vpop.eup %8999  ;;  %9021 = vrcp.f32 %v1560_v38  ;;  %v994_v7 = vadd.f32 %v12330_v1, %v992_v41  ;;  %v2440_v63 = vmul.f32 0.6931472, %v8994_v48  ;;  %v809_v1 = vmul.f32 %v8998_v8, %v11830_v26  ;;  %v15429_v41 = vld [vmem:[#allocation199_spill] sm:$0xff] }
 0x8df   : > { %v9002_v18 = vpop.eup %9001  ;;  %9023 = vrcp.f32 %v15425_v27  ;;  %v995_v55 = vsel %vm633_vm0, %v967_v57, 0.0  ;;  %v953_v28 = vsub.f32 %v857_v49, %v15426_v62  ;;  %v1620_v2 = vmul.f32 0.6931472, %v9000_v25  ;;  %v12505_v38 = vpop.f32.mrf.mxu1  ;;  %v15430_v8 = vld [vmem:[#allocation3_spill] sm:$0xff]  ;;  %v15431_v49 = vld [vmem:[#allocation146_spill] sm:$0xff] }
 0x8e0   : > { %4135 = vperm.xlu1 %8385, %v3853_v16   ;;  %v1566_v29 = vpop.xlane.xlu1 %1565  ;;  %v9004_v40 = vpop.eup %9003  ;;  %9025 = vlog2.f32 %v15425_v27  ;;  %v12500_v12 = vmul.f32 %v8988_v46, %v15428_v51  ;;  %v3855_v11 = vmul.f32 %v12211_v30, %v12155_v0  ;;  %v12508_v56 = vsel %vm633_vm0, %v2571_v19, 0.0 }
 0x8e1   : > { %v9006_v3 = vpop.eup %9005  ;;  %v1650_v31 = vsub.f32 %v11772_v43, %v1620_v2  ;;  %9027 = vlog2.f32 %v1566_v29  ;;  %v969_v48 = vmul.f32 %v953_v28, %v809_v1  ;;  %v996_v58 = vadd.f32 %v995_v55, %v994_v7  ;;  %v12513_v0 = vpop.f32.mrf.mxu1  ;;  %v15432_v28 = vld [vmem:[#allocation55_spill] sm:$0xff] }
 0x8e2   : > { %v9008_v37 = vpop.eup %9007  ;;  %9029 = vrcp.f32 %v1566_v29  ;;  %v1602_v46 = vmul.f32 %v9004_v40, %v11845_v39  ;;  %v2573_v30 = vmul.f32 %v2557_v22, %v2413_v47  ;;  %v2463_v16 = vsub.f32 %v15431_v49, %v2440_v63  ;;  %v15433_v22 = vld [vmem:[#allocation89_spill] sm:$0xff] }
 0x8e3   : > { %v9010_v26 = vpop.eup %9009  ;;  %9031 = vrcp.f32 %v15429_v41  ;;  %v1746_v43 = vsub.f32 %v1650_v31, %v15430_v8  ;;  %v1624_v57 = vmul.f32 0.6931472, %v9008_v37  ;;  %v2444_v25 = vmul.f32 0.6931472, %v9002_v18  ;;  %v12521_v55 = vpop.f32.mrf.mxu1 }
 0x8e4   : > { %4145 = vperm.xlu1 %8385, %v3855_v11   ;;  %v1572_v45 = vpop.xlane.xlu1 %1571  ;;  %9033 = vlog2.f32 %v15429_v41  ;;  %v12517_v19 = vpop.eup %9011  ;;  %v3857_v39 = vmul.f32 %v9006_v3, %v12435_v13  ;;  %v2417_v2 = vmul.f32 %v8996_v59, %v15432_v28  ;;  %v1604_v47 = vmul.f32 %v9010_v26, %v11858_v34  ;;  %v15434_v3 = vld [vmem:[#allocation8_spill] sm:$0xff]  ;;  %v15435_v59 = vld [vmem:[#allocation149_spill] sm:$0xff]  ;;  %v15436_v34 = vld [vmem:[#allocation203_spill] sm:$0xff] }
 0x8e5   : > { %v1762_v7 = vmul.f32 %v1746_v43, %v1602_v46  ;;  %v1652_v27 = vsub.f32 %v11785_v15, %v1624_v57  ;;  %9035 = vlog2.f32 %v1572_v45  ;;  %v998_v29 = vadd.f32 %v12344_v20, %v996_v58  ;;  %v12529_v1 = vpop.f32.mrf.mxu1 }
 0x8e6   : > { %v9014_v62 = vpop.eup %9013  ;;  %v999_v18 = vsel %vm633_vm0, %v969_v48, 0.0  ;;  %9037 = vrcp.f32 %v1572_v45  ;;  %v2559_v51 = vsub.f32 %v2463_v16, %v15434_v3  ;;  %v2465_v31 = vsub.f32 %v15435_v59, %v2444_v25  ;;  %v15437_v45 = vld [vmem:[#allocation90_spill] sm:$0xff]  ;;  %v15442_v59 = vld [vmem:[#allocation91_spill] sm:$0xff] }
 0x8e7   : > { %v9016_v40 = vpop.eup %9015  ;;  %v1778_v44 = vsel %vm633_vm0, %v1762_v7, 0.0  ;;  %v1748_v63 = vsub.f32 %v1652_v27, %v15433_v22  ;;  %v1628_v15 = vmul.f32 0.6931472, %v9014_v62  ;;  %9039 = vrcp.f32 %v15436_v34  ;;  %v12539_v26 = vpop.f32.mrf.mxu1  ;;  %v15438_v27 = vld [vmem:[#allocation10_spill] sm:$0xff]  ;;  %v15440_v22 = vld [vmem:[#allocation205_spill] sm:$0xff] }
 0x8e8   : > { %4155 = vperm.xlu1 %8385, %v3857_v39   ;;  %v1578_v13 = vpop.xlane.xlu1 %1577  ;;  %v1779_v20 = vadd.f32 %v1778_v44, %v12352_v52  ;;  %v9018_v11 = vpop.eup %9017  ;;  %v12536_v37 = vsel %vm633_vm0, %v2573_v30, 0.0  ;;  %v1606_v8 = vmul.f32 %v9016_v40, %v11873_v32  ;;  %v1000_v43 = vadd.f32 %v999_v18, %v998_v29  ;;  %v15439_v29 = vld [vmem:[#allocation11_spill] sm:$0xff] }
 0x8e9   : > { %v1764_v48 = vmul.f32 %v1748_v63, %v1604_v47  ;;  %v1654_v58 = vsub.f32 %v11800_v24, %v1628_v15  ;;  %9041 = vlog2.f32 %v1578_v13  ;;  %v12545_v25 = vpop.f32.mrf.mxu1  ;;  %v5474_v24 = vsel %vm633_vm0, %v12423_v9, -inf }
 0x8ea   : > { %v9020_v41 = vpop.eup %9019  ;;  %v1781_v46 = vadd.f32 %v12395_v36, %v1779_v20  ;;  %9043 = vrcp.f32 %v1578_v13  ;;  %v2575_v36 = vmul.f32 %v2559_v51, %v12500_v12  ;;  %v2561_v32 = vsub.f32 %v2465_v31, %v15438_v27  ;;  %5475 = vmax.xlane.f32.xlu0 %v5474_v24  ;;  %v15441_v12 = vld [vmem:[#allocation228_spill] sm:$0xff] }
 0x8eb   : > { %v9022_v57 = vpop.eup %9021  ;;  %v1782_v52 = vsel %vm633_vm0, %v1764_v48, 0.0  ;;  %v1750_v49 = vsub.f32 %v1654_v58, %v15437_v45  ;;  %v1632_v30 = vmul.f32 0.6931472, %v9020_v41  ;;  %9045 = vlog2.f32 %v15436_v34  ;;  %v12555_v40 = vpop.f32.mrf.mxu1  ;;  %v15443_v41 = vld [vmem:[#allocation32_spill] sm:$0xff] }
 0x8ec   : > { %v1584_v16 = vpop.xlane.xlu1 %1583  ;;  %v12549_v7 = vpop.eup %9023  ;;  %v1783_v39 = vadd.f32 %v1782_v52, %v1781_v46  ;;  %v2448_v28 = vmul.f32 0.6931472, %v9018_v11  ;;  %v1608_v15 = vmul.f32 %v9022_v57, %v15441_v12  ;;  %v1001_v13 = vrot.slane %v1000_v43, 4  ;;  %v15444_v57 = vld [vmem:[#allocation152_spill] sm:$0xff]  ;;  %v15448_v12 = vld [vmem:[#allocation209_spill] sm:$0xff] }
 0x8ed   : > { %v9026_v62 = vpop.eup %9025  ;;  %v1766_v47 = vmul.f32 %v1750_v49, %v1606_v8  ;;  %v1656_v18 = vsub.f32 %v15439_v29, %v1632_v30  ;;  %9047 = vlog2.f32 %v1584_v16  ;;  %v12562_v11 = vpop.f32.mrf.mxu1  ;;  %v2577_v58 = vmul.f32 %v2561_v32, %v2417_v2  ;;  %v15445_v49 = vld [vmem:[#allocation13_spill] sm:$0xff]  ;;  %v15446_v2 = vld [vmem:[#allocation230_spill] sm:$0xff]  ;;  %v15447_v29 = vld [vmem:[#allocation95_spill] sm:$0xff] }
 0x8ee   : > { %v9028_v44 = vpop.eup %9027  ;;  %9049 = vrcp.f32 %v15440_v22  ;;  %v1785_v63 = vadd.f32 %v12398_v60, %v1783_v39  ;;  %v2419_v46 = vmul.f32 %v12517_v19, %v15443_v41  ;;  %v2467_v52 = vsub.f32 %v15444_v57, %v2448_v28 }
 0x8ef   : > { %v9030_v3 = vpop.eup %9029  ;;  %v1786_v51 = vsel %vm633_vm0, %v1766_v47, 0.0  ;;  %v1752_v31 = vsub.f32 %v1656_v18, %v15442_v59  ;;  %v1636_v34 = vmul.f32 0.6931472, %v9028_v44  ;;  %9051 = vrcp.f32 %v1584_v16  ;;  %v12573_v16 = vpop.f32.mrf.mxu1 }
 0x8f0   : > { %v2348_v20 = vpop.xlane.xlu1 %2347  ;;  %v12564_v48 = vpop.eup %9031  ;;  %9053 = vlog2.f32 %v15440_v22  ;;  %v1787_v60 = vadd.f32 %v1786_v51, %v1785_v63  ;;  %v1610_v32 = vmul.f32 %v9030_v3, %v15446_v2  ;;  %v1002_v39 = vadd.f32 %v1001_v13, %v1000_v43  ;;  %v15449_v51 = vld [vmem:[#allocation15_spill] sm:$0xff] }
 0x8f1   : > { %v12569_v8 = vpop.eup %9033  ;;  %v1768_v45 = vmul.f32 %v1752_v31, %v1608_v15  ;;  %v1658_v30 = vsub.f32 %v15445_v49, %v1636_v34  ;;  %9055 = vlog2.f32 %v2348_v20  ;;  %v6277_v19 = vsel %vm633_vm0, %v12573_v16, -inf  ;;  %v15450_v34 = vld [vmem:[#allocation88_spill] sm:$0xff] }
 0x8f2   : > { %v9036_v24 = vpop.eup %9035  ;;  %v1789_v27 = vadd.f32 %v12401_v42, %v1787_v60  ;;  %9057 = vrcp.f32 %v2348_v20  ;;  %6278 = vmax.xlane.f32.xlu0 %v6277_v19  ;;  %v12582_v63 = vsel %vm633_vm0, %v2575_v36, 0.0  ;;  %v5477_v43 = vsel %vm633_vm0, %v12452_v14, -inf  ;;  %v15453_v19 = vld [vmem:[#allocation34_spill] sm:$0xff] }
 0x8f3   : > { %v1790_v47 = vsel %vm633_vm0, %v1768_v45, 0.0  ;;  %v1754_v18 = vsub.f32 %v1658_v30, %v15447_v29  ;;  %v1640_v28 = vmul.f32 0.6931472, %v9036_v24  ;;  %v9038_v22 = vpop.eup %9037  ;;  %9059 = vrcp.f32 %v15448_v12  ;;  %v15451_v45 = vld [vmem:[#allocation232_spill] sm:$0xff]  ;;  %v15452_v30 = vld [vmem:[#allocation98_spill] sm:$0xff] }
 0x8f4   : > { %v2354_v44 = vpop.xlane.xlu1 %2353  ;;  %v1791_v42 = vadd.f32 %v1790_v47, %v1789_v27  ;;  %v12587_v15 = vpop.eup %9039  ;;  %v12590_v13 = vsel %vm633_vm0, %v2577_v58, 0.0  ;;  %v2563_v20 = vsub.f32 %v2467_v52, %v15450_v34  ;;  %v1003_v41 = vrot.slane %v1002_v39, 2 }
 0x8f5   : > { %v1770_v3 = vmul.f32 %v1754_v18, %v1610_v32  ;;  %v1660_v59 = vsub.f32 %v15449_v51, %v1640_v28  ;;  %9061 = vlog2.f32 %v2354_v44  ;;  %v1612_v49 = vmul.f32 %v9038_v22, %v15451_v45  ;;  %v15454_v18 = vld [vmem:[#allocation16_spill] sm:$0xff] }
 0x8f6   : > { %v9042_v31 = vpop.eup %9041  ;;  %v1793_v36 = vadd.f32 %v12406_v5, %v1791_v42  ;;  %9063 = vrcp.f32 %v2354_v44  ;;  %5478 = vmax.xlane.f32.xlu0 %v5477_v43  ;;  %v2452_v2 = vmul.f32 0.6931472, %v9026_v62  ;;  %v5480_v52 = vsel %vm633_vm0, %v12445_v21, -inf }
 0x8f7   : > { %v9044_v60 = vpop.eup %9043  ;;  %v1794_v57 = vsel %vm633_vm0, %v1770_v3, 0.0  ;;  %v1756_v24 = vsub.f32 %v1660_v59, %v15452_v30  ;;  %v1644_v58 = vmul.f32 0.6931472, %v9042_v31  ;;  %9065 = vlog2.f32 %v15448_v12  ;;  %v15455_v3 = vld [vmem:[#allocation235_spill] sm:$0xff]  ;;  %v15456_v59 = vld [vmem:[#allocation102_spill] sm:$0xff] }
 0x8f8   : > { %v2360_v27 = vpop.xlane.xlu1 %2359  ;;  %v1795_v32 = vadd.f32 %v1794_v57, %v1793_v36  ;;  %v12601_v5 = vpop.eup %9045  ;;  %v2421_v47 = vmul.f32 %v12549_v7, %v15453_v19  ;;  %v2579_v22 = vmul.f32 %v2563_v20, %v2419_v46  ;;  %v1004_v62 = vadd.f32 %v1003_v41, %v1002_v39  ;;  %v15457_v57 = vld [vmem:[#allocation26_spill] sm:$0xff]  ;;  %v15461_v19 = vld [vmem:[#allocation237_spill] sm:$0xff] }
 0x8f9   : > { %v1772_v29 = vmul.f32 %v1756_v24, %v1612_v49  ;;  %v1662_v28 = vsub.f32 %v15454_v18, %v1644_v58  ;;  %9067 = vlog2.f32 %v2360_v27  ;;  %v1614_v51 = vmul.f32 %v9044_v60, %v15455_v3  ;;  %v15458_v49 = vld [vmem:[#allocation210_spill] sm:$0xff]  ;;  %v15459_v60 = vld [vmem:[#allocation17_spill] sm:$0xff]  ;;  %v15462_v18 = vld [vmem:[#allocation104_spill] sm:$0xff] }
 0x8fa   : > { %v9048_v44 = vpop.eup %9047  ;;  %v1797_v42 = vadd.f32 %v12412_v53, %v1795_v32  ;;  %9069 = vrcp.f32 %v2360_v27  ;;  %5481 = vmax.xlane.f32.xlu0 %v5480_v52  ;;  %v2469_v45 = vsub.f32 %v15457_v57, %v2452_v2  ;;  %v5483_v53 = vsel %vm633_vm0, %v12469_v10, -inf  ;;  %v15460_v58 = vld [vmem:[#allocation61_spill] sm:$0xff] }
 0x8fb   : > { %v12607_v12 = vpop.eup %9049  ;;  %v1798_v43 = vsel %vm633_vm0, %v1772_v29, 0.0  ;;  %v1758_v31 = vsub.f32 %v1662_v28, %v15456_v59  ;;  %v1648_v34 = vmul.f32 0.6931472, %v9048_v44  ;;  %9071 = vrcp.f32 %v15458_v49 }
 0x8fc   : > { %v2366_v7 = vpop.xlane.xlu1 %2365  ;;  %v9052_v36 = vpop.eup %9051  ;;  %v1799_v46 = vadd.f32 %v1798_v43, %v1797_v42  ;;  %v3230_v20 = vmul.f32 0.6931472, %v12569_v8  ;;  %v12622_v27 = vmul.f32 %v12564_v48, %v15460_v58  ;;  %v1005_v2 = vrot.slane %v1004_v62, 1  ;;  %v15463_v43 = vld [vmem:[#allocation225_spill] sm:$0xff] }
 0x8fd   : > { %v12616_v39 = vpop.eup %9053  ;;  %v1774_v41 = vmul.f32 %v1758_v31, %v1614_v51  ;;  %v1664_v30 = vsub.f32 %v15459_v60, %v1648_v34  ;;  %9073 = vlog2.f32 %v2366_v7  ;;  %v1616_v29 = vmul.f32 %v9052_v36, %v15461_v19  ;;  %v15468_v19 = vld [vmem:[#allocation38_spill] sm:$0xff] }
 0x8fe   : > { %v9056_v24 = vpop.eup %9055  ;;  %9075 = vrcp.f32 %v2366_v7  ;;  %v1801_v32 = vadd.f32 %v12417_v17, %v1799_v46  ;;  %5484 = vmax.xlane.f32.xlu0 %v5483_v53  ;;  %v2565_v3 = vsub.f32 %v2469_v45, %v15463_v43  ;;  %v5486_v51 = vsel %vm633_vm0, %v12460_v61, -inf  ;;  %v15464_v17 = vld [vmem:[#allocation51_spill] sm:$0xff]  ;;  %v15465_v7 = vld [vmem:[#allocation18_spill] sm:$0xff] }
 0x8ff   : > { %v1802_v52 = vsel %vm633_vm0, %v1774_v41, 0.0  ;;  %v1760_v28 = vsub.f32 %v1664_v30, %v15462_v18  ;;  %v2426_v8 = vmul.f32 0.6931472, %v9056_v24  ;;  %v9058_v42 = vpop.eup %9057  ;;  %9077 = vlog2.f32 %v15458_v49  ;;  %v15466_v41 = vld [vmem:[#allocation239_spill] sm:$0xff]  ;;  %v15467_v30 = vld [vmem:[#allocation217_spill] sm:$0xff] }
 0x900   : > { %v2372_v44 = vpop.xlane.xlu1 %2371  ;;  %v1803_v48 = vadd.f32 %v1802_v52, %v1801_v32  ;;  %v12632_v59 = vpop.eup %9059  ;;  %v3261_v31 = vsub.f32 %v15464_v17, %v3230_v20  ;;  %v12637_v46 = vsel %vm633_vm0, %v2579_v22, 0.0  ;;  %v12639_v45 = vadd.f32 %v1005_v2, %v1004_v62  ;;  %v15469_v2 = vld [vmem:[#allocation147_spill] sm:$0xff] }
 0x901   : > { %v1776_v34 = vmul.f32 %v1760_v28, %v1616_v29  ;;  %v2456_v36 = vsub.f32 %v15465_v7, %v2426_v8  ;;  %9079 = vlog2.f32 %v2372_v44  ;;  %v2408_v60 = vmul.f32 %v9058_v42, %v15466_v41  ;;  %v15470_v8 = vld [vmem:[#allocation19_spill] sm:$0xff] }
 0x902   : > { %v9062_v57 = vpop.eup %9061  ;;  %9081 = vrcp.f32 %v2372_v44  ;;  %v1805_v49 = vadd.f32 %v12431_v54, %v1803_v48  ;;  %5487 = vmax.xlane.f32.xlu0 %v5486_v51  ;;  %v2581_v52 = vmul.f32 %v2565_v3, %v2421_v47  ;;  %v12647_v22 = vmul.f32 %v12587_v15, %v15468_v19  ;;  %v15471_v47 = vld [vmem:[#allocation242_spill] sm:$0xff]  ;;  %v15475_v19 = vld [vmem:[#allocation245_spill] sm:$0xff] }
 0x903   : > { %v9064_v53 = vpop.eup %9063  ;;  %v2552_v24 = vsub.f32 %v2456_v36, %v15467_v30  ;;  %v2430_v58 = vmul.f32 0.6931472, %v9062_v57  ;;  %v1806_v32 = vsel %vm633_vm0, %v1776_v34, 0.0  ;;  %v5489_v62 = vsel %vm633_vm0, %v12485_v35, -inf  ;;  %v15472_v34 = vld [vmem:[#allocation106_spill] sm:$0xff]  ;;  %v15473_v57 = vld [vmem:[#allocation212_spill] sm:$0xff] }
 0x904   : > { %v2378_v20 = vpop.xlane.xlu1 %2377  ;;  %v1807_v29 = vadd.f32 %v1806_v32, %v1805_v49  ;;  %v12651_v54 = vpop.eup %9065  ;;  %v3357_v18 = vsub.f32 %v3261_v31, %v15469_v2  ;;  %v3234_v43 = vmul.f32 0.6931472, %v12601_v5  ;;  %v2410_v3 = vmul.f32 %v9064_v53, %v15471_v47  ;;  %v15474_v30 = vld [vmem:[#allocation20_spill] sm:$0xff]  ;;  %v15477_v47 = vld [vmem:[#allocation53_spill] sm:$0xff] }
 0x905   : > { %v2568_v28 = vmul.f32 %v2552_v24, %v2408_v60  ;;  %v2458_v44 = vsub.f32 %v15470_v8, %v2430_v58  ;;  %9083 = vlog2.f32 %v2378_v20  ;;  %v1007_v15 = vsub.f32 0.0, %v12639_v45  ;;  %v15476_v8 = vld [vmem:[#allocation109_spill] sm:$0xff] }
 0x906   : > { %v9068_v42 = vpop.eup %9067  ;;  %v1808_v48 = vrot.slane %v1807_v29, 4  ;;  %9085 = vrcp.f32 %v2378_v20  ;;  %5490 = vmax.xlane.f32.xlu0 %v5489_v62  ;;  %v5492_v5 = vsel %vm633_vm0, %v12477_v23, -inf  ;;  %v12668_v58 = vsel %vm633_vm0, %v2581_v52, 0.0 }
 0x907   : > { %v9070_v51 = vpop.eup %9069  ;;  %v2584_v17 = vsel %vm633_vm0, %v2568_v28, 0.0  ;;  %v2554_v7 = vsub.f32 %v2458_v44, %v15472_v34  ;;  %v2434_v36 = vmul.f32 0.6931472, %v9068_v42  ;;  %9087 = vrcp.f32 %v15473_v57 }
 0x908   : > { %v2384_v31 = vpop.xlane.xlu1 %2383  ;;  %v2585_v49 = vadd.f32 %v2584_v17, %v12463_v50  ;;  %v1809_v41 = vadd.f32 %v1808_v48, %v1807_v29  ;;  %v12664_v53 = vpop.eup %9071  ;;  %v2412_v62 = vmul.f32 %v9070_v51, %v15475_v19  ;;  %v1008_v50 = vsel %vm633_vm0, %v1007_v15, -inf }
 0x909   : > { %v2570_v60 = vmul.f32 %v2554_v7, %v2410_v3  ;;  %v2460_v24 = vsub.f32 %v15474_v30, %v2434_v36  ;;  %9089 = vlog2.f32 %v2384_v31  ;;  %v3263_v3 = vsub.f32 %v15477_v47, %v3234_v43  ;;  %v15478_v36 = vld [vmem:[#allocation21_spill] sm:$0xff]  ;;  %v15484_v47 = vld [vmem:[#allocation252_spill] sm:$0xff] }
 0x90a   : > { %v9074_v20 = vpop.eup %9073  ;;  %v2587_v32 = vadd.f32 %v12488_v6, %v2585_v49  ;;  %v1810_v29 = vrot.slane %v1809_v41, 2  ;;  %9091 = vrcp.f32 %v2384_v31  ;;  %5493 = vmax.xlane.f32.xlu0 %v5492_v5  ;;  %v5495_v51 = vsel %vm633_vm0, %v12505_v38, -inf  ;;  %v15479_v5 = vld [vmem:[#allocation249_spill] sm:$0xff] }
 0x90b   : > { %v9076_v2 = vpop.eup %9075  ;;  %v2588_v28 = vsel %vm633_vm0, %v2570_v60, 0.0  ;;  %v2556_v44 = vsub.f32 %v2460_v24, %v15476_v8  ;;  %v2438_v42 = vmul.f32 0.6931472, %v9074_v20  ;;  %v3373_v34 = vmul.f32 %v3357_v18, %v12622_v27  ;;  %v15480_v20 = vld [vmem:[#allocation114_spill] sm:$0xff] }
 0x90c   : > { %1009 = vmax.xlane.f32.xlu1 %v1008_v50  ;;  %v2390_v52 = vpop.xlane.xlu1 %2389  ;;  %v2589_v6 = vadd.f32 %v2588_v28, %v2587_v32  ;;  %v1811_v48 = vadd.f32 %v1810_v29, %v1809_v41  ;;  %v12680_v17 = vpop.eup %9077  ;;  %v2414_v43 = vmul.f32 %v9076_v2, %v15479_v5  ;;  %v15481_v18 = vld [vmem:[#allocation234_spill] sm:$0xff] }
 0x90d   : > { %v2572_v7 = vmul.f32 %v2556_v44, %v2412_v62  ;;  %v2462_v49 = vsub.f32 %v15478_v36, %v2438_v42  ;;  %9093 = vlog2.f32 %v2390_v52  ;;  %v3359_v62 = vsub.f32 %v3263_v3, %v15481_v18  ;;  %v15482_v28 = vld [vmem:[#allocation22_spill] sm:$0xff] }
 0x90e   : > { %v9080_v60 = vpop.eup %9079  ;;  %9095 = vlog2.f32 %v15473_v57  ;;  %v2591_v31 = vadd.f32 %v12508_v56, %v2589_v6  ;;  %v1812_v30 = vrot.slane %v1811_v48, 1  ;;  %5496 = vmax.xlane.f32.xlu0 %v5495_v51  ;;  %v5498_v56 = vsel %vm633_vm0, %v12494_v4, -inf  ;;  %v15483_v42 = vld [vmem:[#allocation214_spill] sm:$0xff]  ;;  %v15485_v51 = vld [vmem:[#allocation119_spill] sm:$0xff] }
 0x90f   : > { %v9082_v41 = vpop.eup %9081  ;;  %v2592_v24 = vsel %vm633_vm0, %v2572_v7, 0.0  ;;  %v2558_v32 = vsub.f32 %v2462_v49, %v15480_v20  ;;  %v2442_v19 = vmul.f32 0.6931472, %v9080_v60  ;;  %9097 = vrcp.f32 %v2390_v52 }
 0x910   : > { %v3154_v27 = vpop.xlane.xlu1 %3153  ;;  %v2593_v50 = vadd.f32 %v2592_v24, %v2591_v31  ;;  %v12690_v29 = vadd.f32 %v1812_v30, %v1811_v48  ;;  %v3238_v57 = vmul.f32 0.6931472, %v12616_v39  ;;  %v2416_v6 = vmul.f32 %v9082_v41, %v15484_v47  ;;  %v15487_v24 = vld [vmem:[#allocation23_spill] sm:$0xff] }
 0x911   : > { %v2574_v2 = vmul.f32 %v2558_v32, %v2414_v43  ;;  %v2464_v8 = vsub.f32 %v15482_v28, %v2442_v19  ;;  %9099 = vlog2.f32 %v3154_v27  ;;  %v5501_v31 = vsel %vm633_vm0, %v12521_v55, -inf  ;;  %v15486_v43 = vld [vmem:[#allocation41_spill] sm:$0xff] }
 0x912   : > { %v9084_v44 = vpop.eup %9083  ;;  %9101 = vrcp.f32 %v15483_v42  ;;  %v2595_v52 = vadd.f32 %v12536_v37, %v2593_v50  ;;  %v1814_v3 = vsub.f32 0.0, %v12690_v29  ;;  %5499 = vmax.xlane.f32.xlu0 %v5498_v56  ;;  %v3217_v30 = vmul.f32 %v12607_v12, %v15486_v43  ;;  %v13013_v29 = vld [vmem:[%s14494_s2 + $0x40] sm:$0xff] }
 0x913   : > { %v2596_v48 = vsel %vm633_vm0, %v2574_v2, 0.0  ;;  %v2560_v7 = vsub.f32 %v2464_v8, %v15485_v51  ;;  %v2446_v36 = vmul.f32 0.6931472, %v9084_v44  ;;  %9103 = vrcp.f32 %v3154_v27  ;;  %v9086_v49 = vpop.eup %9085  ;;  %v15488_v27 = vld [vmem:[#allocation30_spill] sm:$0xff]  ;;  %v15489_v2 = vld [vmem:[#allocation255_spill] sm:$0xff]  ;;  %v15490_v8 = vld [vmem:[#allocation125_spill] sm:$0xff] }
 0x914   : > { %v3160_v39 = vpop.xlane.xlu1 %3159  ;;  %9105 = vlog2.f32 %v15483_v42  ;;  %v2597_v60 = vadd.f32 %v2596_v48, %v2595_v52  ;;  %v1815_v37 = vsel %vm633_vm0, %v1814_v3, -inf  ;;  %v12708_v5 = vpop.eup %9087  ;;  %v12714_v19 = vsel %vm633_vm0, %v3373_v34, 0.0 }
 0x915   : > { %v2576_v41 = vmul.f32 %v2560_v7, %v2416_v6  ;;  %v2466_v20 = vsub.f32 %v15487_v24, %v2446_v36  ;;  %9107 = vlog2.f32 %v3160_v39  ;;  %1816 = vmax.xlane.f32.xlu1 %v1815_v37  ;;  %v3265_v18 = vsub.f32 %v15488_v27, %v3238_v57  ;;  %v15491_v6 = vld [vmem:[#allocation216_spill] sm:$0xff] }
 0x916   : > { %v9090_v32 = vpop.eup %9089  ;;  %v2599_v50 = vadd.f32 %v12582_v63, %v2597_v60  ;;  %9109 = vrcp.f32 %v3160_v39  ;;  %v2418_v28 = vmul.f32 %v9086_v49, %v15489_v2  ;;  %5502 = vmax.xlane.f32.xlu0 %v5501_v31  ;;  %v3375_v47 = vmul.f32 %v3359_v62, %v12647_v22  ;;  %v15492_v63 = vld [vmem:[#allocation24_spill] sm:$0xff]  ;;  %v15495_v31 = vld [vmem:[#allocation258_spill] sm:$0xff] }
 0x917   : > { %v2600_v56 = vsel %vm633_vm0, %v2576_v41, 0.0  ;;  %v2562_v12 = vsub.f32 %v2466_v20, %v15490_v8  ;;  %v2450_v44 = vmul.f32 0.6931472, %v9090_v32  ;;  %v9092_v52 = vpop.eup %9091  ;;  %v3242_v34 = vmul.f32 0.6931472, %v12651_v54  ;;  %v15493_v39 = vld [vmem:[#allocation240_spill] sm:$0xff] }
 0x918   : > { %v3166_v42 = vpop.xlane.xlu1 %3165  ;;  %9111 = vrcp.f32 %v15491_v6  ;;  %v2601_v57 = vadd.f32 %v2600_v56, %v2599_v50  ;;  %v5504_v7 = vsel %vm633_vm0, %v12513_v0, -inf  ;;  %v3361_v49 = vsub.f32 %v3265_v18, %v15493_v39  ;;  %v15494_v60 = vld [vmem:[#allocation156_spill] sm:$0xff]  ;;  %v15496_v41 = vld [vmem:[#allocation131_spill] sm:$0xff]  ;;  %v15497_v50 = vld [vmem:[#allocation57_spill] sm:$0xff] }
 0x919   : > { %v2578_v48 = vmul.f32 %v2562_v12, %v2418_v28  ;;  %v2468_v51 = vsub.f32 %v15492_v63, %v2450_v44  ;;  %9113 = vlog2.f32 %v3166_v42  ;;  %v3219_v37 = vmul.f32 %v12632_v59, %v15494_v60  ;;  %v15498_v28 = vld [vmem:[#allocation25_spill] sm:$0xff]  ;;  %v15500_v63 = vld [vmem:[#allocation138_spill] sm:$0xff]  ;;  %v15501_v39 = vld [vmem:[#allocation248_spill] sm:$0xff] }
 0x91a   : > { %v9094_v36 = vpop.eup %9093  ;;  %v2603_v22 = vadd.f32 %v12590_v13, %v2601_v57  ;;  %9115 = vrcp.f32 %v3166_v42  ;;  %v2420_v43 = vmul.f32 %v9092_v52, %v15495_v31  ;;  %5505 = vmax.xlane.f32.xlu0 %v5504_v7  ;;  %v3267_v56 = vsub.f32 %v15497_v50, %v3242_v34  ;;  %v15499_v57 = vld [vmem:[#allocation260_spill] sm:$0xff]  ;;  %v15504_v31 = vld [vmem:[#allocation27_spill] sm:$0xff] }
 0x91b   : > { %v9096_v54 = vpop.eup %9095  ;;  %v2604_v62 = vsel %vm633_vm0, %v2578_v48, 0.0  ;;  %v2564_v24 = vsub.f32 %v2468_v51, %v15496_v41  ;;  %v2454_v20 = vmul.f32 0.6931472, %v9094_v36  ;;  %9117 = vlog2.f32 %v15491_v6 }
 0x91c   : > { %v3172_v32 = vpop.xlane.xlu1 %3171  ;;  %v9098_v27 = vpop.eup %9097  ;;  %v2605_v18 = vadd.f32 %v2604_v62, %v2603_v22  ;;  %v5507_v13 = vsel %vm633_vm0, %v12539_v26, -inf  ;;  %v12739_v59 = vsel %vm633_vm0, %v3375_v47, 0.0  ;;  %v3377_v44 = vmul.f32 %v3361_v49, %v3217_v30  ;;  %v15502_v30 = vld [vmem:[#allocation157_spill] sm:$0xff]  ;;  %v15503_v49 = vld [vmem:[#allocation218_spill] sm:$0xff] }
 0x91d   : > { %v2580_v2 = vmul.f32 %v2564_v24, %v2420_v43  ;;  %v2470_v8 = vsub.f32 %v15498_v28, %v2454_v20  ;;  %9119 = vlog2.f32 %v3172_v32  ;;  %v3246_v42 = vmul.f32 0.6931472, %v12680_v17 }
 0x91e   : > { %v9100_v12 = vpop.eup %9099  ;;  %9121 = vrcp.f32 %v3172_v32  ;;  %v2607_v52 = vadd.f32 %v12637_v46, %v2605_v18  ;;  %v2422_v48 = vmul.f32 %v9098_v27, %v15499_v57  ;;  %5508 = vmax.xlane.f32.xlu0 %v5507_v13  ;;  %v3363_v60 = vsub.f32 %v3267_v56, %v15501_v39  ;;  %v15505_v32 = vld [vmem:[#allocation58_spill] sm:$0xff]  ;;  %v15506_v56 = vld [vmem:[#allocation263_spill] sm:$0xff]  ;;  %v15507_v13 = vld [vmem:[#allocation229_spill] sm:$0xff] }
 0x91f   : > { %v12744_v34 = vpop.eup %9101  ;;  %v2608_v6 = vsel %vm633_vm0, %v2580_v2, 0.0  ;;  %v2566_v47 = vsub.f32 %v2470_v8, %v15500_v63  ;;  %v3232_v51 = vmul.f32 0.6931472, %v9100_v12  ;;  %v3221_v17 = vmul.f32 %v12664_v53, %v15502_v30 }
 0x920   : > { %v3178_v7 = vpop.xlane.xlu1 %3177  ;;  %v9104_v36 = vpop.eup %9103  ;;  %9123 = vrcp.f32 %v15503_v49  ;;  %v2609_v46 = vadd.f32 %v2608_v6, %v2607_v52  ;;  %v5510_v41 = vsel %vm633_vm0, %v12529_v1, -inf  ;;  %v12757_v20 = vsel %vm633_vm0, %v3377_v44, 0.0 }
 0x921   : > { %v9106_v22 = vpop.eup %9105  ;;  %v2582_v62 = vmul.f32 %v2566_v47, %v2422_v48  ;;  %v3262_v43 = vsub.f32 %v15504_v31, %v3232_v51  ;;  %9125 = vlog2.f32 %v3178_v7  ;;  %v3269_v27 = vsub.f32 %v15505_v32, %v3246_v42  ;;  %v15508_v48 = vld [vmem:[#allocation29_spill] sm:$0xff]  ;;  %v15509_v51 = vld [vmem:[#allocation256_spill] sm:$0xff]  ;;  %v15512_v31 = vld [vmem:[#allocation151_spill] sm:$0xff] }
 0x922   : > { %v9108_v24 = vpop.eup %9107  ;;  %9127 = vrcp.f32 %v3178_v7  ;;  %v2611_v53 = vadd.f32 %v12668_v58, %v2609_v46  ;;  %v3214_v18 = vmul.f32 %v9104_v36, %v15506_v56  ;;  %5511 = vmax.xlane.f32.xlu0 %v5510_v41  ;;  %v3250_v52 = vmul.f32 0.6931472, %v9096_v54  ;;  %v15510_v36 = vld [vmem:[#allocation159_spill] sm:$0xff]  ;;  %v15511_v54 = vld [vmem:[#allocation265_spill] sm:$0xff] }
 0x923   : > { %v9110_v50 = vpop.eup %9109  ;;  %v3358_v2 = vsub.f32 %v3262_v43, %v15507_v13  ;;  %v3236_v28 = vmul.f32 0.6931472, %v9108_v24  ;;  %v2612_v12 = vsel %vm633_vm0, %v2582_v62, 0.0  ;;  %9129 = vlog2.f32 %v15503_v49  ;;  %v15514_v32 = vld [vmem:[#allocation219_spill] sm:$0xff] }
 0x924   : > { %v3184_v8 = vpop.xlane.xlu1 %3183  ;;  %v2613_v44 = vadd.f32 %v2612_v12, %v2611_v53  ;;  %v5513_v42 = vsel %vm633_vm0, %v12555_v40, -inf  ;;  %v3379_v58 = vmul.f32 %v3363_v60, %v3219_v37  ;;  %v3365_v7 = vsub.f32 %v3269_v27, %v15509_v51  ;;  %v15513_v60 = vld [vmem:[#allocation60_spill] sm:$0xff]  ;;  %v15516_v12 = vld [vmem:[#allocation266_spill] sm:$0xff] }
 0x925   : > { %v12767_v6 = vpop.eup %9111  ;;  %v3374_v57 = vmul.f32 %v3358_v2, %v3214_v18  ;;  %v3264_v63 = vsub.f32 %v15508_v48, %v3236_v28  ;;  %9131 = vlog2.f32 %v3184_v8  ;;  %v3223_v39 = vmul.f32 %v12708_v5, %v15510_v36  ;;  %v15515_v18 = vld [vmem:[#allocation31_spill] sm:$0xff] }
 0x926   : > { %v9114_v47 = vpop.eup %9113  ;;  %v3216_v30 = vmul.f32 %v9110_v50, %v15511_v54  ;;  %v2614_v49 = vrot.slane %v2613_v44, 4  ;;  %9133 = vrcp.f32 %v3184_v8  ;;  %5514 = vmax.xlane.f32.xlu0 %v5513_v42  ;;  %v3271_v24 = vsub.f32 %v15513_v60, %v3250_v52 }
 0x927   : > { %v9116_v46 = vpop.eup %9115  ;;  %v3390_v62 = vsel %vm633_vm0, %v3374_v57, 0.0  ;;  %v3360_v43 = vsub.f32 %v3264_v63, %v15512_v31  ;;  %v3240_v41 = vmul.f32 0.6931472, %v9114_v47  ;;  %9135 = vrcp.f32 %v15514_v32  ;;  %v15517_v63 = vld [vmem:[#allocation52_spill] sm:$0xff] }
 0x928   : > { %v3190_v37 = vpop.xlane.xlu1 %3189  ;;  %v3391_v27 = vadd.f32 %v3390_v62, %v12714_v19  ;;  %v2615_v53 = vadd.f32 %v2614_v49, %v2613_v44  ;;  %v9118_v5 = vpop.eup %9117  ;;  %v3400_v50 = vsel %vm633_vm0, %v3379_v58, 0.0  ;;  %v3381_v28 = vmul.f32 %v3365_v7, %v3221_v17  ;;  %v15518_v58 = vld [vmem:[#allocation262_spill] sm:$0xff]  ;;  %v15520_v62 = vld [vmem:[#allocation160_spill] sm:$0xff] }
 0x929   : > { %v3376_v56 = vmul.f32 %v3360_v43, %v3216_v30  ;;  %v3266_v13 = vsub.f32 %v15515_v18, %v3240_v41  ;;  %9137 = vlog2.f32 %v3190_v37  ;;  %v3218_v42 = vmul.f32 %v9116_v46, %v15516_v12  ;;  %v15519_v30 = vld [vmem:[#allocation33_spill] sm:$0xff]  ;;  %v15524_v12 = vld [vmem:[#allocation62_spill] sm:$0xff] }
 0x92a   : > { %v9120_v2 = vpop.eup %9119  ;;  %v3393_v8 = vadd.f32 %v12739_v59, %v3391_v27  ;;  %v2616_v57 = vrot.slane %v2615_v53, 2  ;;  %9139 = vrcp.f32 %v3190_v37  ;;  %v3367_v51 = vsub.f32 %v3271_v24, %v15518_v58  ;;  %v15521_v41 = vld [vmem:[#allocation269_spill] sm:$0xff]  ;;  %v15522_v27 = vld [vmem:[#allocation56_spill] sm:$0xff] }
 0x92b   : > { %v9122_v52 = vpop.eup %9121  ;;  %v3394_v48 = vsel %vm633_vm0, %v3376_v56, 0.0  ;;  %v3362_v19 = vsub.f32 %v3266_v13, %v15517_v63  ;;  %v3244_v44 = vmul.f32 0.6931472, %v9120_v2  ;;  %9141 = vlog2.f32 %v15514_v32  ;;  %v15523_v13 = vld [vmem:[#allocation221_spill] sm:$0xff] }
 0x92c   : > { %v3196_v47 = vpop.xlane.xlu1 %3195  ;;  %v3395_v36 = vadd.f32 %v3394_v48, %v3393_v8  ;;  %v2617_v54 = vadd.f32 %v2616_v57, %v2615_v53  ;;  %v3254_v59 = vmul.f32 0.6931472, %v9106_v22  ;;  %v3225_v31 = vmul.f32 %v12744_v34, %v15520_v62  ;;  %v15525_v57 = vld [vmem:[#allocation35_spill] sm:$0xff] }
 0x92d   : > { %v12787_v17 = vpop.eup %9123  ;;  %v3378_v7 = vmul.f32 %v3362_v19, %v3218_v42  ;;  %v3268_v49 = vsub.f32 %v15519_v30, %v3244_v44  ;;  %9143 = vlog2.f32 %v3196_v47  ;;  %v3220_v37 = vmul.f32 %v9122_v52, %v15521_v41  ;;  %v15526_v44 = vld [vmem:[#allocation270_spill] sm:$0xff]  ;;  %v15529_v41 = vld [vmem:[#allocation37_spill] sm:$0xff] }
 0x92e   : > { %v9126_v46 = vpop.eup %9125  ;;  %v3397_v43 = vadd.f32 %v12757_v20, %v3395_v36  ;;  %v2618_v60 = vrot.slane %v2617_v54, 1  ;;  %9145 = vrcp.f32 %v3196_v47  ;;  %v3383_v18 = vmul.f32 %v3367_v51, %v3223_v39  ;;  %v15527_v51 = vld [vmem:[#allocation36_spill] sm:$0xff] }
 0x92f   : > { %v9128_v24 = vpop.eup %9127  ;;  %v3398_v32 = vsel %vm633_vm0, %v3378_v7, 0.0  ;;  %v3364_v53 = vsub.f32 %v3268_v49, %v15522_v27  ;;  %v3248_v56 = vmul.f32 0.6931472, %v9126_v46  ;;  %9147 = vrcp.f32 %v15523_v13  ;;  %v15531_v27 = vld [vmem:[#allocation44_spill] sm:$0xff] }
 0x930   : > { %v3960_v22 = vpop.xlane.xlu1 %3959  ;;  %v3399_v2 = vadd.f32 %v3398_v32, %v3397_v43  ;;  %v12797_v8 = vadd.f32 %v2618_v60, %v2617_v54  ;;  %v9130_v34 = vpop.eup %9129  ;;  %v3273_v20 = vsub.f32 %v15524_v12, %v3254_v59  ;;  %v3258_v63 = vmul.f32 0.6931472, %v9118_v5  ;;  %v15528_v59 = vld [vmem:[#allocation268_spill] sm:$0xff]  ;;  %v15530_v32 = vld [vmem:[#allocation223_spill] sm:$0xff] }
 0x931   : > { %v3380_v42 = vmul.f32 %v3364_v53, %v3220_v37  ;;  %v3270_v52 = vsub.f32 %v15525_v57, %v3248_v56  ;;  %9149 = vlog2.f32 %v3960_v22  ;;  %v3222_v58 = vmul.f32 %v9128_v24, %v15526_v44  ;;  %v15533_v12 = vld [vmem:[#allocation155_spill] sm:$0xff]  ;;  %v15534_v44 = vld [vmem:[#allocation174_spill] sm:$0xff] }
 0x932   : > { %v9132_v48 = vpop.eup %9131  ;;  %v3401_v19 = vadd.f32 %v3400_v50, %v3399_v2  ;;  %v2620_v47 = vsub.f32 0.0, %v12797_v8  ;;  %9151 = vrcp.f32 %v3960_v22  ;;  %v3369_v49 = vsub.f32 %v3273_v20, %v15528_v59  ;;  %v6939_v8 = vld [vmem:[%s9818_s23 + $0x3b8] sm:$0xff] }
 0x933   : > { %v3402_v39 = vsel %vm633_vm0, %v3380_v42, 0.0  ;;  %v3366_v36 = vsub.f32 %v3270_v52, %v15527_v51  ;;  %v3252_v54 = vmul.f32 0.6931472, %v9132_v48  ;;  %v9134_v30 = vpop.eup %9133  ;;  %9153 = vlog2.f32 %v15523_v13  ;;  %v15532_v13 = vld [vmem:[#allocation271_spill] sm:$0xff] }
 0x934   : > { %v3966_v7 = vpop.xlane.xlu1 %3965  ;;  %v3403_v46 = vadd.f32 %v3402_v39, %v3401_v19  ;;  %v2621_v5 = vsel %vm633_vm0, %v2620_v47, -inf  ;;  %v12810_v50 = vpop.eup %9135  ;;  %v3404_v62 = vsel %vm633_vm0, %v3381_v28, 0.0  ;;  %v3408_v24 = vsel %vm633_vm0, %v3383_v18, 0.0 }
 0x935   : > { %v3382_v43 = vmul.f32 %v3366_v36, %v3222_v58  ;;  %v3272_v37 = vsub.f32 %v15529_v41, %v3252_v54  ;;  %9155 = vlog2.f32 %v3966_v7  ;;  %2622 = vmax.xlane.f32.xlu1 %v2621_v5  ;;  %v3275_v53 = vsub.f32 %v15531_v27, %v3258_v63  ;;  %v15535_v63 = vld [vmem:[#allocation40_spill] sm:$0xff]  ;;  %v15536_v54 = vld [vmem:[#allocation73_spill] sm:$0xff] }
 0x936   : > { %v9138_v60 = vpop.eup %9137  ;;  %9157 = vrcp.f32 %v15530_v32  ;;  %v3405_v56 = vadd.f32 %v3404_v62, %v3403_v46  ;;  %v3224_v2 = vmul.f32 %v9134_v30, %v15532_v13  ;;  %v4036_v52 = vmul.f32 0.6931472, %v9130_v34  ;;  %v15537_v34 = vld [vmem:[#allocation272_spill] sm:$0xff]  ;;  %v15538_v62 = vld [vmem:[#allocation158_spill] sm:$0xff] }
 0x937   : > { %v3406_v22 = vsel %vm633_vm0, %v3382_v43, 0.0  ;;  %v3368_v20 = vsub.f32 %v3272_v37, %v15533_v12  ;;  %v3256_v28 = vmul.f32 0.6931472, %v9138_v60  ;;  %v9140_v57 = vpop.eup %9139  ;;  %9159 = vlog2.f32 %v15530_v32  ;;  %v15539_v37 = vld [vmem:[#allocation46_spill] sm:$0xff]  ;;  %v15540_v32 = vld [vmem:[#allocation224_spill] sm:$0xff] }
 0x938   : > { %v3972_v42 = vpop.xlane.xlu1 %3971  ;;  %v3385_v48 = vmul.f32 %v3369_v49, %v3225_v31  ;;  %v3407_v19 = vadd.f32 %v3406_v22, %v3405_v56  ;;  %v9142_v18 = vpop.eup %9141  ;;  %v3371_v58 = vsub.f32 %v3275_v53, %v15534_v44  ;;  %v3227_v30 = vmul.f32 %v12767_v6, %v15536_v54 }
 0x939   : > { %v3384_v39 = vmul.f32 %v3368_v20, %v3224_v2  ;;  %v3274_v51 = vsub.f32 %v15535_v63, %v3256_v28  ;;  %9161 = vlog2.f32 %v3972_v42  ;;  %v3226_v5 = vmul.f32 %v9140_v57, %v15537_v34  ;;  %v15542_v20 = vld [vmem:[#allocation273_spill] sm:$0xff]  ;;  %v15546_v34 = vld [vmem:[#allocation162_spill] sm:$0xff] }
 0x93a   : > { %v9144_v36 = vpop.eup %9143  ;;  %v3409_v59 = vadd.f32 %v3408_v24, %v3407_v19  ;;  %9163 = vrcp.f32 %v3966_v7  ;;  %v4067_v60 = vsub.f32 %v15539_v37, %v4036_v52  ;;  %v3412_v27 = vsel %vm633_vm0, %v3385_v48, 0.0  ;;  %v15541_v24 = vld [vmem:[#allocation42_spill] sm:$0xff]  ;;  %v15543_v57 = vld [vmem:[#allocation161_spill] sm:$0xff]  ;;  %v15548_v37 = vld [vmem:[#allocation72_spill] sm:$0xff] }
 0x93b   : > { %v3410_v46 = vsel %vm633_vm0, %v3384_v39, 0.0  ;;  %v3370_v31 = vsub.f32 %v3274_v51, %v15538_v62  ;;  %v3260_v49 = vmul.f32 0.6931472, %v9144_v36  ;;  %v9146_v41 = vpop.eup %9145  ;;  %9165 = vrcp.f32 %v15540_v32  ;;  %v15544_v39 = vld [vmem:[#allocation169_spill] sm:$0xff] }
 0x93c   : > { %v3978_v43 = vpop.xlane.xlu1 %3977  ;;  %v3411_v53 = vadd.f32 %v3410_v46, %v3409_v59  ;;  %v12831_v56 = vpop.eup %9147  ;;  %v3387_v6 = vmul.f32 %v3371_v58, %v3227_v30  ;;  %v3228_v28 = vmul.f32 %v9146_v41, %v15542_v20  ;;  %v4163_v63 = vsub.f32 %v4067_v60, %v15544_v39  ;;  %v15545_v30 = vld [vmem:[#allocation45_spill] sm:$0xff]  ;;  %v15552_v20 = vld [vmem:[#allocation67_spill] sm:$0xff] }
 0x93d   : > { %v3386_v7 = vmul.f32 %v3370_v31, %v3226_v5  ;;  %v3276_v22 = vsub.f32 %v15541_v24, %v3260_v49  ;;  %9167 = vlog2.f32 %v3978_v43  ;;  %v4040_v58 = vmul.f32 0.6931472, %v9142_v18  ;;  %v15547_v49 = vld [vmem:[#allocation274_spill] sm:$0xff] }
 0x93e   : > { %v9150_v13 = vpop.eup %9149  ;;  %9169 = vrcp.f32 %v3972_v42  ;;  %v3413_v2 = vadd.f32 %v3412_v27, %v3411_v53  ;;  %v3416_v54 = vsel %vm633_vm0, %v3387_v6, 0.0  ;;  %v4019_v5 = vmul.f32 %v12787_v17, %v15546_v34  ;;  %v15549_v53 = vld [vmem:[#allocation6_spill] sm:$0xff]  ;;  %v15550_v6 = vld [vmem:[#allocation49_spill] sm:$0xff] }
 0x93f   : > { %v3414_v12 = vsel %vm633_vm0, %v3386_v7, 0.0  ;;  %v3372_v52 = vsub.f32 %v3276_v22, %v15543_v57  ;;  %v4038_v19 = vmul.f32 0.6931472, %v9150_v13  ;;  %v9152_v48 = vpop.eup %9151  ;;  %9171 = vlog2.f32 %v15540_v32 }
 0x940   : > { %v3984_v44 = vpop.xlane.xlu1 %3983  ;;  %v3415_v51 = vadd.f32 %v3414_v12, %v3413_v2  ;;  %v9154_v36 = vpop.eup %9153  ;;  %v4020_v41 = vmul.f32 %v9152_v48, %v15547_v49  ;;  %v4069_v7 = vsub.f32 %v15550_v6, %v4040_v58  ;;  %v4179_v13 = vmul.f32 %v4163_v63, %v4019_v5  ;;  %v15555_v63 = vld [vmem:[#allocation71_spill] sm:$0xff]  ;;  %v15556_v49 = vld [vmem:[#allocation64_spill] sm:$0xff] }
 0x941   : > { %v3388_v42 = vmul.f32 %v3372_v52, %v3228_v28  ;;  %v4068_v59 = vsub.f32 %v15545_v30, %v4038_v19  ;;  %9173 = vlog2.f32 %v3984_v44  ;;  %v15553_v19 = vld [vmem:[#allocation163_spill] sm:$0xff] }
 0x942   : > { %v9156_v46 = vpop.eup %9155  ;;  %9175 = vrcp.f32 %v3978_v43  ;;  %v3417_v62 = vadd.f32 %v3416_v54, %v3415_v51  ;;  %v15551_v43 = vld [vmem:[#allocation48_spill] sm:$0xff]  ;;  %v4165_v28 = vsub.f32 %v4069_v7, %v15552_v20  ;;  %v4021_v48 = vmul.f32 %v12810_v50, %v15553_v19  ;;  %v15554_v51 = vld [vmem:[#allocation7_spill] sm:$0xff] }
 0x943   : > { %v12843_v31 = vpop.eup %9157  ;;  %v4164_v18 = vsub.f32 %v4068_v59, %v15548_v37  ;;  %v4042_v60 = vmul.f32 0.6931472, %v9156_v46  ;;  %v3418_v27 = vsel %vm633_vm0, %v3388_v42, 0.0  ;;  %9177 = vlog2.f32 %v15549_v53  ;;  %v15562_v19 = vld [vmem:[#allocation267_spill] sm:$0xff] }
 0x944   : > { %v3990_v32 = vpop.xlane.xlu1 %3989  ;;  %v3419_v24 = vadd.f32 %v3418_v27, %v3417_v62  ;;  %v9160_v22 = vpop.eup %9159  ;;  %v4044_v46 = vmul.f32 0.6931472, %v9154_v36  ;;  %v4195_v34 = vsel %vm633_vm0, %v4179_v13, 0.0  ;;  %v4181_v62 = vmul.f32 %v4165_v28, %v4021_v48  ;;  %v15559_v36 = vld [vmem:[#allocation165_spill] sm:$0xff] }
 0x945   : > { %v4180_v17 = vmul.f32 %v4164_v18, %v4020_v41  ;;  %v4070_v2 = vsub.f32 %v15551_v43, %v4042_v60  ;;  %9179 = vlog2.f32 %v3990_v32  ;;  %v15557_v41 = vld [vmem:[#allocation275_spill] sm:$0xff]  ;;  %v15558_v60 = vld [vmem:[#allocation9_spill] sm:$0xff]  ;;  %v4023_v13 = vmul.f32 %v12831_v56, %v15559_v36 }
 0x946   : > { %v9162_v12 = vpop.eup %9161  ;;  %9181 = vrcp.f32 %v15549_v53  ;;  %v3420_v57 = vrot.slane %v3419_v24, 4  ;;  %v15560_v43 = vld [vmem:[#allocation65_spill] sm:$0xff]  ;;  %v4198_v28 = vsel %vm633_vm0, %v4181_v62, 0.0  ;;  %v15564_v62 = vld [vmem:[#allocation175_spill] sm:$0xff] }
 0x947   : > { %v9164_v52 = vpop.eup %9163  ;;  %v4046_v39 = vmul.f32 0.6931472, %v9162_v12  ;;  %9183 = vrcp.f32 %v3984_v44  ;;  %v4166_v54 = vsub.f32 %v4070_v2, %v15555_v63  ;;  %v4196_v42 = vsel %vm633_vm0, %v4180_v17, 0.0 }
 0x948   : > { %v3996_v58 = vpop.xlane.xlu1 %3995  ;;  %9185 = vlog2.f32 %v15554_v51  ;;  %v3421_v30 = vadd.f32 %v3420_v57, %v3419_v24  ;;  %v12858_v59 = vpop.eup %9165  ;;  %v4022_v44 = vmul.f32 %v9164_v52, %v15557_v41  ;;  %v4197_v6 = vadd.f32 %v4196_v42, %v4195_v34  ;;  %v15561_v57 = vld [vmem:[#allocation76_spill] sm:$0xff] }
 0x949   : > { %9187 = vlog2.f32 %v3996_v58  ;;  %v4072_v50 = vsub.f32 %v15556_v49, %v4046_v39  ;;  %v4071_v2 = vsub.f32 %v15560_v43, %v4044_v46  ;;  %v4048_v12 = vmul.f32 0.6931472, %v9160_v22 }
 0x94a   : > { %v9168_v5 = vpop.eup %9167  ;;  %v3422_v37 = vrot.slane %v3421_v30, 2  ;;  %9189 = vlog2.f32 %v15558_v60  ;;  %v4182_v7 = vmul.f32 %v4166_v54, %v4022_v44  ;;  %v4199_v54 = vadd.f32 %v4198_v28, %v4197_v6  ;;  %v15566_v44 = vld [vmem:[#allocation69_spill] sm:$0xff]  ;;  %v15567_v6 = vld [vmem:[#allocation12_spill] sm:$0xff] }
 0x94b   : > { %v9170_v18 = vpop.eup %9169  ;;  %v4050_v27 = vmul.f32 0.6931472, %v9168_v5  ;;  %9191 = vrcp.f32 %v3990_v32  ;;  %v4168_v52 = vsub.f32 %v4072_v50, %v15561_v57  ;;  %v15565_v50 = vld [vmem:[#allocation166_spill] sm:$0xff]  ;;  %v15568_v28 = vld [vmem:[#allocation176_spill] sm:$0xff] }
 0x94c   : > { %v4002_v53 = vpop.xlane.xlu1 %4001  ;;  %v3423_v24 = vadd.f32 %v3422_v37, %v3421_v30  ;;  %v9172_v17 = vpop.eup %9171  ;;  %v15563_v30 = vld [vmem:[#allocation173_spill] sm:$0xff]  ;;  %v4200_v56 = vsel %vm633_vm0, %v4182_v7, 0.0  ;;  %v4025_v41 = vmul.f32 %v12843_v31, %v15565_v50  ;;  %v4073_v37 = vsub.f32 %v15566_v44, %v4048_v12  ;;  %v15572_v44 = vld [vmem:[#allocation2_spill] sm:$0xff] }
 0x94d   : > { %9193 = vlog2.f32 %v4002_v53  ;;  %v4074_v48 = vsub.f32 %v15562_v19, %v4050_v27  ;;  %v4024_v34 = vmul.f32 %v9170_v18, %v15563_v30  ;;  %v15571_v30 = vld [vmem:[#allocation177_spill] sm:$0xff] }
 0x94e   : > { %v9174_v20 = vpop.eup %9173  ;;  %v3424_v39 = vrot.slane %v3423_v24, 1  ;;  %9195 = vrcp.f32 %v15554_v51  ;;  %v4052_v51 = vmul.f32 0.6931472, %v9172_v17 }
 0x94f   : > { %v9176_v63 = vpop.eup %9175  ;;  %v4054_v32 = vmul.f32 0.6931472, %v9174_v20  ;;  %9197 = vrcp.f32 %v3996_v58  ;;  %v4170_v36 = vsub.f32 %v4074_v48, %v15567_v6  ;;  %v4184_v18 = vmul.f32 %v4168_v52, %v4024_v34  ;;  %v15569_v52 = vld [vmem:[#allocation14_spill] sm:$0xff]  ;;  %v15573_v6 = vld [vmem:[#allocation167_spill] sm:$0xff] }
 0x950   : > { %v4106_v42 = vpop.permute.xlu1 %4105  ;;  %v12873_v46 = vadd.f32 %v3424_v39, %v3423_v24  ;;  %v9178_v5 = vpop.eup %9177  ;;  %9199 = vrcp.f32 %v15558_v60  ;;  %v4026_v57 = vmul.f32 %v9176_v63, %v15568_v28  ;;  %v15570_v60 = vld [vmem:[#allocation82_spill] sm:$0xff] }
 0x951   : > { %v4167_v22 = vsub.f32 %v4071_v2, %v4106_v42  ;;  %v4076_v49 = vsub.f32 %v15564_v62, %v4054_v32  ;;  %v4201_v2 = vadd.f32 %v4200_v56, %v4199_v54  ;;  %9201 = vrcp.f32 %v4002_v53 }
 0x952   : > { %v9180_v27 = vpop.eup %9179  ;;  %v3426_v58 = vsub.f32 0.0, %v12873_v46  ;;  %v4075_v32 = vsub.f32 %v15570_v60, %v4052_v51  ;;  %v4056_v54 = vmul.f32 0.6931472, %v9178_v5  ;;  %v4204_v53 = vsel %vm633_vm0, %v4184_v18, 0.0 }
 0x953   : > { %v4183_v43 = vmul.f32 %v4167_v22, %v4023_v13  ;;  %v9182_v7 = vpop.eup %9181  ;;  %v4058_v24 = vmul.f32 0.6931472, %v9180_v27  ;;  %v4172_v48 = vsub.f32 %v4076_v49, %v15569_v52  ;;  %v4186_v56 = vmul.f32 %v4170_v36, %v4026_v57  ;;  %v15575_v36 = vld [vmem:[#allocation226_spill] sm:$0xff] }
 0x954   : > { %v4116_v20 = vpop.permute.xlu1 %4115  ;;  %v9184_v19 = vpop.eup %9183  ;;  %v3427_v13 = vsel %vm633_vm0, %v3426_v58, -inf }
 0x955   : > { %v4202_v31 = vsel %vm633_vm0, %v4183_v43, 0.0  ;;  %v4169_v17 = vsub.f32 %v4073_v37, %v4116_v20  ;;  %v9186_v12 = vpop.eup %9185  ;;  %3428 = vmax.xlane.f32.xlu1 %v3427_v13  ;;  %v4078_v63 = vsub.f32 %v15571_v30, %v4058_v24  ;;  %v4028_v37 = vmul.f32 %v9184_v19, %v15572_v44  ;;  %v15574_v20 = vld [vmem:[#allocation78_spill] sm:$0xff] }
 0x956   : > { %v4203_v39 = vadd.f32 %v4202_v31, %v4201_v2  ;;  %v9188_v42 = vpop.eup %9187  ;;  %v4027_v43 = vmul.f32 %v12858_v59, %v15573_v6  ;;  %v4077_v24 = vsub.f32 %v15574_v20, %v4056_v54  ;;  %v4060_v18 = vmul.f32 0.6931472, %v9186_v12  ;;  %v15576_v31 = vld [vmem:[#allocation93_spill] sm:$0xff] }
 0x957   : > { %v4185_v34 = vmul.f32 %v4169_v17, %v4025_v41  ;;  %v4062_v22 = vmul.f32 0.6931472, %v9188_v42  ;;  %v9190_v27 = vpop.eup %9189  ;;  %v4188_v28 = vmul.f32 %v4172_v48, %v4028_v37  ;;  %v4174_v57 = vsub.f32 %v4078_v63, %v15575_v36  ;;  %v15578_v54 = vld [vmem:[#allocation77_spill] sm:$0xff] }
 0x958   : > { %v4205_v62 = vadd.f32 %v4204_v53, %v4203_v39  ;;  %v4126_v50 = vpop.permute.xlu1 %4125  ;;  %v9192_v5 = vpop.eup %9191  ;;  %v4208_v19 = vsel %vm633_vm0, %v4186_v56, 0.0  ;;  %v15580_v56 = vld [vmem:[#allocation227_spill] sm:$0xff]  ;;  %v15581_v37 = vld [vmem:[#allocation97_spill] sm:$0xff] }
 0x959   : > { %v4206_v49 = vsel %vm633_vm0, %v4185_v34, 0.0  ;;  %v4171_v51 = vsub.f32 %v4075_v32, %v4126_v50  ;;  %v4080_v17 = vsub.f32 %v15576_v31, %v4062_v22  ;;  %v15577_v32 = vld [vmem:[#allocation170_spill] sm:$0xff]  ;;  %v4030_v48 = vmul.f32 %v9192_v5, %v15578_v54  ;;  %v15583_v36 = vld [vmem:[#allocation101_spill] sm:$0xff] }
 0x95a   : > { %v4207_v2 = vadd.f32 %v4206_v49, %v4205_v62  ;;  %v9194_v41 = vpop.eup %9193  ;;  %v4029_v30 = vmul.f32 %v9182_v7, %v15577_v32  ;;  %v4212_v63 = vsel %vm633_vm0, %v4188_v28, 0.0  ;;  %v15579_v62 = vld [vmem:[#allocation86_spill] sm:$0xff]  ;;  %v4064_v50 = vmul.f32 0.6931472, %v9190_v27 }
 0x95b   : > { %v4187_v13 = vmul.f32 %v4171_v51, %v4027_v43  ;;  %v4066_v52 = vmul.f32 0.6931472, %v9194_v41  ;;  %v9196_v42 = vpop.eup %9195  ;;  %v4079_v22 = vsub.f32 %v15579_v62, %v4060_v18  ;;  %v4176_v44 = vsub.f32 %v4080_v17, %v15580_v56  ;;  %v15584_v18 = vld [vmem:[#allocation164_spill] sm:$0xff] }
 0x95c   : > { %v4209_v39 = vadd.f32 %v4208_v19, %v4207_v2  ;;  %v4136_v60 = vpop.permute.xlu1 %4135  ;;  %v9198_v12 = vpop.eup %9197  ;;  %v4190_v43 = vmul.f32 %v4174_v57, %v4030_v48  ;;  %v4081_v27 = vsub.f32 %v15584_v18, %v4064_v50  ;;  %v6877_v18 = vld [vmem:[%s9818_s23 + $0x2c8] sm:$0xff] }
 0x95d   : > { %v4210_v59 = vsel %vm633_vm0, %v4187_v13, 0.0  ;;  %v4173_v53 = vsub.f32 %v4077_v24, %v4136_v60  ;;  %v4082_v49 = vsub.f32 %v15581_v37, %v4066_v52  ;;  %v9200_v20 = vpop.eup %9199  ;;  %v15582_v24 = vld [vmem:[#allocation171_spill] sm:$0xff]  ;;  %v4032_v31 = vmul.f32 %v9198_v12, %v15583_v36  ;;  %v6879_v36 = vld [vmem:[%s9818_s23 + $0x2d8] sm:$0xff] }
 0x95e   : > { %v4211_v34 = vadd.f32 %v4210_v59, %v4209_v39  ;;  %v4031_v5 = vmul.f32 %v9196_v42, %v15582_v24  ;;  %v9202_v28 = vpop.eup %9201  ;;  %v15585_v13 = vld [vmem:[#allocation231_spill] sm:$0xff]  ;;  %v4216_v52 = vsel %vm633_vm0, %v4190_v43, 0.0 }
 0x95f   : > { %v4189_v6 = vmul.f32 %v4173_v53, %v4029_v30  ;;  %v4178_v17 = vsub.f32 %v4082_v49, %v15585_v13  ;;  %v4192_v57 = vmul.f32 %v4176_v44, %v4032_v31  ;;  %v15586_v30 = vld [vmem:[#allocation172_spill] sm:$0xff]  ;;  %v6881_v24 = vld [vmem:[%s9818_s23 + $0x2e8] sm:$0xff] }
 0x960   : > { %v4213_v51 = vadd.f32 %v4212_v63, %v4211_v34  ;;  %v4146_v2 = vpop.permute.xlu1 %4145  ;;  %v4033_v42 = vmul.f32 %v9200_v20, %v15586_v30  ;;  %v15587_v53 = vld [vmem:[#allocation84_spill] sm:$0xff]  ;;  %v6873_v30 = vld [vmem:[%s9818_s23 + $0x2a8] sm:$0xff] }
 0x961   : > { %v4214_v7 = vsel %vm633_vm0, %v4189_v6, 0.0  ;;  %v4175_v41 = vsub.f32 %v4079_v22, %v4146_v2  ;;  %v4034_v54 = vmul.f32 %v9202_v28, %v15587_v53  ;;  %v4220_v63 = vsel %vm633_vm0, %v4192_v57, 0.0  ;;  %v6882_v2 = vld [vmem:[%s9818_s23 + $0x2f0] sm:$0xff] }
 0x962   : > { %v4215_v19 = vadd.f32 %v4214_v7, %v4213_v51  ;;  %v6883_v51 = vld [vmem:[%s9818_s23 + $0x2f8] sm:$0xff]  ;;  %v6878_v28 = vld [vmem:[%s9818_s23 + $0x2d0] sm:$0xff] }
 0x963   : > { %v4191_v39 = vmul.f32 %v4175_v41, %v4031_v5  ;;  %v4194_v34 = vmul.f32 %v4178_v17, %v4034_v54  ;;  %8040 = vmatprep.subr.mxu0 %v6883_v51  ;;  %v6880_v5 = vld [vmem:[%s9818_s23 + $0x2e0] sm:$0xff] }
 0x964   : > { %v4217_v60 = vadd.f32 %v4216_v52, %v4215_v19  ;;  %v4156_v59 = vpop.permute.xlu1 %4155  ;;  %8041 = vmatpush3.msra.mxu0 %v6883_v51  ;;  %v6876_v17 = vld [vmem:[%s9818_s23 + $0x2c0] sm:$0xff]  ;;  %v6875_v52 = vld [vmem:[%s9818_s23 + $0x2b8] sm:$0xff]  ;;  %v12960_v51 = vld [vmem:[%s14494_s2 + $0x8] sm:$0xff] }
 0x965   : > { %v4218_v32 = vsel %vm633_vm0, %v4191_v39, 0.0  ;;  %v4177_v48 = vsub.f32 %v4081_v27, %v4156_v59  ;;  %v4224_v44 = vsel %vm633_vm0, %v4194_v34, 0.0  ;;  %8042 = vmatprep.subr.mxu0 %v6882_v2  ;;  %v15588_v27 = vld [vmem:[#allocation195_spill] sm:$0xff]  ;;  %v15589_v39 = vld [vmem:[#allocation198_spill] sm:$0xff]  ;;  %v15590_v59 = vld [vmem:[#allocation200_spill] sm:$0xff] }
 0x966   : > { %v4219_v12 = vadd.f32 %v4218_v32, %v4217_v60  ;;  %8043 = vmatpush3.msra.mxu0 %v6882_v2  ;;  %v4668_v13 = vsel %vm633_vm0, %v15588_v27, -inf  ;;  %v4674_v57 = vsel %vm633_vm0, %v15589_v39, -inf  ;;  %v6874_v60 = vld [vmem:[%s9818_s23 + $0x2b0] sm:$0xff]  ;;  %v4680_v32 = vsel %vm633_vm0, %v15590_v59, -inf  ;;  %v6872_v54 = vld [vmem:[%s9818_s23 + $0x2a0] sm:$0xff] }
 0x967   : > { %v4193_v62 = vmul.f32 %v4177_v48, %v4033_v42  ;;  %8044 = vmatprep.subr.mxu0 %v6881_v24  ;;  %v15591_v42 = vld [vmem:[#allocation201_spill] sm:$0xff]  ;;  %v6914_v2 = vld [vmem:[%s9818_s23 + $0x370] sm:$0xff] }
 0x968   : > { %v4221_v22 = vadd.f32 %v4220_v63, %v4219_v12  ;;  %8045 = vmatpush3.msra.mxu0 %v6881_v24  ;;  %v4686_v53 = vsel %vm633_vm0, %v15591_v42, -inf  ;;  %v6871_v48 = vld [vmem:[%s9818_s23 + $0x298] sm:$0xff]  ;;  %v15592_v12 = vld [vmem:[#allocation204_spill] sm:$0xff] }
 0x969   : > { %v4222_v50 = vsel %vm633_vm0, %v4193_v62, 0.0  ;;  %8046 = vmatprep.subr.mxu0 %v6880_v5  ;;  %v4692_v34 = vsel %vm633_vm0, %v15592_v12, -inf  ;;  %v6870_v63 = vld [vmem:[%s9818_s23 + $0x290] sm:$0xff]  ;;  %v6869_v62 = vld [vmem:[%s9818_s23 + $0x288] sm:$0xff] }
 0x96a   : > { %v4223_v56 = vadd.f32 %v4222_v50, %v4221_v22  ;;  %8047 = vmatpush3.msra.mxu0 %v6880_v5  ;;  %v15593_v22 = vld [vmem:[#allocation206_spill] sm:$0xff]  ;;  %v12976_v5 = vld [vmem:[%s14494_s2 + $0x18] sm:$0xff] }
 0x96b   : > { %8048 = vmatprep.subr.mxu0 %v6879_v36  ;;  %v4698_v50 = vsel %vm633_vm0, %v15593_v22, -inf }
 0x96c   : > { %v4225_v37 = vadd.f32 %v4224_v44, %v4223_v56  ;;  %8049 = vmatpush3.msra.mxu0 %v6879_v36  ;;  %v6868_v56 = vld [vmem:[%s9818_s23 + $0x280] sm:$0xff] }
 0x96d   : > { %8050 = vmatprep.subr.mxu0 %v6878_v28  ;;  %v6912_v36 = vld [vmem:[%s9818_s23 + $0x360] sm:$0xff] }
 0x96e   : > { %v4226_v49 = vrot.slane %v4225_v37, 4  ;;  %8051 = vmatpush3.msra.mxu0 %v6878_v28  ;;  %v12983_v28 = vld [vmem:[%s14494_s2 + $0x20] sm:$0xff] }
 0x96f   : > { %8052 = vmatprep.subr.mxu0 %v6877_v18 }
 0x970   : > { %v4227_v6 = vadd.f32 %v4226_v49, %v4225_v37  ;;  %8053 = vmatpush3.msra.mxu0 %v6877_v18  ;;  %v6915_v37 = vld [vmem:[%s9818_s23 + $0x378] sm:$0xff]  ;;  %v12990_v18 = vld [vmem:[%s14494_s2 + $0x28] sm:$0xff] }
 0x971   : > { %8054 = vmatprep.subr.mxu0 %v6876_v17 }
 0x972   : > { %v4228_v43 = vrot.slane %v4227_v6, 2  ;;  %8055 = vmatpush3.msra.mxu0 %v6876_v17  ;;  %v6910_v17 = vld [vmem:[%s9818_s23 + $0x350] sm:$0xff] }
 0x973   : > { %8056 = vmatprep.subr.mxu0 %v6875_v52 }
 0x974   : > { %v4229_v20 = vadd.f32 %v4228_v43, %v4227_v6  ;;  %8057 = vmatpush3.msra.mxu0 %v6875_v52  ;;  %v15594_v6 = vld [vmem:[#allocation208_spill] sm:$0xff] }
 0x975   : > { %8058 = vmatprep.subr.mxu0 %v6874_v60  ;;  %v4704_v43 = vsel %vm633_vm0, %v15594_v6, -inf  ;;  %v12997_v52 = vld [vmem:[%s14494_s2 + $0x30] sm:$0xff] }
 0x976   : > { %v4230_v7 = vrot.slane %v4229_v20, 1  ;;  %8059 = vmatpush3.msra.mxu0 %v6874_v60  ;;  %v6909_v60 = vld [vmem:[%s9818_s23 + $0x348] sm:$0xff] }
 0x977   : > { %8060 = vmatprep.subr.mxu0 %v6873_v30 }
 0x978   : > { %v12922_v41 = vadd.f32 %v4230_v7, %v4229_v20  ;;  %8061 = vmatpush3.msra.mxu0 %v6873_v30  ;;  %v12967_v20 = vld [vmem:[%s14494_s2 + $0x10] sm:$0xff]  ;;  %v13006_v30 = vld [vmem:[%s14494_s2 + $0x38] sm:$0xff] }
 0x979   : > { %8062 = vmatprep.subr.mxu0 %v6872_v54  ;;  %v15595_v7 = vld [vmem:[#allocation4_spill] sm:$0xff] }
 0x97a   : > { %v4232_v31 = vsub.f32 0.0, %v12922_v41  ;;  %8063 = vmatpush3.msra.mxu0 %v6872_v54  ;;  %v4710_v24 = vsel %vm633_vm0, %v15595_v7, -inf  ;;  %v13020_v54 = vld [vmem:[%s14494_s2 + $0x48] sm:$0xff] }
 0x97b   : > { %8064 = vmatprep.subr.mxu0 %v6871_v48 }
 0x97c   : > { %v4233_v19 = vsel %vm633_vm0, %v4232_v31, -inf  ;;  %8065 = vmatpush3.msra.mxu0 %v6871_v48 }
 0x97d   : > { %4234 = vmax.xlane.f32.xlu1 %v4233_v19  ;;  %8066 = vmatprep.subr.mxu0 %v6870_v63  ;;  %v6911_v19 = vld [vmem:[%s9818_s23 + $0x358] sm:$0xff] }
 0x97e   : > { %8067 = vmatpush3.msra.mxu0 %v6870_v63  ;;  %v13029_v63 = vld [vmem:[%s14494_s2 + $0x50] sm:$0xff] }
 0x97f   : > { %8068 = vmatprep.subr.mxu0 %v6869_v62 }
 0x980   : > { %8069 = vmatpush3.msra.mxu0 %v6869_v62 }
 0x981   : > { %4669 = vmax.xlane.f32.xlu1 %v4668_v13  ;;  %8070 = vmatprep.subr.mxu0 %v6868_v56 }
 0x982   : > { %8071 = vmatpush3.msra.mxu0 %v6868_v56  ;;  %v13035_v56 = vpop.xlane.xlu0 %4762 }
 0x983   : > { %8073 = vmatmul.mubr.f32.vlgmr.msra.gmra.mxu0 %v12960_v51  ;;  %8152 = vmatprep.subr.mxu0 %v6915_v37  ;;  %15596 = vst [vmem:[#allocation107_spill] sm:$0xff] %v13035_v56 }
 0x984   : > { %8153 = vmatpush3.msra.mxu0 %v6915_v37  ;;  %8075 = vmatprep.mubr.f32.mxu0 %v12967_v20  ;;  %v6904_v37 = vld [vmem:[%s9818_s23 + $0x320] sm:$0xff] }
 0x985   : > { %4675 = vmax.xlane.f32.xlu1 %v4674_v57  ;;  %8154 = vmatprep.subr.mxu0 %v6914_v2 }
 0x986   : > { %8155 = vmatpush3.msra.mxu0 %v6914_v2  ;;  %v6902_v2 = vld [vmem:[%s9818_s23 + $0x310] sm:$0xff] }
 0x987   : > { %8076 = vmatmul.mubr.f32.gmra.mxu0 %v12976_v5 }
 0x988   : > { %8078 = vmatprep.mubr.f32.mxu0 %v12983_v28 }
 0x989   : > { %4681 = vmax.xlane.f32.xlu1 %v4680_v32 }
 0x98b   : > { %8079 = vmatmul.mubr.f32.gmra.mxu0 %v12990_v18 }
 0x98c   : > { %8081 = vmatprep.mubr.f32.mxu0 %v12997_v52 }
 0x98d   : > { %4687 = vmax.xlane.f32.xlu1 %v4686_v53  ;;  %v6908_v53 = vld [vmem:[%s9818_s23 + $0x340] sm:$0xff] }
 0x98f   : > { %8082 = vmatmul.mubr.f32.gmra.mxu0 %v13006_v30 }
 0x990   : > { %8084 = vmatprep.mubr.f32.mxu0 %v13013_v29 }
 0x991   : > { %4693 = vmax.xlane.f32.xlu1 %v4692_v34  ;;  %v6906_v34 = vld [vmem:[%s9818_s23 + $0x330] sm:$0xff] }
 0x993   : > { %8085 = vmatmul.mubr.f32.gmra.mxu0 %v13020_v54 }
 0x994   : > { %8087 = vmatprep.mubr.f32.mxu0 %v13029_v63 }
 0x995   : > { %4699 = vmax.xlane.f32.xlu1 %v4698_v50  ;;  %v1010_v44 = vpop.xlane.xlu1 %1009  ;;  %v6905_v50 = vld [vmem:[%s9818_s23 + $0x328] sm:$0xff] }
 0x996   : > { %v1011_v49 = vsub.f32 %v1007_v15, %v1010_v44  ;;  %v6913_v15 = vld [vmem:[%s9818_s23 + $0x368] sm:$0xff]  ;;  %v13040_v44 = vld [vmem:[%s14494_s2 + $0x58] sm:$0xff] }
 0x997   : > { %8156 = vmatprep.subr.mxu0 %v6913_v15  ;;  %8088 = vmatmul.mubr.f32.gmra.mxu0 %v13040_v44 }
 0x998   : > { %v1012_v45 = vmul.f32 1.442695, %v1011_v49  ;;  %8157 = vmatpush3.msra.mxu0 %v6913_v15  ;;  %v13047_v49 = vld [vmem:[%s14494_s2 + $0x60] sm:$0xff]  ;;  %v13061_v15 = vld [vmem:[%s14494_s2 + $0x70] sm:$0xff] }
 0x999   : > { %4705 = vmax.xlane.f32.xlu1 %v4704_v43  ;;  %8158 = vmatprep.subr.mxu0 %v6912_v36  ;;  %v6903_v43 = vld [vmem:[%s9818_s23 + $0x318] sm:$0xff] }
 0x99a   : > { %9203 = vpow2.f32 %v1012_v45  ;;  %8159 = vmatpush3.msra.mxu0 %v6912_v36  ;;  %8090 = vmatprep.mubr.f32.mxu0 %v13047_v49  ;;  %v13055_v45 = vld [vmem:[%s14494_s2 + $0x68] sm:$0xff]  ;;  %v13065_v36 = vpop.xlane.xlu0 %4768 }
 0x99b   : > { %8160 = vmatprep.subr.mxu0 %v6911_v19  ;;  %8091 = vmatmul.mubr.f32.gmra.mxu0 %v13055_v45  ;;  %15597 = vst [vmem:[#allocation92_spill] sm:$0xff] %v13065_v36 }
 0x99c   : > { %8161 = vmatpush3.msra.mxu0 %v6911_v19  ;;  %8093 = vmatprep.mubr.f32.mxu0 %v13061_v15 }
 0x99d   : > { %4711 = vmax.xlane.f32.xlu1 %v4710_v24  ;;  %8162 = vmatprep.subr.mxu0 %v6910_v17  ;;  %v6901_v24 = vld [vmem:[%s9818_s23 + $0x308] sm:$0xff] }
 0x99e   : > { %v1817_v13 = vpop.xlane.xlu1 %1816  ;;  %8163 = vmatpush3.msra.mxu0 %v6910_v17 }
 0x99f   : > { %v1818_v57 = vsub.f32 %v1814_v3, %v1817_v13  ;;  %8164 = vmatprep.subr.mxu0 %v6909_v60  ;;  %v6907_v3 = vld [vmem:[%s9818_s23 + $0x338] sm:$0xff]  ;;  %v6900_v13 = vld [vmem:[%s9818_s23 + $0x300] sm:$0xff] }
 0x9a0   : > { %8165 = vmatpush3.msra.mxu0 %v6909_v60  ;;  %v13081_v60 = vld [vmem:[%s14494_s2] sm:$0xff] }
 0x9a1   : > { %v1819_v32 = vmul.f32 1.442695, %v1818_v57  ;;  %8166 = vmatprep.subr.mxu0 %v6908_v53  ;;  %v13075_v57 = vld [vmem:[%s14494_s2 + $0x78] sm:$0xff] }
 0x9a2   : > { %8167 = vmatpush3.msra.mxu0 %v6908_v53  ;;  %v13085_v53 = vpop.xlane.xlu0 %4774 }
 0x9a3   : > { %9205 = vpow2.f32 %v1819_v32  ;;  %8168 = vmatprep.subr.mxu0 %v6907_v3  ;;  %8094 = vmatmul.mubr.f32.gmra.mxu0 %v13075_v57  ;;  %v6947_v32 = vld [vmem:[%s9818_s23 + $0x3f8] sm:$0xff]  ;;  %15598 = vst [vmem:[#allocation103_spill] sm:$0xff] %v13085_v53 }
 0x9a4   : > { %8169 = vmatpush3.msra.mxu0 %v6907_v3  ;;  %8184 = vmatprep.mubr.f32.mxu0 %v13081_v60  ;;  %v6946_v3 = vld [vmem:[%s9818_s23 + $0x3f0] sm:$0xff] }
 0x9a5   : > { %8170 = vmatprep.subr.mxu0 %v6906_v34 }
 0x9a6   : > { %8171 = vmatpush3.msra.mxu0 %v6906_v34  ;;  %v6945_v34 = vld [vmem:[%s9818_s23 + $0x3e8] sm:$0xff] }
 0x9a7   : > { %v13023_v48 = vpop.eup %9203  ;;  %8172 = vmatprep.subr.mxu0 %v6905_v50 }
 0x9a8   : > { %v1014_v62 = vsel %vm633_vm0, %v13023_v48, 0.0  ;;  %8173 = vmatpush3.msra.mxu0 %v6905_v50  ;;  %v13094_v50 = vpop.xlane.xlu0 %4780 }
 0x9a9   : > { %1015 = vadd.xlane.f32.xlu0 %v1014_v62  ;;  %8174 = vmatprep.subr.mxu0 %v6904_v37  ;;  %v6944_v62 = vld [vmem:[%s9818_s23 + $0x3e0] sm:$0xff]  ;;  %15599 = vst [vmem:[#allocation85_spill] sm:$0xff] %v13094_v50 }
 0x9aa   : > { %8175 = vmatpush3.msra.mxu0 %v6904_v37  ;;  %v6943_v37 = vld [vmem:[%s9818_s23 + $0x3d8] sm:$0xff] }
 0x9ab   : > { %8176 = vmatprep.subr.mxu0 %v6903_v43 }
 0x9ac   : > { %8177 = vmatpush3.msra.mxu0 %v6903_v43 }
 0x9ad   : > { %8178 = vmatprep.subr.mxu0 %v6902_v2 }
 0x9ae   : > { %8179 = vmatpush3.msra.mxu0 %v6902_v2  ;;  %v6942_v2 = vld [vmem:[%s9818_s23 + $0x3d0] sm:$0xff] }
 0x9af   : > { %8180 = vmatprep.subr.mxu0 %v6901_v24 }
 0x9b0   : > { %v13067_v19 = vpop.eup %9205  ;;  %8181 = vmatpush3.msra.mxu0 %v6901_v24 }
 0x9b1   : > { %v1821_v17 = vsel %vm633_vm0, %v13067_v19, 0.0  ;;  %8182 = vmatprep.subr.mxu0 %v6900_v13 }
 0x9b2   : > { %1822 = vadd.xlane.f32.xlu0 %v1821_v17  ;;  %8183 = vmatpush3.msra.mxu0 %v6900_v13  ;;  %v6941_v13 = vld [vmem:[%s9818_s23 + $0x3c8] sm:$0xff]  ;;  %v13103_v17 = vpop.xlane.xlu0 %4786 }
 0x9b3   : > { %8185 = vmatmul.mubr.f32.vlgmr.msra.gmra.mxu0 %v12960_v51  ;;  %8264 = vmatprep.subr.mxu0 %v6947_v32  ;;  %15600 = vst [vmem:[#allocation178_spill] sm:$0xff] %v13103_v17 }
 0x9b4   : > { %8265 = vmatpush3.msra.mxu0 %v6947_v32  ;;  %8187 = vmatprep.mubr.f32.mxu0 %v12967_v20 }
 0x9b5   : > { %8266 = vmatprep.subr.mxu0 %v6946_v3 }
 0x9b6   : > { %8267 = vmatpush3.msra.mxu0 %v6946_v3  ;;  %v6940_v3 = vld [vmem:[%s9818_s23 + $0x3c0] sm:$0xff] }
 0x9b7   : > { %8188 = vmatmul.mubr.f32.gmra.mxu0 %v12976_v5  ;;  %8268 = vmatprep.subr.mxu0 %v6945_v34 }
 0x9b8   : > { %8269 = vmatpush3.msra.mxu0 %v6945_v34  ;;  %8190 = vmatprep.mubr.f32.mxu0 %v12983_v28  ;;  %v13112_v34 = vpop.xlane.xlu0 %4792 }
 0x9b9   : > { %8270 = vmatprep.subr.mxu0 %v6944_v62  ;;  %15601 = vst [vmem:[#allocation100_spill] sm:$0xff] %v13112_v34 }
 0x9ba   : > { %8271 = vmatpush3.msra.mxu0 %v6944_v62  ;;  %v6937_v62 = vld [vmem:[%s9818_s23 + $0x3a8] sm:$0xff] }
 0x9bb   : > { %8191 = vmatmul.mubr.f32.gmra.mxu0 %v12990_v18  ;;  %8272 = vmatprep.subr.mxu0 %v6943_v37 }
 0x9bc   : > { %8273 = vmatpush3.msra.mxu0 %v6943_v37  ;;  %8193 = vmatprep.mubr.f32.mxu0 %v12997_v52  ;;  %v6936_v37 = vld [vmem:[%s9818_s23 + $0x3a0] sm:$0xff] }
 0x9bd   : > { %8274 = vmatprep.subr.mxu0 %v6942_v2 }
 0x9be   : > { %v2623_v43 = vpop.xlane.xlu1 %2622  ;;  %8275 = vmatpush3.msra.mxu0 %v6942_v2  ;;  %v6934_v2 = vld [vmem:[%s9818_s23 + $0x390] sm:$0xff] }
 0x9bf   : > { %v2624_v24 = vsub.f32 %v2620_v47, %v2623_v43  ;;  %8194 = vmatmul.mubr.f32.gmra.mxu0 %v13006_v30  ;;  %8276 = vmatprep.subr.mxu0 %v6941_v13  ;;  %v6938_v47 = vld [vmem:[%s9818_s23 + $0x3b0] sm:$0xff]  ;;  %v6935_v43 = vld [vmem:[%s9818_s23 + $0x398] sm:$0xff] }
 0x9c0   : > { %8277 = vmatpush3.msra.mxu0 %v6941_v13  ;;  %8196 = vmatprep.mubr.f32.mxu0 %v13013_v29  ;;  %v6933_v13 = vld [vmem:[%s9818_s23 + $0x388] sm:$0xff] }
 0x9c1   : > { %v2625_v32 = vmul.f32 1.442695, %v2624_v24  ;;  %8278 = vmatprep.subr.mxu0 %v6940_v3  ;;  %v13120_v24 = vpop.xlane.xlu0 %4798 }
 0x9c2   : > { %8279 = vmatpush3.msra.mxu0 %v6940_v3  ;;  %15602 = vst [vmem:[#allocation108_spill] sm:$0xff] %v13120_v24  ;;  %v6932_v3 = vld [vmem:[%s9818_s23 + $0x380] sm:$0xff]  ;;  %s6739_s23 = sshll.u32 %s15884_s13, 3 }
 0x9c3   : > { %9207 = vpow2.f32 %v2625_v32  ;;  %8197 = vmatmul.mubr.f32.gmra.mxu0 %v13020_v54  ;;  %8280 = vmatprep.subr.mxu0 %v6939_v8  ;;  %s13268_s19 = scalar_lea.vmem %s14495_s3, %s6739_s23 }
 0x9c4   : > { %8281 = vmatpush3.msra.mxu0 %v6939_v8  ;;  %8199 = vmatprep.mubr.f32.mxu0 %v13029_v63 }
 0x9c5   : > { %8282 = vmatprep.subr.mxu0 %v6938_v47 }
 0x9c6   : > { %8283 = vmatpush3.msra.mxu0 %v6938_v47  ;;  %v13131_v47 = vpop.xlane.xlu0 %4804 }
 0x9c7   : > { %8200 = vmatmul.mubr.f32.gmra.mxu0 %v13040_v44  ;;  %8284 = vmatprep.subr.mxu0 %v6937_v62  ;;  %15603 = vst [vmem:[#allocation99_spill] sm:$0xff] %v13131_v47 }
 0x9c8   : > { %8285 = vmatpush3.msra.mxu0 %v6937_v62  ;;  %8202 = vmatprep.mubr.f32.mxu0 %v13047_v49 }
 0x9c9   : > { %8286 = vmatprep.subr.mxu0 %v6936_v37 }
 0x9ca   : > { %8287 = vmatpush3.msra.mxu0 %v6936_v37  ;;  %v13136_v62 = vpop.xlane.xlu0 %5475 }
 0x9cb   : > { %8203 = vmatmul.mubr.f32.gmra.mxu0 %v13055_v45  ;;  %8288 = vmatprep.subr.mxu0 %v6935_v43 }
 0x9cc   : > { %8289 = vmatpush3.msra.mxu0 %v6935_v43  ;;  %8205 = vmatprep.mubr.f32.mxu0 %v13061_v15 }
 0x9cd   : > { %8290 = vmatprep.subr.mxu0 %v6934_v2 }
 0x9ce   : > { %8291 = vmatpush3.msra.mxu0 %v6934_v2  ;;  %v13140_v37 = vpop.xlane.xlu0 %6278 }
 0x9cf   : > { %8206 = vmatmul.mubr.f32.gmra.mxu0 %v13075_v57  ;;  %8292 = vmatprep.subr.mxu0 %v6933_v13 }
 0x9d0   : > { %v13125_v32 = vpop.eup %9207  ;;  %8293 = vmatpush3.msra.mxu0 %v6933_v13  ;;  %8296 = vmatprep.mubr.f32.mxu0 %v13081_v60 }
 0x9d1   : > { %v2627_v8 = vsel %vm633_vm0, %v13125_v32, 0.0  ;;  %8294 = vmatprep.subr.mxu0 %v6932_v3 }
 0x9d2   : > { %2628 = vadd.xlane.f32.xlu0 %v2627_v8  ;;  %8295 = vmatpush3.msra.mxu0 %v6932_v3 }
 0x9d3   : > { %8297 = vmatmul.mubr.f32.vlgmr.msra.gmra.mxu0 %v12960_v51  ;;  %v13148_v51 = vpop.xlane.xlu0 %5478 }
 0x9d4   : > { %8299 = vmatprep.mubr.f32.mxu0 %v12967_v20 }
 0x9d7   : > { %8300 = vmatmul.mubr.f32.gmra.mxu0 %v12976_v5  ;;  %v13152_v20 = vpop.xlane.xlu0 %5481 }
 0x9d8   : > { %8302 = vmatprep.mubr.f32.mxu0 %v12983_v28  ;;  %v5516_v28 = vsel %vm633_vm0, %v12545_v25, -inf }
 0x9db   : > { %8303 = vmatmul.mubr.f32.gmra.mxu0 %v12990_v18  ;;  %v13158_v46 = vpop.xlane.xlu0 %5484 }
 0x9dc   : > { %8305 = vmatprep.mubr.f32.mxu0 %v12997_v52 }
 0x9de   : > { %v3429_v43 = vpop.xlane.xlu1 %3428 }
 0x9df   : > { %v3430_v60 = vsub.f32 %v3426_v58, %v3429_v43  ;;  %8306 = vmatmul.mubr.f32.gmra.mxu0 %v13006_v30  ;;  %v13167_v18 = vpop.xlane.xlu0 %5487 }
 0x9e0   : > { %8308 = vmatprep.mubr.f32.mxu0 %v13013_v29 }
 0x9e1   : > { %v3431_v2 = vmul.f32 1.442695, %v3430_v60 }
 0x9e3   : > { %9209 = vpow2.f32 %v3431_v2  ;;  %8309 = vmatmul.mubr.f32.gmra.mxu0 %v13020_v54  ;;  %v13169_v52 = vpop.xlane.xlu0 %5490 }
 0x9e4   : > { %8311 = vmatprep.mubr.f32.mxu0 %v13029_v63 }
 0x9e7   : > { %8312 = vmatmul.mubr.f32.gmra.mxu0 %v13040_v44  ;;  %v13171_v30 = vpop.xlane.xlu0 %5493 }
 0x9e8   : > { %8314 = vmatprep.mubr.f32.mxu0 %v13047_v49 }
 0x9eb   : > { %8315 = vmatmul.mubr.f32.gmra.mxu0 %v13055_v45  ;;  %v13175_v63 = vpop.xlane.xlu0 %5496 }
 0x9ec   : > { %8317 = vmatprep.mubr.f32.mxu0 %v13061_v15 }
 0x9ef   : > { %8318 = vmatmul.mubr.f32.gmra.mxu0 %v13075_v57  ;;  %v13181_v13 = vpop.xlane.xlu0 %5499 }
 0x9f0   : > { %v13160_v58 = vpop.eup %9209 }
 0x9f1   : > { %v3433_v5 = vsel %vm633_vm0, %v13160_v58, 0.0 }
 0x9f2   : > { %3434 = vadd.xlane.f32.xlu0 %v3433_v5 }
 0x9f3   : > { %v13190_v43 = vpop.xlane.xlu0 %5502 }
 0x9f6   : > { %5517 = vmax.xlane.f32.xlu0 %v5516_v28 }
 0xa06   : > { %v4235_v29 = vpop.xlane.xlu1 %4234 }
 0xa07   : > { %v4236_v54 = vsub.f32 %v4232_v31, %v4235_v29 }
 0xa09   : > { %v4237_v44 = vmul.f32 1.442695, %v4236_v54 }
 0xa0a   : > { %v4670_v49 = vpop.xlane.xlu1 %4669 }
 0xa0b   : > { %9211 = vpow2.f32 %v4237_v44  ;;  %v13178_v45 = vsub.f32 %v15588_v27, %v4670_v49 }
 0xa0d   : > { %15604 = vst [vmem:[#allocation110_spill] sm:$0xff] %v13178_v45  ;;  %v4731_v15 = vmul.f32 1.442695, %v13178_v45 }
 0xa0e   : > { %v4676_v57 = vpop.xlane.xlu1 %4675 }
 0xa0f   : > { %9213 = vpow2.f32 %v4731_v15  ;;  %v13184_v3 = vsub.f32 %v15589_v39, %v4676_v57 }
 0xa11   : > { %15605 = vst [vmem:[#allocation111_spill] sm:$0xff] %v13184_v3  ;;  %v4735_v41 = vmul.f32 1.442695, %v13184_v3 }
 0xa12   : > { %v4682_v31 = vpop.xlane.xlu1 %4681 }
 0xa13   : > { %9215 = vpow2.f32 %v4735_v41  ;;  %v13188_v8 = vsub.f32 %v15590_v59, %v4682_v31  ;;  %v13201_v59 = vpop.xlane.xlu0 %5505 }
 0xa15   : > { %15606 = vst [vmem:[#allocation179_spill] sm:$0xff] %v13188_v8  ;;  %v4739_v27 = vmul.f32 1.442695, %v13188_v8 }
 0xa16   : > { %v4688_v60 = vpop.xlane.xlu1 %4687 }
 0xa17   : > { %9217 = vpow2.f32 %v4739_v27  ;;  %v13194_v2 = vsub.f32 %v15591_v42, %v4688_v60  ;;  %v13216_v31 = vpop.xlane.xlu0 %5508 }
 0xa18   : > { %v13196_v5 = vpop.eup %9211 }
 0xa19   : > { %15607 = vst [vmem:[#allocation116_spill] sm:$0xff] %v13194_v2  ;;  %v4743_v39 = vmul.f32 1.442695, %v13194_v2  ;;  %v4239_v28 = vsel %vm633_vm0, %v13196_v5, 0.0 }
 0xa1a   : > { %4240 = vadd.xlane.f32.xlu0 %v4239_v28  ;;  %v4694_v29 = vpop.xlane.xlu1 %4693 }
 0xa1b   : > { %9219 = vpow2.f32 %v4743_v39  ;;  %v13204_v54 = vsub.f32 %v15592_v12, %v4694_v29 }
 0xa1c   : > { %v13206_v44 = vpop.eup %9213 }
 0xa1d   : > { %15608 = vst [vmem:[#allocation112_spill] sm:$0xff] %v13204_v54  ;;  %15609 = vst [vmem:[#allocation118_spill] sm:$0xff] %v13206_v44  ;;  %v4747_v42 = vmul.f32 1.442695, %v13204_v54  ;;  %v4764_v49 = vsel %vm633_vm0, %v13206_v44, 0.0  ;;  %v13259_v54 = vpop.f32.mrf.mxu1 }
 0xa1e   : > { %4765 = vadd.xlane.f32.xlu1 %v4764_v49  ;;  %v4700_v15 = vpop.xlane.xlu1 %4699  ;;  %v13229_v49 = vpop.xlane.xlu0 %5511 }
 0xa1f   : > { %9221 = vpow2.f32 %v4747_v42  ;;  %v13212_v57 = vsub.f32 %v15593_v22, %v4700_v15 }
 0xa20   : > { %v13214_v41 = vpop.eup %9215 }
 0xa21   : > { %15610 = vst [vmem:[#allocation134_spill] sm:$0xff] %v13212_v57  ;;  %15611 = vst [vmem:[#allocation181_spill] sm:$0xff] %v13214_v41  ;;  %v4751_v12 = vmul.f32 1.442695, %v13212_v57  ;;  %v4770_v27 = vsel %vm633_vm0, %v13214_v41, 0.0 }
 0xa22   : > { %4771 = vadd.xlane.f32.xlu1 %v4770_v27  ;;  %v4706_v60 = vpop.xlane.xlu1 %4705 }
 0xa23   : > { %9223 = vpow2.f32 %v4751_v12  ;;  %v13222_v39 = vsub.f32 %v15594_v6, %v4706_v60 }
 0xa24   : > { %v13224_v28 = vpop.eup %9217 }
 0xa25   : > { %15612 = vst [vmem:[#allocation115_spill] sm:$0xff] %v13222_v39  ;;  %15613 = vst [vmem:[#allocation121_spill] sm:$0xff] %v13224_v28  ;;  %v4755_v22 = vmul.f32 1.442695, %v13222_v39  ;;  %v4776_v29 = vsel %vm633_vm0, %v13224_v28, 0.0 }
 0xa26   : > { %4777 = vadd.xlane.f32.xlu1 %v4776_v29  ;;  %v4712_v42 = vpop.xlane.xlu1 %4711  ;;  %v13241_v29 = vpop.xlane.xlu0 %5514 }
 0xa27   : > { %9225 = vpow2.f32 %v4755_v22  ;;  %v13232_v15 = vsub.f32 %v15595_v7, %v4712_v42 }
 0xa28   : > { %v13234_v12 = vpop.eup %9219 }
 0xa29   : > { %15614 = vst [vmem:[#allocation59_spill] sm:$0xff] %v13232_v15  ;;  %15615 = vst [vmem:[#allocation168_spill] sm:$0xff] %v13234_v12  ;;  %v4759_v6 = vmul.f32 1.442695, %v13232_v15  ;;  %v4782_v27 = vsel %vm633_vm0, %v13234_v12, 0.0 }
 0xa2a   : > { %4783 = vadd.xlane.f32.xlu1 %v4782_v27 }
 0xa2b   : > { %9227 = vpow2.f32 %v4759_v6 }
 0xa2c   : > { %v13239_v60 = vpop.eup %9221 }
 0xa2d   : > { %15616 = vst [vmem:[#allocation183_spill] sm:$0xff] %v13239_v60  ;;  %v4788_v22 = vsel %vm633_vm0, %v13239_v60, 0.0 }
 0xa2e   : > { %4789 = vadd.xlane.f32.xlu1 %v4788_v22 }
 0xa30   : > { %v13245_v7 = vpop.eup %9223 }
 0xa31   : > { %15617 = vst [vmem:[#allocation182_spill] sm:$0xff] %v13245_v7  ;;  %v4794_v42 = vsel %vm633_vm0, %v13245_v7, 0.0 }
 0xa32   : > { %v1016_v15 = vpop.xlane.xlu0 %1015  ;;  %4795 = vadd.xlane.f32.xlu1 %v4794_v42  ;;  %v6280_v42 = vsel %vm633_vm0, %v12562_v11, -inf }
 0xa33   : > { %9229 = vrcp.f32 %v1016_v15  ;;  %v5471_v15 = vsel %vm633_vm0, %v12433_v33, -inf }
 0xa34   : > { %v13249_v39 = vpop.eup %9225 }
 0xa35   : > { %15618 = vst [vmem:[#allocation117_spill] sm:$0xff] %v13249_v39  ;;  %v4800_v6 = vsel %vm633_vm0, %v13249_v39, 0.0  ;;  %v6286_v39 = vsel %vm633_vm0, %v13259_v54, -inf }
 0xa36   : > { %4801 = vadd.xlane.f32.xlu1 %v4800_v6 }
 0xa38   : > { %v13254_v27 = vpop.eup %9227 }
 0xa39   : > { %15619 = vst [vmem:[#allocation123_spill] sm:$0xff] %v13254_v27  ;;  %v4806_v22 = vsel %vm633_vm0, %v13254_v27, 0.0 }
 0xa3a   : > { %4807 = vadd.xlane.f32.xlu1 %v4806_v22  ;;  %v13270_v22 = vpop.f32.mrf.mxu1 }
 0xa3b   : > { %v1823_v57 = vpop.xlane.xlu0 %1822 }
 0xa3c   : > { %9231 = vrcp.f32 %v1823_v57  ;;  %v13277_v27 = vpop.f32.mrf.mxu1 }
 0xa3e   : > { %5472 = vmax.xlane.f32.xlu1 %v5471_v15  ;;  %v6283_v15 = vsel %vm633_vm0, %v13270_v22, -inf  ;;  %v13281_v7 = vpop.f32.mrf.mxu1 }
 0xa40   : > { %v9230_v6 = vpop.eup %9229 }
 0xa41   : > { %v1018_v57 = vmul.f32 %v9230_v6, %v13023_v48  ;;  %v6289_v48 = vsel %vm633_vm0, %v13281_v7, -inf  ;;  %v6292_v6 = vsel %vm633_vm0, %v13277_v27, -inf }
 0xa42   : > { %6281 = vmax.xlane.f32.xlu1 %v6280_v42  ;;  %v13286_v42 = vpop.f32.mrf.mxu1 }
 0xa43   : > { %1020 = vst.msk [vmem:[%s13268_s19] sm:$0x1] %vm1019_vm1, %v1018_v57  ;;  %v13333_v45 = vpop.f32.mrf.mxu0 }
 0xa44   : > { %v13292_v57 = vpop.f32.mrf.mxu1 }
 0xa45   : > { %v13336_v47 = vpop.f32.mrf.mxu0 }
 0xa46   : > { %6284 = vmax.xlane.f32.xlu1 %v6283_v15  ;;  %v6295_v15 = vsel %vm633_vm0, %v13292_v57, -inf }
 0xa49   : > { %v9232_v60 = vpop.eup %9231 }
 0xa4a   : > { %6287 = vmax.xlane.f32.xlu1 %v6286_v39  ;;  %v1825_v2 = vmul.f32 %v9232_v60, %v13067_v19  ;;  %v13296_v39 = vpop.f32.mrf.mxu1  ;;  %v6298_v19 = vsel %vm633_vm0, %v13286_v42, -inf }
 0xa4c   : > { %1826 = vst.msk [vmem:[%s13268_s19 + $0x1] sm:$0x1] %vm1019_vm1, %v1825_v2  ;;  %v13300_v60 = vpop.f32.mrf.mxu1 }
 0xa4d   : > { %v6301_v2 = vsel %vm633_vm0, %v13300_v60, -inf }
 0xa4e   : > { %6290 = vmax.xlane.f32.xlu1 %v6289_v48  ;;  %v13304_v12 = vpop.f32.mrf.mxu1 }
 0xa50   : > { %v13308_v8 = vpop.f32.mrf.mxu1 }
 0xa52   : > { %6293 = vmax.xlane.f32.xlu1 %v6292_v6  ;;  %v6304_v6 = vsel %vm633_vm0, %v13296_v39, -inf  ;;  %v13312_v28 = vpop.f32.mrf.mxu1 }
 0xa54   : > { %v13316_v3 = vpop.f32.mrf.mxu1 }
 0xa56   : > { %6296 = vmax.xlane.f32.xlu1 %v6295_v15  ;;  %v6307_v15 = vsel %vm633_vm0, %v13308_v8, -inf  ;;  %v13321_v44 = vpop.f32.mrf.mxu1 }
 0xa5a   : > { %6299 = vmax.xlane.f32.xlu1 %v6298_v19  ;;  %v6310_v19 = vsel %vm633_vm0, %v13304_v12, -inf }
 0xa5b   : > { %v2629_v48 = vpop.xlane.xlu0 %2628 }
 0xa5c   : > { %9233 = vrcp.f32 %v2629_v48  ;;  %v6313_v48 = vsel %vm633_vm0, %v13316_v3, -inf }
 0xa5e   : > { %6302 = vmax.xlane.f32.xlu1 %v6301_v2 }
 0xa62   : > { %6305 = vmax.xlane.f32.xlu1 %v6304_v6  ;;  %v6316_v6 = vsel %vm633_vm0, %v13312_v28, -inf }
 0xa66   : > { %6308 = vmax.xlane.f32.xlu1 %v6307_v15  ;;  %v13327_v15 = vpop.f32.mrf.mxu1 }
 0xa69   : > { %v9234_v41 = vpop.eup %9233 }
 0xa6a   : > { %6311 = vmax.xlane.f32.xlu1 %v6310_v19  ;;  %v2631_v2 = vmul.f32 %v9234_v41, %v13125_v32  ;;  %v6319_v19 = vsel %vm633_vm0, %v13327_v15, -inf  ;;  %v6322_v32 = vsel %vm633_vm0, %v13321_v44, -inf }
 0xa6c   : > { %2632 = vst.msk [vmem:[%s13268_s19 + $0x2] sm:$0x1] %vm1019_vm1, %v2631_v2 }
 0xa6e   : > { %6314 = vmax.xlane.f32.xlu1 %v6313_v48 }
 0xa72   : > { %6317 = vmax.xlane.f32.xlu1 %v6316_v6  ;;  %v13340_v6 = vpop.f32.mrf.mxu0 }
 0xa74   : > { %v13342_v24 = vpop.f32.mrf.mxu0 }
 0xa76   : > { %6320 = vmax.xlane.f32.xlu1 %v6319_v19  ;;  %v13344_v19 = vpop.f32.mrf.mxu0 }
 0xa77   : > { %15620 = vst [vmem:[#allocation184_spill] sm:$0xff] %v13344_v19 }
 0xa78   : > { %v13346_v34 = vpop.f32.mrf.mxu0 }
 0xa79   : > { %15621 = vst [vmem:[#allocation126_spill] sm:$0xff] %v13346_v34 }
 0xa7a   : > { %6323 = vmax.xlane.f32.xlu1 %v6322_v32 }
 0xa7b   : > { %v3435_v41 = vpop.xlane.xlu0 %3434 }
 0xa7c   : > { %9235 = vrcp.f32 %v3435_v41  ;;  %v13350_v41 = vpop.f32.mrf.mxu0 }
 0xa7d   : > { %15622 = vst [vmem:[#allocation186_spill] sm:$0xff] %v13350_v41 }
 0xa7f   : > { %v13348_v32 = vpop.xlane.xlu0 %5517 }
 0xa89   : > { %v9236_v2 = vpop.eup %9235 }
 0xa8a   : > { %v3437_v48 = vmul.f32 %v9236_v2, %v13160_v58  ;;  %v13352_v58 = vpop.f32.mrf.mxu0 }
 0xa8b   : > { %15623 = vst [vmem:[#allocation128_spill] sm:$0xff] %v13352_v58 }
 0xa8c   : > { %3438 = vst.msk [vmem:[%s13268_s19 + $0x3] sm:$0x1] %vm1019_vm1, %v3437_v48  ;;  %v13356_v48 = vpop.f32.mrf.mxu0 }
 0xa8d   : > { %15625 = vst [vmem:[#allocation39_spill] sm:$0xff] %v13356_v48 }
 0xa8e   : > { %v13360_v53 = vpop.f32.mrf.mxu0 }
 0xa8f   : > { %15627 = vst [vmem:[#allocation120_spill] sm:$0xff] %v13360_v53 }
 0xa90   : > { %v13364_v56 = vpop.f32.mrf.mxu0 }
 0xa91   : > { %15629 = vst [vmem:[#allocation133_spill] sm:$0xff] %v13364_v56 }
 0xaa3   : > { %v4241_v17 = vpop.xlane.xlu0 %4240 }
 0xaa4   : > { %9237 = vrcp.f32 %v4241_v17  ;;  %v13371_v17 = vpop.f32.mrf.mxu0 }
 0xaa6   : > { %v13375_v48 = vpop.f32.mrf.mxu0 }
 0xaa7   : > { %v13354_v2 = vpop.xlane.xlu1 %4765  ;;  %15632 = vst [vmem:[#allocation180_spill] sm:$0xff] %v13375_v48 }
 0xaa8   : > { %15624 = vst [vmem:[#allocation87_spill] sm:$0xff] %v13354_v2  ;;  %v13379_v53 = vpop.f32.mrf.mxu0 }
 0xaaa   : > { %v13383_v56 = vpop.f32.mrf.mxu0 }
 0xaab   : > { %v13358_v50 = vpop.xlane.xlu1 %4771  ;;  %15635 = vst [vmem:[#allocation122_spill] sm:$0xff] %v13383_v56 }
 0xaac   : > { %15626 = vst [vmem:[#allocation130_spill] sm:$0xff] %v13358_v50 }
 0xaaf   : > { %v13362_v36 = vpop.xlane.xlu1 %4777 }
 0xab0   : > { %15628 = vst [vmem:[#allocation74_spill] sm:$0xff] %v13362_v36 }
 0xab1   : > { %v9238_v19 = vpop.eup %9237 }
 0xab2   : > { %v4243_v34 = vmul.f32 %v9238_v19, %v13196_v5  ;;  %v13387_v5 = vpop.f32.mrf.mxu0 }
 0xab3   : > { %v13367_v41 = vpop.xlane.xlu1 %4783 }
 0xab4   : > { %15630 = vst [vmem:[#allocation189_spill] sm:$0xff] %v13367_v41  ;;  %4244 = vst.msk [vmem:[%s13268_s19 + $0x4] sm:$0x1] %vm1019_vm1, %v4243_v34  ;;  %v13391_v34 = vsub.f32 %v12423_v9, %v13136_v62  ;;  %v13396_v41 = vpop.f32.mrf.mxu0  ;;  %v13408_v9 = vsub.f32 %v12477_v23, %v13171_v30  ;;  %v13426_v23 = vsub.f32 %v12505_v38, %v13175_v63 }
 0xab5   : > { %v13440_v38 = vsub.f32 %v12494_v4, %v13181_v13 }
 0xab6   : > { %15637 = vst [vmem:[#allocation187_spill] sm:$0xff] %v13391_v34  ;;  %v13404_v48 = vpop.f32.mrf.mxu0  ;;  %15638 = vst [vmem:[#allocation79_spill] sm:$0xff] %v13408_v9 }
 0xab7   : > { %v13373_v2 = vpop.xlane.xlu1 %4789  ;;  %15639 = vst [vmem:[#allocation192_spill] sm:$0xff] %v13426_v23  ;;  %15640 = vst [vmem:[#allocation127_spill] sm:$0xff] %v13440_v38 }
 0xab8   : > { %15631 = vst [vmem:[#allocation185_spill] sm:$0xff] %v13373_v2 }
 0xabb   : > { %v13377_v50 = vpop.xlane.xlu1 %4795 }
 0xabc   : > { %15633 = vst [vmem:[#allocation43_spill] sm:$0xff] %v13377_v50  ;;  %v5537_v50 = vmul.f32 1.442695, %v13391_v34  ;;  %v5549_v34 = vmul.f32 1.442695, %v13408_v9 }
 0xabf   : > { %v13381_v36 = vpop.xlane.xlu1 %4801 }
 0xac0   : > { %15634 = vst [vmem:[#allocation136_spill] sm:$0xff] %v13381_v36  ;;  %v13401_v36 = vsub.f32 %v12573_v16, %v13140_v37  ;;  %v13417_v37 = vpop.f32.mrf.mxu0 }
 0xac2   : > { %v13430_v30 = vpop.f32.mrf.mxu0 }
 0xac3   : > { %v13385_v58 = vpop.xlane.xlu1 %4807 }
 0xac4   : > { %15636 = vst [vmem:[#allocation124_spill] sm:$0xff] %v13385_v58 }
 0xac7   : > { %v5473_v19 = vpop.xlane.xlu1 %5472 }
 0xac8   : > { %v13394_v2 = vsub.f32 %v12433_v33, %v5473_v19  ;;  %v6341_v33 = vmul.f32 1.442695, %v13401_v36 }
 0xaca   : > { %v5535_v58 = vmul.f32 1.442695, %v13394_v2 }
 0xacb   : > { %v6282_v56 = vpop.xlane.xlu1 %6281 }
 0xacc   : > { %9239 = vpow2.f32 %v5535_v58  ;;  %v13412_v62 = vsub.f32 %v12562_v11, %v6282_v56  ;;  %v13421_v58 = vsub.f32 %v12452_v14, %v13148_v51  ;;  %v13435_v14 = vsub.f32 %v12445_v21, %v13152_v20 }
 0xacd   : > { %9241 = vpow2.f32 %v5537_v50  ;;  %v5551_v51 = vmul.f32 1.442695, %v13426_v23  ;;  %v13449_v21 = vsub.f32 %v12521_v55, %v13190_v43  ;;  %v5553_v20 = vmul.f32 1.442695, %v13440_v38 }
 0xace   : > { %9243 = vpow2.f32 %v6341_v33  ;;  %v6343_v11 = vmul.f32 1.442695, %v13412_v62  ;;  %v13442_v33 = vpop.f32.mrf.mxu0  ;;  %v13463_v55 = vsub.f32 %v12469_v10, %v13158_v46 }
 0xacf   : > { %v6285_v19 = vpop.xlane.xlu1 %6284  ;;  %15641 = vst [vmem:[#allocation193_spill] sm:$0xff] %v13449_v21  ;;  %v5555_v43 = vmul.f32 1.442695, %v13449_v21 }
 0xad0   : > { %v13415_v16 = vsub.f32 %v13270_v22, %v6285_v19  ;;  %v5539_v22 = vmul.f32 1.442695, %v13421_v58  ;;  %15642 = vst [vmem:[#allocation47_spill] sm:$0xff] %v13463_v55  ;;  %v5543_v46 = vmul.f32 1.442695, %v13463_v55 }
 0xad2   : > { %v6345_v56 = vmul.f32 1.442695, %v13415_v16 }
 0xad3   : > { %v6288_v50 = vpop.xlane.xlu1 %6287 }
 0xad4   : > { %9245 = vpow2.f32 %v6345_v56  ;;  %v5541_v56 = vmul.f32 1.442695, %v13435_v14 }
 0xad5   : > { %9247 = vpow2.f32 %v5549_v34  ;;  %v13453_v34 = vsub.f32 %v13259_v54, %v6288_v50  ;;  %v13468_v54 = vsub.f32 %v12513_v0, %v13201_v59  ;;  %v13483_v59 = vsub.f32 %v12539_v26, %v13216_v31 }
 0xad6   : > { %9249 = vpow2.f32 %v6343_v11  ;;  %v13500_v26 = vsub.f32 %v12460_v61, %v13167_v18 }
 0xad7   : > { %v6291_v63 = vpop.xlane.xlu1 %6290  ;;  %9251 = vpow2.f32 %v5539_v22  ;;  %v13459_v22 = vpop.f32.mrf.mxu0  ;;  %15643 = vst [vmem:[#allocation197_spill] sm:$0xff] %v13468_v54  ;;  %v6347_v50 = vmul.f32 1.442695, %v13453_v34  ;;  %v5557_v0 = vmul.f32 1.442695, %v13468_v54  ;;  %15644 = vst [vmem:[#allocation188_spill] sm:$0xff] %v13483_v59 }
 0xad8   : > { %9253 = vpow2.f32 %v5551_v51  ;;  %v13488_v21 = vsub.f32 %v13281_v7, %v6291_v63  ;;  %15646 = vst [vmem:[#allocation139_spill] sm:$0xff] %v13500_v26  ;;  %v5559_v31 = vmul.f32 1.442695, %v13483_v59  ;;  %v13505_v7 = vsub.f32 %v12529_v1, %v13229_v49 }
 0xad9   : > { %v13444_v19 = vpop.eup %9239  ;;  %9255 = vpow2.f32 %v5541_v56  ;;  %v13475_v23 = vpop.f32.mrf.mxu0  ;;  %v5545_v1 = vmul.f32 1.442695, %v13500_v26 }
 0xada   : > { %v5567_v4 = vsel %vm633_vm0, %v13444_v19, 0.0  ;;  %v13457_v13 = vpop.eup %9241  ;;  %9257 = vpow2.f32 %v5553_v20  ;;  %15647 = vst [vmem:[#allocation132_spill] sm:$0xff] %v13505_v7  ;;  %v5561_v49 = vmul.f32 1.442695, %v13505_v7 }
 0xadb   : > { %5568 = vadd.xlane.f32.xlu1 %v5567_v4  ;;  %v6294_v11 = vpop.xlane.xlu1 %6293  ;;  %v5570_v51 = vsel %vm633_vm0, %v13457_v13, 0.0  ;;  %v13473_v4 = vpop.eup %9243  ;;  %9259 = vpow2.f32 %v5555_v43 }
 0xadc   : > { %9261 = vpow2.f32 %v6347_v50  ;;  %v13496_v54 = vpop.f32.mrf.mxu0  ;;  %v6349_v50 = vmul.f32 1.442695, %v13488_v21  ;;  %v13523_v59 = vsub.f32 %v13277_v27, %v6294_v11 }
 0xadd   : > { %9263 = vpow2.f32 %v5543_v46 }
 0xade   : > { %9265 = vpow2.f32 %v5557_v0  ;;  %v13516_v18 = vpop.f32.mrf.mxu0  ;;  %15649 = vst [vmem:[#allocation96_spill] sm:$0xff] %v13523_v59  ;;  %v6351_v11 = vmul.f32 1.442695, %v13523_v59 }
 0xadf   : > { %5571 = vadd.xlane.f32.xlu1 %v5570_v51  ;;  %v6297_v56 = vpop.xlane.xlu1 %6296  ;;  %v6373_v51 = vsel %vm633_vm0, %v13473_v4, 0.0  ;;  %9267 = vpow2.f32 %v5559_v31 }
 0xae0   : > { %9269 = vpow2.f32 %v6349_v50  ;;  %v13531_v31 = vpop.f32.mrf.mxu0  ;;  %v13535_v50 = vsub.f32 %v12485_v35, %v13169_v52 }
 0xae1   : > { %v13477_v10 = vpop.eup %9245  ;;  %9271 = vpow2.f32 %v5545_v1 }
 0xae2   : > { %v13485_v20 = vpop.eup %9247  ;;  %v6379_v38 = vsel %vm633_vm0, %v13477_v10, 0.0  ;;  %15651 = vst [vmem:[#allocation135_spill] sm:$0xff] %v13535_v50  ;;  %9273 = vpow2.f32 %v5561_v49  ;;  %v5547_v35 = vmul.f32 1.442695, %v13535_v50  ;;  %v13552_v49 = vsub.f32 %v13292_v57, %v6297_v56 }
 0xae3   : > { %15645 = vst [vmem:[#allocation129_spill] sm:$0xff] %v13485_v20  ;;  %v13494_v9 = vpop.eup %9249  ;;  %6374 = vadd.xlane.f32.xlu1 %v6373_v51  ;;  %6380 = vadd.xlane.f32.xlu0 %v6379_v38  ;;  %v6300_v43 = vpop.xlane.xlu1 %6299  ;;  %v5588_v46 = vsel %vm633_vm0, %v13485_v20, 0.0  ;;  %9275 = vpow2.f32 %v6351_v11 }
 0xae4   : > { %v13507_v63 = vpop.eup %9251  ;;  %v6376_v38 = vsel %vm633_vm0, %v13494_v9, 0.0  ;;  %15655 = vst [vmem:[#allocation211_spill] sm:$0xff] %v13552_v49  ;;  %9277 = vpow2.f32 %v5547_v35  ;;  %v6353_v11 = vmul.f32 1.442695, %v13552_v49  ;;  %v13566_v57 = vsub.f32 %v13286_v42, %v6300_v43 }
 0xae5   : > { %v13514_v51 = vpop.eup %9253  ;;  %v5573_v20 = vsel %vm633_vm0, %v13507_v63, 0.0 }
 0xae6   : > { %15648 = vst [vmem:[#allocation202_spill] sm:$0xff] %v13514_v51  ;;  %v13520_v0 = vpop.eup %9255  ;;  %15658 = vst [vmem:[#allocation213_spill] sm:$0xff] %v13566_v57  ;;  %9279 = vpow2.f32 %v6353_v11  ;;  %v6355_v42 = vmul.f32 1.442695, %v13566_v57 }
 0xae7   : > { %6377 = vadd.xlane.f32.xlu1 %v6376_v38  ;;  %5589 = vadd.xlane.f32.xlu0 %v5588_v46  ;;  %v6303_v61 = vpop.xlane.xlu1 %6302  ;;  %v5591_v38 = vsel %vm633_vm0, %v13514_v51, 0.0  ;;  %v13529_v46 = vpop.eup %9257  ;;  %v5576_v7 = vsel %vm633_vm0, %v13520_v0, 0.0 }
 0xae8   : > { %15650 = vst [vmem:[#allocation141_spill] sm:$0xff] %v13529_v46  ;;  %v13537_v27 = vpop.eup %9259  ;;  %v13546_v51 = vpop.f32.mrf.mxu0  ;;  %v13577_v35 = vsub.f32 %v13300_v60, %v6303_v61  ;;  %9281 = vpow2.f32 %v6355_v42 }
 0xae9   : > { %15652 = vst [vmem:[#allocation207_spill] sm:$0xff] %v13537_v27  ;;  %v5597_v59 = vsel %vm633_vm0, %v13537_v27, 0.0 }
 0xaea   : > { %15660 = vst [vmem:[#allocation190_spill] sm:$0xff] %v13577_v35  ;;  %v6357_v60 = vmul.f32 1.442695, %v13577_v35 }
 0xaeb   : > { %5574 = vadd.xlane.f32.xlu1 %v5573_v20  ;;  %5592 = vadd.xlane.f32.xlu0 %v5591_v38  ;;  %v6306_v55 = vpop.xlane.xlu1 %6305  ;;  %v5594_v20 = vsel %vm633_vm0, %v13529_v46, 0.0  ;;  %v13544_v38 = vpop.eup %9261 }
 0xaec   : > { %15653 = vst [vmem:[#allocation215_spill] sm:$0xff] %v13544_v38  ;;  %v13549_v52 = vpop.eup %9263  ;;  %v6382_v46 = vsel %vm633_vm0, %v13544_v38, 0.0  ;;  %v13592_v61 = vsub.f32 %v13296_v39, %v6306_v55  ;;  %v4569_v39 = vsub.f32 %v13336_v47, %v13336_v47  ;;  %9283 = vpow2.f32 %v6357_v60 }
 0xaed   : > { %15654 = vst [vmem:[#allocation143_spill] sm:$0xff] %v13549_v52  ;;  %v13558_v26 = vpop.eup %9265  ;;  %v5579_v27 = vsel %vm633_vm0, %v13549_v52, 0.0 }
 0xaee   : > { %15656 = vst [vmem:[#allocation94_spill] sm:$0xff] %v13558_v26  ;;  %v13562_v50 = vpop.eup %9267  ;;  %v5600_v56 = vsel %vm633_vm0, %v13558_v26, 0.0  ;;  %15663 = vst [vmem:[#allocation50_spill] sm:$0xff] %v13592_v61  ;;  %v6359_v42 = vmul.f32 1.442695, %v13592_v61 }
 0xaef   : > { %5577 = vadd.xlane.f32.xlu1 %v5576_v7  ;;  %5595 = vadd.xlane.f32.xlu0 %v5594_v20  ;;  %v6309_v1 = vpop.xlane.xlu1 %6308  ;;  %v13560_v20 = vpop.f32.mrf.mxu0  ;;  %15657 = vst [vmem:[#allocation145_spill] sm:$0xff] %v13562_v50  ;;  %v5603_v43 = vsel %vm633_vm0, %v13562_v50, 0.0  ;;  %v4585_v60 = vmul.f32 1.442695, %v4569_v39 }
 0xaf0   : > { %v13572_v38 = vpop.eup %9269 }
 0xaf1   : > { %15659 = vst [vmem:[#allocation148_spill] sm:$0xff] %v13572_v38  ;;  %v13579_v49 = vpop.eup %9271  ;;  %v6385_v26 = vsel %vm633_vm0, %v13572_v38, 0.0 }
 0xaf2   : > { %15661 = vst [vmem:[#allocation137_spill] sm:$0xff] %v13579_v49  ;;  %v13586_v52 = vpop.eup %9273  ;;  %v5582_v50 = vsel %vm633_vm0, %v13579_v49, 0.0 }
 0xaf3   : > { %5598 = vadd.xlane.f32.xlu0 %v5597_v59  ;;  %6383 = vadd.xlane.f32.xlu1 %v6382_v46  ;;  %v6312_v7 = vpop.xlane.xlu1 %6311  ;;  %v13574_v46 = vpop.f32.mrf.mxu0  ;;  %15662 = vst [vmem:[#allocation150_spill] sm:$0xff] %v13586_v52  ;;  %v5606_v11 = vsel %vm633_vm0, %v13586_v52, 0.0  ;;  %v13611_v52 = vsub.f32 %v13308_v8, %v6309_v1 }
 0xaf4   : > { %v13598_v57 = vpop.eup %9275  ;;  %v13625_v1 = vsub.f32 %v13304_v12, %v6312_v7 }
 0xaf5   : > { %15664 = vst [vmem:[#allocation153_spill] sm:$0xff] %v13598_v57  ;;  %v13607_v55 = vpop.eup %9277  ;;  %15667 = vst [vmem:[#allocation105_spill] sm:$0xff] %v13611_v52  ;;  %v6361_v8 = vmul.f32 1.442695, %v13611_v52 }
 0xaf6   : > { %15666 = vst [vmem:[#allocation113_spill] sm:$0xff] %v13607_v55  ;;  %v5585_v61 = vsel %vm633_vm0, %v13607_v55, 0.0  ;;  %15669 = vst [vmem:[#allocation63_spill] sm:$0xff] %v13625_v1  ;;  %v6363_v39 = vmul.f32 1.442695, %v13625_v1 }
 0xaf7   : > { %5601 = vadd.xlane.f32.xlu0 %v5600_v56  ;;  %5580 = vadd.xlane.f32.xlu1 %v5579_v27  ;;  %v6315_v59 = vpop.xlane.xlu1 %6314  ;;  %v13588_v56 = vpop.f32.mrf.mxu0 }
 0xaf9   : > { %v13603_v38 = vpop.f32.mrf.mxu0 }
 0xafb   : > { %5604 = vadd.xlane.f32.xlu0 %v5603_v43  ;;  %6386 = vadd.xlane.f32.xlu1 %v6385_v26  ;;  %v6318_v27 = vpop.xlane.xlu1 %6317  ;;  %v13619_v47 = vpop.f32.mrf.mxu0 }
 0xaff   : > { %5607 = vadd.xlane.f32.xlu0 %v5606_v11  ;;  %5583 = vadd.xlane.f32.xlu1 %v5582_v50  ;;  %v6321_v26 = vpop.xlane.xlu1 %6320  ;;  %v6388_v50 = vsel %vm633_vm0, %v13598_v57, 0.0 }
 0xb00   : > { %v13601_v43 = vsub.f32 %v13327_v15, %v6321_v26 }
 0xb02   : > { %15665 = vst [vmem:[#allocation191_spill] sm:$0xff] %v13601_v43  ;;  %v6369_v11 = vmul.f32 1.442695, %v13601_v43 }
 0xb03   : > { %6389 = vadd.xlane.f32.xlu1 %v6388_v50  ;;  %v6324_v15 = vpop.xlane.xlu1 %6323  ;;  %v13628_v50 = vpop.eup %9279 }
 0xb04   : > { %9285 = vpow2.f32 %v6369_v11  ;;  %v13617_v26 = vsub.f32 %v13321_v44, %v6324_v15  ;;  %15670 = vst [vmem:[#allocation75_spill] sm:$0xff] %v13628_v50  ;;  %v4571_v44 = vsub.f32 %v13342_v24, %v13342_v24  ;;  %v8298_v11 = vpop.f32.mrf.mxu0  ;;  %v6391_v12 = vsel %vm633_vm0, %v13628_v50, 0.0  ;;  %v13638_v7 = vpop.eup %9281 }
 0xb05   : > { %9287 = vpow2.f32 %v6359_v42  ;;  %v13634_v42 = vsub.f32 %v13316_v3, %v6315_v59  ;;  %15672 = vst [vmem:[#allocation66_spill] sm:$0xff] %v13638_v7  ;;  %v6182_v24 = vsub.f32 %v8298_v11, %v8298_v11  ;;  %v13648_v3 = vsub.f32 %v13312_v28, %v6318_v27 }
 0xb06   : > { %15668 = vst [vmem:[#allocation140_spill] sm:$0xff] %v13617_v26  ;;  %v6371_v43 = vmul.f32 1.442695, %v13617_v26  ;;  %v4589_v15 = vmul.f32 1.442695, %v4571_v44  ;;  %v5375_v26 = vsub.f32 %v13404_v48, %v13404_v48  ;;  %v6394_v59 = vsel %vm633_vm0, %v13638_v7, 0.0 }
 0xb07   : > { %5586 = vadd.xlane.f32.xlu1 %v5585_v61  ;;  %15671 = vst [vmem:[#allocation154_spill] sm:$0xff] %v13634_v42  ;;  %v13642_v61 = vpop.f32.mrf.mxu0  ;;  %15674 = vst [vmem:[#allocation142_spill] sm:$0xff] %v13648_v3  ;;  %v6199_v44 = vmul.f32 1.442695, %v6182_v24 }
 0xb08   : > { %9289 = vpow2.f32 %v6371_v43  ;;  %v13644_v43 = vpop.eup %9283 }
 0xb09   : > { %9291 = vpow2.f32 %v4585_v60  ;;  %15673 = vst [vmem:[#allocation220_spill] sm:$0xff] %v13644_v43  ;;  %v6365_v60 = vmul.f32 1.442695, %v13634_v42  ;;  %v13652_v48 = vpop.f32.mrf.mxu0  ;;  %v6397_v28 = vsel %vm633_vm0, %v13644_v43, 0.0 }
 0xb0a   : > { %9293 = vpow2.f32 %v6361_v8  ;;  %v5391_v8 = vmul.f32 1.442695, %v5375_v26 }
 0xb0b   : > { %6392 = vadd.xlane.f32.xlu1 %v6391_v12  ;;  %9295 = vpow2.f32 %v6363_v39  ;;  %v13658_v12 = vsub.f32 %v12555_v40, %v13241_v29  ;;  %v6367_v39 = vmul.f32 1.442695, %v13648_v3  ;;  %v4570_v40 = vsub.f32 %v13333_v45, %v13333_v45  ;;  %v5967_v29 = vpop.f32.mrf.mxu0 }
 0xb0c   : > { %9297 = vpow2.f32 %v4589_v15  ;;  %v5377_v15 = vsub.f32 %v13430_v30, %v13430_v30 }
 0xb0d   : > { %15676 = vst [vmem:[#allocation194_spill] sm:$0xff] %v13658_v12  ;;  %9299 = vpow2.f32 %v6365_v60  ;;  %v5563_v60 = vmul.f32 1.442695, %v13658_v12  ;;  %v5376_v12 = vsub.f32 %v13396_v41, %v13396_v41 }
 0xb0e   : > { %9301 = vpow2.f32 %v5391_v8  ;;  %v13680_v8 = vsub.f32 %v12545_v25, %v13348_v32 }
 0xb0f   : > { %6395 = vadd.xlane.f32.xlu1 %v6394_v59  ;;  %9303 = vpow2.f32 %v6199_v44  ;;  %v4572_v59 = vsub.f32 %v13340_v6, %v13340_v6  ;;  %v13686_v44 = vpop.f32.mrf.mxu0  ;;  %v4587_v6 = vmul.f32 1.442695, %v4570_v40  ;;  %v5393_v41 = vmul.f32 1.442695, %v5376_v12 }
 0xb10   : > { %15679 = vst [vmem:[#allocation81_spill] sm:$0xff] %v13680_v8  ;;  %9305 = vpow2.f32 %v6367_v39  ;;  %v5565_v32 = vmul.f32 1.442695, %v13680_v8  ;;  %v15681_v39 = vld [vmem:[#allocation126_spill] sm:$0xff] }
 0xb11   : > { %v13654_v11 = vpop.eup %9285  ;;  %9307 = vpow2.f32 %v5563_v60  ;;  %v4591_v25 = vmul.f32 1.442695, %v4572_v59  ;;  %v5977_v1 = vpop.f32.mrf.mxu0 }
 0xb12   : > { %15675 = vst [vmem:[#allocation80_spill] sm:$0xff] %v13654_v11  ;;  %v6415_v27 = vsel %vm633_vm0, %v13654_v11, 0.0  ;;  %v13665_v26 = vpop.eup %9287  ;;  %v6185_v60 = vsub.f32 %v5977_v1, %v5977_v1  ;;  %v5380_v1 = vsub.f32 %v13442_v33, %v13442_v33  ;;  %v15685_v33 = vld [vmem:[#allocation128_spill] sm:$0xff] }
 0xb13   : > { %15677 = vst [vmem:[#allocation68_spill] sm:$0xff] %v13665_v26  ;;  %6398 = vadd.xlane.f32.xlu1 %v6397_v28  ;;  %6416 = vadd.xlane.f32.xlu0 %v6415_v27  ;;  %v6400_v30 = vsel %vm633_vm0, %v13665_v26, 0.0  ;;  %v5395_v27 = vmul.f32 1.442695, %v5377_v15 }
 0xb14   : > { %v6205_v12 = vmul.f32 1.442695, %v6185_v60  ;;  %v4575_v60 = vsub.f32 %v15685_v33, %v15685_v33 }
 0xb15   : > { %v13671_v24 = vpop.eup %9289 }
 0xb16   : > { %15678 = vst [vmem:[#allocation222_spill] sm:$0xff] %v13671_v24  ;;  %v13676_v11 = vpop.eup %9291  ;;  %v6418_v45 = vsel %vm633_vm0, %v13671_v24, 0.0  ;;  %v4573_v24 = vsub.f32 %v15681_v39, %v15681_v39  ;;  %v4597_v42 = vmul.f32 1.442695, %v4575_v60 }
 0xb17   : > { %v13688_v28 = vpop.eup %9293  ;;  %6401 = vadd.xlane.f32.xlu1 %v6400_v30  ;;  %6419 = vadd.xlane.f32.xlu0 %v6418_v45  ;;  %9309 = vrcp.f32 %v13676_v11  ;;  %v6181_v30 = vsub.f32 %v13642_v61, %v13642_v61  ;;  %v6183_v61 = vsub.f32 %v5967_v29, %v5967_v29 }
 0xb18   : > { %15680 = vst [vmem:[#allocation28_spill] sm:$0xff] %v13688_v28  ;;  %v6403_v3 = vsel %vm633_vm0, %v13688_v28, 0.0  ;;  %v13698_v15 = vpop.eup %9295  ;;  %9311 = vpow2.f32 %v5395_v27  ;;  %v4593_v59 = vmul.f32 1.442695, %v4573_v24 }
 0xb19   : > { %15682 = vst [vmem:[#allocation144_spill] sm:$0xff] %v13698_v15  ;;  %v13700_v40 = vpop.eup %9297  ;;  %9313 = vpow2.f32 %v4587_v6  ;;  %v6406_v45 = vsel %vm633_vm0, %v13698_v15, 0.0  ;;  %v6197_v24 = vmul.f32 1.442695, %v6181_v30  ;;  %v6201_v30 = vmul.f32 1.442695, %v6183_v61 }
 0xb1a   : > { %9315 = vpow2.f32 %v4591_v25  ;;  %v13706_v39 = vpop.eup %9299  ;;  %v13717_v25 = vpop.f32.mrf.mxu0 }
 0xb1b   : > { %6404 = vadd.xlane.f32.xlu1 %v6403_v3  ;;  %9317 = vpow2.f32 %v5565_v32  ;;  %15683 = vst [vmem:[#allocation70_spill] sm:$0xff] %v13706_v39  ;;  %v13709_v3 = vpop.eup %9301  ;;  %v6409_v6 = vsel %vm633_vm0, %v13706_v39, 0.0 }
 0xb1c   : > { %9319 = vrcp.f32 %v13700_v40  ;;  %v13711_v27 = vpop.eup %9303  ;;  %v5987_v8 = vpop.f32.mrf.mxu0 }
 0xb1d   : > { %9321 = vpow2.f32 %v5393_v41  ;;  %v13719_v32 = vpop.eup %9305  ;;  %v5378_v41 = vsub.f32 %v13417_v37, %v13417_v37  ;;  %v6187_v33 = vsub.f32 %v5987_v8, %v5987_v8  ;;  %v5379_v8 = vsub.f32 %v13459_v22, %v13459_v22 }
 0xb1e   : > { %9323 = vpow2.f32 %v4593_v59  ;;  %15684 = vst [vmem:[#allocation196_spill] sm:$0xff] %v13719_v32  ;;  %v5401_v59 = vmul.f32 1.442695, %v5380_v1  ;;  %v13727_v29 = vpop.eup %9307  ;;  %v5382_v22 = vsub.f32 %v13475_v23, %v13475_v23 }
 0xb1f   : > { %6407 = vadd.xlane.f32.xlu1 %v6406_v45  ;;  %9325 = vrcp.f32 %v13709_v3  ;;  %15686 = vst [vmem:[#allocation83_spill] sm:$0xff] %v13727_v29  ;;  %v6412_v45 = vsel %vm633_vm0, %v13719_v32, 0.0  ;;  %v5397_v37 = vmul.f32 1.442695, %v5378_v41 }
 0xb20   : > { %9327 = vrcp.f32 %v13711_v27 }
 0xb21   : > { %9329 = vpow2.f32 %v6205_v12  ;;  %v6184_v12 = vsub.f32 %v13652_v48, %v13652_v48  ;;  %v6209_v48 = vmul.f32 1.442695, %v6187_v33  ;;  %v5399_v33 = vmul.f32 1.442695, %v5379_v8 }
 0xb22   : > { %9331 = vpow2.f32 %v6197_v24  ;;  %v5609_v24 = vsel %vm633_vm0, %v13727_v29, 0.0  ;;  %v13752_v29 = vpop.f32.mrf.mxu0 }
 0xb23   : > { %6410 = vadd.xlane.f32.xlu1 %v6409_v6  ;;  %9333 = vpow2.f32 %v5401_v59  ;;  %v6203_v59 = vmul.f32 1.442695, %v6184_v12 }
 0xb24   : > { %v9310_v39 = vpop.eup %9309  ;;  %9335 = vpow2.f32 %v6201_v30  ;;  %v5997_v23 = vpop.f32.mrf.mxu0 }
 0xb25   : > { %v13731_v6 = vpop.eup %9311  ;;  %v4649_v41 = vmul.f32 %v9310_v39, %v13676_v11  ;;  %v15688_v39 = vld [vmem:[#allocation184_spill] sm:$0xff] }
 0xb26   : > { %v13733_v15 = vpop.eup %9313  ;;  %9337 = vrcp.f32 %v13731_v6 }
 0xb27   : > { %6413 = vadd.xlane.f32.xlu1 %v6412_v45  ;;  %v13735_v1 = vpop.eup %9315  ;;  %9339 = vpow2.f32 %v5397_v37  ;;  %v4574_v37 = vsub.f32 %v15688_v39, %v15688_v39 }
 0xb28   : > { %v13741_v61 = vpop.eup %9317  ;;  %9341 = vpow2.f32 %v4597_v42 }
 0xb29   : > { %15687 = vst [vmem:[#allocation5_spill] sm:$0xff] %v13741_v61  ;;  %v9320_v45 = vpop.eup %9319  ;;  %9343 = vrcp.f32 %v13733_v15  ;;  %v5612_v30 = vsel %vm633_vm0, %v13741_v61, 0.0  ;;  %v4595_v39 = vmul.f32 1.442695, %v4574_v37 }
 0xb2a   : > { %v13747_v60 = vpop.eup %9321  ;;  %9345 = vrcp.f32 %v13735_v1  ;;  %v4651_v42 = vmul.f32 %v9320_v45, %v13700_v40  ;;  %v5405_v40 = vmul.f32 1.442695, %v5382_v22 }
 0xb2b   : > { %5610 = vadd.xlane.f32.xlu1 %v5609_v24  ;;  %v13754_v24 = vpop.eup %9323  ;;  %9347 = vrcp.f32 %v13747_v60 }
 0xb2c   : > { %v9326_v11 = vpop.eup %9325  ;;  %9349 = vpow2.f32 %v6209_v48  ;;  %v6189_v48 = vsub.f32 %v5997_v23, %v5997_v23 }
 0xb2d   : > { %4891 = vperm.xlu0 %8386, %v4649_v41   ;;  %v9328_v12 = vpop.eup %9327  ;;  %v15689_v41 = vld [vmem:[#allocation120_spill] sm:$0xff]  ;;  %9351 = vpow2.f32 %v6203_v59  ;;  %v5455_v45 = vmul.f32 %v9326_v11, %v13709_v3  ;;  %v6186_v59 = vsub.f32 %v13686_v44, %v13686_v44 }
 0xb2e   : > { %v4577_v61 = vsub.f32 %v15689_v41, %v15689_v41  ;;  %v13765_v32 = vpop.eup %9329  ;;  %9353 = vrcp.f32 %v13754_v24 }
 0xb2f   : > { %5613 = vadd.xlane.f32.xlu1 %v5612_v30  ;;  %v13767_v30 = vpop.eup %9331  ;;  %9355 = vpow2.f32 %v5399_v33  ;;  %v6207_v37 = vmul.f32 1.442695, %v6186_v59  ;;  %v13787_v33 = vpop.f32.mrf.mxu0 }
 0xb30   : > { %v4601_v8 = vmul.f32 1.442695, %v4577_v61  ;;  %9357 = vrcp.f32 %v13765_v32  ;;  %v13773_v41 = vpop.eup %9333  ;;  %v5381_v61 = vsub.f32 %v13496_v54, %v13496_v54 }
 0xb31   : > { %4901 = vperm.xlu0 %8386, %v4651_v42   ;;  %v6262_v42 = vmul.f32 %v9328_v12, %v13711_v27  ;;  %9359 = vrcp.f32 %v13767_v30  ;;  %v13778_v26 = vpop.eup %9335  ;;  %v6213_v27 = vmul.f32 1.442695, %v6189_v48  ;;  %v5384_v12 = vsub.f32 %v13516_v18, %v13516_v18  ;;  %v6007_v59 = vpop.f32.mrf.mxu0 }
 0xb32   : > { %9361 = vpow2.f32 %v5405_v40  ;;  %v15690_v40 = vld [vmem:[#allocation186_spill] sm:$0xff] }
 0xb33   : > { %v9338_v3 = vpop.eup %9337  ;;  %9363 = vpow2.f32 %v4595_v39  ;;  %v5403_v39 = vmul.f32 1.442695, %v5381_v61 }
 0xb34   : > { %v13782_v22 = vpop.eup %9339  ;;  %9365 = vpow2.f32 %v4601_v8  ;;  %v5457_v54 = vmul.f32 %v9338_v3, %v13731_v6  ;;  %v5409_v3 = vmul.f32 1.442695, %v5384_v12 }
 0xb35   : > { %5697 = vperm.xlu0 %8386, %v5455_v45   ;;  %v13784_v11 = vpop.eup %9341  ;;  %9367 = vrcp.f32 %v13778_v26  ;;  %v4576_v45 = vsub.f32 %v15690_v40, %v15690_v40 }
 0xb36   : > { %v9344_v44 = vpop.eup %9343  ;;  %9369 = vrcp.f32 %v13773_v41 }
 0xb37   : > { %v9346_v23 = vpop.eup %9345  ;;  %9371 = vrcp.f32 %v13782_v22  ;;  %v4650_v18 = vmul.f32 %v9344_v44, %v13733_v15  ;;  %v4599_v28 = vmul.f32 1.442695, %v4576_v45  ;;  %v6188_v44 = vsub.f32 %v13717_v25, %v13717_v25 }
 0xb38   : > { %v9348_v8 = vpop.eup %9347  ;;  %9373 = vpow2.f32 %v6213_v27  ;;  %v4652_v40 = vmul.f32 %v9346_v23, %v13735_v1  ;;  %v5383_v45 = vsub.f32 %v13531_v31, %v13531_v31  ;;  %v5386_v31 = vsub.f32 %v13546_v51, %v13546_v51 }
 0xb39   : > { %6508 = vperm.xlu0 %8386, %v6262_v42   ;;  %v4579_v42 = vsub.f32 %v13371_v17, %v13371_v17  ;;  %v13798_v48 = vpop.eup %9349  ;;  %9375 = vpow2.f32 %v6207_v37  ;;  %v6191_v37 = vsub.f32 %v6007_v59, %v6007_v59  ;;  %v5456_v12 = vmul.f32 %v9348_v8, %v13747_v60  ;;  %v13824_v8 = vpop.f32.mrf.mxu0 }
 0xb3a   : > { %v13801_v6 = vpop.eup %9351  ;;  %9377 = vrcp.f32 %v13784_v11  ;;  %v6211_v60 = vmul.f32 1.442695, %v6188_v44  ;;  %v5413_v44 = vmul.f32 1.442695, %v5386_v31  ;;  %v5385_v31 = vsub.f32 %v13560_v20, %v13560_v20 }
 0xb3b   : > { %v9354_v61 = vpop.eup %9353  ;;  %9379 = vpow2.f32 %v5403_v39  ;;  %v4605_v27 = vmul.f32 1.442695, %v4579_v42  ;;  %v6217_v25 = vmul.f32 1.442695, %v6191_v37  ;;  %v6017_v51 = vpop.f32.mrf.mxu0  ;;  %v5388_v20 = vsub.f32 %v13574_v46, %v13574_v46 }
 0xb3c   : > { %v13805_v17 = vpop.eup %9355  ;;  %9381 = vrcp.f32 %v13798_v48 }
 0xb3d   : > { %5707 = vperm.xlu0 %8386, %v5457_v54   ;;  %v9358_v15 = vpop.eup %9357  ;;  %9383 = vrcp.f32 %v13801_v6  ;;  %v4653_v54 = vmul.f32 %v9354_v61, %v13754_v24 }
 0xb3e   : > { %v9360_v1 = vpop.eup %9359  ;;  %9385 = vpow2.f32 %v5409_v3  ;;  %v6265_v42 = vmul.f32 %v9358_v15, %v13765_v32  ;;  %v15691_v32 = vld [vmem:[#allocation39_spill] sm:$0xff] }
 0xb3f   : > { %v13813_v23 = vpop.eup %9361  ;;  %9387 = vpow2.f32 %v4599_v28  ;;  %v6261_v24 = vmul.f32 %v9360_v1, %v13767_v30  ;;  %v4578_v3 = vsub.f32 %v15691_v32, %v15691_v32  ;;  %v4581_v30 = vsub.f32 %v13379_v53, %v13379_v53 }
 0xb40   : > { %4896 = vperm.xlu1 %8385, %v4650_v18   ;;  %v13817_v39 = vpop.eup %9363  ;;  %9389 = vpow2.f32 %v4605_v27 }
 0xb41   : > { %4906 = vperm.xlu0 %8386, %v4652_v40   ;;  %v13820_v18 = vpop.eup %9365  ;;  %9391 = vrcp.f32 %v13805_v17  ;;  %v5407_v40 = vmul.f32 1.442695, %v5383_v45  ;;  %v4609_v45 = vmul.f32 1.442695, %v4581_v30 }
 0xb42   : > { %v9368_v28 = vpop.eup %9367  ;;  %9393 = vrcp.f32 %v13813_v23 }
 0xb43   : > { %v9370_v59 = vpop.eup %9369  ;;  %9395 = vrcp.f32 %v13817_v39  ;;  %v6263_v37 = vmul.f32 %v9368_v28, %v13778_v26 }
 0xb44   : > { %5702 = vperm.xlu1 %8385, %v5456_v12   ;;  %v9372_v61 = vpop.eup %9371  ;;  %9397 = vpow2.f32 %v6217_v25  ;;  %v5460_v12 = vmul.f32 %v9370_v59, %v13773_v41  ;;  %v6190_v25 = vsub.f32 %v13752_v29, %v13752_v29 }
 0xb45   : > { %4911 = vperm.xlu0 %8386, %v4653_v54   ;;  %v13834_v27 = vpop.eup %9373  ;;  %9399 = vpow2.f32 %v6211_v60  ;;  %v4603_v54 = vmul.f32 1.442695, %v4578_v3  ;;  %v5458_v60 = vmul.f32 %v9372_v61, %v13782_v22 }
 0xb46   : > { %v13837_v15 = vpop.eup %9375  ;;  %9401 = vrcp.f32 %v13820_v18  ;;  %v6215_v22 = vmul.f32 1.442695, %v6190_v25 }
 0xb47   : > { %v9378_v1 = vpop.eup %9377  ;;  %9403 = vpow2.f32 %v5407_v40  ;;  %v13860_v40 = vpop.f32.mrf.mxu0 }
 0xb48   : > { %6503 = vperm.xlu1 %8385, %v6261_v24   ;;  %v13841_v53 = vpop.eup %9379  ;;  %9405 = vrcp.f32 %v13834_v27  ;;  %v4655_v24 = vmul.f32 %v9378_v1, %v13784_v11 }
 0xb49   : > { %6523 = vperm.xlu0 %8386, %v6265_v42   ;;  %v6193_v42 = vsub.f32 %v6017_v51, %v6017_v51  ;;  %v9382_v26 = vpop.eup %9381  ;;  %9407 = vrcp.f32 %v13837_v15  ;;  %v5411_v51 = vmul.f32 1.442695, %v5385_v31  ;;  %v6027_v46 = vpop.f32.mrf.mxu0 }
 0xb4a   : > { %v9384_v41 = vpop.eup %9383  ;;  %9409 = vpow2.f32 %v5413_v44  ;;  %v6267_v32 = vmul.f32 %v9382_v26, %v13798_v48  ;;  %v15692_v48 = vld [vmem:[#allocation133_spill] sm:$0xff] }
 0xb4b   : > { %v13849_v28 = vpop.eup %9385  ;;  %9411 = vpow2.f32 %v4603_v54  ;;  %v6221_v29 = vmul.f32 1.442695, %v6193_v42  ;;  %v6264_v11 = vmul.f32 %v9384_v41, %v13801_v6  ;;  %v4583_v6 = vsub.f32 %v13387_v5, %v13387_v5 }
 0xb4c   : > { %6513 = vperm.xlu1 %8385, %v6263_v37   ;;  %v13853_v59 = vpop.eup %9387  ;;  %9413 = vpow2.f32 %v4609_v45  ;;  %v4580_v37 = vsub.f32 %v15692_v48, %v15692_v48  ;;  %v5417_v45 = vmul.f32 1.442695, %v5388_v20  ;;  %v6195_v41 = vsub.f32 %v6027_v46, %v6027_v46 }
 0xb4d   : > { %5722 = vperm.xlu0 %8386, %v5460_v12   ;;  %v13856_v3 = vpop.eup %9389  ;;  %9415 = vrcp.f32 %v13841_v53 }
 0xb4e   : > { %v9392_v61 = vpop.eup %9391  ;;  %9417 = vrcp.f32 %v13849_v28  ;;  %v4607_v25 = vmul.f32 1.442695, %v4580_v37 }
 0xb4f   : > { %v9394_v30 = vpop.eup %9393  ;;  %9419 = vrcp.f32 %v13853_v59  ;;  %v5459_v1 = vmul.f32 %v9392_v61, %v13805_v17 }
 0xb50   : > { %5712 = vperm.xlu1 %8385, %v5458_v60   ;;  %v9396_v44 = vpop.eup %9395  ;;  %9421 = vpow2.f32 %v6221_v29  ;;  %v5462_v42 = vmul.f32 %v9394_v30, %v13813_v23  ;;  %v4613_v60 = vmul.f32 1.442695, %v4583_v6 }
 0xb51   : > { %4921 = vperm.xlu0 %8386, %v4655_v24   ;;  %v13870_v12 = vpop.eup %9397  ;;  %9423 = vpow2.f32 %v6215_v22  ;;  %v6192_v24 = vsub.f32 %v13787_v33, %v13787_v33  ;;  %v4654_v31 = vmul.f32 %v9396_v44, %v13817_v39  ;;  %v5387_v22 = vsub.f32 %v13588_v56, %v13588_v56 }
 0xb52   : > { %v13873_v54 = vpop.eup %9399  ;;  %9425 = vrcp.f32 %v13856_v3  ;;  %v6225_v33 = vmul.f32 1.442695, %v6195_v41  ;;  %v5390_v56 = vsub.f32 %v13603_v38, %v13603_v38 }
 0xb53   : > { %v9402_v26 = vpop.eup %9401  ;;  %9427 = vpow2.f32 %v5411_v51  ;;  %v6219_v39 = vmul.f32 1.442695, %v6192_v24  ;;  %v5415_v37 = vmul.f32 1.442695, %v5387_v22  ;;  %v15693_v51 = vld [vmem:[#allocation180_spill] sm:$0xff] }
 0xb54   : > { %6518 = vperm.xlu1 %8385, %v6264_v11   ;;  %v13877_v5 = vpop.eup %9403  ;;  %9429 = vrcp.f32 %v13870_v12  ;;  %v4582_v44 = vsub.f32 %v15693_v51, %v15693_v51  ;;  %v5421_v38 = vmul.f32 1.442695, %v5390_v56 }
 0xb55   : > { %6533 = vperm.xlu0 %8386, %v6267_v32   ;;  %v9406_v17 = vpop.eup %9405  ;;  %9431 = vrcp.f32 %v13873_v54  ;;  %v4657_v32 = vmul.f32 %v9402_v26, %v13820_v18 }
 0xb56   : > { %v9408_v23 = vpop.eup %9407  ;;  %9433 = vpow2.f32 %v5417_v45  ;;  %v6269_v61 = vmul.f32 %v9406_v17, %v13834_v27 }
 0xb57   : > { %v13885_v29 = vpop.eup %9409  ;;  %9435 = vpow2.f32 %v4607_v25  ;;  %v6266_v18 = vmul.f32 %v9408_v23, %v13837_v15  ;;  %v4611_v25 = vmul.f32 1.442695, %v4582_v44 }
 0xb58   : > { %5717 = vperm.xlu1 %8385, %v5459_v1   ;;  %v13889_v11 = vpop.eup %9411  ;;  %9437 = vpow2.f32 %v4613_v60 }
 0xb59   : > { %5732 = vperm.xlu0 %8386, %v5462_v42   ;;  %v13892_v20 = vpop.eup %9413  ;;  %9439 = vrcp.f32 %v13877_v5 }
 0xb5a   : > { %v9416_v30 = vpop.eup %9415  ;;  %9441 = vrcp.f32 %v13885_v29 }
 0xb5b   : > { %v9418_v48 = vpop.eup %9417  ;;  %9443 = vrcp.f32 %v13889_v11  ;;  %v5461_v15 = vmul.f32 %v9416_v30, %v13841_v53  ;;  %v6194_v53 = vsub.f32 %v13824_v8, %v13824_v8  ;;  %v15694_v30 = vld [vmem:[#allocation122_spill] sm:$0xff] }
 0xb5c   : > { %4916 = vperm.xlu1 %8385, %v4654_v31   ;;  %v9420_v27 = vpop.eup %9419  ;;  %9445 = vpow2.f32 %v6225_v33  ;;  %v5464_v46 = vmul.f32 %v9418_v48, %v13849_v28  ;;  %v5389_v31 = vsub.f32 %v13619_v47, %v13619_v47 }
 0xb5d   : > { %4931 = vperm.xlu0 %8386, %v4657_v32   ;;  %v13902_v6 = vpop.eup %9421  ;;  %9447 = vpow2.f32 %v6219_v39  ;;  %v4656_v41 = vmul.f32 %v9420_v27, %v13853_v59  ;;  %v6223_v59 = vmul.f32 1.442695, %v6194_v53 }
 0xb5e   : > { %v13905_v1 = vpop.eup %9423  ;;  %9449 = vrcp.f32 %v13892_v20  ;;  %v5419_v33 = vmul.f32 1.442695, %v5389_v31 }
 0xb5f   : > { %v9426_v45 = vpop.eup %9425  ;;  %9451 = vpow2.f32 %v5415_v37 }
 0xb60   : > { %6528 = vperm.xlu1 %8385, %v6266_v18   ;;  %v13911_v26 = vpop.eup %9427  ;;  %9453 = vrcp.f32 %v13902_v6  ;;  %v4659_v17 = vmul.f32 %v9426_v45, %v13856_v3 }
 0xb61   : > { %6543 = vperm.xlu0 %8386, %v6269_v61   ;;  %v9430_v60 = vpop.eup %9429  ;;  %9455 = vrcp.f32 %v13905_v1 }
 0xb62   : > { %v9432_v28 = vpop.eup %9431  ;;  %9457 = vpow2.f32 %v5421_v38  ;;  %v6271_v8 = vmul.f32 %v9430_v60, %v13870_v12  ;;  %v4584_v12 = vsub.f32 %v15694_v30, %v15694_v30 }
 0xb63   : > { %v13919_v24 = vpop.eup %9433  ;;  %9459 = vpow2.f32 %v4611_v25  ;;  %v6268_v3 = vmul.f32 %v9432_v28, %v13873_v54 }
 0xb64   : > { %5727 = vperm.xlu1 %8385, %v5461_v15   ;;  %v13909_v42 = vpop.xlane.xlu1 %5568  ;;  %v13925_v32 = vpop.eup %9435  ;;  %9461 = vrcp.f32 %v13911_v26  ;;  %v4615_v38 = vmul.f32 1.442695, %v4584_v12 }
 0xb65   : > { %5742 = vperm.xlu0 %8386, %v5464_v46   ;;  %v13928_v22 = vpop.eup %9437  ;;  %9463 = vrcp.f32 %v13919_v24 }
 0xb66   : > { %v9440_v61 = vpop.eup %9439  ;;  %9465 = vrcp.f32 %v13925_v32 }
 0xb67   : > { %v9442_v47 = vpop.eup %9441  ;;  %9467 = vpow2.f32 %v6223_v59  ;;  %v5463_v48 = vmul.f32 %v9440_v61, %v13877_v5  ;;  %v6196_v5 = vsub.f32 %v13860_v40, %v13860_v40 }
 0xb68   : > { %4926 = vperm.xlu1 %8385, %v4656_v41   ;;  %v13923_v23 = vpop.xlane.xlu1 %5571  ;;  %v9444_v18 = vpop.eup %9443  ;;  %9469 = vrcp.f32 %v13928_v22  ;;  %v5466_v37 = vmul.f32 %v9442_v47, %v13885_v29 }
 0xb69   : > { %4941 = vperm.xlu0 %8386, %v4659_v17   ;;  %v9446_v56 = vpop.eup %9445  ;;  %9471 = vpow2.f32 %v5419_v33  ;;  %v4658_v45 = vmul.f32 %v9444_v18, %v13889_v11  ;;  %v6227_v17 = vmul.f32 1.442695, %v6196_v5 }
 0xb6a   : > { %v9448_v54 = vpop.eup %9447  ;;  %9473 = vrcp.f32 %v9446_v56 }
 0xb6b   : > { %v9450_v27 = vpop.eup %9449  ;;  %9475 = vrcp.f32 %v9448_v54 }
 0xb6c   : > { %6538 = vperm.xlu1 %8385, %v6268_v3   ;;  %v13933_v39 = vpop.xlane.xlu1 %6374  ;;  %v13941_v51 = vpop.xlane.xlu0 %6380  ;;  %v4661_v29 = vmul.f32 %v9450_v27, %v13892_v20  ;;  %9477 = vpow2.f32 %v4615_v38 }
 0xb6d   : > { %6553 = vperm.xlu0 %8386, %v6271_v8   ;;  %v9452_v15 = vpop.eup %9451 }
 0xb6e   : > { %v9454_v46 = vpop.eup %9453  ;;  %9479 = vrcp.f32 %v9452_v15 }
 0xb6f   : > { %v9456_v25 = vpop.eup %9455  ;;  %v6273_v41 = vmul.f32 %v9454_v46, %v13902_v6 }
 0xb70   : > { %5737 = vperm.xlu1 %8385, %v5463_v48   ;;  %v13943_v44 = vpop.xlane.xlu1 %6377  ;;  %v9458_v60 = vpop.eup %9457  ;;  %v6270_v40 = vmul.f32 %v9456_v25, %v13905_v1 }
 0xb71   : > { %5752 = vperm.xlu0 %8386, %v5466_v37   ;;  %v9460_v28 = vpop.eup %9459  ;;  %v13952_v31 = vpop.xlane.xlu0 %5589  ;;  %9481 = vrcp.f32 %v9458_v60 }
 0xb72   : > { %v9462_v8 = vpop.eup %9461  ;;  %9483 = vrcp.f32 %v9460_v28 }
 0xb73   : > { %v9464_v11 = vpop.eup %9463  ;;  %9485 = vpow2.f32 %v6227_v17  ;;  %v5465_v3 = vmul.f32 %v9462_v8, %v13911_v26 }
 0xb74   : > { %4936 = vperm.xlu1 %8385, %v4658_v45   ;;  %v13949_v53 = vpop.xlane.xlu1 %5574  ;;  %v9466_v59 = vpop.eup %9465  ;;  %v5468_v61 = vmul.f32 %v9464_v11, %v13919_v24  ;;  %v15697_v11 = vld [vmem:[#allocation107_spill] sm:$0xff] }
 0xb75   : > { %4951 = vperm.xlu0 %8386, %v4661_v29   ;;  %v9468_v6 = vpop.eup %9467  ;;  %v13959_v33 = vpop.xlane.xlu0 %5592  ;;  %v4660_v12 = vmul.f32 %v9466_v59, %v13925_v32 }
 0xb76   : > { %v9470_v47 = vpop.eup %9469  ;;  %9487 = vrcp.f32 %v9468_v6 }
 0xb77   : > { %v9472_v18 = vpop.eup %9471  ;;  %v4663_v37 = vmul.f32 %v9470_v47, %v13928_v22 }
 0xb78   : > { %6548 = vperm.xlu1 %8385, %v6270_v40   ;;  %v13955_v20 = vpop.xlane.xlu1 %5577  ;;  %v9474_v30 = vpop.eup %9473  ;;  %9489 = vrcp.f32 %v9472_v18 }
 0xb79   : > { %6563 = vperm.xlu0 %8386, %v6273_v41   ;;  %v9476_v48 = vpop.eup %9475  ;;  %v6275_v24 = vmul.f32 %v9474_v30, %v9446_v56  ;;  %v13967_v38 = vpop.xlane.xlu0 %5595 }
 0xb7a   : > { %v9478_v27 = vpop.eup %9477  ;;  %15695 = vst [vmem:[#allocation54_spill] sm:$0xff] %v13967_v38  ;;  %v6272_v46 = vmul.f32 %v9476_v48, %v9448_v54 }
 0xb7b   : > { %v9480_v5 = vpop.eup %9479  ;;  %9491 = vrcp.f32 %v9478_v27 }
 0xb7c   : > { %5747 = vperm.xlu1 %8385, %v5465_v3   ;;  %v13961_v1 = vpop.xlane.xlu1 %6383  ;;  %v5467_v29 = vmul.f32 %v9480_v5, %v9452_v15  ;;  %v15704_v5 = vld [vmem:[#allocation100_spill] sm:$0xff] }
 0xb7d   : > { %5762 = vperm.xlu0 %8386, %v5468_v61   ;;  %v13971_v17 = vpop.xlane.xlu0 %5598 }
 0xb7e   : > { %v9482_v45 = vpop.eup %9481  ;;  %15696 = vst [vmem:[#allocation199_spill] sm:$0xff] %v13971_v17 }
 0xb7f   : > { %v9484_v32 = vpop.eup %9483  ;;  %v5470_v41 = vmul.f32 %v9482_v45, %v9458_v60  ;;  %v15699_v60 = vld [vmem:[#allocation92_spill] sm:$0xff] }
 0xb80   : > { %4946 = vperm.xlu1 %8385, %v4660_v12   ;;  %v13965_v26 = vpop.xlane.xlu1 %5580  ;;  %v9486_v22 = vpop.eup %9485  ;;  %v4662_v40 = vmul.f32 %v9484_v32, %v9460_v28  ;;  %v15700_v28 = vld [vmem:[#allocation103_spill] sm:$0xff]  ;;  %v15701_v12 = vld [vmem:[#allocation85_spill] sm:$0xff]  ;;  %v15705_v45 = vld [vmem:[#allocation108_spill] sm:$0xff] }
 0xb81   : > { %4961 = vperm.xlu0 %8386, %v4663_v37   ;;  %9493 = vrcp.f32 %v9486_v22  ;;  %v13978_v59 = vpop.xlane.xlu0 %5601  ;;  %v15703_v37 = vld [vmem:[#allocation178_spill] sm:$0xff] }
 0xb82   : > { %9495 = vrcp.f32 %v15697_v11  ;;  %15698 = vst [vmem:[#allocation3_spill] sm:$0xff] %v13978_v59 }
 0xb83   : > { %v9488_v54 = vpop.eup %9487  ;;  %9497 = vlog2.f32 %v15697_v11 }
 0xb84   : > { %6558 = vperm.xlu1 %8385, %v6272_v46   ;;  %v13969_v25 = vpop.xlane.xlu1 %6386  ;;  %v6274_v3 = vmul.f32 %v9488_v54, %v9468_v6  ;;  %9499 = vrcp.f32 %v15699_v60 }
 0xb85   : > { %6573 = vperm.xlu0 %8386, %v6275_v24   ;;  %v9490_v15 = vpop.eup %9489  ;;  %9501 = vlog2.f32 %v15699_v60  ;;  %v13988_v48 = vpop.xlane.xlu0 %5604 }
 0xb86   : > { %9503 = vrcp.f32 %v15700_v28  ;;  %v5469_v47 = vmul.f32 %v9490_v15, %v9472_v18  ;;  %15702 = vst [vmem:[#allocation146_spill] sm:$0xff] %v13988_v48  ;;  %v15708_v15 = vld [vmem:[#allocation87_spill] sm:$0xff] }
 0xb87   : > { %9505 = vlog2.f32 %v15700_v28 }
 0xb88   : > { %5757 = vperm.xlu1 %8385, %v5467_v29   ;;  %v13973_v56 = vpop.xlane.xlu1 %5583  ;;  %v9492_v30 = vpop.eup %9491  ;;  %9507 = vrcp.f32 %v15701_v12 }
 0xb89   : > { %5772 = vperm.xlu0 %8386, %v5470_v41   ;;  %9509 = vlog2.f32 %v15701_v12  ;;  %v4664_v24 = vmul.f32 %v9492_v30, %v9478_v27  ;;  %v14000_v32 = vpop.xlane.xlu0 %5607 }
 0xb8a   : > { %9511 = vrcp.f32 %v15703_v37  ;;  %15706 = vst [vmem:[#allocation55_spill] sm:$0xff] %v14000_v32 }
 0xb8b   : > { %9513 = vlog2.f32 %v15703_v37 }
 0xb8c   : > { %4956 = vperm.xlu1 %8385, %v4662_v40   ;;  %v13975_v8 = vpop.xlane.xlu1 %6389  ;;  %9515 = vrcp.f32 %v15704_v5  ;;  %v15707_v40 = vld [vmem:[#allocation99_spill] sm:$0xff] }
 0xb8d   : > { %9517 = vlog2.f32 %v15704_v5 }
 0xb8e   : > { %v9494_v46 = vpop.eup %9493  ;;  %9519 = vrcp.f32 %v15705_v45 }
 0xb8f   : > { %v6276_v29 = vmul.f32 %v9494_v46, %v9486_v22  ;;  %v14002_v41 = vpop.eup %9495  ;;  %9521 = vlog2.f32 %v15705_v45  ;;  %v15714_v45 = vld [vmem:[#allocation189_spill] sm:$0xff] }
 0xb90   : > { %6568 = vperm.xlu1 %8385, %v6274_v3   ;;  %v13982_v61 = vpop.xlane.xlu1 %5586  ;;  %v9498_v27 = vpop.eup %9497  ;;  %9523 = vrcp.f32 %v15707_v40 }
 0xb91   : > { %v14008_v11 = vpop.eup %9499  ;;  %9525 = vlog2.f32 %v15707_v40  ;;  %v4842_v57 = vmul.f32 0.6931472, %v9498_v27 }
 0xb92   : > { %v9502_v3 = vpop.eup %9501  ;;  %9527 = vrcp.f32 %v15708_v15 }
 0xb93   : > { %v14014_v22 = vpop.eup %9503  ;;  %9529 = vlog2.f32 %v15708_v15 }
 0xb94   : > { %5767 = vperm.xlu1 %8385, %v5469_v47   ;;  %v13990_v6 = vpop.xlane.xlu1 %6392  ;;  %v14017_v28 = vpop.eup %9505  ;;  %v15710_v47 = vld [vmem:[#allocation130_spill] sm:$0xff] }
 0xb95   : > { %9531 = vrcp.f32 %v15710_v47  ;;  %v14022_v12 = vpop.eup %9507 }
 0xb96   : > { %9533 = vlog2.f32 %v15710_v47  ;;  %v14025_v37 = vpop.eup %9509 }
 0xb97   : > { %v14028_v46 = vpop.eup %9511 }
 0xb98   : > { %4966 = vperm.xlu1 %8385, %v4664_v24   ;;  %v13996_v18 = vpop.xlane.xlu1 %6395  ;;  %v15712_v24 = vld [vmem:[#allocation74_spill] sm:$0xff]  ;;  %15713 = vst [vmem:[#allocation149_spill] sm:$0xff] %v14028_v46  ;;  %v14031_v5 = vpop.eup %9513 }
 0xb99   : > { %9535 = vrcp.f32 %v15712_v24  ;;  %v14038_v15 = vpop.eup %9515 }
 0xb9a   : > { %9537 = vlog2.f32 %v15712_v24  ;;  %15717 = vst [vmem:[#allocation10_spill] sm:$0xff] %v14038_v15  ;;  %v14041_v47 = vpop.eup %9517  ;;  %v15739_v15 = vld [vmem:[#allocation236_spill] sm:$0xff] }
 0xb9b   : > { %9539 = vrcp.f32 %v15714_v45  ;;  %v14044_v52 = vpop.eup %9519 }
 0xb9c   : > { %6578 = vperm.xlu1 %8385, %v6276_v29   ;;  %v14006_v54 = vpop.xlane.xlu1 %6398  ;;  %v14012_v60 = vpop.xlane.xlu0 %6416  ;;  %9541 = vlog2.f32 %v15714_v45  ;;  %15719 = vst [vmem:[#allocation11_spill] sm:$0xff] %v14044_v52  ;;  %v4846_v52 = vmul.f32 0.6931472, %v9502_v3  ;;  %v15738_v3 = vld [vmem:[#allocation244_spill] sm:$0xff] }
 0xb9d   : > { %15709 = vst [vmem:[#allocation89_spill] sm:$0xff] %v14012_v60  ;;  %v15718_v60 = vld [vmem:[#allocation185_spill] sm:$0xff]  ;;  %v14047_v24 = vpop.eup %9521 }
 0xb9e   : > { %9543 = vrcp.f32 %v15718_v60  ;;  %v14052_v43 = vpop.eup %9523 }
 0xb9f   : > { %9545 = vlog2.f32 %v13909_v42  ;;  %15721 = vst [vmem:[#allocation228_spill] sm:$0xff] %v14052_v43  ;;  %v14055_v45 = vpop.eup %9525 }
 0xba0   : > { %v14020_v30 = vpop.xlane.xlu1 %6401  ;;  %v14034_v29 = vpop.xlane.xlu0 %6419  ;;  %9547 = vlog2.f32 %v15718_v60  ;;  %15722 = vst [vmem:[#allocation91_spill] sm:$0xff] %v14055_v45 }
 0xba1   : > { %15711 = vst [vmem:[#allocation8_spill] sm:$0xff] %v14020_v30  ;;  %15715 = vst [vmem:[#allocation203_spill] sm:$0xff] %v14034_v29  ;;  %9549 = vlog2.f32 %v13949_v53  ;;  %v9528_v32 = vpop.eup %9527 }
 0xba2   : > { %9551 = vlog2.f32 %v13923_v23  ;;  %v9530_v48 = vpop.eup %9529 }
 0xba3   : > { %9553 = vlog2.f32 %v13943_v44  ;;  %v14062_v60 = vpop.eup %9531 }
 0xba4   : > { %v14036_v40 = vpop.xlane.xlu1 %6404  ;;  %9555 = vrcp.f32 %v13909_v42  ;;  %15724 = vst [vmem:[#allocation152_spill] sm:$0xff] %v14062_v60  ;;  %v14065_v43 = vpop.eup %9533  ;;  %v15730_v60 = vld [vmem:[#allocation43_spill] sm:$0xff] }
 0xba5   : > { %15716 = vst [vmem:[#allocation90_spill] sm:$0xff] %v14036_v40  ;;  %9557 = vrcp.f32 %v13923_v23  ;;  %15725 = vst [vmem:[#allocation13_spill] sm:$0xff] %v14065_v43 }
 0xba6   : > { %9559 = vlog2.f32 %v13933_v39 }
 0xba7   : > { %9561 = vlog2.f32 %v13941_v51 }
 0xba8   : > { %v4892_v7 = vpop.permute.xlu0 %4891  ;;  %v14050_v29 = vpop.xlane.xlu1 %6407  ;;  %9563 = vrcp.f32 %v13949_v53 }
 0xba9   : > { %15720 = vst [vmem:[#allocation205_spill] sm:$0xff] %v14050_v29  ;;  %v14068_v29 = vpop.eup %9535  ;;  %9565 = vrcp.f32 %v15730_v60 }
 0xbaa   : > { %15726 = vst [vmem:[#allocation230_spill] sm:$0xff] %v14068_v29  ;;  %v14071_v30 = vpop.eup %9537  ;;  %9567 = vrcp.f32 %v13943_v44  ;;  %v15736_v44 = vld [vmem:[#allocation233_spill] sm:$0xff] }
 0xbab   : > { %15727 = vst [vmem:[#allocation95_spill] sm:$0xff] %v14071_v30  ;;  %9569 = vlog2.f32 %v15730_v60  ;;  %v4873_v27 = vsub.f32 %v15736_v44, %v4842_v57  ;;  %v4875_v57 = vsub.f32 %v15739_v15, %v4846_v52 }
 0xbac   : > { %v4902_v35 = vpop.permute.xlu0 %4901  ;;  %v14060_v55 = vpop.xlane.xlu1 %6410 }
 0xbad   : > { %15723 = vst [vmem:[#allocation32_spill] sm:$0xff] %v14060_v55  ;;  %v14076_v55 = vpop.eup %9539  ;;  %9571 = vrcp.f32 %v13933_v39  ;;  %v4969_v40 = vsub.f32 %v4873_v27, %v4892_v7 }
 0xbae   : > { %15729 = vst [vmem:[#allocation15_spill] sm:$0xff] %v14076_v55  ;;  %v14079_v23 = vpop.eup %9541  ;;  %v15735_v55 = vld [vmem:[#allocation136_spill] sm:$0xff] }
 0xbaf   : > { %15731 = vst [vmem:[#allocation88_spill] sm:$0xff] %v14079_v23  ;;  %v14082_v50 = vpop.eup %9543  ;;  %9573 = vrcp.f32 %v15735_v55 }
 0xbb0   : > { %v5698_v42 = vpop.permute.xlu0 %5697  ;;  %v14074_v59 = vpop.xlane.xlu1 %6413  ;;  %15732 = vst [vmem:[#allocation232_spill] sm:$0xff] %v14082_v50  ;;  %9575 = vlog2.f32 %v15735_v55  ;;  %v4844_v50 = vmul.f32 0.6931472, %v9530_v48  ;;  %v4825_v55 = vmul.f32 %v14002_v41, %v15738_v3 }
 0xbb1   : > { %15728 = vst [vmem:[#allocation209_spill] sm:$0xff] %v14074_v59  ;;  %v9546_v29 = vpop.eup %9545  ;;  %9577 = vlog2.f32 %v13955_v20 }
 0xbb2   : > { %v14090_v59 = vpop.eup %9547  ;;  %v5648_v60 = vmul.f32 0.6931472, %v9546_v29  ;;  %9579 = vrcp.f32 %v13941_v51  ;;  %v15740_v29 = vld [vmem:[#allocation247_spill] sm:$0xff]  ;;  %v15741_v51 = vld [vmem:[#allocation110_spill] sm:$0xff]  ;;  %v4985_v52 = vmul.f32 %v4969_v40, %v4825_v55 }
 0xbb3   : > { %15734 = vst [vmem:[#allocation34_spill] sm:$0xff] %v14090_v59  ;;  %v9550_v23 = vpop.eup %9549  ;;  %9581 = vlog2.f32 %v13969_v25  ;;  %v4827_v46 = vmul.f32 %v14008_v11, %v15740_v29  ;;  %v4874_v7 = vsub.f32 %v15741_v51, %v4844_v50  ;;  %v15743_v40 = vld [vmem:[#allocation187_spill] sm:$0xff] }
 0xbb4   : > { %v14086_v53 = vpop.permute.xlu0 %6508  ;;  %v14088_v30 = vpop.xlane.xlu1 %5610  ;;  %v5652_v48 = vmul.f32 0.6931472, %v9550_v23  ;;  %v5679_v45 = vsub.f32 %v13394_v2, %v5648_v60  ;;  %v15742_v23 = vld [vmem:[#allocation118_spill] sm:$0xff] }
 0xbb5   : > { %15733 = vst [vmem:[#allocation98_spill] sm:$0xff] %v14088_v30  ;;  %v9552_v43 = vpop.eup %9551  ;;  %9583 = vrcp.f32 %v13955_v20  ;;  %v4826_v11 = vmul.f32 %v9528_v32, %v15742_v23 }
 0xbb6   : > { %v9554_v39 = vpop.eup %9553  ;;  %v5650_v27 = vmul.f32 0.6931472, %v9552_v43  ;;  %9585 = vlog2.f32 %v13961_v1  ;;  %v5775_v43 = vsub.f32 %v5679_v45, %v5698_v42 }
 0xbb7   : > { %v9556_v59 = vpop.eup %9555  ;;  %v6456_v38 = vmul.f32 0.6931472, %v9554_v39  ;;  %9587 = vrcp.f32 %v13961_v1 }
 0xbb8   : > { %v5708_v30 = vpop.permute.xlu0 %5707  ;;  %v14097_v17 = vpop.xlane.xlu1 %5613  ;;  %v5631_v15 = vmul.f32 %v9556_v59, %v13444_v19  ;;  %v5680_v19 = vsub.f32 %v15743_v40, %v5650_v27 }
 0xbb9   : > { %15737 = vst [vmem:[#allocation16_spill] sm:$0xff] %v14097_v17  ;;  %v9558_v44 = vpop.eup %9557  ;;  %v4971_v17 = vsub.f32 %v4875_v57, %v4902_v35  ;;  %9589 = vlog2.f32 %v13973_v56  ;;  %v5681_v35 = vsub.f32 %v13421_v58, %v5652_v48  ;;  %v6486_v32 = vsub.f32 %v13412_v62, %v6456_v38 }
 0xbba   : > { %v9560_v49 = vpop.eup %9559  ;;  %9591 = vlog2.f32 %v13965_v26  ;;  %v5632_v1 = vmul.f32 %v9558_v44, %v13457_v13  ;;  %v5001_v58 = vsel %vm633_vm0, %v4985_v52, 0.0 }
 0xbbb   : > { %v9562_v41 = vpop.eup %9561  ;;  %v6454_v59 = vmul.f32 0.6931472, %v9560_v49  ;;  %v4987_v39 = vmul.f32 %v4971_v17, %v4827_v46  ;;  %v5777_v55 = vsub.f32 %v5681_v35, %v5708_v30  ;;  %9593 = vrcp.f32 %v13969_v25  ;;  %v15745_v35 = vld [vmem:[#allocation124_spill] sm:$0xff] }
 0xbbc   : > { %v14111_v20 = vpop.permute.xlu0 %4906  ;;  %v4897_v3 = vpop.permute.xlu1 %4896  ;;  %v6458_v48 = vmul.f32 0.6931472, %v9562_v41  ;;  %v5791_v49 = vmul.f32 %v5775_v43, %v5631_v15  ;;  %v6582_v17 = vsub.f32 %v6486_v32, %v14086_v53 }
 0xbbd   : > { %v9564_v50 = vpop.eup %9563  ;;  %v4970_v57 = vsub.f32 %v4874_v7, %v4897_v3  ;;  %9595 = vrcp.f32 %v13965_v26  ;;  %v5004_v27 = vsel %vm633_vm0, %v4987_v39, 0.0 }
 0xbbe   : > { %v14116_v2 = vpop.eup %9565  ;;  %v5633_v45 = vmul.f32 %v9564_v50, %v13507_v63  ;;  %v6485_v63 = vsub.f32 %v13401_v36, %v6454_v59  ;;  %9597 = vrcp.f32 %v13973_v56  ;;  %v5807_v36 = vsel %vm633_vm0, %v5791_v49, 0.0 }
 0xbbf   : > { %v9568_v60 = vpop.eup %9567  ;;  %v4986_v29 = vmul.f32 %v4970_v57, %v4826_v11  ;;  %9599 = vlog2.f32 %v13990_v6  ;;  %v14148_v57 = vmul.f32 0.6931472, %v14017_v28  ;;  %v6487_v40 = vsub.f32 %v13415_v16, %v6458_v48 }
 0xbc0   : > { %v14122_v51 = vpop.eup %9569  ;;  %v14127_v42 = vpop.permute.xlu0 %4911  ;;  %v6438_v25 = vmul.f32 %v9568_v60, %v13494_v9  ;;  %v5793_v41 = vmul.f32 %v5777_v55, %v5633_v45  ;;  %9601 = vrcp.f32 %v15745_v35  ;;  %v14156_v28 = vmul.f32 0.6931472, %v14025_v37 }
 0xbc1   : > { %v5703_v13 = vpop.permute.xlu1 %5702  ;;  %v9572_v44 = vpop.eup %9571  ;;  %v5002_v62 = vsel %vm633_vm0, %v4986_v29, 0.0  ;;  %9603 = vlog2.f32 %v13975_v8 }
 0xbc2   : > { %v5776_v38 = vsub.f32 %v5680_v19, %v5703_v13  ;;  %v14131_v30 = vpop.eup %9573  ;;  %v5003_v46 = vadd.f32 %v5002_v62, %v5001_v58  ;;  %v6437_v26 = vmul.f32 %v9572_v44, %v13473_v4  ;;  %v6598_v3 = vmul.f32 %v6582_v17, %v6438_v25  ;;  %v15746_v17 = vld [vmem:[#allocation251_spill] sm:$0xff] }
 0xbc3   : > { %15744 = vst [vmem:[#allocation235_spill] sm:$0xff] %v14131_v30  ;;  %v14136_v7 = vpop.eup %9575  ;;  %v5810_v4 = vsel %vm633_vm0, %v5793_v41, 0.0  ;;  %9605 = vlog2.f32 %v13952_v31  ;;  %v14163_v62 = vmul.f32 %v14014_v22, %v15746_v17  ;;  %v15748_v41 = vld [vmem:[#allocation241_spill] sm:$0xff] }
 0xbc4   : > { %v5792_v53 = vmul.f32 %v5776_v38, %v5632_v1  ;;  %v9578_v52 = vpop.eup %9577  ;;  %v14141_v15 = vadd.f32 %v5004_v27, %v5003_v46  ;;  %v6524_v23 = vpop.permute.xlu0 %6523  ;;  %v6614_v16 = vsel %vm633_vm0, %v6598_v3, 0.0  ;;  %9607 = vlog2.f32 %v13982_v61 }
 0xbc5   : > { %v6504_v9 = vpop.permute.xlu1 %6503  ;;  %v9580_v11 = vpop.eup %9579  ;;  %v5654_v60 = vmul.f32 0.6931472, %v9578_v52  ;;  %9609 = vrcp.f32 %v13975_v8 }
 0xbc6   : > { %v5808_v50 = vsel %vm633_vm0, %v5792_v53, 0.0  ;;  %v6581_v56 = vsub.f32 %v6485_v63, %v6504_v9  ;;  %v9582_v43 = vpop.eup %9581  ;;  %v6439_v55 = vmul.f32 %v9580_v11, %v13477_v10  ;;  %v15747_v10 = vld [vmem:[#allocation238_spill] sm:$0xff]  ;;  %9611 = vrcp.f32 %v13990_v6 }
 0xbc7   : > { %v5809_v1 = vadd.f32 %v5808_v50, %v5807_v36  ;;  %v9584_v19 = vpop.eup %9583  ;;  %v6462_v13 = vmul.f32 0.6931472, %v9582_v43  ;;  %v5682_v63 = vsub.f32 %v13435_v14, %v5654_v60  ;;  %v14176_v9 = vmul.f32 0.6931472, %v14031_v5 }
 0xbc8   : > { %v6597_v59 = vmul.f32 %v6581_v56, %v6437_v26  ;;  %v9586_v39 = vpop.eup %9585  ;;  %v5723_v32 = vpop.permute.xlu0 %5722  ;;  %v5634_v22 = vmul.f32 %v9584_v19, %v13520_v0  ;;  %9613 = vlog2.f32 %v15745_v35  ;;  %v14182_v56 = vmul.f32 0.6931472, %v14041_v47 }
 0xbc9   : > { %v6514_v29 = vpop.permute.xlu1 %6513  ;;  %v5811_v58 = vadd.f32 %v5810_v4, %v5809_v1  ;;  %v9588_v45 = vpop.eup %9587  ;;  %v6460_v27 = vmul.f32 0.6931472, %v9586_v39  ;;  %v6489_v8 = vsub.f32 %v13488_v21, %v6462_v13  ;;  %9615 = vrcp.f32 %v13952_v31  ;;  %v15750_v21 = vld [vmem:[#allocation148_spill] sm:$0xff]  ;;  %v15753_v31 = vld [vmem:[#allocation139_spill] sm:$0xff] }
 0xbca   : > { %v6613_v48 = vsel %vm633_vm0, %v6597_v59, 0.0  ;;  %v6583_v44 = vsub.f32 %v6487_v40, %v6514_v29  ;;  %v9590_v49 = vpop.eup %9589  ;;  %15749 = vst [vmem:[#allocation102_spill] sm:$0xff] %v14182_v56  ;;  %9617 = vrcp.f32 %v13982_v61  ;;  %v15751_v59 = vld [vmem:[#allocation215_spill] sm:$0xff]  ;;  %v14190_v39 = vmul.f32 0.6931472, %v14047_v24  ;;  %v15754_v61 = vld [vmem:[#allocation253_spill] sm:$0xff] }
 0xbcb   : > { %v6615_v37 = vadd.f32 %v6614_v16, %v6613_v48  ;;  %v9592_v25 = vpop.eup %9591  ;;  %v5658_v36 = vmul.f32 0.6931472, %v9590_v49  ;;  %v6585_v0 = vsub.f32 %v6489_v8, %v6524_v23  ;;  %v6488_v1 = vsub.f32 %v13453_v34, %v6460_v27  ;;  %v15762_v8 = vld [vmem:[#allocation137_spill] sm:$0xff]  ;;  %v15813_v56 = vld [vmem:[#allocation112_spill] sm:$0xff] }
 0xbcc   : > { %v6599_v46 = vmul.f32 %v6583_v44, %v6439_v55  ;;  %v14172_v52 = vpop.permute.xlu0 %4921  ;;  %v9594_v11 = vpop.eup %9593  ;;  %v5656_v50 = vmul.f32 0.6931472, %v9592_v25  ;;  %v6440_v35 = vmul.f32 %v9588_v45, %v15751_v59  ;;  %15752 = vst [vmem:[#allocation26_spill] sm:$0xff] %v14190_v39  ;;  %9619 = vlog2.f32 %v14006_v54  ;;  %v15755_v45 = vld [vmem:[#allocation47_spill] sm:$0xff]  ;;  %v15809_v39 = vld [vmem:[#allocation220_spill] sm:$0xff] }
 0xbcd   : > { %v5713_v26 = vpop.permute.xlu1 %5712  ;;  %v9596_v43 = vpop.eup %9595  ;;  %v6441_v19 = vmul.f32 %v9594_v11, %v15750_v21  ;;  %v5684_v23 = vsub.f32 %v15753_v31, %v5658_v36  ;;  %9621 = vrcp.f32 %v13959_v33  ;;  %v14198_v29 = vmul.f32 %v14022_v12, %v15754_v61  ;;  %v15759_v12 = vld [vmem:[#allocation243_spill] sm:$0xff]  ;;  %v15766_v31 = vld [vmem:[#allocation149_spill] sm:$0xff] }
 0xbce   : > { %v6616_v14 = vsel %vm633_vm0, %v6599_v46, 0.0  ;;  %v5778_v3 = vsub.f32 %v5682_v63, %v5713_v26  ;;  %v9598_v40 = vpop.eup %9597  ;;  %v5683_v13 = vsub.f32 %v15755_v45, %v5656_v50  ;;  %9623 = vlog2.f32 %v13996_v18  ;;  %v15758_v46 = vld [vmem:[#allocation143_spill] sm:$0xff] }
 0xbcf   : > { %v6617_v6 = vadd.f32 %v6616_v14, %v6615_v37  ;;  %v9600_v47 = vpop.eup %9599  ;;  %v6601_v24 = vmul.f32 %v6585_v0, %v6441_v19  ;;  %v5780_v44 = vsub.f32 %v5684_v23, %v5723_v32  ;;  %v15757_v37 = vld [vmem:[#allocation54_spill] sm:$0xff]  ;;  %v5635_v63 = vmul.f32 %v9596_v43, %v15758_v46  ;;  %v15769_v46 = vld [vmem:[#allocation259_spill] sm:$0xff] }
 0xbd0   : > { %v5794_v5 = vmul.f32 %v5778_v3, %v5634_v22  ;;  %v6534_v4 = vpop.permute.xlu0 %6533  ;;  %v14201_v48 = vpop.eup %9601  ;;  %9625 = vlog2.f32 %v15757_v37  ;;  %v5636_v36 = vmul.f32 %v9598_v40, %v15762_v8  ;;  %v6466_v14 = vmul.f32 0.6931472, %v9600_v47  ;;  %v15765_v47 = vld [vmem:[#allocation257_spill] sm:$0xff]  ;;  %v15773_v8 = vld [vmem:[#allocation199_spill] sm:$0xff]  ;;  %v15814_v0 = vld [vmem:[#allocation182_spill] sm:$0xff] }
 0xbd1   : > { %v6519_v60 = vpop.permute.xlu1 %6518  ;;  %15756 = vst [vmem:[#allocation210_spill] sm:$0xff] %v14201_v48  ;;  %v9604_v17 = vpop.eup %9603  ;;  %9627 = vlog2.f32 %v13959_v33  ;;  %v6620_v19 = vsel %vm633_vm0, %v6601_v24, 0.0  ;;  %v14222_v23 = vmul.f32 %v15766_v31, %v15765_v47  ;;  %v15778_v47 = vld [vmem:[#allocation11_spill] sm:$0xff] }
 0xbd2   : > { %v5812_v55 = vsel %vm633_vm0, %v5794_v5, 0.0  ;;  %v6584_v34 = vsub.f32 %v6488_v1, %v6519_v60  ;;  %v9606_v11 = vpop.eup %9605  ;;  %v5796_v59 = vmul.f32 %v5780_v44, %v5636_v36  ;;  %v6464_v60 = vmul.f32 0.6931472, %v9604_v17  ;;  %v15783_v61 = vld [vmem:[#allocation3_spill] sm:$0xff]  ;;  %v15785_v1 = vld [vmem:[#allocation152_spill] sm:$0xff] }
 0xbd3   : > { %v5813_v16 = vadd.f32 %v5812_v55, %v5811_v58  ;;  %v15760_v58 = vld [vmem:[#allocation91_spill] sm:$0xff]  ;;  %v9608_v21 = vpop.eup %9607  ;;  %9629 = vrcp.f32 %v13996_v18  ;;  %v5662_v44 = vmul.f32 0.6931472, %v9606_v11 }
 0xbd4   : > { %v6600_v49 = vmul.f32 %v6584_v34, %v6440_v35  ;;  %v5733_v25 = vpop.permute.xlu0 %5732  ;;  %v14209_v26 = vmul.f32 0.6931472, %v15760_v58  ;;  %v9610_v40 = vpop.eup %9609  ;;  %9631 = vrcp.f32 %v14006_v54  ;;  %v5660_v17 = vmul.f32 0.6931472, %v9608_v21 }
 0xbd5   : > { %v5718_v27 = vpop.permute.xlu1 %5717  ;;  %v9612_v45 = vpop.eup %9611  ;;  %9633 = vrcp.f32 %v15757_v37  ;;  %v5816_v36 = vsel %vm633_vm0, %v5796_v59, 0.0  ;;  %v15781_v59 = vld [vmem:[#allocation79_spill] sm:$0xff] }
 0xbd6   : > { %15761 = vst [vmem:[#allocation17_spill] sm:$0xff] %v14209_v26  ;;  %v6618_v32 = vsel %vm633_vm0, %v6600_v49, 0.0  ;;  %v5779_v3 = vsub.f32 %v5683_v13, %v5718_v27  ;;  %v15768_v13 = vld [vmem:[#allocation211_spill] sm:$0xff]  ;;  %v14238_v58 = vpop.eup %9613  ;;  %9635 = vrcp.f32 %v15773_v8 }
 0xbd7   : > { %v6619_v50 = vadd.f32 %v6618_v32, %v6617_v6  ;;  %v6491_v24 = vsub.f32 %v15768_v13, %v6466_v14  ;;  %15772 = vst [vmem:[#allocation237_spill] sm:$0xff] %v14238_v58  ;;  %v15774_v32 = vld [vmem:[#allocation96_spill] sm:$0xff]  ;;  %v9616_v11 = vpop.eup %9615 }
 0xbd8   : > { %v5795_v35 = vmul.f32 %v5779_v3, %v5635_v63  ;;  %v14224_v33 = vpop.permute.xlu0 %4931  ;;  %v15770_v63 = vld [vmem:[#allocation10_spill] sm:$0xff]  ;;  %v6490_v14 = vsub.f32 %v15774_v32, %v6464_v60  ;;  %v9618_v13 = vpop.eup %9617 }
 0xbd9   : > { %v14226_v6 = vpop.permute.xlu1 %4916  ;;  %v6621_v55 = vadd.f32 %v6620_v19, %v6619_v50  ;;  %v14236_v27 = vmul.f32 %v15770_v63, %v15769_v46  ;;  %v6587_v54 = vsub.f32 %v6491_v24, %v6534_v4  ;;  %v15775_v3 = vld [vmem:[#allocation90_spill] sm:$0xff]  ;;  %v15776_v50 = vld [vmem:[#allocation13_spill] sm:$0xff]  ;;  %v5686_v4 = vsub.f32 %v15781_v59, %v5662_v44  ;;  %v9620_v32 = vpop.eup %9619 }
 0xbda   : > { %v5814_v18 = vsel %vm633_vm0, %v5795_v35, 0.0  ;;  %9637 = vlog2.f32 %v15775_v3  ;;  %v14245_v37 = vmul.f32 0.6931472, %v15776_v50  ;;  %v15777_v35 = vld [vmem:[#allocation261_spill] sm:$0xff]  ;;  %v14263_v22 = vpop.eup %9621  ;;  %v6470_v48 = vmul.f32 0.6931472, %v9620_v32 }
 0xbdb   : > { %v5815_v49 = vadd.f32 %v5814_v18, %v5813_v16  ;;  %15771 = vst [vmem:[#allocation61_spill] sm:$0xff] %v14236_v27  ;;  %v14249_v31 = vmul.f32 %v15778_v47, %v15777_v35  ;;  %v15780_v18 = vld [vmem:[#allocation75_spill] sm:$0xff]  ;;  %v15782_v24 = vld [vmem:[#allocation153_spill] sm:$0xff]  ;;  %9639 = vlog2.f32 %v15783_v61 }
 0xbdc   : > { %v6544_v16 = vpop.permute.xlu0 %6543  ;;  %v6443_v46 = vmul.f32 %v9612_v45, %v15780_v18  ;;  %v6442_v60 = vmul.f32 %v9610_v40, %v15782_v24  ;;  %v15784_v50 = vld [vmem:[#allocation181_spill] sm:$0xff]  ;;  %v15787_v35 = vld [vmem:[#allocation135_spill] sm:$0xff]  ;;  %v15788_v45 = vld [vmem:[#allocation8_spill] sm:$0xff]  ;;  %v5782_v18 = vsub.f32 %v5686_v4, %v5733_v25 }
 0xbdd   : > { %v6529_v21 = vpop.permute.xlu1 %6528  ;;  %v5817_v19 = vadd.f32 %v5816_v36, %v5815_v49  ;;  %15779 = vst [vmem:[#allocation104_spill] sm:$0xff] %v14249_v31  ;;  %v14257_v43 = vmul.f32 %v15785_v1, %v15784_v50  ;;  %v15786_v49 = vld [vmem:[#allocation95_spill] sm:$0xff]  ;;  %v5685_v47 = vsub.f32 %v15787_v35, %v5660_v17  ;;  %9641 = vlog2.f32 %v15788_v45  ;;  %v15790_v1 = vld [vmem:[#allocation129_spill] sm:$0xff] }
 0xbde   : > { %v6586_v63 = vsub.f32 %v6490_v14, %v6529_v21  ;;  %v14260_v36 = vmul.f32 0.6931472, %v15786_v49  ;;  %v6603_v44 = vmul.f32 %v6587_v54, %v6443_v46  ;;  %v9624_v14 = vpop.eup %9623  ;;  %9643 = vlog2.f32 %v15773_v8  ;;  %v15789_v21 = vld [vmem:[#allocation111_spill] sm:$0xff]  ;;  %v15791_v50 = vld [vmem:[#allocation121_spill] sm:$0xff]  ;;  %v15792_v49 = vld [vmem:[#allocation230_spill] sm:$0xff] }
 0xbdf   : > { %v5638_v24 = vmul.f32 %v9616_v11, %v15790_v1  ;;  %v14272_v53 = vmul.f32 %v15792_v49, %v15791_v50  ;;  %v9626_v38 = vpop.eup %9625  ;;  %v15793_v25 = vld [vmem:[#allocation113_spill] sm:$0xff]  ;;  %9645 = vrcp.f32 %v15788_v45  ;;  %v15794_v8 = vld [vmem:[#allocation179_spill] sm:$0xff]  ;;  %v15795_v11 = vld [vmem:[#allocation168_spill] sm:$0xff]  ;;  %v6468_v34 = vmul.f32 0.6931472, %v9624_v14 }
 0xbe0   : > { %v6602_v40 = vmul.f32 %v6586_v63, %v6442_v60  ;;  %v5743_v17 = vpop.permute.xlu0 %5742  ;;  %v5637_v46 = vmul.f32 %v9618_v13, %v15793_v25  ;;  %v15796_v1 = vld [vmem:[#allocation15_spill] sm:$0xff]  ;;  %v9628_v50 = vpop.eup %9627  ;;  %v6624_v49 = vsel %vm633_vm0, %v6603_v44, 0.0  ;;  %9647 = vrcp.f32 %v15775_v3  ;;  %v15800_v44 = vld [vmem:[#allocation190_spill] sm:$0xff]  ;;  %v15812_v27 = vld [vmem:[#allocation205_spill] sm:$0xff] }
 0xbe1   : > { %v5728_v35 = vpop.permute.xlu1 %5727  ;;  %v14281_v59 = vmul.f32 %v15796_v1, %v15795_v11  ;;  %v5798_v26 = vmul.f32 %v5782_v18, %v5638_v24  ;;  %v9630_v25 = vpop.eup %9629  ;;  %9649 = vrcp.f32 %v15783_v61  ;;  %v6493_v18 = vsub.f32 %v15800_v44, %v6470_v48  ;;  %v15803_v61 = vld [vmem:[#allocation213_spill] sm:$0xff] }
 0xbe2   : > { %v6622_v54 = vsel %vm633_vm0, %v6602_v40, 0.0  ;;  %v5781_v4 = vsub.f32 %v5685_v47, %v5728_v35  ;;  %v15798_v47 = vld [vmem:[#allocation88_spill] sm:$0xff]  ;;  %v15799_v35 = vld [vmem:[#allocation34_spill] sm:$0xff]  ;;  %v5666_v24 = vmul.f32 0.6931472, %v9626_v38  ;;  %v9632_v3 = vpop.eup %9631  ;;  %v6492_v60 = vsub.f32 %v15803_v61, %v6468_v34 }
 0xbe3   : > { %v6623_v63 = vadd.f32 %v6622_v54, %v6621_v55  ;;  %v14288_v45 = vmul.f32 0.6931472, %v15798_v47  ;;  %v14293_v54 = vmul.f32 0.6931472, %v15799_v35  ;;  %v5664_v11 = vmul.f32 0.6931472, %v9628_v50 }
 0xbe4   : > { %v5797_v32 = vmul.f32 %v5781_v4, %v5637_v46  ;;  %v14285_v13 = vpop.permute.xlu0 %4941  ;;  %v15801_v46 = vld [vmem:[#allocation146_spill] sm:$0xff]  ;;  %v14300_v1 = vmul.f32 0.6931472, %v14122_v51  ;;  %v5820_v47 = vsel %vm633_vm0, %v5798_v26, 0.0  ;;  %v6589_v35 = vsub.f32 %v6493_v18, %v6544_v16  ;;  %v15804_v38 = vld [vmem:[#allocation32_spill] sm:$0xff]  ;;  %v15810_v26 = vld [vmem:[#allocation127_spill] sm:$0xff] }
 0xbe5   : > { %15797 = vst [vmem:[#allocation225_spill] sm:$0xff] %v14285_v13  ;;  %v14290_v40 = vpop.permute.xlu1 %4926  ;;  %v6625_v55 = vadd.f32 %v6624_v49, %v6623_v63  ;;  %9651 = vrcp.f32 %v15801_v46  ;;  %v9634_v63 = vpop.eup %9633  ;;  %v15802_v49 = vld [vmem:[#allocation55_spill] sm:$0xff]  ;;  %v15807_v51 = vld [vmem:[#allocation232_spill] sm:$0xff]  ;;  %v6445_v5 = vmul.f32 %v9632_v3, %v15809_v39  ;;  %v5688_v16 = vsub.f32 %v15810_v26, %v5666_v24  ;;  %v15811_v18 = vld [vmem:[#allocation66_spill] sm:$0xff] }
 0xbe6   : > { %v5818_v14 = vsel %vm633_vm0, %v5797_v32, 0.0  ;;  %9653 = vlog2.f32 %v15802_v49  ;;  %v9636_v48 = vpop.eup %9635  ;;  %v15805_v32 = vld [vmem:[#allocation116_spill] sm:$0xff]  ;;  %v6444_v34 = vmul.f32 %v9630_v25, %v15811_v18 }
 0xbe7   : > { %v5819_v4 = vadd.f32 %v5818_v14, %v5817_v19  ;;  %9655 = vlog2.f32 %v15804_v38  ;;  %v15806_v14 = vld [vmem:[#allocation183_spill] sm:$0xff]  ;;  %v9638_v30 = vpop.eup %9637  ;;  %v6605_v13 = vmul.f32 %v6589_v35, %v6445_v5  ;;  %v5784_v39 = vsub.f32 %v5688_v16, %v5743_v17  ;;  %v15817_v24 = vld [vmem:[#allocation192_spill] sm:$0xff] }
 0xbe8   : > { %v6554_v58 = vpop.permute.xlu0 %6553  ;;  %v14310_v31 = vmul.f32 %v15807_v51, %v15806_v14  ;;  %9657 = vlog2.f32 %v15812_v27  ;;  %v9640_v51 = vpop.eup %9639  ;;  %v5687_v26 = vsub.f32 %v15817_v24, %v5664_v11  ;;  %v6474_v18 = vmul.f32 0.6931472, %v9638_v30 }
 0xbe9   : > { %v6539_v19 = vpop.permute.xlu1 %6538  ;;  %v5821_v50 = vadd.f32 %v5820_v47, %v5819_v4  ;;  %v14320_v4 = vmul.f32 %v14116_v2, %v15814_v0  ;;  %v15816_v47 = vld [vmem:[#allocation134_spill] sm:$0xff]  ;;  %9659 = vlog2.f32 %v15801_v46  ;;  %v15820_v5 = vsub.f32 %v15789_v21, %v14245_v37  ;;  %v15821_v37 = vld [vmem:[#allocation105_spill] sm:$0xff] }
 0xbea   : > { %15808 = vst [vmem:[#allocation51_spill] sm:$0xff] %v14310_v31  ;;  %v6588_v61 = vsub.f32 %v6492_v60, %v6539_v19  ;;  %v4884_v14 = vsub.f32 %v15816_v47, %v14300_v1  ;;  %v9642_v25 = vpop.eup %9641  ;;  %v15818_v60 = vld [vmem:[#allocation141_spill] sm:$0xff]  ;;  %v15819_v31 = vld [vmem:[#allocation202_spill] sm:$0xff]  ;;  %9661 = vrcp.f32 %v15802_v49  ;;  %v5670_v30 = vmul.f32 0.6931472, %v9640_v51 }
 0xbeb   : > { %15815 = vst [vmem:[#allocation18_spill] sm:$0xff] %v14320_v4  ;;  %v5640_v19 = vmul.f32 %v9634_v63, %v15818_v60  ;;  %v5639_v2 = vmul.f32 %v14263_v22, %v15819_v31  ;;  %v9644_v4 = vpop.eup %9643  ;;  %v4972_v17 = vsub.f32 %v15820_v5, %v14111_v20  ;;  %9663 = vrcp.f32 %v15812_v27  ;;  %v15825_v60 = vld [vmem:[#allocation89_spill] sm:$0xff] }
 0xbec   : > { %v6604_v3 = vmul.f32 %v6588_v61, %v6444_v34  ;;  %v5753_v44 = vpop.permute.xlu0 %5752  ;;  %v14337_v63 = vmul.f32 0.6931472, %v14136_v7  ;;  %v9646_v22 = vpop.eup %9645  ;;  %v6628_v31 = vsel %vm633_vm0, %v6605_v13, 0.0  ;;  %v6472_v34 = vmul.f32 0.6931472, %v9642_v25  ;;  %v15854_v47 = vld [vmem:[#allocation61_spill] sm:$0xff] }
 0xbed   : > { %v5738_v0 = vpop.permute.xlu1 %5737  ;;  %v5800_v16 = vmul.f32 %v5784_v39, %v5640_v19  ;;  %9665 = vrcp.f32 %v15804_v38  ;;  %v6495_v20 = vsub.f32 %v15821_v37, %v6474_v18  ;;  %v4988_v7 = vmul.f32 %v4972_v17, %v14257_v43  ;;  %v15826_v19 = vld [vmem:[#allocation197_spill] sm:$0xff] }
 0xbee   : > { %v6626_v11 = vsel %vm633_vm0, %v6604_v3, 0.0  ;;  %v5783_v35 = vsub.f32 %v5687_v26, %v5738_v0  ;;  %v9648_v3 = vpop.eup %9647  ;;  %v15823_v13 = vsub.f32 %v15747_v10, %v14148_v57  ;;  %v15824_v38 = vsub.f32 %v15794_v8, %v14260_v36  ;;  %v15827_v10 = vld [vmem:[#allocation50_spill] sm:$0xff]  ;;  %v15829_v8 = vld [vmem:[#allocation28_spill] sm:$0xff] }
 0xbef   : > { %v6627_v46 = vadd.f32 %v6626_v11, %v6625_v55  ;;  %v15822_v55 = vld [vmem:[#allocation207_spill] sm:$0xff]  ;;  %v9650_v25 = vpop.eup %9649  ;;  %9667 = vrcp.f32 %v15825_v60  ;;  %v6591_v57 = vsub.f32 %v6495_v20, %v6554_v58  ;;  %v6494_v0 = vsub.f32 %v15827_v10, %v6472_v34  ;;  %v15830_v11 = vld [vmem:[#allocation68_spill] sm:$0xff] }
 0xbf0   : > { %v5799_v49 = vmul.f32 %v5783_v35, %v5639_v2  ;;  %v14342_v21 = vpop.permute.xlu0 %4951  ;;  %v5641_v51 = vmul.f32 %v9636_v48, %v15822_v55  ;;  %v4973_v39 = vsub.f32 %v15823_v13, %v14127_v42  ;;  %v4974_v24 = vsub.f32 %v15824_v38, %v14226_v6  ;;  %v15828_v6 = vld [vmem:[#allocation209_spill] sm:$0xff]  ;;  %v15835_v38 = vld [vmem:[#allocation16_spill] sm:$0xff] }
 0xbf1   : > { %v14344_v61 = vpop.permute.xlu1 %4936  ;;  %v6629_v27 = vadd.f32 %v6628_v31, %v6627_v46  ;;  %v5690_v48 = vsub.f32 %v15826_v19, %v5670_v30  ;;  %v5668_v2 = vmul.f32 0.6931472, %v9644_v4  ;;  %9669 = vlog2.f32 %v15825_v60 }
 0xbf2   : > { %v5822_v26 = vsel %vm633_vm0, %v5799_v49, 0.0  ;;  %v14359_v43 = vpop.eup %9651  ;;  %v5824_v42 = vsel %vm633_vm0, %v5800_v16, 0.0  ;;  %9671 = vlog2.f32 %v15828_v6  ;;  %v6447_v5 = vmul.f32 %v9648_v3, %v15829_v8  ;;  %v15831_v49 = vld [vmem:[#allocation98_spill] sm:$0xff] }
 0xbf3   : > { %v5823_v18 = vadd.f32 %v5822_v26, %v5821_v50  ;;  %v9654_v36 = vpop.eup %9653  ;;  %v6446_v35 = vmul.f32 %v9646_v22, %v15830_v11  ;;  %v5006_v30 = vsel %vm633_vm0, %v4988_v7, 0.0  ;;  %v4989_v31 = vmul.f32 %v4973_v39, %v14163_v62  ;;  %v15833_v22 = vld [vmem:[#allocation193_spill] sm:$0xff] }
 0xbf4   : > { %v6564_v17 = vpop.permute.xlu0 %6563  ;;  %v9656_v4 = vpop.eup %9655  ;;  %v4990_v16 = vmul.f32 %v4974_v24, %v14272_v53  ;;  %9673 = vlog2.f32 %v15831_v49  ;;  %v5007_v34 = vadd.f32 %v5006_v30, %v14141_v15  ;;  %v15832_v37 = vsub.f32 %v15748_v41, %v14156_v28  ;;  %v15836_v24 = vld [vmem:[#allocation94_spill] sm:$0xff] }
 0xbf5   : > { %v6549_v46 = vpop.permute.xlu1 %6548  ;;  %v5825_v50 = vadd.f32 %v5824_v42, %v5823_v18  ;;  %v5689_v55 = vsub.f32 %v15833_v22, %v5668_v2  ;;  %v9658_v3 = vpop.eup %9657  ;;  %v15834_v7 = vsub.f32 %v15805_v32, %v14288_v45  ;;  %v6607_v13 = vmul.f32 %v6591_v57, %v6447_v5  ;;  %v15839_v30 = vld [vmem:[#allocation154_spill] sm:$0xff] }
 0xbf6   : > { %v6590_v58 = vsub.f32 %v6494_v0, %v6549_v46  ;;  %v4975_v20 = vsub.f32 %v15832_v37, %v14172_v52  ;;  %v5786_v53 = vsub.f32 %v5690_v48, %v5753_v44  ;;  %9675 = vlog2.f32 %v15835_v38  ;;  %v9660_v28 = vpop.eup %9659 }
 0xbf7   : > { %v4976_v62 = vsub.f32 %v15834_v7, %v14290_v40  ;;  %v5642_v15 = vmul.f32 %v9650_v25, %v15836_v24  ;;  %v6478_v26 = vmul.f32 0.6931472, %v9656_v4  ;;  %v5674_v60 = vmul.f32 0.6931472, %v9654_v36  ;;  %v9662_v45 = vpop.eup %9661 }
 0xbf8   : > { %v6606_v39 = vmul.f32 %v6590_v58, %v6446_v35  ;;  %v5008_v41 = vsel %vm633_vm0, %v4989_v31, 0.0  ;;  %v5010_v52 = vsel %vm633_vm0, %v4990_v16, 0.0  ;;  %v4991_v32 = vmul.f32 %v4975_v20, %v14198_v29  ;;  %v5763_v48 = vpop.permute.xlu0 %5762  ;;  %v9664_v57 = vpop.eup %9663 }
 0xbf9   : > { %v5748_v19 = vpop.permute.xlu1 %5747  ;;  %v5009_v40 = vadd.f32 %v5008_v41, %v5007_v34  ;;  %v6476_v42 = vmul.f32 0.6931472, %v9658_v3  ;;  %v4992_v25 = vmul.f32 %v4976_v62, %v14281_v59  ;;  %v6632_v10 = vsel %vm633_vm0, %v6607_v13, 0.0  ;;  %v15841_v34 = vld [vmem:[#allocation63_spill] sm:$0xff] }
 0xbfa   : > { %v6630_v18 = vsel %vm633_vm0, %v6606_v39, 0.0  ;;  %v5785_v2 = vsub.f32 %v5689_v55, %v5748_v19  ;;  %v5802_v0 = vmul.f32 %v5786_v53, %v5642_v15  ;;  %9677 = vrcp.f32 %v15828_v6  ;;  %v9666_v46 = vpop.eup %9665  ;;  %v15840_v6 = vld [vmem:[#allocation132_spill] sm:$0xff]  ;;  %v15843_v13 = vld [vmem:[#allocation51_spill] sm:$0xff]  ;;  %v15844_v39 = vld [vmem:[#allocation70_spill] sm:$0xff] }
 0xbfb   : > { %v6631_v44 = vadd.f32 %v6630_v18, %v6629_v27  ;;  %v5011_v8 = vadd.f32 %v5010_v52, %v5009_v40  ;;  %v5672_v35 = vmul.f32 0.6931472, %v9660_v28  ;;  %v15837_v29 = vsub.f32 %v15759_v12, %v14176_v9  ;;  %v15850_v52 = vld [vmem:[#allocation188_spill] sm:$0xff] }
 0xbfc   : > { %v5801_v36 = vmul.f32 %v5785_v2, %v5641_v51  ;;  %v15838_v59 = vsub.f32 %v15813_v56, %v14293_v54  ;;  %v6497_v31 = vsub.f32 %v15839_v30, %v6478_v26  ;;  %9679 = vrcp.f32 %v15831_v49  ;;  %v14403_v20 = vpop.eup %9667  ;;  %v14409_v22 = vpop.permute.xlu0 %4961  ;;  %v15842_v49 = vld [vmem:[#allocation144_spill] sm:$0xff]  ;;  %v15845_v26 = vld [vmem:[#allocation203_spill] sm:$0xff] }
 0xbfd   : > { %v4947_v5 = vpop.permute.xlu1 %4946  ;;  %v6633_v11 = vadd.f32 %v6632_v10, %v6631_v44  ;;  %v4977_v27 = vsub.f32 %v15837_v29, %v14224_v33  ;;  %v5692_v16 = vsub.f32 %v15840_v6, %v5674_v60  ;;  %v6496_v37 = vsub.f32 %v15841_v34, %v6476_v42  ;;  %v15847_v60 = vld [vmem:[#allocation246_spill] sm:$0xff]  ;;  %v15852_v10 = vld [vmem:[#allocation145_spill] sm:$0xff] }
 0xbfe   : > { %v4978_v4 = vsub.f32 %v15838_v59, %v14344_v61  ;;  %v5826_v51 = vsel %vm633_vm0, %v5801_v36, 0.0  ;;  %v5012_v9 = vsel %vm633_vm0, %v4991_v32, 0.0  ;;  %v5014_v12 = vsel %vm633_vm0, %v4992_v25, 0.0  ;;  %v9670_v54 = vpop.eup %9669  ;;  %v15851_v42 = vld [vmem:[#allocation150_spill] sm:$0xff] }
 0xbff   : > { %v5827_v58 = vadd.f32 %v5826_v51, %v5825_v50  ;;  %v5828_v56 = vsel %vm633_vm0, %v5802_v0, 0.0  ;;  %v6593_v33 = vsub.f32 %v6497_v31, %v6564_v17  ;;  %9681 = vrcp.f32 %v15835_v38  ;;  %v9672_v7 = vpop.eup %9671  ;;  %v15846_v17 = vld [vmem:[#allocation225_spill] sm:$0xff]  ;;  %v15848_v38 = vld [vmem:[#allocation102_spill] sm:$0xff] }
 0xc00   : > { %v5013_v61 = vadd.f32 %v5012_v9, %v5011_v8  ;;  %v6448_v55 = vmul.f32 %v9664_v57, %v15842_v49  ;;  %v4993_v62 = vmul.f32 %v4977_v27, %v14222_v23  ;;  %v4994_v53 = vmul.f32 %v4978_v4, %v15843_v13  ;;  %v15853_v8 = vld [vmem:[#allocation115_spill] sm:$0xff]  ;;  %v15855_v31 = vld [vmem:[#allocation18_spill] sm:$0xff] }
 0xc01   : > { %v6559_v50 = vpop.permute.xlu1 %6558  ;;  %v5829_v3 = vadd.f32 %v5828_v56, %v5827_v58  ;;  %v6449_v24 = vmul.f32 %v9666_v46, %v15844_v39  ;;  %9683 = vlog2.f32 %v15845_v26  ;;  %v15849_v19 = vsub.f32 %v15847_v60, %v15848_v38  ;;  %v9674_v2 = vpop.eup %9673  ;;  %v15858_v56 = vld [vmem:[#allocation26_spill] sm:$0xff]  ;;  %v15863_v38 = vld [vmem:[#allocation80_spill] sm:$0xff] }
 0xc02   : > { %v6592_v15 = vsub.f32 %v6496_v37, %v6559_v50  ;;  %v5015_v41 = vadd.f32 %v5014_v12, %v5013_v61  ;;  %v5691_v18 = vsub.f32 %v15850_v52, %v5672_v35  ;;  %v5788_v32 = vsub.f32 %v5692_v16, %v5763_v48  ;;  %v15856_v16 = vld [vmem:[#allocation191_spill] sm:$0xff]  ;;  %v15857_v12 = vld [vmem:[#allocation250_spill] sm:$0xff]  ;;  %v15860_v50 = vld [vmem:[#allocation117_spill] sm:$0xff] }
 0xc03   : > { %v4979_v28 = vsub.f32 %v15849_v19, %v15846_v17  ;;  %v6609_v40 = vmul.f32 %v6593_v33, %v6449_v24  ;;  %v4980_v23 = vsub.f32 %v4884_v14, %v4947_v5  ;;  %v5644_v57 = vmul.f32 %v9662_v45, %v15851_v42  ;;  %v9676_v29 = vpop.eup %9675  ;;  %v6574_v45 = vpop.permute.xlu0 %6573  ;;  %v15862_v13 = vld [vmem:[#allocation142_spill] sm:$0xff] }
 0xc04   : > { %v6608_v44 = vmul.f32 %v6592_v15, %v6448_v55  ;;  %v6482_v25 = vmul.f32 0.6931472, %v9670_v54  ;;  %v5643_v0 = vmul.f32 %v14359_v43, %v15852_v10  ;;  %v4886_v46 = vsub.f32 %v15853_v8, %v14337_v63  ;;  %v15867_v10 = vld [vmem:[#allocation194_spill] sm:$0xff] }
 0xc05   : > { %v5758_v36 = vpop.permute.xlu1 %5757  ;;  %v5016_v35 = vsel %vm633_vm0, %v4993_v62, 0.0  ;;  %v5018_v48 = vsel %vm633_vm0, %v4994_v53, 0.0  ;;  %v4995_v14 = vmul.f32 %v4979_v28, %v15854_v47  ;;  %v6480_v4 = vmul.f32 0.6931472, %v9672_v7  ;;  %v15861_v7 = vld [vmem:[#allocation235_spill] sm:$0xff] }
 0xc06   : > { %v6634_v27 = vsel %vm633_vm0, %v6608_v44, 0.0  ;;  %v5787_v1 = vsub.f32 %v5691_v18, %v5758_v36  ;;  %v5017_v5 = vadd.f32 %v5016_v35, %v5015_v41  ;;  %v6636_v43 = vsel %vm633_vm0, %v6609_v40, 0.0  ;;  %v15868_v36 = vld [vmem:[#allocation237_spill] sm:$0xff] }
 0xc07   : > { %v6635_v59 = vadd.f32 %v6634_v27, %v6633_v11  ;;  %v5804_v30 = vmul.f32 %v5788_v32, %v5644_v57  ;;  %v4996_v51 = vmul.f32 %v4980_v23, %v15855_v31  ;;  %9685 = vrcp.f32 %v15845_v26  ;;  %v9678_v9 = vpop.eup %9677  ;;  %v5773_v28 = vpop.permute.xlu0 %5772  ;;  %v15865_v32 = vld [vmem:[#allocation104_spill] sm:$0xff]  ;;  %v15866_v23 = vld [vmem:[#allocation81_spill] sm:$0xff] }
 0xc08   : > { %v5803_v63 = vmul.f32 %v5787_v1, %v5643_v0  ;;  %v5019_v6 = vadd.f32 %v5018_v48, %v5017_v5  ;;  %v6499_v58 = vsub.f32 %v15856_v16, %v6482_v25  ;;  %v15859_v33 = vsub.f32 %v15857_v12, %v15858_v56  ;;  %v15873_v5 = vld [vmem:[#allocation228_spill] sm:$0xff] }
 0xc09   : > { %v4957_v34 = vpop.permute.xlu1 %4956  ;;  %v6637_v37 = vadd.f32 %v6636_v43, %v6635_v59  ;;  %v5678_v54 = vmul.f32 0.6931472, %v9676_v29  ;;  %v4838_v62 = vmul.f32 %v15861_v7, %v15860_v50  ;;  %v6498_v53 = vsub.f32 %v15862_v13, %v6480_v4  ;;  %v9680_v24 = vpop.eup %9679  ;;  %v15870_v29 = vld [vmem:[#allocation17_spill] sm:$0xff]  ;;  %v15875_v43 = vld [vmem:[#allocation83_spill] sm:$0xff]  ;;  %v15878_v13 = vld [vmem:[#allocation210_spill] sm:$0xff] }
 0xc0a   : > { %v4981_v11 = vsub.f32 %v15859_v33, %v14342_v21  ;;  %v5830_v61 = vsel %vm633_vm0, %v5803_v63, 0.0  ;;  %v4982_v49 = vsub.f32 %v4886_v46, %v4957_v34  ;;  %v5676_v39 = vmul.f32 0.6931472, %v9674_v2  ;;  %v15874_v59 = vld [vmem:[#allocation5_spill] sm:$0xff]  ;;  %v15876_v34 = vld [vmem:[#allocation59_spill] sm:$0xff] }
 0xc0b   : > { %v5831_v55 = vadd.f32 %v5830_v61, %v5829_v3  ;;  %v5020_v15 = vsel %vm633_vm0, %v4995_v14, 0.0  ;;  %v5832_v26 = vsel %vm633_vm0, %v5804_v30, 0.0  ;;  %v5022_v17 = vsel %vm633_vm0, %v4996_v51, 0.0  ;;  %v15864_v3 = vld [vmem:[#allocation196_spill] sm:$0xff] }
 0xc0c   : > { %v6595_v60 = vsub.f32 %v6499_v58, %v6574_v45  ;;  %v5021_v21 = vadd.f32 %v5020_v15, %v5019_v6  ;;  %v6451_v19 = vmul.f32 %v14403_v20, %v15863_v38  ;;  %v6450_v41 = vmul.f32 %v9678_v9, %v15864_v3  ;;  %v9682_v40 = vpop.eup %9681  ;;  %v15869_v20 = vld [vmem:[#allocation254_spill] sm:$0xff]  ;;  %v15872_v14 = vld [vmem:[#allocation264_spill] sm:$0xff] }
 0xc0d   : > { %v6569_v52 = vpop.permute.xlu1 %6568  ;;  %v5833_v18 = vadd.f32 %v5832_v26, %v5831_v55  ;;  %v4997_v2 = vmul.f32 %v4981_v11, %v15865_v32  ;;  %v5694_v44 = vsub.f32 %v15866_v23, %v5678_v54  ;;  %v4998_v42 = vmul.f32 %v4982_v49, %v4838_v62  ;;  %v15877_v62 = vld [vmem:[#allocation123_spill] sm:$0xff]  ;;  %v15880_v3 = vld [vmem:[#allocation222_spill] sm:$0xff] }
 0xc0e   : > { %v6594_v57 = vsub.f32 %v6498_v53, %v6569_v52  ;;  %v5023_v25 = vadd.f32 %v5022_v17, %v5021_v21  ;;  %v5693_v0 = vsub.f32 %v15867_v10, %v5676_v39  ;;  %v4872_v8 = vmul.f32 0.6931472, %v15868_v36  ;;  %v9684_v46 = vpop.eup %9683  ;;  %v15879_v17 = vld [vmem:[#allocation140_spill] sm:$0xff] }
 0xc0f   : > { %v15871_v35 = vsub.f32 %v15869_v20, %v15870_v29  ;;  %v6611_v27 = vmul.f32 %v6595_v60, %v6451_v19  ;;  %v5790_v1 = vsub.f32 %v5694_v44, %v5773_v28  ;;  %v4839_v45 = vmul.f32 %v15873_v5, %v15872_v14 }
 0xc10   : > { %v6610_v47 = vmul.f32 %v6594_v57, %v6450_v41  ;;  %v5646_v4 = vmul.f32 %v9682_v40, %v15874_v59  ;;  %v5645_v30 = vmul.f32 %v9680_v24, %v15875_v43  ;;  %v5024_v51 = vsel %vm633_vm0, %v4997_v2, 0.0 }
 0xc11   : > { %v4983_v48 = vsub.f32 %v15871_v35, %v14409_v22  ;;  %v5768_v31 = vpop.permute.xlu1 %5767  ;;  %v5026_v63 = vsel %vm633_vm0, %v4998_v42, 0.0  ;;  %v5025_v58 = vadd.f32 %v5024_v51, %v5023_v25  ;;  %v4888_v9 = vsub.f32 %v15876_v34, %v4872_v8 }
 0xc12   : > { %v6638_v6 = vsel %vm633_vm0, %v6610_v47, 0.0  ;;  %v5789_v16 = vsub.f32 %v5693_v0, %v5768_v31  ;;  %v6484_v12 = vmul.f32 0.6931472, %v9684_v46  ;;  %v6640_v33 = vsel %vm633_vm0, %v6611_v27, 0.0 }
 0xc13   : > { %v6639_v22 = vadd.f32 %v6638_v6, %v6637_v37  ;;  %v4999_v56 = vmul.f32 %v4983_v48, %v4839_v45  ;;  %v5806_v11 = vmul.f32 %v5790_v1, %v5646_v4  ;;  %v5027_v61 = vadd.f32 %v5026_v63, %v5025_v58 }
 0xc14   : > { %v5805_v54 = vmul.f32 %v5789_v16, %v5645_v30  ;;  %v9686_v50 = vpop.eup %9685  ;;  %v4840_v53 = vmul.f32 %v15878_v13, %v15877_v62  ;;  %v6500_v60 = vsub.f32 %v15879_v17, %v6484_v12 }
 0xc15   : > { %v4967_v49 = vpop.permute.xlu1 %4966  ;;  %v6641_v55 = vadd.f32 %v6640_v33, %v6639_v22  ;;  %v5028_v37 = vsel %vm633_vm0, %v4999_v56, 0.0  ;;  %v5836_v15 = vsel %vm633_vm0, %v5806_v11, 0.0  ;;  %v6452_v41 = vmul.f32 %v9686_v50, %v15880_v3 }
 0xc16   : > { %v5834_v7 = vsel %vm633_vm0, %v5805_v54, 0.0  ;;  %v4984_v39 = vsub.f32 %v4888_v9, %v4967_v49  ;;  %v5029_v38 = vadd.f32 %v5028_v37, %v5027_v61 }
 0xc17   : > { %v5835_v24 = vadd.f32 %v5834_v7, %v5833_v18 }
 0xc18   : > { %v5000_v26 = vmul.f32 %v4984_v39, %v4840_v53 }
 0xc19   : > { %v5837_v21 = vadd.f32 %v5836_v15, %v5835_v24  ;;  %v6579_v19 = vpop.permute.xlu1 %6578 }
 0xc1a   : > { %v5030_v28 = vsel %vm633_vm0, %v5000_v26, 0.0  ;;  %v6596_v52 = vsub.f32 %v6500_v60, %v6579_v19 }
 0xc1b   : > { %v5838_v40 = vrot.slane %v5837_v21, 4  ;;  %v5031_v32 = vadd.f32 %v5030_v28, %v5029_v38 }
 0xc1c   : > { %v6612_v2 = vmul.f32 %v6596_v52, %v6452_v41 }
 0xc1d   : > { %v5032_v23 = vrot.slane %v5031_v32, 4  ;;  %v5839_v18 = vadd.f32 %v5838_v40, %v5837_v21 }
 0xc1e   : > { %v6642_v44 = vsel %vm633_vm0, %v6612_v2, 0.0 }
 0xc1f   : > { %v5033_v42 = vadd.f32 %v5032_v23, %v5031_v32  ;;  %v6643_v57 = vadd.f32 %v6642_v44, %v6641_v55  ;;  %v5840_v25 = vrot.slane %v5839_v18, 2 }
 0xc21   : > { %v6644_v10 = vrot.slane %v6643_v57, 4  ;;  %v5841_v0 = vadd.f32 %v5840_v25, %v5839_v18  ;;  %v5034_v36 = vrot.slane %v5033_v42, 2 }
 0xc23   : > { %v6645_v8 = vadd.f32 %v6644_v10, %v6643_v57  ;;  %v5842_v46 = vrot.slane %v5841_v0, 1  ;;  %v5035_v20 = vadd.f32 %v5034_v36, %v5033_v42 }
 0xc25   : > { %v5843_v29 = vadd.f32 %v5842_v46, %v5841_v0  ;;  %v5036_v35 = vrot.slane %v5035_v20, 1  ;;  %v6646_v48 = vrot.slane %v6645_v8, 2 }
 0xc27   : > { %v5844_v27 = vsub.f32 0.0, %v5843_v29  ;;  %v5037_v1 = vadd.f32 %v5036_v35, %v5035_v20  ;;  %v6647_v47 = vadd.f32 %v6646_v48, %v6645_v8 }
 0xc29   : > { %v5845_v14 = vsel %vm633_vm0, %v5844_v27, -inf  ;;  %v5038_v5 = vsub.f32 0.0, %v5037_v1  ;;  %v6648_v45 = vrot.slane %v6647_v47, 1 }
 0xc2a   : > { %5846 = vmax.xlane.f32.xlu1 %v5845_v14 }
 0xc2b   : > { %v5039_v59 = vsel %vm633_vm0, %v5038_v5, -inf  ;;  %v6649_v4 = vadd.f32 %v6648_v45, %v6647_v47 }
 0xc2c   : > { %5040 = vmax.xlane.f32.xlu0 %v5039_v59 }
 0xc2d   : > { %v6650_v43 = vsub.f32 0.0, %v6649_v4 }
 0xc2f   : > { %v6651_v30 = vsel %vm633_vm0, %v6650_v43, -inf }
 0xc30   : > { %6652 = vmax.xlane.f32.xlu0 %v6651_v30 }
 0xcb3   : > { %v5847_v31 = vpop.xlane.xlu1 %5846 }
 0xcb4   : > { %v5848_v51 = vsub.f32 %v5844_v27, %v5847_v31 }
 0xcb5   : > { %v5041_v63 = vpop.xlane.xlu0 %5040 }
 0xcb6   : > { %v5849_v6 = vmul.f32 1.442695, %v5848_v51  ;;  %v5042_v16 = vsub.f32 %v5038_v5, %v5041_v63 }
 0xcb8   : > { %9687 = vpow2.f32 %v5849_v6  ;;  %v5043_v58 = vmul.f32 1.442695, %v5042_v16 }
 0xcb9   : > { %v6653_v22 = vpop.xlane.xlu0 %6652 }
 0xcba   : > { %9689 = vpow2.f32 %v5043_v58  ;;  %v6654_v34 = vsub.f32 %v6650_v43, %v6653_v22 }
 0xcbc   : > { %v6655_v9 = vmul.f32 1.442695, %v6654_v34 }
 0xcbe   : > { %9691 = vpow2.f32 %v6655_v9 }
 0xcc5   : > { %v9688_v12 = vpop.eup %9687 }
 0xcc6   : > { %v5851_v56 = vsel %vm633_vm0, %v9688_v12, 0.0 }
 0xcc7   : > { %v9690_v33 = vpop.eup %9689  ;;  %5852 = vadd.xlane.f32.xlu1 %v5851_v56 }
 0xcc8   : > { %v5045_v11 = vsel %vm633_vm0, %v9690_v33, 0.0 }
 0xcc9   : > { %5046 = vadd.xlane.f32.xlu0 %v5045_v11 }
 0xccb   : > { %v9692_v54 = vpop.eup %9691 }
 0xccc   : > { %v6657_v61 = vsel %vm633_vm0, %v9692_v54, 0.0 }
 0xccd   : > { %6658 = vadd.xlane.f32.xlu0 %v6657_v61 }
 0xd50   : > { %v5853_v49 = vpop.xlane.xlu1 %5852 }
 0xd51   : > { %9693 = vrcp.f32 %v5853_v49 }
 0xd52   : > { %v5047_v55 = vpop.xlane.xlu0 %5046 }
 0xd53   : > { %9695 = vrcp.f32 %v5047_v55 }
 0xd56   : > { %v6659_v50 = vpop.xlane.xlu0 %6658 }
 0xd57   : > { %9697 = vrcp.f32 %v6659_v50 }
 0xd5e   : > { %v9694_v7 = vpop.eup %9693 }
 0xd5f   : > { %v5855_v62 = vmul.f32 %v9694_v7, %v9688_v12 }
 0xd60   : > { %v9696_v13 = vpop.eup %9695 }
 0xd61   : > { %5856 = vst.msk [vmem:[%s13268_s19 + $0x6] sm:$0x1] %vm1019_vm1, %v5855_v62  ;;  %v5049_v53 = vmul.f32 %v9696_v13, %v9690_v33 }
 0xd63   : > { %5050 = vst.msk [vmem:[%s13268_s19 + $0x5] sm:$0x1] %vm1019_vm1, %v5049_v53 }
 0xd64   : > { %v9698_v39 = vpop.eup %9697 }
 0xd65   : > { %v6661_v24 = vmul.f32 %v9698_v39, %v9692_v54 }
 0xd67   : > { %6662 = vst.msk [vmem:[%s13268_s19 + $0x7] sm:$0x1] %vm1019_vm1, %v6661_v24 }
 0xd68 PF: > { %s13_s12 = sadd.s32 1, %s9769_s12  }
 0xd69   : > { %p10_p5 = scmp.ge.s32.totalorder %s13_s12, 4  }
 0xd6b   :  { %12 = sbr.rel (!%p10_p5) target bundleno = 1 (0x1), region = 79 }

</bundles_post_ra>
